<compile_context>
chip_gen: v7x
topology: tpu7x:2x2x1
jax: 0.10.0
libtpu: 0.0.40
codegen_flags: <defaults>
</compile_context>

<pallas_src>
import math
from functools import partial

import jax
import jax.numpy as jnp
from jax.experimental import pallas as pl
from jax.experimental.pallas import tpu as pltpu


# ----------------------------- helpers ----------------------------- #

def _round_up(v, m):
    return ((v + m - 1) // m) * m


def _pad_to(a, shape):
    """Zero-pad `a` up to `shape`; no-op (no copy emitted) if already that shape."""
    if tuple(a.shape) == tuple(shape):
        return a
    return jnp.pad(a, [(0, t - s) for s, t in zip(a.shape, shape)])


def _pick_tm(m, cap):
    """Fewest M grid steps of size <= cap, rounded to 16 (packed bf16 sublanes)."""
    if m <= cap:
        return _round_up(m, 16)
    n_steps = -(-m // cap)
    return _round_up(-(-m // n_steps), 16)


# ----------------------------- Pallas matmul kernels ----------------------------- #

def _mm_bias_act_kernel(x_ref, w_ref, b_ref, o_ref, *, apply_relu):
    """Single-K-step matmul: y = relu(x @ w + b). bf16 inputs, f32 accumulate."""
    r = jnp.dot(x_ref[...], w_ref[...], preferred_element_type=jnp.float32)
    r = r + b_ref[...]
    if apply_relu:
        r = jnp.maximum(r, 0.0)
    o_ref[...] = r.astype(o_ref.dtype)


def _mm_bias_act_acc_kernel(x_ref, w_ref, b_ref, o_ref, acc_ref, *, apply_relu):
    """K-tiled matmul with f32 VMEM accumulator; bias/ReLU fused on last K step."""
    @pl.when(pl.program_id(2) == 0)
    def _():
        acc_ref[...] = jnp.zeros_like(acc_ref)

    acc_ref[...] += jnp.dot(x_ref[...], w_ref[...],
                            preferred_element_type=jnp.float32)

    @pl.when(pl.program_id(2) == pl.num_programs(2) - 1)
    def _():
        r = acc_ref[...] + b_ref[...]
        if apply_relu:
            r = jnp.maximum(r, 0.0)
        o_ref[...] = r.astype(o_ref.dtype)


def pallas_linear(x, w, b, *, relu, out_dtype=jnp.float32, max_tk=2048):
    """y = act(x @ w + b).  x:(M,K), w:(K,N), b:(N,). bf16 MXU inputs, f32 acc."""
    M, K = x.shape
    K2, N = w.shape
    assert K == K2

    # Lane-dense output tiles; 256-wide when the layer has >=256 outputs (conv4)
    # to match the 256-wide MXU on v6e/v7x.
    tn = 256 if _round_up(N, 128) >= 256 else 128
    Np = _round_up(N, tn)

    # Big M tiles amortize per-grid-step overhead; cap at 256 when tn=256 so the
    # grid keeps >=2 parallel M steps for v7x megacore.
    cap = 256 if tn == 256 else 512
    tm = _pick_tm(M, cap)
    Mp = _round_up(M, tm)

    Kp = _round_up(K, 16)                 # bf16 sublane alignment (9 -> 16 for conv1)
    if Kp <= max_tk:
        tk = Kp                           # full-K block: single step, no accumulator
    else:
        tk = max_tk
        Kp = _round_up(K, tk)

    xp = _pad_to(x.astype(jnp.bfloat16), (Mp, Kp))
    wp = _pad_to(w.astype(jnp.bfloat16), (Kp, Np))
    bp = _pad_to(b.astype(jnp.float32).reshape(1, N), (1, Np))

    k_steps = Kp // tk
    if k_steps == 1:
        out = pl.pallas_call(
            partial(_mm_bias_act_kernel, apply_relu=relu),
            out_shape=jax.ShapeDtypeStruct((Mp, Np), out_dtype),
            grid_spec=pltpu.PrefetchScalarGridSpec(
                num_scalar_prefetch=0,
                grid=(Mp // tm, Np // tn),
                in_specs=[
                    pl.BlockSpec((tm, tk), lambda i, j: (i, 0)),
                    pl.BlockSpec((tk, tn), lambda i, j: (0, j)),
                    pl.BlockSpec((1, tn), lambda i, j: (0, j)),
                ],
                out_specs=pl.BlockSpec((tm, tn), lambda i, j: (i, j)),
            ),
            compiler_params=pltpu.CompilerParams(
                dimension_semantics=("parallel", "parallel")),
        )(xp, wp, bp)
    else:
        out = pl.pallas_call(
            partial(_mm_bias_act_acc_kernel, apply_relu=relu),
            out_shape=jax.ShapeDtypeStruct((Mp, Np), out_dtype),
            grid_spec=pltpu.PrefetchScalarGridSpec(
                num_scalar_prefetch=0,
                grid=(Mp // tm, Np // tn, k_steps),
                in_specs=[
                    pl.BlockSpec((tm, tk), lambda i, j, k: (i, k)),
                    pl.BlockSpec((tk, tn), lambda i, j, k: (k, j)),
                    pl.BlockSpec((1, tn), lambda i, j, k: (0, j)),
                ],
                out_specs=pl.BlockSpec((tm, tn), lambda i, j, k: (i, j)),
                scratch_shapes=[pltpu.VMEM((tm, tn), jnp.float32)],
            ),
            compiler_params=pltpu.CompilerParams(
                dimension_semantics=("parallel", "parallel", "arbitrary")),
        )(xp, wp, bp)

    if (Mp, Np) != (M, N):
        out = out[:M, :N]
    return out


# ----------------------------- Fused fc1 + ReLU + fc2 kernel ----------------------------- #

def _fc_head_kernel(x_ref, w1_ref, b1_ref, w2_ref, b2_ref, o_ref, acc_ref):
    """acc += x @ w1 over K steps; epilogue: relu(acc + b1) @ w2 + b2."""
    k = pl.program_id(0)

    @pl.when(k == 0)
    def _():
        acc_ref[...] = jnp.zeros_like(acc_ref)

    acc_ref[...] += jnp.dot(x_ref[...], w1_ref[...],
                            preferred_element_type=jnp.float32)

    @pl.when(k == pl.num_programs(0) - 1)
    def _():
        h = jnp.maximum(acc_ref[...] + b1_ref[...], 0.0)          # fc1 + ReLU (f32)
        y = jnp.dot(h.astype(jnp.bfloat16), w2_ref[...],
                    preferred_element_type=jnp.float32) + b2_ref[...]
        o_ref[...] = y.astype(o_ref.dtype)


def pallas_fc_head(x, w1, b1, w2, b2, *, max_tk=8192):
    """y = relu(x @ w1 + b1) @ w2 + b2 in a single Pallas kernel. Output f32."""
    M, K = x.shape
    K1, H = w1.shape
    H2, C = w2.shape
    assert K == K1 and H == H2

    Mp = _round_up(M, 16)                  # packed bf16 vregs on the x operand
    Hp = _round_up(H, 128)
    Cp = _round_up(C, 128)
    tk = min(max_tk, _round_up(K, 16))
    Kp = _round_up(K, tk)
    k_steps = Kp // tk

    xp = _pad_to(x.astype(jnp.bfloat16), (Mp, Kp))
    w1p = _pad_to(w1.astype(jnp.bfloat16), (Kp, Hp))
    b1p = _pad_to(b1.astype(jnp.float32).reshape(1, H), (1, Hp))
    w2p = _pad_to(w2.astype(jnp.bfloat16), (Hp, Cp))
    b2p = _pad_to(b2.astype(jnp.float32).reshape(1, C), (1, Cp))

    out = pl.pallas_call(
        _fc_head_kernel,
        out_shape=jax.ShapeDtypeStruct((Mp, Cp), jnp.float32),
        grid_spec=pltpu.PrefetchScalarGridSpec(
            num_scalar_prefetch=0,
            grid=(k_steps,),
            in_specs=[
                pl.BlockSpec((Mp, tk), lambda k: (0, k)),
                pl.BlockSpec((tk, Hp), lambda k: (k, 0)),
                pl.BlockSpec((1, Hp), lambda k: (0, 0)),
                pl.BlockSpec((Hp, Cp), lambda k: (0, 0)),
                pl.BlockSpec((1, Cp), lambda k: (0, 0)),
            ],
            out_specs=pl.BlockSpec((Mp, Cp), lambda k: (0, 0)),
            scratch_shapes=[pltpu.VMEM((Mp, Hp), jnp.float32)],
        ),
        compiler_params=pltpu.CompilerParams(
            dimension_semantics=("arbitrary",)),
    )(xp, w1p, b1p, w2p, b2p)

    if (Mp, Cp) != (M, C):
        out = out[:M, :C]
    return out


# ----------------------------- Conv / pool glue ----------------------------- #

def conv2d_3x3_relu(x_nhwc, w_mat, b, *, relu=True):
    """3x3 valid conv, stride 1, via lane-dense channel-concat im2col + Pallas matmul.
    x: (N,H,W,Cin); w_mat: (9*Cin, Cout), rows ordered tap-major / Cin-minor,
    i.e. K index = (3*dy+dx)*Cin + cin (matching the concat below)."""
    N, H, W, Cin = x_nhwc.shape
    Cout = w_mat.shape[1]
    Ho, Wo = H - 2, W - 2
    xb = x_nhwc.astype(jnp.bfloat16)
    # TODO(synk): fuse this im2col into the matmul kernel (shifted-window 9-tap
    # reduction) to avoid the patch-matrix HBM round trip entirely.
    patches = jnp.concatenate(
        [xb[:, dy:dy + Ho, dx:dx + Wo, :] for dy in range(3) for dx in range(3)],
        axis=-1)                                       # (N, Ho, Wo, 9*Cin), lane-dense
    patches = patches.reshape(N * Ho * Wo, 9 * Cin)
    y = pallas_linear(patches, w_mat, b, relu=relu, out_dtype=jnp.bfloat16)
    return y.reshape(N, Ho, Wo, Cout)


def max_pool_2x2(x_nhwc):
    N, H, W, C = x_nhwc.shape
    x = x_nhwc[:, : (H // 2) * 2, : (W // 2) * 2, :]
    x = x.reshape(N, H // 2, 2, W // 2, 2, C)
    return x.max(axis=(2, 4))


def adaptive_avg_pool(x_nhwc, out_h, out_w):
    """nn.AdaptiveAvgPool2d semantics with fast paths (identity / even-bin mean)."""
    N, H, W, C = x_nhwc.shape
    if (H, W) == (out_h, out_w):
        return x_nhwc                                   # already the target size
    if H % out_h == 0 and W % out_w == 0:
        return x_nhwc.reshape(N, out_h, H // out_h, out_w, W // out_w, C).mean(axis=(2, 4))
    # General exact-bin fallback (not hit for the 44x44 input).
    rows = []
    for i in range(out_h):
        h0 = (i * H) // out_h
        h1 = ((i + 1) * H + out_h - 1) // out_h
        cols = []
        for j in range(out_w):
            w0 = (j * W) // out_w
            w1 = ((j + 1) * W + out_w - 1) // out_w
            cols.append(jnp.mean(x_nhwc[:, h0:h1, w0:w1, :], axis=(1, 2)))
        rows.append(jnp.stack(cols, axis=1))
    return jnp.stack(rows, axis=1)


# ----------------------------- Model ----------------------------- #

def init_params(key, n_classes, pooled_hw=8, conv4_out=256):
    """Weights stored pre-transposed / pre-permuted / pre-cast for the kernels:
    conv: (9*Cin, Cout) bf16 (tap-major, Cin-minor rows), bias f32.
    fc1:  (16384, 128) bf16 with rows permuted from NCHW-flatten to NHWC-flatten order.
    fc2:  (128, n_classes) bf16, bias f32."""
    def conv_init(k, cout, cin):
        k1, k2 = jax.random.split(k)
        fan_in = cin * 9
        w = jax.random.normal(k1, (cout, cin, 3, 3), jnp.float32) * math.sqrt(2.0 / fan_in)
        b = jax.random.normal(k2, (cout,), jnp.float32) * 0.01
        # (Cout,Cin,kh,kw) -> (kh,kw,Cin,Cout) -> (9*Cin, Cout): row = tap*Cin + cin
        w_mat = jnp.transpose(w, (2, 3, 1, 0)).reshape(9 * cin, cout).astype(jnp.bfloat16)
        return w_mat, b

    def fc1_init(k, cout, c, h, w):
        k1, k2 = jax.random.split(k)
        cin = c * h * w
        wt = jax.random.normal(k1, (cout, cin), jnp.float32) * math.sqrt(2.0 / cin)
        b = jax.random.normal(k2, (cout,), jnp.float32) * 0.01
        # PyTorch flatten order is (C,H,W); permute rows to NHWC flatten order so the
        # runtime transpose before fc1 disappears.
        w_mat = (wt.reshape(cout, c, h, w)
                   .transpose(2, 3, 1, 0)               # (H, W, C, out)
                   .reshape(h * w * c, cout)
                   .astype(jnp.bfloat16))
        return w_mat, b

    def fc2_init(k, cout, cin):
        k1, k2 = jax.random.split(k)
        w = jax.random.normal(k1, (cout, cin), jnp.float32) * math.sqrt(2.0 / cin)
        b = jax.random.normal(k2, (cout,), jnp.float32) * 0.01
        return w.T.astype(jnp.bfloat16), b

    ks = jax.random.split(key, 6)
    return {
        "conv1": conv_init(ks[0], 32, 1),
        "conv2": conv_init(ks[1], 64, 32),
        "conv3": conv_init(ks[2], 128, 64),
        "conv4": conv_init(ks[3], conv4_out, 128),
        "fc1": fc1_init(ks[4], 128, conv4_out, pooled_hw, pooled_hw),
        "fc2": fc2_init(ks[5], n_classes, 128),
    }


def net_forward(params, x_nchw):
    # NCHW -> NHWC
    x = jnp.transpose(x_nchw, (0, 2, 3, 1)).astype(jnp.float32)

    x = conv2d_3x3_relu(x, *params["conv1"], relu=True)
    x = conv2d_3x3_relu(x, *params["conv2"], relu=True)
    x = max_pool_2x2(x)
    # dropout1: identity in eval mode
    x = conv2d_3x3_relu(x, *params["conv3"], relu=True)
    x = conv2d_3x3_relu(x, *params["conv4"], relu=True)
    x = max_pool_2x2(x)
    # dropout1: identity in eval mode
    x = adaptive_avg_pool(x, 8, 8)                       # (N, 8, 8, 256) bf16

    # NHWC flatten (fc1 weight rows were pre-permuted to this order at init).
    n = x.shape[0]
    x = x.reshape(n, -1)                                 # (N, 16384)

    # fc1 + ReLU + fc2 fused in a single kernel; dropout2 identity in eval mode.
    w1, b1 = params["fc1"]
    w2, b2 = params["fc2"]
    return pallas_fc_head(x, w1, b1, w2, b2)


if __name__ == "__main__":
    n_classes = 10
    key = jax.random.PRNGKey(0)
    kp, kx = jax.random.split(key)
    params = init_params(kp, n_classes)

    # 44x44 input: 44 ->conv-> 42 ->conv-> 40 ->pool-> 20 ->conv-> 18 ->conv-> 16 ->pool-> 8,
    # so the 8x8 adaptive pool is an identity and fc1 sees 256*8*8 = 16384 features.
    x = jax.random.normal(kx, (2, 1, 44, 44), jnp.float32)

    fwd = jax.jit(net_forward)
    out = jax.block_until_ready(fwd(params, x))
    assert out.shape == (2, n_classes)
    print("KERNEL_OK")
</pallas_src>

<mosaic_0001>
module attributes {stable_mosaic.version = 11 : i64} {
  func.func @_mm_bias_act_kernel(%arg0: i32, %arg1: i32, %arg2: memref<512x16xbf16, #tpu.memory_space<vmem>>, %arg3: memref<16x128xbf16, #tpu.memory_space<vmem>>, %arg4: memref<1x128xf32, #tpu.memory_space<vmem>>, %arg5: memref<512x128xbf16, #tpu.memory_space<vmem>>) attributes {dimension_semantics = [#tpu.dimension_semantics<parallel>, #tpu.dimension_semantics<parallel>], iteration_bounds = array<i64: 7, 1>, scalar_prefetch = 0 : i64, scratch_operands = 0 : i64, tpu.core_type = #tpu.core_type<tc>, window_params = [{transform_indices = @transform_0, window_bounds = array<i64: 512, 16>}, {transform_indices = @transform_1, window_bounds = array<i64: 16, 128>}, {transform_indices = @transform_2, window_bounds = array<i64: 1, 128>}, {transform_indices = @transform_3, window_bounds = array<i64: 512, 128>}]} {
    %c0 = arith.constant 0 : index
    %c0_0 = arith.constant 0 : index
    %0 = vector.load %arg2[%c0, %c0_0] : memref<512x16xbf16, #tpu.memory_space<vmem>>, vector<512x16xbf16>
    %c0_1 = arith.constant 0 : index
    %c0_2 = arith.constant 0 : index
    %1 = vector.load %arg3[%c0_1, %c0_2] : memref<16x128xbf16, #tpu.memory_space<vmem>>, vector<16x128xbf16>
    %cst = arith.constant dense<0.000000e+00> : vector<512x128xf32>
    %2 = tpu.matmul %0, %1, %cst {dimension_numbers = #tpu.dot_dimension_numbers<[1], [0], [0], [1], [0, 0, 1, 1], [], []>} : vector<512x16xbf16>, vector<16x128xbf16>, vector<512x128xf32> -> vector<512x128xf32>
    %c0_3 = arith.constant 0 : index
    %c0_4 = arith.constant 0 : index
    %3 = vector.load %arg4[%c0_3, %c0_4] : memref<1x128xf32, #tpu.memory_space<vmem>>, vector<1x128xf32>
    %4 = vector.broadcast %3 : vector<1x128xf32> to vector<512x128xf32>
    %5 = arith.addf %2, %4 : vector<512x128xf32>
    %cst_5 = arith.constant 0.000000e+00 : f32
    %6 = vector.broadcast %cst_5 : f32 to vector<512x128xf32>
    %7 = arith.maximumf %5, %6 : vector<512x128xf32>
    %8 = arith.truncf %7 : vector<512x128xf32> to vector<512x128xbf16>
    %c0_6 = arith.constant 0 : index
    %c0_7 = arith.constant 0 : index
    %9 = vector.load %arg5[%c0_6, %c0_7] : memref<512x128xbf16, #tpu.memory_space<vmem>>, vector<512x128xbf16>
    tpu.vector_store %arg5[%c0_6, %c0_7], %8 {strides = array<i32>} : memref<512x128xbf16, #tpu.memory_space<vmem>>, vector<512x128xbf16>,
    return
  }
  func.func @transform_0(%arg0: i32, %arg1: i32) -> (i32, i32) {
    %c0_i32 = arith.constant 0 : i32
    %c0_i32_0 = arith.constant 0 : i32
    return %arg0, %c0_i32 : i32, i32
  }
  func.func @transform_1(%arg0: i32, %arg1: i32) -> (i32, i32) {
    %c0_i32 = arith.constant 0 : i32
    %c0_i32_0 = arith.constant 0 : i32
    return %c0_i32, %arg1 : i32, i32
  }
  func.func @transform_2(%arg0: i32, %arg1: i32) -> (i32, i32) {
    %c0_i32 = arith.constant 0 : i32
    %c0_i32_0 = arith.constant 0 : i32
    return %c0_i32, %arg1 : i32, i32
  }
  func.func @transform_3(%arg0: i32, %arg1: i32) -> (i32, i32) {
    %c0_i32 = arith.constant 0 : i32
    return %arg0, %arg1 : i32, i32
  }
}

module attributes {stable_mosaic.version = 11 : i64} {
  func.func @_mm_bias_act_kernel(%arg0: i32, %arg1: i32, %arg2: memref<464x288xbf16, #tpu.memory_space<vmem>>, %arg3: memref<288x128xbf16, #tpu.memory_space<vmem>>, %arg4: memref<1x128xf32, #tpu.memory_space<vmem>>, %arg5: memref<464x128xbf16, #tpu.memory_space<vmem>>) attributes {dimension_semantics = [#tpu.dimension_semantics<parallel>, #tpu.dimension_semantics<parallel>], iteration_bounds = array<i64: 7, 1>, scalar_prefetch = 0 : i64, scratch_operands = 0 : i64, tpu.core_type = #tpu.core_type<tc>, window_params = [{transform_indices = @transform_0, window_bounds = array<i64: 464, 288>}, {transform_indices = @transform_1, window_bounds = array<i64: 288, 128>}, {transform_indices = @transform_2, window_bounds = array<i64: 1, 128>}, {transform_indices = @transform_3, window_bounds = array<i64: 464, 128>}]} {
    %c0 = arith.constant 0 : index
    %c0_0 = arith.constant 0 : index
    %0 = vector.load %arg2[%c0, %c0_0] : memref<464x288xbf16, #tpu.memory_space<vmem>>, vector<464x288xbf16>
    %c0_1 = arith.constant 0 : index
    %c0_2 = arith.constant 0 : index
    %1 = vector.load %arg3[%c0_1, %c0_2] : memref<288x128xbf16, #tpu.memory_space<vmem>>, vector<288x128xbf16>
    %cst = arith.constant dense<0.000000e+00> : vector<464x128xf32>
    %2 = tpu.matmul %0, %1, %cst {dimension_numbers = #tpu.dot_dimension_numbers<[1], [0], [0], [1], [0, 0, 1, 1], [], []>} : vector<464x288xbf16>, vector<288x128xbf16>, vector<464x128xf32> -> vector<464x128xf32>
    %c0_3 = arith.constant 0 : index
    %c0_4 = arith.constant 0 : index
    %3 = vector.load %arg4[%c0_3, %c0_4] : memref<1x128xf32, #tpu.memory_space<vmem>>, vector<1x128xf32>
    %4 = vector.broadcast %3 : vector<1x128xf32> to vector<464x128xf32>
    %5 = arith.addf %2, %4 : vector<464x128xf32>
    %cst_5 = arith.constant 0.000000e+00 : f32
    %6 = vector.broadcast %cst_5 : f32 to vector<464x128xf32>
    %7 = arith.maximumf %5, %6 : vector<464x128xf32>
    %8 = arith.truncf %7 : vector<464x128xf32> to vector<464x128xbf16>
    %c0_6 = arith.constant 0 : index
    %c0_7 = arith.constant 0 : index
    %9 = vector.load %arg5[%c0_6, %c0_7] : memref<464x128xbf16, #tpu.memory_space<vmem>>, vector<464x128xbf16>
    tpu.vector_store %arg5[%c0_6, %c0_7], %8 {strides = array<i32>} : memref<464x128xbf16, #tpu.memory_space<vmem>>, vector<464x128xbf16>,
    return
  }
  func.func @transform_0(%arg0: i32, %arg1: i32) -> (i32, i32) {
    %c0_i32 = arith.constant 0 : i32
    %c0_i32_0 = arith.constant 0 : i32
    return %arg0, %c0_i32 : i32, i32
  }
  func.func @transform_1(%arg0: i32, %arg1: i32) -> (i32, i32) {
    %c0_i32 = arith.constant 0 : i32
    %c0_i32_0 = arith.constant 0 : i32
    return %c0_i32, %arg1 : i32, i32
  }
  func.func @transform_2(%arg0: i32, %arg1: i32) -> (i32, i32) {
    %c0_i32 = arith.constant 0 : i32
    %c0_i32_0 = arith.constant 0 : i32
    return %c0_i32, %arg1 : i32, i32
  }
  func.func @transform_3(%arg0: i32, %arg1: i32) -> (i32, i32) {
    %c0_i32 = arith.constant 0 : i32
    return %arg0, %arg1 : i32, i32
  }
}

module attributes {stable_mosaic.version = 11 : i64} {
  func.func @_mm_bias_act_kernel(%arg0: i32, %arg1: i32, %arg2: memref<336x576xbf16, #tpu.memory_space<vmem>>, %arg3: memref<576x128xbf16, #tpu.memory_space<vmem>>, %arg4: memref<1x128xf32, #tpu.memory_space<vmem>>, %arg5: memref<336x128xbf16, #tpu.memory_space<vmem>>) attributes {dimension_semantics = [#tpu.dimension_semantics<parallel>, #tpu.dimension_semantics<parallel>], iteration_bounds = array<i64: 2, 1>, scalar_prefetch = 0 : i64, scratch_operands = 0 : i64, tpu.core_type = #tpu.core_type<tc>, window_params = [{transform_indices = @transform_0, window_bounds = array<i64: 336, 576>}, {transform_indices = @transform_1, window_bounds = array<i64: 576, 128>}, {transform_indices = @transform_2, window_bounds = array<i64: 1, 128>}, {transform_indices = @transform_3, window_bounds = array<i64: 336, 128>}]} {
    %c0 = arith.constant 0 : index
    %c0_0 = arith.constant 0 : index
    %0 = vector.load %arg2[%c0, %c0_0] : memref<336x576xbf16, #tpu.memory_space<vmem>>, vector<336x576xbf16>
    %c0_1 = arith.constant 0 : index
    %c0_2 = arith.constant 0 : index
    %1 = vector.load %arg3[%c0_1, %c0_2] : memref<576x128xbf16, #tpu.memory_space<vmem>>, vector<576x128xbf16>
    %cst = arith.constant dense<0.000000e+00> : vector<336x128xf32>
    %2 = tpu.matmul %0, %1, %cst {dimension_numbers = #tpu.dot_dimension_numbers<[1], [0], [0], [1], [0, 0, 1, 1], [], []>} : vector<336x576xbf16>, vector<576x128xbf16>, vector<336x128xf32> -> vector<336x128xf32>
    %c0_3 = arith.constant 0 : index
    %c0_4 = arith.constant 0 : index
    %3 = vector.load %arg4[%c0_3, %c0_4] : memref<1x128xf32, #tpu.memory_space<vmem>>, vector<1x128xf32>
    %4 = vector.broadcast %3 : vector<1x128xf32> to vector<336x128xf32>
    %5 = arith.addf %2, %4 : vector<336x128xf32>
    %cst_5 = arith.constant 0.000000e+00 : f32
    %6 = vector.broadcast %cst_5 : f32 to vector<336x128xf32>
    %7 = arith.maximumf %5, %6 : vector<336x128xf32>
    %8 = arith.truncf %7 : vector<336x128xf32> to vector<336x128xbf16>
    %c0_6 = arith.constant 0 : index
    %c0_7 = arith.constant 0 : index
    %9 = vector.load %arg5[%c0_6, %c0_7] : memref<336x128xbf16, #tpu.memory_space<vmem>>, vector<336x128xbf16>
    tpu.vector_store %arg5[%c0_6, %c0_7], %8 {strides = array<i32>} : memref<336x128xbf16, #tpu.memory_space<vmem>>, vector<336x128xbf16>,
    return
  }
  func.func @transform_0(%arg0: i32, %arg1: i32) -> (i32, i32) {
    %c0_i32 = arith.constant 0 : i32
    %c0_i32_0 = arith.constant 0 : i32
    return %arg0, %c0_i32 : i32, i32
  }
  func.func @transform_1(%arg0: i32, %arg1: i32) -> (i32, i32) {
    %c0_i32 = arith.constant 0 : i32
    %c0_i32_0 = arith.constant 0 : i32
    return %c0_i32, %arg1 : i32, i32
  }
  func.func @transform_2(%arg0: i32, %arg1: i32) -> (i32, i32) {
    %c0_i32 = arith.constant 0 : i32
    %c0_i32_0 = arith.constant 0 : i32
    return %c0_i32, %arg1 : i32, i32
  }
  func.func @transform_3(%arg0: i32, %arg1: i32) -> (i32, i32) {
    %c0_i32 = arith.constant 0 : i32
    return %arg0, %arg1 : i32, i32
  }
}

module attributes {stable_mosaic.version = 11 : i64} {
  func.func @_mm_bias_act_kernel(%arg0: i32, %arg1: i32, %arg2: memref<256x1152xbf16, #tpu.memory_space<vmem>>, %arg3: memref<1152x256xbf16, #tpu.memory_space<vmem>>, %arg4: memref<1x256xf32, #tpu.memory_space<vmem>>, %arg5: memref<256x256xbf16, #tpu.memory_space<vmem>>) attributes {dimension_semantics = [#tpu.dimension_semantics<parallel>, #tpu.dimension_semantics<parallel>], iteration_bounds = array<i64: 2, 1>, scalar_prefetch = 0 : i64, scratch_operands = 0 : i64, tpu.core_type = #tpu.core_type<tc>, window_params = [{transform_indices = @transform_0, window_bounds = array<i64: 256, 1152>}, {transform_indices = @transform_1, window_bounds = array<i64: 1152, 256>}, {transform_indices = @transform_2, window_bounds = array<i64: 1, 256>}, {transform_indices = @transform_3, window_bounds = array<i64: 256, 256>}]} {
    %c0 = arith.constant 0 : index
    %c0_0 = arith.constant 0 : index
    %0 = vector.load %arg2[%c0, %c0_0] : memref<256x1152xbf16, #tpu.memory_space<vmem>>, vector<256x1152xbf16>
    %c0_1 = arith.constant 0 : index
    %c0_2 = arith.constant 0 : index
    %1 = vector.load %arg3[%c0_1, %c0_2] : memref<1152x256xbf16, #tpu.memory_space<vmem>>, vector<1152x256xbf16>
    %cst = arith.constant dense<0.000000e+00> : vector<256x256xf32>
    %2 = tpu.matmul %0, %1, %cst {dimension_numbers = #tpu.dot_dimension_numbers<[1], [0], [0], [1], [0, 0, 1, 1], [], []>} : vector<256x1152xbf16>, vector<1152x256xbf16>, vector<256x256xf32> -> vector<256x256xf32>
    %c0_3 = arith.constant 0 : index
    %c0_4 = arith.constant 0 : index
    %3 = vector.load %arg4[%c0_3, %c0_4] : memref<1x256xf32, #tpu.memory_space<vmem>>, vector<1x256xf32>
    %4 = vector.broadcast %3 : vector<1x256xf32> to vector<256x256xf32>
    %5 = arith.addf %2, %4 : vector<256x256xf32>
    %cst_5 = arith.constant 0.000000e+00 : f32
    %6 = vector.broadcast %cst_5 : f32 to vector<256x256xf32>
    %7 = arith.maximumf %5, %6 : vector<256x256xf32>
    %8 = arith.truncf %7 : vector<256x256xf32> to vector<256x256xbf16>
    %c0_6 = arith.constant 0 : index
    %c0_7 = arith.constant 0 : index
    %9 = vector.load %arg5[%c0_6, %c0_7] : memref<256x256xbf16, #tpu.memory_space<vmem>>, vector<256x256xbf16>
    tpu.vector_store %arg5[%c0_6, %c0_7], %8 {strides = array<i32>} : memref<256x256xbf16, #tpu.memory_space<vmem>>, vector<256x256xbf16>,
    return
  }
  func.func @transform_0(%arg0: i32, %arg1: i32) -> (i32, i32) {
    %c0_i32 = arith.constant 0 : i32
    %c0_i32_0 = arith.constant 0 : i32
    return %arg0, %c0_i32 : i32, i32
  }
  func.func @transform_1(%arg0: i32, %arg1: i32) -> (i32, i32) {
    %c0_i32 = arith.constant 0 : i32
    %c0_i32_0 = arith.constant 0 : i32
    return %c0_i32, %arg1 : i32, i32
  }
  func.func @transform_2(%arg0: i32, %arg1: i32) -> (i32, i32) {
    %c0_i32 = arith.constant 0 : i32
    %c0_i32_0 = arith.constant 0 : i32
    return %c0_i32, %arg1 : i32, i32
  }
  func.func @transform_3(%arg0: i32, %arg1: i32) -> (i32, i32) {
    %c0_i32 = arith.constant 0 : i32
    return %arg0, %arg1 : i32, i32
  }
}

module attributes {stable_mosaic.version = 11 : i64} {
  func.func @_fc_head_kernel(%arg0: i32, %arg1: memref<16x8192xbf16, #tpu.memory_space<vmem>>, %arg2: memref<8192x128xbf16, #tpu.memory_space<vmem>>, %arg3: memref<1x128xf32, #tpu.memory_space<vmem>>, %arg4: memref<128x128xbf16, #tpu.memory_space<vmem>>, %arg5: memref<1x128xf32, #tpu.memory_space<vmem>>, %arg6: memref<16x128xf32, #tpu.memory_space<vmem>>, %arg7: memref<16x128xf32, #tpu.memory_space<vmem>>) attributes {dimension_semantics = [#tpu.dimension_semantics<arbitrary>], iteration_bounds = array<i64: 2>, scalar_prefetch = 0 : i64, scratch_operands = 1 : i64, tpu.core_type = #tpu.core_type<tc>, window_params = [{transform_indices = @transform_0, window_bounds = array<i64: 16, 8192>}, {transform_indices = @transform_1, window_bounds = array<i64: 8192, 128>}, {pipeline_mode = #tpu.pipeline_mode<synchronous>, transform_indices = @transform_2, window_bounds = array<i64: 1, 128>}, {pipeline_mode = #tpu.pipeline_mode<synchronous>, transform_indices = @transform_3, window_bounds = array<i64: 128, 128>}, {pipeline_mode = #tpu.pipeline_mode<synchronous>, transform_indices = @transform_4, window_bounds = array<i64: 1, 128>}, {pipeline_mode = #tpu.pipeline_mode<synchronous>, transform_indices = @transform_5, window_bounds = array<i64: 16, 128>}]} {
    %c0_i32 = arith.constant 0 : i32
    %0 = arith.cmpi eq, %arg0, %c0_i32 : i32
    %1 = arith.extui %0 : i1 to i32
    %c0_i32_0 = arith.constant 0 : i32
    %2 = arith.cmpi ne, %1, %c0_i32_0 : i32
    scf.if %2 {
      %cst_9 = arith.constant 0.000000e+00 : f32
      %12 = vector.broadcast %cst_9 : f32 to vector<16x128xf32>
      %c0_10 = arith.constant 0 : index
      %c0_11 = arith.constant 0 : index
      %13 = vector.load %arg7[%c0_10, %c0_11] : memref<16x128xf32, #tpu.memory_space<vmem>>, vector<16x128xf32>
      tpu.vector_store %arg7[%c0_10, %c0_11], %12 {strides = array<i32>} : memref<16x128xf32, #tpu.memory_space<vmem>>, vector<16x128xf32>,
    } else {
    }
    %c0 = arith.constant 0 : index
    %c0_1 = arith.constant 0 : index
    %3 = vector.load %arg7[%c0, %c0_1] : memref<16x128xf32, #tpu.memory_space<vmem>>, vector<16x128xf32>
    %c0_2 = arith.constant 0 : index
    %c0_3 = arith.constant 0 : index
    %4 = vector.load %arg1[%c0_2, %c0_3] : memref<16x8192xbf16, #tpu.memory_space<vmem>>, vector<16x8192xbf16>
    %c0_4 = arith.constant 0 : index
    %c0_5 = arith.constant 0 : index
    %5 = vector.load %arg2[%c0_4, %c0_5] : memref<8192x128xbf16, #tpu.memory_space<vmem>>, vector<8192x128xbf16>
    %cst = arith.constant dense<0.000000e+00> : vector<16x128xf32>
    %6 = tpu.matmul %4, %5, %cst {dimension_numbers = #tpu.dot_dimension_numbers<[1], [0], [0], [1], [0, 0, 1, 1], [], []>} : vector<16x8192xbf16>, vector<8192x128xbf16>, vector<16x128xf32> -> vector<16x128xf32>
    %7 = arith.addf %3, %6 : vector<16x128xf32>
    %c0_6 = arith.constant 0 : index
    %c0_7 = arith.constant 0 : index
    %8 = vector.load %arg7[%c0_6, %c0_7] : memref<16x128xf32, #tpu.memory_space<vmem>>, vector<16x128xf32>
    tpu.vector_store %arg7[%c0_6, %c0_7], %7 {strides = array<i32>} : memref<16x128xf32, #tpu.memory_space<vmem>>, vector<16x128xf32>,
    %c1_i32 = arith.constant 1 : i32
    %9 = arith.cmpi eq, %arg0, %c1_i32 : i32
    %10 = arith.extui %9 : i1 to i32
    %c0_i32_8 = arith.constant 0 : i32
    %11 = arith.cmpi ne, %10, %c0_i32_8 : i32
    scf.if %11 {
      %c0_9 = arith.constant 0 : index
      %c0_10 = arith.constant 0 : index
      %12 = vector.load %arg7[%c0_9, %c0_10] : memref<16x128xf32, #tpu.memory_space<vmem>>, vector<16x128xf32>
      %c0_11 = arith.constant 0 : index
      %c0_12 = arith.constant 0 : index
      %13 = vector.load %arg3[%c0_11, %c0_12] : memref<1x128xf32, #tpu.memory_space<vmem>>, vector<1x128xf32>
      %14 = vector.broadcast %13 : vector<1x128xf32> to vector<16x128xf32>
      %15 = arith.addf %12, %14 : vector<16x128xf32>
      %cst_13 = arith.constant 0.000000e+00 : f32
      %16 = vector.broadcast %cst_13 : f32 to vector<16x128xf32>
      %17 = arith.maximumf %15, %16 : vector<16x128xf32>
      %18 = arith.truncf %17 : vector<16x128xf32> to vector<16x128xbf16>
      %c0_14 = arith.constant 0 : index
      %c0_15 = arith.constant 0 : index
      %19 = vector.load %arg4[%c0_14, %c0_15] : memref<128x128xbf16, #tpu.memory_space<vmem>>, vector<128x128xbf16>
      %cst_16 = arith.constant dense<0.000000e+00> : vector<16x128xf32>
      %20 = tpu.matmul %18, %19, %cst_16 {dimension_numbers = #tpu.dot_dimension_numbers<[1], [0], [0], [1], [0, 0, 1, 1], [], []>} : vector<16x128xbf16>, vector<128x128xbf16>, vector<16x128xf32> -> vector<16x128xf32>
      %c0_17 = arith.constant 0 : index
      %c0_18 = arith.constant 0 : index
      %21 = vector.load %arg5[%c0_17, %c0_18] : memref<1x128xf32, #tpu.memory_space<vmem>>, vector<1x128xf32>
      %22 = vector.broadcast %21 : vector<1x128xf32> to vector<16x128xf32>
      %23 = arith.addf %20, %22 : vector<16x128xf32>
      %c0_19 = arith.constant 0 : index
      %c0_20 = arith.constant 0 : index
      %24 = vector.load %arg6[%c0_19, %c0_20] : memref<16x128xf32, #tpu.memory_space<vmem>>, vector<16x128xf32>
      tpu.vector_store %arg6[%c0_19, %c0_20], %23 {strides = array<i32>} : memref<16x128xf32, #tpu.memory_space<vmem>>, vector<16x128xf32>,
    } else {
    }
    return
  }
  func.func @transform_0(%arg0: i32) -> (i32, i32) {
    %c0_i32 = arith.constant 0 : i32
    %c0_i32_0 = arith.constant 0 : i32
    return %c0_i32, %arg0 : i32, i32
  }
  func.func @transform_1(%arg0: i32) -> (i32, i32) {
    %c0_i32 = arith.constant 0 : i32
    %c0_i32_0 = arith.constant 0 : i32
    return %arg0, %c0_i32 : i32, i32
  }
  func.func @transform_2(%arg0: i32) -> (i32, i32) {
    %c0_i32 = arith.constant 0 : i32
    %c0_i32_0 = arith.constant 0 : i32
    %c0_i32_1 = arith.constant 0 : i32
    return %c0_i32, %c0_i32_0 : i32, i32
  }
  func.func @transform_3(%arg0: i32) -> (i32, i32) {
    %c0_i32 = arith.constant 0 : i32
    %c0_i32_0 = arith.constant 0 : i32
    %c0_i32_1 = arith.constant 0 : i32
    return %c0_i32, %c0_i32_0 : i32, i32
  }
  func.func @transform_4(%arg0: i32) -> (i32, i32) {
    %c0_i32 = arith.constant 0 : i32
    %c0_i32_0 = arith.constant 0 : i32
    %c0_i32_1 = arith.constant 0 : i32
    return %c0_i32, %c0_i32_0 : i32, i32
  }
  func.func @transform_5(%arg0: i32) -> (i32, i32) {
    %c0_i32 = arith.constant 0 : i32
    %c0_i32_0 = arith.constant 0 : i32
    %c0_i32_1 = arith.constant 0 : i32
    return %c0_i32, %c0_i32_0 : i32, i32
  }
}

</mosaic_0001>

<bundles_post_ra>
// kernel: net_forward.5
= control target key start
LH: loop header
LB: loop body
LE: loop exit
PB: predicated region body
PF: predicated region fallthrough
CT: control target
= control target key end

     0   :  { %s1937_s12 = smov 0   ;;  %s1939_s13 = smov 0   ;;  %s2149_s0 = inlined_call_operand.vmem [shape: bf16[3584,16], index: 0, kind: input, shape index: {}]   ;;  %s2150_s1 = inlined_call_operand.vmem [shape: bf16[16,128], index: 1, kind: input, shape index: {}]   ;;  %s2151_s2 = inlined_call_operand.vmem [shape: f32[1,128], index: 2, kind: input, shape index: {}]   ;;  %s2152_s3 = inlined_call_operand.vmem [shape: bf16[3584,128], index: 3, kind: output, shape index: {}]  }
   0x1   :  { %s1941_s14 = smov 0  }
   0x2 LB: > { %s25_s15 = sadd.s32 1, %s1911_s13  ;;  %p1343_p0 = scmp.ge.s32.totalorder %s1915_s14, 1  ;;  %s1915_s14 = sphi %s1941_s14, %s13_s14   ;;  %s1911_s13 = sphi %s1939_s13, %s2154_s13   ;;  %s1907_s12 = sphi %s1937_s12, %s2153_s12  }
   0x3   : > { %p27_p1 = scmp.ge.s32.totalorder %s25_s15, 7  ;;  %p169_p2 = scmp.lt.s32.totalorder %s1915_s14, 8 }
   0x5   : > { %s2156_s15 = smov (%p27_p1, %s25_s15), 0  ;;  %p170_p3 = pnand %p1343_p0, %p169_p2 }
   0x6   : > { %v1860_v0 = vld [vmem:[%s2150_s1] sm:$0xff] (!%p170_p3)   ;;  %s1344_s18 = sshll.u32 (!%p170_p3), %s1907_s12, 6  ;;  %vm465_vm0 = vcmask (!%p170_p3), 130048  }
   0x7   : > { %173 = sbr.rel (%p170_p3) target bundleno = 298 (0x12a), region = 32  ;;  %p204_p4 = scmp.lt.s32.totalorder (!%p170_p3), %s1344_s18, 447  ;;  %1768 = vmatprep.subr.bf16.mxu0 (!%p170_p3), %v1860_v0  ;;  %1834 = vmatprep.subr.bf16.mxu1 (!%p170_p3), %v1860_v0  ;;  %v2035_v33 = vld [vmem:[%s2151_s2] ss:$0 sm:$0xff] (!%p170_p3) }
   0x8   : > { %1769 = vmatpush3.bf16.msra.mxu0 (!%p170_p3), %v1860_v0  ;;  %1835 = vmatpush3.bf16.msra.mxu1 (!%p170_p3), %v1860_v0 }
   0xe   : > { %s2158_s18 = smov (!%p204_p4, %s1344_s18), 447 }
   0xf   : > { %s1345_s19 = sshll.u32 %s2158_s18, 2 }
  0x10   : > { %s1966_s22 = scalar_lea.vmem %s2149_s0, %s1345_s19  ;;  %s2050_s27 = scalar_lea.vmem %s2152_s3, %s1345_s19 }
  0x11   : > { %v1861_v1 = vld [vmem:[%s1966_s22] sm:$0xff]   ;;  %v1863_v3 = vld [vmem:[%s1966_s22 + $0x8] sm:$0xff]   ;;  %v1865_v5 = vld [vmem:[%s1966_s22 + $0x10] sm:$0xff]  }
  0x12   : > { %v1862_v2 = vld [vmem:[%s1966_s22 + $0x80] sm:$0xff]   ;;  %1770 = vmatprep.mubr.msk.bf16.mxu0 %vm465_vm0, %v1861_v1  ;;  %v1864_v4 = vld [vmem:[%s1966_s22 + $0x88] sm:$0xff]   ;;  %v1866_v6 = vld [vmem:[%s1966_s22 + $0x90] sm:$0xff]  }
  0x13   : > { %1802 = vmatprep.mubr.msk.bf16.mxu1 %vm465_vm0, %v1862_v2  ;;  %1771 = vmatmul.mubr.msk.bf16.vlgmr.msra.gmra.mrb[0].mxu0 %vm465_vm0, %v1863_v3  ;;  %v1867_v7 = vld [vmem:[%s1966_s22 + $0x18] sm:$0xff]   ;;  %v1869_v9 = vld [vmem:[%s1966_s22 + $0x20] sm:$0xff]   ;;  %v1871_v11 = vld [vmem:[%s1966_s22 + $0x28] sm:$0xff]  }
  0x14   : > { %1803 = vmatmul.mubr.msk.bf16.vlgmr.msra.gmra.mrb[0].mxu1 %vm465_vm0, %v1864_v4  ;;  %1774 = vmatprep.mubr.msk.bf16.mxu0 %vm465_vm0, %v1865_v5  ;;  %v1868_v8 = vld [vmem:[%s1966_s22 + $0x98] sm:$0xff]   ;;  %v1870_v10 = vld [vmem:[%s1966_s22 + $0xa0] sm:$0xff]   ;;  %v1872_v12 = vld [vmem:[%s1966_s22 + $0xa8] sm:$0xff]  }
  0x15   : > { %1806 = vmatprep.mubr.msk.bf16.mxu1 %vm465_vm0, %v1866_v6  ;;  %v1873_v13 = vld [vmem:[%s1966_s22 + $0x30] sm:$0xff]   ;;  %v1875_v15 = vld [vmem:[%s1966_s22 + $0x38] sm:$0xff]   ;;  %v1877_v17 = vld [vmem:[%s1966_s22 + $0x40] sm:$0xff]  }
  0x16   : > { %v1874_v14 = vld [vmem:[%s1966_s22 + $0xb0] sm:$0xff]   ;;  %v1876_v16 = vld [vmem:[%s1966_s22 + $0xb8] sm:$0xff]   ;;  %v1878_v18 = vld [vmem:[%s1966_s22 + $0xc0] sm:$0xff]  }
  0x17   : > { %v1879_v19 = vld [vmem:[%s1966_s22 + $0x48] sm:$0xff]   ;;  %v1881_v21 = vld [vmem:[%s1966_s22 + $0x50] sm:$0xff]   ;;  %v1883_v23 = vld [vmem:[%s1966_s22 + $0x58] sm:$0xff]  }
  0x18   : > { %v1880_v20 = vld [vmem:[%s1966_s22 + $0xc8] sm:$0xff]   ;;  %v1882_v22 = vld [vmem:[%s1966_s22 + $0xd0] sm:$0xff]   ;;  %v1884_v24 = vld [vmem:[%s1966_s22 + $0xd8] sm:$0xff]  }
  0x19   : > { %v1885_v25 = vld [vmem:[%s1966_s22 + $0x60] sm:$0xff]   ;;  %v1887_v27 = vld [vmem:[%s1966_s22 + $0x68] sm:$0xff]   ;;  %v1889_v29 = vld [vmem:[%s1966_s22 + $0x70] sm:$0xff]  }
  0x1a   : > { %v1886_v26 = vld [vmem:[%s1966_s22 + $0xe0] sm:$0xff]   ;;  %v1888_v28 = vld [vmem:[%s1966_s22 + $0xe8] sm:$0xff]   ;;  %v1890_v30 = vld [vmem:[%s1966_s22 + $0xf0] sm:$0xff]  }
  0x1b   : > { %1775 = vmatmul.mubr.msk.bf16.gmra.mrb[4].mxu0 %vm465_vm0, %v1867_v7  ;;  %v1891_v31 = vld [vmem:[%s1966_s22 + $0x78] sm:$0xff]  }
  0x1c   : > { %1807 = vmatmul.mubr.msk.bf16.gmra.mrb[4].mxu1 %vm465_vm0, %v1868_v8  ;;  %1778 = vmatprep.mubr.msk.bf16.mxu0 %vm465_vm0, %v1869_v9  ;;  %v1892_v32 = vld [vmem:[%s1966_s22 + $0xf8] sm:$0xff]  }
  0x1d   : > { %1810 = vmatprep.mubr.msk.bf16.mxu1 %vm465_vm0, %v1870_v10 }
  0x23   : > { %1779 = vmatmul.mubr.msk.bf16.gmra.mrb[8].mxu0 %vm465_vm0, %v1871_v11 }
  0x24   : > { %1811 = vmatmul.mubr.msk.bf16.gmra.mrb[8].mxu1 %vm465_vm0, %v1872_v12  ;;  %1782 = vmatprep.mubr.msk.bf16.mxu0 %vm465_vm0, %v1873_v13 }
  0x25   : > { %1814 = vmatprep.mubr.msk.bf16.mxu1 %vm465_vm0, %v1874_v14 }
  0x2b   : > { %1783 = vmatmul.mubr.msk.bf16.gmra.mrb[12].mxu0 %vm465_vm0, %v1875_v15 }
  0x2c   : > { %1815 = vmatmul.mubr.msk.bf16.gmra.mrb[12].mxu1 %vm465_vm0, %v1876_v16  ;;  %1786 = vmatprep.mubr.msk.bf16.mxu0 %vm465_vm0, %v1877_v17 }
  0x2d   : > { %1818 = vmatprep.mubr.msk.bf16.mxu1 %vm465_vm0, %v1878_v18 }
  0x33   : > { %1787 = vmatmul.mubr.msk.bf16.gmra.mrb[16].mxu0 %vm465_vm0, %v1879_v19 }
  0x34   : > { %1819 = vmatmul.mubr.msk.bf16.gmra.mrb[16].mxu1 %vm465_vm0, %v1880_v20  ;;  %1790 = vmatprep.mubr.msk.bf16.mxu0 %vm465_vm0, %v1881_v21 }
  0x35   : > { %1822 = vmatprep.mubr.msk.bf16.mxu1 %vm465_vm0, %v1882_v22 }
  0x3b   : > { %1791 = vmatmul.mubr.msk.bf16.gmra.mrb[20].mxu0 %vm465_vm0, %v1883_v23 }
  0x3c   : > { %1823 = vmatmul.mubr.msk.bf16.gmra.mrb[20].mxu1 %vm465_vm0, %v1884_v24  ;;  %1794 = vmatprep.mubr.msk.bf16.mxu0 %vm465_vm0, %v1885_v25 }
  0x3d   : > { %1826 = vmatprep.mubr.msk.bf16.mxu1 %vm465_vm0, %v1886_v26 }
  0x43   : > { %1795 = vmatmul.mubr.msk.bf16.gmra.mrb[24].mxu0 %vm465_vm0, %v1887_v27 }
  0x44   : > { %1827 = vmatmul.mubr.msk.bf16.gmra.mrb[24].mxu1 %vm465_vm0, %v1888_v28  ;;  %1798 = vmatprep.mubr.msk.bf16.mxu0 %vm465_vm0, %v1889_v29 }
  0x45   : > { %1830 = vmatprep.mubr.msk.bf16.mxu1 %vm465_vm0, %v1890_v30 }
  0x4b   : > { %1799 = vmatmul.mubr.msk.bf16.gmra.mrb[28].mxu0 %vm465_vm0, %v1891_v31 }
  0x4c   : > { %1831 = vmatmul.mubr.msk.bf16.gmra.mrb[28].mxu1 %vm465_vm0, %v1892_v32 }
  0xe6   : > { %v1772_v34 = vpop.f32.mrb[0].mxu0 }
  0xe7   : > { %v605_v35 = vadd.f32 %v1772_v34, %v2035_v33  ;;  %v1804_v36 = vpop.f32.mrb[0].mxu1  ;;  %v596_v37 = vpop.f32.mrb[1].mxu0 }
  0xe8   : > { %v733_v38 = vadd.f32 %v1804_v36, %v2035_v33  ;;  %v597_v39 = vadd.f32 %v2035_v33, %v596_v37  ;;  %v724_v40 = vpop.f32.mrb[1].mxu1  ;;  %v1773_v41 = vpop.f32.mrb[2].mxu0 }
  0xe9   : > { %v725_v42 = vadd.f32 %v2035_v33, %v724_v40  ;;  %v608_v43 = vadd.f32 %v1773_v41, %v2035_v33  ;;  %v1805_v44 = vpop.f32.mrb[2].mxu1  ;;  %v599_v45 = vpop.f32.mrb[3].mxu0  ;;  %v853_v49 = vmax.f32 %v605_v35, 0.0 }
  0xea   : > { %v736_v46 = vadd.f32 %v1805_v44, %v2035_v33  ;;  %v600_v47 = vadd.f32 %v2035_v33, %v599_v45  ;;  %v727_v48 = vpop.f32.mrb[3].mxu1  ;;  %v885_v52 = vmax.f32 %v733_v38, 0.0  ;;  %v851_v53 = vmax.f32 %v597_v39, 0.0 }
  0xeb   : > { %v854_v50 = vmax.f32 %v608_v43, 0.0  ;;  %v728_v51 = vadd.f32 %v2035_v33, %v727_v48  ;;  %v883_v56 = vmax.f32 %v725_v42, 0.0 }
  0xec   : > { %v886_v54 = vmax.f32 %v736_v46, 0.0  ;;  %v852_v55 = vmax.f32 %v600_v47, 0.0 }
  0xed   : > { %v1552_v57 = vpack.c.bf16 %v854_v50, %v853_v49  ;;  %v884_v58 = vmax.f32 %v728_v51, 0.0 }
  0xee   : > { %v1632_v59 = vpack.c.bf16 %v886_v54, %v885_v52  ;;  %v1547_v60 = vpack.c.bf16 %v852_v55, %v851_v53  ;;  %v1776_v61 = vpop.f32.mrb[4].mxu0 }
  0xef   : > { %1704 = vst [vmem:[%s2050_s27 + $0x8] sm:$0xff] %v1552_v57   ;;  %v1627_v62 = vpack.c.bf16 %v884_v58, %v883_v56  ;;  %v621_v63 = vadd.f32 %v1776_v61, %v2035_v33  ;;  %v1808_v0 = vpop.f32.mrb[4].mxu1  ;;  %v612_v1 = vpop.f32.mrb[5].mxu0 }
  0xf0   : > { %1720 = vst [vmem:[%s2050_s27 + $0x88] sm:$0xff] %v1632_v59   ;;  %1548 = vst [vmem:[%s2050_s27] sm:$0xff] %v1547_v60   ;;  %v749_v2 = vadd.f32 %v1808_v0, %v2035_v33  ;;  %v613_v3 = vadd.f32 %v2035_v33, %v612_v1  ;;  %v740_v4 = vpop.f32.mrb[5].mxu1  ;;  %v1777_v5 = vpop.f32.mrb[6].mxu0 }
  0xf1   : > { %1719 = vst [vmem:[%s2050_s27 + $0x80] sm:$0xff] %v1627_v62   ;;  %v741_v6 = vadd.f32 %v2035_v33, %v740_v4  ;;  %v624_v7 = vadd.f32 %v1777_v5, %v2035_v33  ;;  %v1809_v8 = vpop.f32.mrb[6].mxu1  ;;  %v615_v9 = vpop.f32.mrb[7].mxu0  ;;  %v857_v13 = vmax.f32 %v621_v63, 0.0 }
  0xf2   : > { %v752_v10 = vadd.f32 %v1809_v8, %v2035_v33  ;;  %v616_v11 = vadd.f32 %v2035_v33, %v615_v9  ;;  %v743_v12 = vpop.f32.mrb[7].mxu1  ;;  %v889_v16 = vmax.f32 %v749_v2, 0.0  ;;  %v855_v17 = vmax.f32 %v613_v3, 0.0 }
  0xf3   : > { %v858_v14 = vmax.f32 %v624_v7, 0.0  ;;  %v744_v15 = vadd.f32 %v2035_v33, %v743_v12  ;;  %v887_v20 = vmax.f32 %v741_v6, 0.0 }
  0xf4   : > { %v890_v18 = vmax.f32 %v752_v10, 0.0  ;;  %v856_v19 = vmax.f32 %v616_v11, 0.0 }
  0xf5   : > { %v1562_v21 = vpack.c.bf16 %v858_v14, %v857_v13  ;;  %v888_v22 = vmax.f32 %v744_v15, 0.0 }
  0xf6   : > { %v1642_v23 = vpack.c.bf16 %v890_v18, %v889_v16  ;;  %v1557_v24 = vpack.c.bf16 %v856_v19, %v855_v17  ;;  %v1780_v25 = vpop.f32.mrb[8].mxu0 }
  0xf7   : > { %1706 = vst [vmem:[%s2050_s27 + $0x18] sm:$0xff] %v1562_v21   ;;  %v1637_v26 = vpack.c.bf16 %v888_v22, %v887_v20  ;;  %v637_v27 = vadd.f32 %v1780_v25, %v2035_v33  ;;  %v1812_v28 = vpop.f32.mrb[8].mxu1  ;;  %v628_v29 = vpop.f32.mrb[9].mxu0 }
  0xf8   : > { %1722 = vst [vmem:[%s2050_s27 + $0x98] sm:$0xff] %v1642_v23   ;;  %1705 = vst [vmem:[%s2050_s27 + $0x10] sm:$0xff] %v1557_v24   ;;  %v765_v30 = vadd.f32 %v1812_v28, %v2035_v33  ;;  %v629_v31 = vadd.f32 %v2035_v33, %v628_v29  ;;  %v756_v32 = vpop.f32.mrb[9].mxu1  ;;  %v1781_v34 = vpop.f32.mrb[10].mxu0 }
  0xf9   : > { %1721 = vst [vmem:[%s2050_s27 + $0x90] sm:$0xff] %v1637_v26   ;;  %v757_v35 = vadd.f32 %v2035_v33, %v756_v32  ;;  %v640_v36 = vadd.f32 %v1781_v34, %v2035_v33  ;;  %v1813_v37 = vpop.f32.mrb[10].mxu1  ;;  %v631_v38 = vpop.f32.mrb[11].mxu0  ;;  %v861_v42 = vmax.f32 %v637_v27, 0.0 }
  0xfa   : > { %v768_v39 = vadd.f32 %v1813_v37, %v2035_v33  ;;  %v632_v40 = vadd.f32 %v2035_v33, %v631_v38  ;;  %v759_v41 = vpop.f32.mrb[11].mxu1  ;;  %v893_v45 = vmax.f32 %v765_v30, 0.0  ;;  %v859_v46 = vmax.f32 %v629_v31, 0.0 }
  0xfb   : > { %v862_v43 = vmax.f32 %v640_v36, 0.0  ;;  %v760_v44 = vadd.f32 %v2035_v33, %v759_v41  ;;  %v891_v49 = vmax.f32 %v757_v35, 0.0 }
  0xfc   : > { %v894_v47 = vmax.f32 %v768_v39, 0.0  ;;  %v860_v48 = vmax.f32 %v632_v40, 0.0 }
  0xfd   : > { %v1572_v50 = vpack.c.bf16 %v862_v43, %v861_v42  ;;  %v892_v51 = vmax.f32 %v760_v44, 0.0 }
  0xfe   : > { %v1652_v52 = vpack.c.bf16 %v894_v47, %v893_v45  ;;  %v1567_v53 = vpack.c.bf16 %v860_v48, %v859_v46  ;;  %v1784_v54 = vpop.f32.mrb[12].mxu0 }
  0xff   : > { %1708 = vst [vmem:[%s2050_s27 + $0x28] sm:$0xff] %v1572_v50   ;;  %v1647_v55 = vpack.c.bf16 %v892_v51, %v891_v49  ;;  %v653_v56 = vadd.f32 %v1784_v54, %v2035_v33  ;;  %v1816_v57 = vpop.f32.mrb[12].mxu1  ;;  %v644_v58 = vpop.f32.mrb[13].mxu0 }
 0x100   : > { %1724 = vst [vmem:[%s2050_s27 + $0xa8] sm:$0xff] %v1652_v52   ;;  %1707 = vst [vmem:[%s2050_s27 + $0x20] sm:$0xff] %v1567_v53   ;;  %v781_v59 = vadd.f32 %v1816_v57, %v2035_v33  ;;  %v645_v60 = vadd.f32 %v2035_v33, %v644_v58  ;;  %v772_v61 = vpop.f32.mrb[13].mxu1  ;;  %v1785_v62 = vpop.f32.mrb[14].mxu0 }
 0x101   : > { %1723 = vst [vmem:[%s2050_s27 + $0xa0] sm:$0xff] %v1647_v55   ;;  %v773_v63 = vadd.f32 %v2035_v33, %v772_v61  ;;  %v656_v0 = vadd.f32 %v1785_v62, %v2035_v33  ;;  %v1817_v1 = vpop.f32.mrb[14].mxu1  ;;  %v647_v2 = vpop.f32.mrb[15].mxu0  ;;  %v865_v6 = vmax.f32 %v653_v56, 0.0 }
 0x102   : > { %v784_v3 = vadd.f32 %v1817_v1, %v2035_v33  ;;  %v648_v4 = vadd.f32 %v2035_v33, %v647_v2  ;;  %v775_v5 = vpop.f32.mrb[15].mxu1  ;;  %v897_v9 = vmax.f32 %v781_v59, 0.0  ;;  %v863_v10 = vmax.f32 %v645_v60, 0.0 }
 0x103   : > { %v866_v7 = vmax.f32 %v656_v0, 0.0  ;;  %v776_v8 = vadd.f32 %v2035_v33, %v775_v5  ;;  %v895_v13 = vmax.f32 %v773_v63, 0.0 }
 0x104   : > { %v898_v11 = vmax.f32 %v784_v3, 0.0  ;;  %v864_v12 = vmax.f32 %v648_v4, 0.0 }
 0x105   : > { %v1582_v14 = vpack.c.bf16 %v866_v7, %v865_v6  ;;  %v896_v15 = vmax.f32 %v776_v8, 0.0 }
 0x106   : > { %v1662_v16 = vpack.c.bf16 %v898_v11, %v897_v9  ;;  %v1577_v17 = vpack.c.bf16 %v864_v12, %v863_v10  ;;  %v1788_v18 = vpop.f32.mrb[16].mxu0 }
 0x107   : > { %1710 = vst [vmem:[%s2050_s27 + $0x38] sm:$0xff] %v1582_v14   ;;  %v1657_v19 = vpack.c.bf16 %v896_v15, %v895_v13  ;;  %v669_v20 = vadd.f32 %v1788_v18, %v2035_v33  ;;  %v1820_v21 = vpop.f32.mrb[16].mxu1  ;;  %v660_v22 = vpop.f32.mrb[17].mxu0 }
 0x108   : > { %1726 = vst [vmem:[%s2050_s27 + $0xb8] sm:$0xff] %v1662_v16   ;;  %1709 = vst [vmem:[%s2050_s27 + $0x30] sm:$0xff] %v1577_v17   ;;  %v797_v23 = vadd.f32 %v1820_v21, %v2035_v33  ;;  %v661_v24 = vadd.f32 %v2035_v33, %v660_v22  ;;  %v788_v25 = vpop.f32.mrb[17].mxu1  ;;  %v1789_v26 = vpop.f32.mrb[18].mxu0 }
 0x109   : > { %1725 = vst [vmem:[%s2050_s27 + $0xb0] sm:$0xff] %v1657_v19   ;;  %v789_v27 = vadd.f32 %v2035_v33, %v788_v25  ;;  %v672_v28 = vadd.f32 %v1789_v26, %v2035_v33  ;;  %v1821_v29 = vpop.f32.mrb[18].mxu1  ;;  %v663_v30 = vpop.f32.mrb[19].mxu0  ;;  %v869_v35 = vmax.f32 %v669_v20, 0.0 }
 0x10a   : > { %v800_v31 = vadd.f32 %v1821_v29, %v2035_v33  ;;  %v664_v32 = vadd.f32 %v2035_v33, %v663_v30  ;;  %v791_v34 = vpop.f32.mrb[19].mxu1  ;;  %v901_v38 = vmax.f32 %v797_v23, 0.0  ;;  %v867_v39 = vmax.f32 %v661_v24, 0.0 }
 0x10b   : > { %v870_v36 = vmax.f32 %v672_v28, 0.0  ;;  %v792_v37 = vadd.f32 %v2035_v33, %v791_v34  ;;  %v899_v42 = vmax.f32 %v789_v27, 0.0 }
 0x10c   : > { %v902_v40 = vmax.f32 %v800_v31, 0.0  ;;  %v868_v41 = vmax.f32 %v664_v32, 0.0 }
 0x10d   : > { %v1592_v43 = vpack.c.bf16 %v870_v36, %v869_v35  ;;  %v900_v44 = vmax.f32 %v792_v37, 0.0 }
 0x10e   : > { %v1672_v45 = vpack.c.bf16 %v902_v40, %v901_v38  ;;  %v1587_v46 = vpack.c.bf16 %v868_v41, %v867_v39  ;;  %v1792_v47 = vpop.f32.mrb[20].mxu0 }
 0x10f   : > { %1712 = vst [vmem:[%s2050_s27 + $0x48] sm:$0xff] %v1592_v43   ;;  %v1667_v48 = vpack.c.bf16 %v900_v44, %v899_v42  ;;  %v685_v49 = vadd.f32 %v1792_v47, %v2035_v33  ;;  %v1824_v50 = vpop.f32.mrb[20].mxu1  ;;  %v676_v51 = vpop.f32.mrb[21].mxu0 }
 0x110   : > { %1728 = vst [vmem:[%s2050_s27 + $0xc8] sm:$0xff] %v1672_v45   ;;  %1711 = vst [vmem:[%s2050_s27 + $0x40] sm:$0xff] %v1587_v46   ;;  %v813_v52 = vadd.f32 %v1824_v50, %v2035_v33  ;;  %v677_v53 = vadd.f32 %v2035_v33, %v676_v51  ;;  %v804_v54 = vpop.f32.mrb[21].mxu1  ;;  %v1793_v55 = vpop.f32.mrb[22].mxu0 }
 0x111   : > { %1727 = vst [vmem:[%s2050_s27 + $0xc0] sm:$0xff] %v1667_v48   ;;  %v805_v56 = vadd.f32 %v2035_v33, %v804_v54  ;;  %v688_v57 = vadd.f32 %v1793_v55, %v2035_v33  ;;  %v1825_v58 = vpop.f32.mrb[22].mxu1  ;;  %v679_v59 = vpop.f32.mrb[23].mxu0  ;;  %v873_v63 = vmax.f32 %v685_v49, 0.0 }
 0x112   : > { %v816_v60 = vadd.f32 %v1825_v58, %v2035_v33  ;;  %v680_v61 = vadd.f32 %v2035_v33, %v679_v59  ;;  %v807_v62 = vpop.f32.mrb[23].mxu1  ;;  %v905_v2 = vmax.f32 %v813_v52, 0.0  ;;  %v871_v3 = vmax.f32 %v677_v53, 0.0 }
 0x113   : > { %v874_v0 = vmax.f32 %v688_v57, 0.0  ;;  %v808_v1 = vadd.f32 %v2035_v33, %v807_v62  ;;  %v903_v6 = vmax.f32 %v805_v56, 0.0 }
 0x114   : > { %v906_v4 = vmax.f32 %v816_v60, 0.0  ;;  %v872_v5 = vmax.f32 %v680_v61, 0.0 }
 0x115   : > { %v1602_v7 = vpack.c.bf16 %v874_v0, %v873_v63  ;;  %v904_v8 = vmax.f32 %v808_v1, 0.0 }
 0x116   : > { %v1682_v9 = vpack.c.bf16 %v906_v4, %v905_v2  ;;  %v1597_v10 = vpack.c.bf16 %v872_v5, %v871_v3  ;;  %v1796_v11 = vpop.f32.mrb[24].mxu0 }
 0x117   : > { %1714 = vst [vmem:[%s2050_s27 + $0x58] sm:$0xff] %v1602_v7   ;;  %v1677_v12 = vpack.c.bf16 %v904_v8, %v903_v6  ;;  %v701_v13 = vadd.f32 %v1796_v11, %v2035_v33  ;;  %v1828_v14 = vpop.f32.mrb[24].mxu1  ;;  %v692_v15 = vpop.f32.mrb[25].mxu0 }
 0x118   : > { %1730 = vst [vmem:[%s2050_s27 + $0xd8] sm:$0xff] %v1682_v9   ;;  %1713 = vst [vmem:[%s2050_s27 + $0x50] sm:$0xff] %v1597_v10   ;;  %v829_v16 = vadd.f32 %v1828_v14, %v2035_v33  ;;  %v693_v17 = vadd.f32 %v2035_v33, %v692_v15  ;;  %v820_v18 = vpop.f32.mrb[25].mxu1  ;;  %v1797_v19 = vpop.f32.mrb[26].mxu0 }
 0x119   : > { %1729 = vst [vmem:[%s2050_s27 + $0xd0] sm:$0xff] %v1677_v12   ;;  %v821_v20 = vadd.f32 %v2035_v33, %v820_v18  ;;  %v704_v21 = vadd.f32 %v1797_v19, %v2035_v33  ;;  %v1829_v22 = vpop.f32.mrb[26].mxu1  ;;  %v695_v23 = vpop.f32.mrb[27].mxu0  ;;  %v877_v27 = vmax.f32 %v701_v13, 0.0 }
 0x11a   : > { %v832_v24 = vadd.f32 %v1829_v22, %v2035_v33  ;;  %v696_v25 = vadd.f32 %v2035_v33, %v695_v23  ;;  %v823_v26 = vpop.f32.mrb[27].mxu1  ;;  %v909_v30 = vmax.f32 %v829_v16, 0.0  ;;  %v875_v31 = vmax.f32 %v693_v17, 0.0 }
 0x11b   : > { %v878_v28 = vmax.f32 %v704_v21, 0.0  ;;  %v824_v29 = vadd.f32 %v2035_v33, %v823_v26  ;;  %v907_v35 = vmax.f32 %v821_v20, 0.0 }
 0x11c   : > { %v910_v32 = vmax.f32 %v832_v24, 0.0  ;;  %v876_v34 = vmax.f32 %v696_v25, 0.0 }
 0x11d   : > { %v1612_v36 = vpack.c.bf16 %v878_v28, %v877_v27  ;;  %v908_v37 = vmax.f32 %v824_v29, 0.0 }
 0x11e   : > { %v1692_v38 = vpack.c.bf16 %v910_v32, %v909_v30  ;;  %v1607_v39 = vpack.c.bf16 %v876_v34, %v875_v31  ;;  %v1800_v40 = vpop.f32.mrb[28].mxu0 }
 0x11f   : > { %1716 = vst [vmem:[%s2050_s27 + $0x68] sm:$0xff] %v1612_v36   ;;  %v1687_v41 = vpack.c.bf16 %v908_v37, %v907_v35  ;;  %v717_v42 = vadd.f32 %v1800_v40, %v2035_v33  ;;  %v1832_v43 = vpop.f32.mrb[28].mxu1  ;;  %v708_v44 = vpop.f32.mrb[29].mxu0 }
 0x120   : > { %1732 = vst [vmem:[%s2050_s27 + $0xe8] sm:$0xff] %v1692_v38   ;;  %1715 = vst [vmem:[%s2050_s27 + $0x60] sm:$0xff] %v1607_v39   ;;  %v845_v45 = vadd.f32 %v1832_v43, %v2035_v33  ;;  %v709_v46 = vadd.f32 %v2035_v33, %v708_v44  ;;  %v836_v47 = vpop.f32.mrb[29].mxu1  ;;  %v1801_v48 = vpop.f32.mrb[30].mxu0 }
 0x121   : > { %1731 = vst [vmem:[%s2050_s27 + $0xe0] sm:$0xff] %v1687_v41   ;;  %v837_v49 = vadd.f32 %v2035_v33, %v836_v47  ;;  %v720_v50 = vadd.f32 %v1801_v48, %v2035_v33  ;;  %v1833_v51 = vpop.f32.mrb[30].mxu1  ;;  %v711_v52 = vpop.f32.mrb[31].mxu0  ;;  %v881_v56 = vmax.f32 %v717_v42, 0.0 }
 0x122   : > { %v848_v53 = vadd.f32 %v1833_v51, %v2035_v33  ;;  %v712_v54 = vadd.f32 %v2035_v33, %v711_v52  ;;  %v839_v55 = vpop.f32.mrb[31].mxu1  ;;  %v913_v59 = vmax.f32 %v845_v45, 0.0  ;;  %v879_v60 = vmax.f32 %v709_v46, 0.0 }
 0x123   : > { %v882_v57 = vmax.f32 %v720_v50, 0.0  ;;  %v840_v58 = vadd.f32 %v2035_v33, %v839_v55  ;;  %v911_v63 = vmax.f32 %v837_v49, 0.0 }
 0x124   : > { %v914_v61 = vmax.f32 %v848_v53, 0.0  ;;  %v880_v62 = vmax.f32 %v712_v54, 0.0 }
 0x125   : > { %v1622_v0 = vpack.c.bf16 %v882_v57, %v881_v56  ;;  %v912_v1 = vmax.f32 %v840_v58, 0.0 }
 0x126   : > { %v1702_v2 = vpack.c.bf16 %v914_v61, %v913_v59  ;;  %v1617_v3 = vpack.c.bf16 %v880_v62, %v879_v60 }
 0x127   : > { %1718 = vst [vmem:[%s2050_s27 + $0x78] sm:$0xff] %v1622_v0   ;;  %v1697_v4 = vpack.c.bf16 %v912_v1, %v911_v63 }
 0x128   : > { %1734 = vst [vmem:[%s2050_s27 + $0xf8] sm:$0xff] %v1702_v2   ;;  %1717 = vst [vmem:[%s2050_s27 + $0x70] sm:$0xff] %v1617_v3  }
 0x129   : > { %1733 = vst [vmem:[%s2050_s27 + $0xf0] sm:$0xff] %v1697_v4  }
 0x12a PF: > { %s13_s14 = sadd.s32 1, %s1915_s14   ;;  %s2153_s12 = smov %s1911_s13 }
 0x12b   : > { %p10_p5 = scmp.ge.s32.totalorder %s13_s14, 9   ;;  %s2154_s13 = smov %s2156_s15 }
 0x12d   :  { %12 = sbr.rel (!%p10_p5) target bundleno = 2 (0x2), region = 68 }

// kernel: net_forward.6
= control target key start
LH: loop header
LB: loop body
LE: loop exit
PB: predicated region body
PF: predicated region fallthrough
CT: control target
= control target key end

     0   :  { %s2910_s12 = smov 0   ;;  %s2912_s13 = smov 0   ;;  %s3457_s0 = inlined_call_operand.vmem [shape: bf16[3248,288], index: 0, kind: input, shape index: {}]   ;;  %s3458_s1 = inlined_call_operand.vmem [shape: bf16[288,128], index: 1, kind: input, shape index: {}]   ;;  %s3459_s2 = inlined_call_operand.vmem [shape: f32[1,128], index: 2, kind: input, shape index: {}]   ;;  %s3460_s3 = inlined_call_operand.vmem [shape: bf16[3248,128], index: 3, kind: output, shape index: {}]  }
   0x1   :  { %s2914_s14 = smov 0  }
   0x2 LB: > { %s25_s15 = sadd.s32 1, %s2881_s13  ;;  %p2005_p0 = scmp.ge.s32.totalorder %s2885_s14, 1  ;;  %s2885_s14 = sphi %s2914_s14, %s13_s14   ;;  %s2881_s13 = sphi %s2912_s13, %s3462_s13   ;;  %s2877_s12 = sphi %s2910_s12, %s3461_s12  }
   0x3   : > { %p27_p1 = scmp.ge.s32.totalorder %s25_s15, 7  ;;  %p170_p2 = scmp.lt.s32.totalorder %s2885_s14, 8 }
   0x5   : > { %s3464_s15 = smov (%p27_p1, %s25_s15), 0  ;;  %p171_p3 = pnand %p2005_p0, %p170_p2 }
   0x6   : > { %v2729_v0 = vld [vmem:[%s3458_s1] sm:$0xff] (!%p171_p3)   ;;  %v2887_v1 = vmov (!%p171_p3), 0   ;;  %v2730_v2 = vld [vmem:[%s3458_s1 + $0x8] sm:$0xff] (!%p171_p3)   ;;  %v2888_v3 = vmov (!%p171_p3), 0.0   ;;  %vm2889_vm0 = vmmov (!%p171_p3), 0   ;;  %s205_s20 = smul.u32 (!%p171_p3), 58, %s2877_s12 }
   0x7   : > { %174 = sbr.rel (%p171_p3) target bundleno = 518 (0x206), region = 32  ;;  %1019 = vmatprep.subr.bf16.mxu1 (!%p171_p3), %v2887_v1  ;;  %2465 = vmatprep.subr.bf16.mxu0 (!%p171_p3), %v2888_v3  ;;  %v2731_v4 = vld [vmem:[%s3458_s1 + $0x10] sm:$0xff] (!%p171_p3)   ;;  %v2732_v5 = vld [vmem:[%s3458_s1 + $0x18] sm:$0xff] (!%p171_p3)   ;;  %v2733_v6 = vld [vmem:[%s3458_s1 + $0x20] sm:$0xff] (!%p171_p3)   ;;  %vm931_vm1 = vcmask (!%p171_p3), 261120  }
   0x8   : > { %1020 = vmatpush1.bf16.msra.mxu1 (!%p171_p3), %v2729_v0  ;;  %2469 = vmatprep.mubr.msk.bf16.mxu0 (!%p171_p3), %vm2889_vm0, %v2888_v3  ;;  %p206_p4 = scmp.lt.s32.totalorder (!%p171_p3), %s205_s20, 405  ;;  %v2743_v7 = vld [vmem:[%s3458_s1 + $0x80] sm:$0xff] (!%p171_p3)   ;;  %v2745_v8 = vld [vmem:[%s3458_s1 + $0x88] sm:$0xff] (!%p171_p3)   ;;  %v2735_v12 = vld [vmem:[%s3458_s1 + $0x30] sm:$0xff] (!%p171_p3)  }
   0x9   : > { %1021 = vmatprep.subr.bf16.mxu1 (!%p171_p3), %v2887_v1  ;;  %2466 = vmatpush3.bf16.msra.mxu0 (!%p171_p3), %v2743_v7  ;;  %v2734_v9 = vld [vmem:[%s3458_s1 + $0x28] sm:$0xff] (!%p171_p3)   ;;  %v2736_v13 = vld [vmem:[%s3458_s1 + $0x38] sm:$0xff] (!%p171_p3)   ;;  %v2737_v15 = vld [vmem:[%s3458_s1 + $0x40] sm:$0xff] (!%p171_p3)  }
   0xa   : > { %2467 = vmatprep.subr.bf16.mxu0 (!%p171_p3), %v2888_v3  ;;  %v2738_v16 = vld [vmem:[%s3458_s1 + $0x48] sm:$0xff] (!%p171_p3)   ;;  %v2739_v18 = vld [vmem:[%s3458_s1 + $0x50] sm:$0xff] (!%p171_p3)   ;;  %v2740_v19 = vld [vmem:[%s3458_s1 + $0x58] sm:$0xff] (!%p171_p3)  }
   0xb   : > { %v2741_v21 = vld [vmem:[%s3458_s1 + $0x60] sm:$0xff] (!%p171_p3)   ;;  %v2742_v22 = vld [vmem:[%s3458_s1 + $0x68] sm:$0xff] (!%p171_p3)   ;;  %v2744_v24 = vld [vmem:[%s3458_s1 + $0x70] sm:$0xff] (!%p171_p3)  }
   0xc   : > { %1022 = vmatpush1.bf16.msra.mxu1 (!%p171_p3), %v2730_v2  ;;  %v2746_v25 = vld [vmem:[%s3458_s1 + $0x78] sm:$0xff] (!%p171_p3)  }
   0xd   : > { %1023 = vmatprep.subr.bf16.mxu1 (!%p171_p3), %v2887_v1  ;;  %2468 = vmatpush3.bf16.msra.mxu0 (!%p171_p3), %v2745_v8 }
   0xe   : > { %s3466_s20 = smov (!%p206_p4, %s205_s20), 405 }
   0xf   : > { %s2701_s25 = smul.u32 12, %s3466_s20  ;;  %s2007_s10 = sshll.u32 %s3466_s20, 2 }
  0x10   : > { %1024 = vmatpush1.bf16.msra.mxu1 %v2731_v4  ;;  %s3214_s16 = scalar_lea.vmem %s3460_s3, %s2007_s10 }
  0x11   : > { %1025 = vmatprep.subr.bf16.mxu1 %v2887_v1  ;;  %s2963_s7 = scalar_lea.vmem %s3457_s0, %s2701_s25 }
  0x12   : > { %v2749_v10 = vld [vmem:[%s2963_s7 + $0x4] ss:$12 sps:$4 sm:$0xff]   ;;  %v2750_v11 = vld [vmem:[%s2963_s7 + $0x8] ss:$12 sps:$4 sm:$0xff]   ;;  %v2753_v14 = vld [vmem:[%s2963_s7 + $0x20] ss:$12 sps:$4 sm:$0xff]  }
  0x13   : > { %1051 = vmatprep.mubr.bf16.mxu1 %v2749_v10  ;;  %2470 = vmatmul.mubr.msk.bf16.vlgmr.msra.gmra.mrb[0].mxu0 %vm931_vm1, %v2750_v11  ;;  %v2757_v17 = vld [vmem:[%s2963_s7 + $0x38] ss:$12 sps:$4 sm:$0xff]   ;;  %v2761_v20 = vld [vmem:[%s2963_s7 + $0x50] ss:$12 sps:$4 sm:$0xff]   ;;  %v2765_v23 = vld [vmem:[%s2963_s7 + $0x68] ss:$12 sps:$4 sm:$0xff]  }
  0x14   : > { %1026 = vmatpush1.bf16.msra.mxu1 %v2732_v5  ;;  %2473 = vmatprep.mubr.msk.bf16.mxu0 %vm2889_vm0, %v2888_v3  ;;  %v2769_v26 = vld [vmem:[%s2963_s7 + $0x80] ss:$12 sps:$4 sm:$0xff]   ;;  %v2751_v28 = vld [vmem:[%s2963_s7 + $0x1c] ss:$12 sps:$4 sm:$0xff]   ;;  %v2773_v29 = vld [vmem:[%s2963_s7 + $0x98] ss:$12 sps:$4 sm:$0xff]  }
  0x15   : > { %1027 = vmatprep.subr.bf16.mxu1 %v2887_v1  ;;  %v2747_v27 = vld [vmem:[%s2963_s7] ss:$12 sps:$4 sm:$0xff]   ;;  %v2754_v30 = vld [vmem:[%s2963_s7 + $0x18] ss:$12 sps:$4 sm:$0xff]   ;;  %v2777_v32 = vld [vmem:[%s2963_s7 + $0xb0] ss:$12 sps:$4 sm:$0xff]  }
  0x16   : > { %v2755_v31 = vld [vmem:[%s2963_s7 + $0x34] ss:$12 sps:$4 sm:$0xff]   ;;  %v2758_v33 = vld [vmem:[%s2963_s7 + $0x30] ss:$12 sps:$4 sm:$0xff]   ;;  %v2759_v34 = vld [vmem:[%s2963_s7 + $0x4c] ss:$12 sps:$4 sm:$0xff]  }
  0x17   : > { %v2781_v35 = vld [vmem:[%s2963_s7 + $0xc8] ss:$12 sps:$4 sm:$0xff]   ;;  %v2763_v37 = vld [vmem:[%s2963_s7 + $0x64] ss:$12 sps:$4 sm:$0xff]   ;;  %v2785_v38 = vld [vmem:[%s2963_s7 + $0xe0] ss:$12 sps:$4 sm:$0xff]  }
  0x18   : > { %1028 = vmatpush1.bf16.msra.mxu1 %v2733_v6  ;;  %v2762_v36 = vld [vmem:[%s2963_s7 + $0x48] ss:$12 sps:$4 sm:$0xff]   ;;  %v2766_v39 = vld [vmem:[%s2963_s7 + $0x60] ss:$12 sps:$4 sm:$0xff]   ;;  %v2789_v41 = vld [vmem:[%s2963_s7 + $0xf8] ss:$12 sps:$4 sm:$0xff]  }
  0x19   : > { %1029 = vmatprep.subr.bf16.mxu1 %v2887_v1  ;;  %v2767_v40 = vld [vmem:[%s2963_s7 + $0x7c] ss:$12 sps:$4 sm:$0xff]   ;;  %v2770_v42 = vld [vmem:[%s2963_s7 + $0x78] ss:$12 sps:$4 sm:$0xff]   ;;  %v2771_v43 = vld [vmem:[%s2963_s7 + $0x94] ss:$12 sps:$4 sm:$0xff]  }
  0x1a   : > { %v2793_v44 = vld [vmem:[%s2963_s7 + $0x110] ss:$12 sps:$4 sm:$0xff]   ;;  %v2775_v46 = vld [vmem:[%s2963_s7 + $0xac] ss:$12 sps:$4 sm:$0xff]   ;;  %v2797_v47 = vld [vmem:[%s2963_s7 + $0x128] ss:$12 sps:$4 sm:$0xff]  }
  0x1b   : > { %2474 = vmatmul.mubr.msk.bf16.gmra.mrb[4].mxu0 %vm931_vm1, %v2753_v14  ;;  %v2774_v45 = vld [vmem:[%s2963_s7 + $0x90] ss:$12 sps:$4 sm:$0xff]   ;;  %v2778_v48 = vld [vmem:[%s2963_s7 + $0xa8] ss:$12 sps:$4 sm:$0xff]   ;;  %v2801_v50 = vld [vmem:[%s2963_s7 + $0x140] ss:$12 sps:$4 sm:$0xff]  }
  0x1c   : > { %1030 = vmatpush1.bf16.msra.mxu1 %v2734_v9  ;;  %2477 = vmatprep.mubr.msk.bf16.mxu0 %vm2889_vm0, %v2888_v3  ;;  %v2779_v49 = vld [vmem:[%s2963_s7 + $0xc4] ss:$12 sps:$4 sm:$0xff]   ;;  %v2782_v51 = vld [vmem:[%s2963_s7 + $0xc0] ss:$12 sps:$4 sm:$0xff]   ;;  %v2783_v52 = vld [vmem:[%s2963_s7 + $0xdc] ss:$12 sps:$4 sm:$0xff]  }
  0x1d   : > { %1031 = vmatprep.subr.bf16.mxu1 %v2887_v1  ;;  %v2805_v53 = vld [vmem:[%s2963_s7 + $0x158] ss:$12 sps:$4 sm:$0xff]   ;;  %v2787_v55 = vld [vmem:[%s2963_s7 + $0xf4] ss:$12 sps:$4 sm:$0xff]   ;;  %v2809_v56 = vld [vmem:[%s2963_s7 + $0x170] ss:$12 sps:$4 sm:$0xff]  }
  0x1e   : > { %v2786_v54 = vld [vmem:[%s2963_s7 + $0xd8] ss:$12 sps:$4 sm:$0xff]   ;;  %v2790_v57 = vld [vmem:[%s2963_s7 + $0xf0] ss:$12 sps:$4 sm:$0xff]   ;;  %v2813_v59 = vld [vmem:[%s2963_s7 + $0x188] ss:$12 sps:$4 sm:$0xff]  }
  0x1f   : > { %v2791_v58 = vld [vmem:[%s2963_s7 + $0x10c] ss:$12 sps:$4 sm:$0xff]   ;;  %v2794_v60 = vld [vmem:[%s2963_s7 + $0x108] ss:$12 sps:$4 sm:$0xff]   ;;  %v2795_v61 = vld [vmem:[%s2963_s7 + $0x124] ss:$12 sps:$4 sm:$0xff]  }
  0x20   : > { %1032 = vmatpush1.bf16.msra.mxu1 %v2735_v12  ;;  %v2817_v62 = vld [vmem:[%s2963_s7 + $0x1a0] ss:$12 sps:$4 sm:$0xff]   ;;  %v2799_v0 = vld [vmem:[%s2963_s7 + $0x13c] ss:$12 sps:$4 sm:$0xff]   ;;  %v2802_v2 = vld [vmem:[%s2963_s7 + $0x138] ss:$12 sps:$4 sm:$0xff]  }
  0x21   : > { %1033 = vmatprep.subr.bf16.mxu1 %v2887_v1  ;;  %v2798_v63 = vld [vmem:[%s2963_s7 + $0x120] ss:$12 sps:$4 sm:$0xff]   ;;  %v2825_v5 = vld [vmem:[%s2963_s7 + $0x1d0] ss:$12 sps:$4 sm:$0xff]   ;;  %v2829_v8 = vld [vmem:[%s2963_s7 + $0x1e8] ss:$12 sps:$4 sm:$0xff]  }
  0x22   : > { %v2803_v4 = vld [vmem:[%s2963_s7 + $0x154] ss:$12 sps:$4 sm:$0xff]   ;;  %v2806_v6 = vld [vmem:[%s2963_s7 + $0x150] ss:$12 sps:$4 sm:$0xff]   ;;  %v2807_v7 = vld [vmem:[%s2963_s7 + $0x16c] ss:$12 sps:$4 sm:$0xff]  }
  0x23   : > { %2478 = vmatmul.mubr.msk.bf16.gmra.mrb[8].mxu0 %vm931_vm1, %v2757_v17  ;;  %v2810_v9 = vld [vmem:[%s2963_s7 + $0x168] ss:$12 sps:$4 sm:$0xff]   ;;  %v2811_v10 = vld [vmem:[%s2963_s7 + $0x184] ss:$12 sps:$4 sm:$0xff]   ;;  %v2833_v11 = vld [vmem:[%s2963_s7 + $0x200] ss:$12 sps:$4 sm:$0xff]  }
  0x24   : > { %1034 = vmatpush1.bf16.msra.mxu1 %v2736_v13  ;;  %2481 = vmatprep.mubr.msk.bf16.mxu0 %vm2889_vm0, %v2888_v3  ;;  %v2814_v12 = vld [vmem:[%s2963_s7 + $0x180] ss:$12 sps:$4 sm:$0xff]   ;;  %v2815_v13 = vld [vmem:[%s2963_s7 + $0x19c] ss:$12 sps:$4 sm:$0xff]   ;;  %v2837_v14 = vld [vmem:[%s2963_s7 + $0x218] ss:$12 sps:$4 sm:$0xff]  }
  0x25   : > { %1035 = vmatprep.subr.bf16.mxu1 %v2887_v1  ;;  %v2841_v17 = vld [vmem:[%s2963_s7 + $0x230] ss:$12 sps:$4 sm:$0xff]  }
  0x28   : > { %1036 = vmatpush1.bf16.msra.mxu1 %v2737_v15  ;;  %v2818_v15 = vld [vmem:[%s2963_s7 + $0x198] ss:$12 sps:$4 sm:$0xff]  }
  0x29   : > { %1037 = vmatprep.subr.bf16.mxu1 %v2887_v1 }
  0x2b   : > { %2482 = vmatmul.mubr.msk.bf16.gmra.mrb[12].mxu0 %vm931_vm1, %v2761_v20  ;;  %v2845_v20 = vld [vmem:[%s2963_s7 + $0x248] ss:$12 sps:$4 sm:$0xff]  }
  0x2c   : > { %1038 = vmatpush1.bf16.msra.mxu1 %v2738_v16  ;;  %2485 = vmatprep.mubr.msk.bf16.mxu0 %vm2889_vm0, %v2888_v3  ;;  %v2819_v16 = vld [vmem:[%s2963_s7 + $0x1b4] ss:$12 sps:$4 sm:$0xff]  }
  0x2d   : > { %1039 = vmatprep.subr.bf16.mxu1 %v2887_v1 }
  0x30   : > { %1040 = vmatpush1.bf16.msra.mxu1 %v2739_v18  ;;  %v2822_v18 = vld [vmem:[%s2963_s7 + $0x1b0] ss:$12 sps:$4 sm:$0xff]  }
  0x31   : > { %1041 = vmatprep.subr.bf16.mxu1 %v2887_v1 }
  0x33   : > { %2486 = vmatmul.mubr.msk.bf16.gmra.mrb[16].mxu0 %vm931_vm1, %v2765_v23  ;;  %v2849_v23 = vld [vmem:[%s2963_s7 + $0x260] ss:$12 sps:$4 sm:$0xff]  }
  0x34   : > { %1042 = vmatpush1.bf16.msra.mxu1 %v2740_v19  ;;  %2489 = vmatprep.mubr.msk.bf16.mxu0 %vm2889_vm0, %v2888_v3  ;;  %v2823_v19 = vld [vmem:[%s2963_s7 + $0x1cc] ss:$12 sps:$4 sm:$0xff]  }
  0x35   : > { %1043 = vmatprep.subr.bf16.mxu1 %v2887_v1 }
  0x38   : > { %1044 = vmatpush1.bf16.msra.mxu1 %v2741_v21  ;;  %v2826_v21 = vld [vmem:[%s2963_s7 + $0x1c8] ss:$12 sps:$4 sm:$0xff]  }
  0x39   : > { %1045 = vmatprep.subr.bf16.mxu1 %v2887_v1 }
  0x3b   : > { %2490 = vmatmul.mubr.msk.bf16.gmra.mrb[20].mxu0 %vm931_vm1, %v2769_v26  ;;  %v2853_v26 = vld [vmem:[%s2963_s7 + $0x278] ss:$12 sps:$4 sm:$0xff]  }
  0x3c   : > { %1046 = vmatpush1.bf16.msra.mxu1 %v2742_v22  ;;  %2493 = vmatprep.mubr.msk.bf16.mxu0 %vm2889_vm0, %v2888_v3  ;;  %v2827_v22 = vld [vmem:[%s2963_s7 + $0x1e4] ss:$12 sps:$4 sm:$0xff]  }
  0x3d   : > { %1047 = vmatprep.subr.bf16.mxu1 %v2887_v1 }
  0x40   : > { %1048 = vmatpush1.bf16.msra.mxu1 %v2744_v24  ;;  %v2830_v24 = vld [vmem:[%s2963_s7 + $0x1e0] ss:$12 sps:$4 sm:$0xff]  }
  0x41   : > { %1049 = vmatprep.subr.bf16.mxu1 %v2887_v1  ;;  %v2821_v1 = vld [vmem:[%s2963_s7 + $0x1b8] ss:$12 sps:$4 sm:$0xff]  }
  0x43   : > { %2494 = vmatmul.mubr.msk.bf16.gmra.mrb[24].mxu0 %vm931_vm1, %v2773_v29 }
  0x44   : > { %1050 = vmatpush1.bf16.msra.mxu1 %v2746_v25  ;;  %2497 = vmatprep.mubr.msk.bf16.mxu0 %vm2889_vm0, %v2888_v3  ;;  %v2831_v25 = vld [vmem:[%s2963_s7 + $0x1fc] ss:$12 sps:$4 sm:$0xff]  }
  0x47   : > { %1052 = vmatmul.mubr.bf16.vlgmr.msra.gmra.mrb[0].mxu1 %v2747_v27  ;;  %v2834_v27 = vld [vmem:[%s2963_s7 + $0x1f8] ss:$12 sps:$4 sm:$0xff]  }
  0x48   : > { %1059 = vmatprep.mubr.bf16.mxu1 %v2751_v28  ;;  %v2835_v28 = vld [vmem:[%s2963_s7 + $0x214] ss:$12 sps:$4 sm:$0xff]  }
  0x4b   : > { %2498 = vmatmul.mubr.msk.bf16.gmra.mrb[28].mxu0 %vm931_vm1, %v2777_v32 }
  0x4c   : > { %2501 = vmatprep.mubr.msk.bf16.mxu0 %vm2889_vm0, %v2888_v3 }
  0x4f   : > { %1060 = vmatmul.mubr.bf16.gmra.mrb[4].mxu1 %v2754_v30 }
  0x50   : > { %1067 = vmatprep.mubr.bf16.mxu1 %v2755_v31  ;;  %v2857_v31 = vld [vmem:[%s2963_s7 + $0x290] ss:$12 sps:$4 sm:$0xff]  }
  0x53   : > { %2502 = vmatmul.mubr.msk.bf16.gmra.mrb[32].mxu0 %vm931_vm1, %v2781_v35  ;;  %v2839_v35 = vld [vmem:[%s2963_s7 + $0x22c] ss:$12 sps:$4 sm:$0xff]  }
  0x54   : > { %2505 = vmatprep.mubr.msk.bf16.mxu0 %vm2889_vm0, %v2888_v3 }
  0x57   : > { %1068 = vmatmul.mubr.bf16.gmra.mrb[8].mxu1 %v2758_v33  ;;  %v2838_v33 = vld [vmem:[%s2963_s7 + $0x210] ss:$12 sps:$4 sm:$0xff]  }
  0x58   : > { %1075 = vmatprep.mubr.bf16.mxu1 %v2759_v34 }
  0x5b   : > { %2506 = vmatmul.mubr.msk.bf16.gmra.mrb[36].mxu0 %vm931_vm1, %v2785_v38  ;;  %v2861_v38 = vld [vmem:[%s2963_s7 + $0x2a8] ss:$12 sps:$4 sm:$0xff]  }
  0x5c   : > { %2509 = vmatprep.mubr.msk.bf16.mxu0 %vm2889_vm0, %v2888_v3 }
  0x5f   : > { %1076 = vmatmul.mubr.bf16.gmra.mrb[12].mxu1 %v2762_v36 }
  0x60   : > { %1083 = vmatprep.mubr.bf16.mxu1 %v2763_v37 }
  0x63   : > { %2510 = vmatmul.mubr.msk.bf16.gmra.mrb[40].mxu0 %vm931_vm1, %v2789_v41 }
  0x64   : > { %2513 = vmatprep.mubr.msk.bf16.mxu0 %vm2889_vm0, %v2888_v3 }
  0x67   : > { %1084 = vmatmul.mubr.bf16.gmra.mrb[16].mxu1 %v2766_v39 }
  0x68   : > { %1091 = vmatprep.mubr.bf16.mxu1 %v2767_v40  ;;  %v2842_v40 = vld [vmem:[%s2963_s7 + $0x228] ss:$12 sps:$4 sm:$0xff]  }
  0x6b   : > { %2514 = vmatmul.mubr.msk.bf16.gmra.mrb[44].mxu0 %vm931_vm1, %v2793_v44 }
  0x6c   : > { %2517 = vmatprep.mubr.msk.bf16.mxu0 %vm2889_vm0, %v2888_v3 }
  0x6f   : > { %1092 = vmatmul.mubr.bf16.gmra.mrb[20].mxu1 %v2770_v42  ;;  %v2843_v42 = vld [vmem:[%s2963_s7 + $0x244] ss:$12 sps:$4 sm:$0xff]  }
  0x70   : > { %1099 = vmatprep.mubr.bf16.mxu1 %v2771_v43 }
  0x73   : > { %2518 = vmatmul.mubr.msk.bf16.gmra.mrb[48].mxu0 %vm931_vm1, %v2797_v47  ;;  %v2847_v47 = vld [vmem:[%s2963_s7 + $0x25c] ss:$12 sps:$4 sm:$0xff]  }
  0x74   : > { %2521 = vmatprep.mubr.msk.bf16.mxu0 %vm2889_vm0, %v2888_v3 }
  0x77   : > { %1100 = vmatmul.mubr.bf16.gmra.mrb[24].mxu1 %v2774_v45  ;;  %v2846_v45 = vld [vmem:[%s2963_s7 + $0x240] ss:$12 sps:$4 sm:$0xff]  }
  0x78   : > { %1107 = vmatprep.mubr.bf16.mxu1 %v2775_v46 }
  0x7b   : > { %2522 = vmatmul.mubr.msk.bf16.gmra.mrb[52].mxu0 %vm931_vm1, %v2801_v50 }
  0x7c   : > { %2525 = vmatprep.mubr.msk.bf16.mxu0 %vm2889_vm0, %v2888_v3 }
  0x7f   : > { %1108 = vmatmul.mubr.bf16.gmra.mrb[28].mxu1 %v2778_v48 }
  0x80   : > { %1115 = vmatprep.mubr.bf16.mxu1 %v2779_v49 }
  0x83   : > { %2526 = vmatmul.mubr.msk.bf16.gmra.mrb[56].mxu0 %vm931_vm1, %v2805_v53  ;;  %v2851_v53 = vld [vmem:[%s2963_s7 + $0x274] ss:$12 sps:$4 sm:$0xff]  }
  0x84   : > { %2529 = vmatprep.mubr.msk.bf16.mxu0 %vm2889_vm0, %v2888_v3 }
  0x87   : > { %1116 = vmatmul.mubr.bf16.gmra.mrb[32].mxu1 %v2782_v51  ;;  %v2850_v51 = vld [vmem:[%s2963_s7 + $0x258] ss:$12 sps:$4 sm:$0xff]  }
  0x88   : > { %1123 = vmatprep.mubr.bf16.mxu1 %v2783_v52 }
  0x8b   : > { %2530 = vmatmul.mubr.msk.bf16.gmra.mrb[60].mxu0 %vm931_vm1, %v2809_v56 }
  0x8c   : > { %2533 = vmatprep.mubr.msk.bf16.mxu0 %vm2889_vm0, %v2888_v3 }
  0x8f   : > { %1124 = vmatmul.mubr.bf16.gmra.mrb[36].mxu1 %v2786_v54 }
  0x90   : > { %1131 = vmatprep.mubr.bf16.mxu1 %v2787_v55 }
  0x93   : > { %2534 = vmatmul.mubr.msk.bf16.gmra.mrb[64].mxu0 %vm931_vm1, %v2813_v59  ;;  %v2855_v59 = vld [vmem:[%s2963_s7 + $0x28c] ss:$12 sps:$4 sm:$0xff]  }
  0x94   : > { %2537 = vmatprep.mubr.msk.bf16.mxu0 %vm2889_vm0, %v2888_v3 }
  0x97   : > { %1132 = vmatmul.mubr.bf16.gmra.mrb[40].mxu1 %v2790_v57  ;;  %v2854_v57 = vld [vmem:[%s2963_s7 + $0x270] ss:$12 sps:$4 sm:$0xff]  }
  0x98   : > { %1139 = vmatprep.mubr.bf16.mxu1 %v2791_v58 }
  0x9b   : > { %2538 = vmatmul.mubr.msk.bf16.gmra.mrb[68].mxu0 %vm931_vm1, %v2817_v62 }
  0x9c   : > { %2541 = vmatprep.mubr.msk.bf16.mxu0 %vm2889_vm0, %v2888_v3 }
  0x9f   : > { %1140 = vmatmul.mubr.bf16.gmra.mrb[44].mxu1 %v2794_v60  ;;  %v3198_v60 = vld [vmem:[%s3459_s2] ss:$0 sm:$0xff] }
  0xa0   : > { %1147 = vmatprep.mubr.bf16.mxu1 %v2795_v61 }
  0xa3   : > { %2542 = vmatmul.mubr.msk.bf16.gmra.mrb[72].mxu0 %vm931_vm1, %v2821_v1 }
  0xa4   : > { %2545 = vmatprep.mubr.msk.bf16.mxu0 %vm2889_vm0, %v2888_v3 }
  0xa7   : > { %1148 = vmatmul.mubr.bf16.gmra.mrb[48].mxu1 %v2798_v63 }
  0xa8   : > { %1155 = vmatprep.mubr.bf16.mxu1 %v2799_v0 }
  0xab   : > { %2546 = vmatmul.mubr.msk.bf16.gmra.mrb[76].mxu0 %vm931_vm1, %v2825_v5 }
  0xac   : > { %2549 = vmatprep.mubr.msk.bf16.mxu0 %vm2889_vm0, %v2888_v3 }
  0xaf   : > { %1156 = vmatmul.mubr.bf16.gmra.mrb[52].mxu1 %v2802_v2 }
  0xb0   : > { %1163 = vmatprep.mubr.bf16.mxu1 %v2803_v4  ;;  %v2858_v4 = vld [vmem:[%s2963_s7 + $0x288] ss:$12 sps:$4 sm:$0xff]  }
  0xb3   : > { %2550 = vmatmul.mubr.msk.bf16.gmra.mrb[80].mxu0 %vm931_vm1, %v2829_v8 }
  0xb4   : > { %2553 = vmatprep.mubr.msk.bf16.mxu0 %vm2889_vm0, %v2888_v3 }
  0xb7   : > { %1164 = vmatmul.mubr.bf16.gmra.mrb[56].mxu1 %v2806_v6 }
  0xb8   : > { %1171 = vmatprep.mubr.bf16.mxu1 %v2807_v7  ;;  %v2859_v7 = vld [vmem:[%s2963_s7 + $0x2a4] ss:$12 sps:$4 sm:$0xff]  }
  0xbb   : > { %2554 = vmatmul.mubr.msk.bf16.gmra.mrb[84].mxu0 %vm931_vm1, %v2833_v11 }
  0xbc   : > { %2557 = vmatprep.mubr.msk.bf16.mxu0 %vm2889_vm0, %v2888_v3 }
  0xbf   : > { %1172 = vmatmul.mubr.bf16.gmra.mrb[60].mxu1 %v2810_v9 }
  0xc0   : > { %1179 = vmatprep.mubr.bf16.mxu1 %v2811_v10 }
  0xc3   : > { %2558 = vmatmul.mubr.msk.bf16.gmra.mrb[88].mxu0 %vm931_vm1, %v2837_v14 }
  0xc4   : > { %2561 = vmatprep.mubr.msk.bf16.mxu0 %vm2889_vm0, %v2888_v3 }
  0xc7   : > { %1180 = vmatmul.mubr.bf16.gmra.mrb[64].mxu1 %v2814_v12 }
  0xc8   : > { %1187 = vmatprep.mubr.bf16.mxu1 %v2815_v13 }
  0xcb   : > { %2562 = vmatmul.mubr.msk.bf16.gmra.mrb[92].mxu0 %vm931_vm1, %v2841_v17 }
  0xcc   : > { %2565 = vmatprep.mubr.msk.bf16.mxu0 %vm2889_vm0, %v2888_v3 }
  0xcf   : > { %1188 = vmatmul.mubr.bf16.gmra.mrb[68].mxu1 %v2818_v15 }
  0xd0   : > { %1195 = vmatprep.mubr.bf16.mxu1 %v2819_v16 }
  0xd3   : > { %2566 = vmatmul.mubr.msk.bf16.gmra.mrb[96].mxu0 %vm931_vm1, %v2845_v20 }
  0xd4   : > { %2569 = vmatprep.mubr.msk.bf16.mxu0 %vm2889_vm0, %v2888_v3 }
  0xd7   : > { %1196 = vmatmul.mubr.bf16.gmra.mrb[72].mxu1 %v2822_v18 }
  0xd8   : > { %1203 = vmatprep.mubr.bf16.mxu1 %v2823_v19 }
  0xdb   : > { %2570 = vmatmul.mubr.msk.bf16.gmra.mrb[100].mxu0 %vm931_vm1, %v2849_v23 }
  0xdc   : > { %2573 = vmatprep.mubr.msk.bf16.mxu0 %vm2889_vm0, %v2888_v3 }
  0xdf   : > { %1204 = vmatmul.mubr.bf16.gmra.mrb[76].mxu1 %v2826_v21  ;;  %v2862_v21 = vld [vmem:[%s2963_s7 + $0x2a0] ss:$12 sps:$4 sm:$0xff]  }
  0xe0   : > { %1211 = vmatprep.mubr.bf16.mxu1 %v2827_v22 }
  0xe3   : > { %2574 = vmatmul.mubr.msk.bf16.gmra.mrb[104].mxu0 %vm931_vm1, %v2853_v26 }
  0xe4   : > { %2577 = vmatprep.mubr.msk.bf16.mxu0 %vm2889_vm0, %v2888_v3 }
  0xe6   : > { %v1318_v29 = vpop.f32.mrb[0].mxu0 }
  0xe7   : > { %1212 = vmatmul.mubr.bf16.gmra.mrb[80].mxu1 %v2830_v24  ;;  %v2471_v30 = vpop.f32.mrb[1].mxu0 }
  0xe8   : > { %1219 = vmatprep.mubr.bf16.mxu1 %v2831_v25  ;;  %v1321_v32 = vpop.f32.mrb[2].mxu0 }
  0xe9   : > { %v2472_v34 = vpop.f32.mrb[3].mxu0 }
  0xeb   : > { %2578 = vmatmul.mubr.msk.bf16.gmra.mrb[108].mxu0 %vm931_vm1, %v2857_v31 }
  0xec   : > { %2581 = vmatprep.mubr.msk.bf16.mxu0 %vm2889_vm0, %v2888_v3 }
  0xee   : > { %v3169_v36 = vpop.f32.mrb[4].mxu0 }
  0xef   : > { %1220 = vmatmul.mubr.bf16.gmra.mrb[84].mxu1 %v2834_v27  ;;  %v2475_v37 = vpop.f32.mrb[5].mxu0 }
  0xf0   : > { %1227 = vmatprep.mubr.bf16.mxu1 %v2835_v28  ;;  %v3172_v39 = vpop.f32.mrb[6].mxu0 }
  0xf1   : > { %v2476_v41 = vpop.f32.mrb[7].mxu0 }
  0xf3   : > { %2582 = vmatmul.mubr.msk.bf16.gmra.mrb[112].mxu0 %vm931_vm1, %v2861_v38 }
  0xf6   : > { %v3177_v3 = vpop.f32.mrb[8].mxu0 }
  0xf7   : > { %1228 = vmatmul.mubr.bf16.gmra.mrb[88].mxu1 %v2838_v33  ;;  %v2479_v43 = vpop.f32.mrb[9].mxu0 }
  0xf8   : > { %1235 = vmatprep.mubr.bf16.mxu1 %v2839_v35  ;;  %v3179_v44 = vpop.f32.mrb[10].mxu0 }
  0xf9   : > { %v2480_v46 = vpop.f32.mrb[11].mxu0 }
  0xfe   : > { %v3183_v48 = vpop.f32.mrb[12].mxu0 }
  0xff   : > { %1236 = vmatmul.mubr.bf16.gmra.mrb[92].mxu1 %v2842_v40  ;;  %v2483_v49 = vpop.f32.mrb[13].mxu0 }
 0x100   : > { %1243 = vmatprep.mubr.bf16.mxu1 %v2843_v42  ;;  %v3185_v50 = vpop.f32.mrb[14].mxu0 }
 0x101   : > { %v2484_v52 = vpop.f32.mrb[15].mxu0 }
 0x106   : > { %v3189_v54 = vpop.f32.mrb[16].mxu0 }
 0x107   : > { %1244 = vmatmul.mubr.bf16.gmra.mrb[96].mxu1 %v2846_v45  ;;  %v2487_v55 = vpop.f32.mrb[17].mxu0 }
 0x108   : > { %1251 = vmatprep.mubr.bf16.mxu1 %v2847_v47  ;;  %v3191_v56 = vpop.f32.mrb[18].mxu0 }
 0x109   : > { %v2488_v58 = vpop.f32.mrb[19].mxu0 }
 0x10e   : > { %v3200_v61 = vpop.f32.mrb[20].mxu0 }
 0x10f   : > { %1252 = vmatmul.mubr.bf16.gmra.mrb[100].mxu1 %v2850_v51  ;;  %v2491_v62 = vpop.f32.mrb[21].mxu0 }
 0x110   : > { %1259 = vmatprep.mubr.bf16.mxu1 %v2851_v53  ;;  %v3202_v0 = vpop.f32.mrb[22].mxu0 }
 0x111   : > { %v2492_v5 = vpop.f32.mrb[23].mxu0 }
 0x116   : > { %v3209_v12 = vpop.f32.mrb[24].mxu0 }
 0x117   : > { %1260 = vmatmul.mubr.bf16.gmra.mrb[104].mxu1 %v2854_v57  ;;  %v2495_v15 = vpop.f32.mrb[25].mxu0 }
 0x118   : > { %1267 = vmatprep.mubr.bf16.mxu1 %v2855_v59  ;;  %v3216_v17 = vpop.f32.mrb[26].mxu0 }
 0x119   : > { %v2496_v22 = vpop.f32.mrb[27].mxu0 }
 0x11a   : > { %v1053_v63 = vpop.f32.mrb[0].mxu1 }
 0x11b   : > { %v1054_v1 = vadd.f32 %v3198_v60, %v1053_v63  ;;  %v1055_v2 = vpop.f32.mrb[1].mxu1 }
 0x11c   : > { %v1056_v6 = vpop.f32.mrb[2].mxu1 }
 0x11d   : > { %v1319_v8 = vadd.f32 %v1318_v29, %v1054_v1  ;;  %v1057_v9 = vadd.f32 %v3198_v60, %v1056_v6  ;;  %v1058_v10 = vpop.f32.mrb[3].mxu1 }
 0x11e   : > { %v3224_v28 = vpop.f32.mrb[28].mxu0 }
 0x11f   : > { %v1322_v11 = vadd.f32 %v1321_v32, %v1057_v9  ;;  %1268 = vmatmul.mubr.bf16.gmra.mrb[108].mxu1 %v2858_v4  ;;  %v1549_v13 = vmax.f32 %v1319_v8, 0.0  ;;  %v2499_v31 = vpop.f32.mrb[29].mxu0 }
 0x120   : > { %1275 = vmatprep.mubr.bf16.mxu1 %v2859_v7  ;;  %v3226_v33 = vpop.f32.mrb[30].mxu0 }
 0x121   : > { %v1550_v14 = vmax.f32 %v1322_v11, 0.0 }
 0x122   : > { %v1061_v16 = vpop.f32.mrb[4].mxu1 }
 0x123   : > { %v2264_v18 = vpack.c.bf16 %v1550_v14, %v1549_v13  ;;  %v1062_v19 = vadd.f32 %v3198_v60, %v1061_v16  ;;  %v1063_v20 = vpop.f32.mrb[5].mxu1 }
 0x124   : > { %v1064_v23 = vpop.f32.mrb[6].mxu1 }
 0x125   : > { %2265 = vst [vmem:[%s3214_s16] sm:$0xff] %v2264_v18   ;;  %v1327_v24 = vadd.f32 %v3169_v36, %v1062_v19  ;;  %v1065_v25 = vadd.f32 %v3198_v60, %v1064_v23  ;;  %v1066_v26 = vpop.f32.mrb[7].mxu1  ;;  %v2500_v36 = vpop.f32.mrb[31].mxu0 }
 0x126   : > { %v3233_v43 = vpop.f32.mrb[32].mxu0 }
 0x127   : > { %v1330_v27 = vadd.f32 %v3172_v39, %v1065_v25  ;;  %1276 = vmatmul.mubr.bf16.gmra.mrb[112].mxu1 %v2862_v21  ;;  %v1551_v29 = vmax.f32 %v1327_v24, 0.0  ;;  %v2503_v47 = vpop.f32.mrb[33].mxu0 }
 0x128   : > { %v3235_v51 = vpop.f32.mrb[34].mxu0 }
 0x129   : > { %v1552_v30 = vmax.f32 %v1330_v27, 0.0  ;;  %v2504_v57 = vpop.f32.mrb[35].mxu0 }
 0x12a   : > { %v1069_v32 = vpop.f32.mrb[8].mxu1 }
 0x12b   : > { %v2269_v34 = vpack.c.bf16 %v1552_v30, %v1551_v29  ;;  %v1070_v35 = vadd.f32 %v3198_v60, %v1069_v32  ;;  %v1071_v37 = vpop.f32.mrb[9].mxu1 }
 0x12c   : > { %v1072_v38 = vpop.f32.mrb[10].mxu1 }
 0x12d   : > { %2406 = vst [vmem:[%s3214_s16 + $0x8] sm:$0xff] %v2269_v34   ;;  %v1335_v40 = vadd.f32 %v3177_v3, %v1070_v35  ;;  %v1073_v39 = vadd.f32 %v3198_v60, %v1072_v38  ;;  %v1074_v41 = vpop.f32.mrb[11].mxu1 }
 0x12e   : > { %v3242_v63 = vpop.f32.mrb[36].mxu0 }
 0x12f   : > { %v1338_v42 = vadd.f32 %v3179_v44, %v1073_v39  ;;  %v1553_v45 = vmax.f32 %v1335_v40, 0.0  ;;  %v2507_v4 = vpop.f32.mrb[37].mxu0 }
 0x130   : > { %v3244_v6 = vpop.f32.mrb[38].mxu0 }
 0x131   : > { %v1554_v46 = vmax.f32 %v1338_v42, 0.0  ;;  %v2508_v10 = vpop.f32.mrb[39].mxu0 }
 0x132   : > { %v1077_v49 = vpop.f32.mrb[12].mxu1 }
 0x133   : > { %v2274_v52 = vpack.c.bf16 %v1554_v46, %v1553_v45  ;;  %v1078_v53 = vadd.f32 %v3198_v60, %v1077_v49  ;;  %v1079_v55 = vpop.f32.mrb[13].mxu1 }
 0x134   : > { %v1080_v58 = vpop.f32.mrb[14].mxu1 }
 0x135   : > { %2407 = vst [vmem:[%s3214_s16 + $0x10] sm:$0xff] %v2274_v52   ;;  %v1343_v3 = vadd.f32 %v3183_v48, %v1078_v53  ;;  %v1081_v44 = vadd.f32 %v3198_v60, %v1080_v58  ;;  %v1082_v59 = vpop.f32.mrb[15].mxu1 }
 0x136   : > { %v3251_v15 = vpop.f32.mrb[40].mxu0 }
 0x137   : > { %v1346_v62 = vadd.f32 %v3185_v50, %v1081_v44  ;;  %v1555_v1 = vmax.f32 %v1343_v3, 0.0  ;;  %v2511_v19 = vpop.f32.mrb[41].mxu0 }
 0x138   : > { %v3253_v21 = vpop.f32.mrb[42].mxu0 }
 0x139   : > { %v1556_v2 = vmax.f32 %v1346_v62, 0.0  ;;  %v2512_v25 = vpop.f32.mrb[43].mxu0 }
 0x13a   : > { %v1085_v5 = vpop.f32.mrb[16].mxu1 }
 0x13b   : > { %v2279_v7 = vpack.c.bf16 %v1556_v2, %v1555_v1  ;;  %v1086_v8 = vadd.f32 %v3198_v60, %v1085_v5  ;;  %v1087_v9 = vpop.f32.mrb[17].mxu1 }
 0x13c   : > { %v1088_v11 = vpop.f32.mrb[18].mxu1 }
 0x13d   : > { %2408 = vst [vmem:[%s3214_s16 + $0x18] sm:$0xff] %v2279_v7   ;;  %v1351_v48 = vadd.f32 %v3189_v54, %v1086_v8  ;;  %v1089_v50 = vadd.f32 %v3198_v60, %v1088_v11  ;;  %v1090_v13 = vpop.f32.mrb[19].mxu1 }
 0x13e   : > { %v3260_v30 = vpop.f32.mrb[44].mxu0 }
 0x13f   : > { %v1354_v14 = vadd.f32 %v3191_v56, %v1089_v50  ;;  %v1557_v16 = vmax.f32 %v1351_v48, 0.0  ;;  %v2515_v34 = vpop.f32.mrb[45].mxu0 }
 0x140   : > { %v3262_v37 = vpop.f32.mrb[46].mxu0 }
 0x141   : > { %v1558_v18 = vmax.f32 %v1354_v14, 0.0  ;;  %v2516_v39 = vpop.f32.mrb[47].mxu0 }
 0x142   : > { %v1093_v20 = vpop.f32.mrb[20].mxu1 }
 0x143   : > { %v2284_v22 = vpack.c.bf16 %v1558_v18, %v1557_v16  ;;  %v1094_v23 = vadd.f32 %v3198_v60, %v1093_v20  ;;  %v1095_v24 = vpop.f32.mrb[21].mxu1 }
 0x144   : > { %v1096_v26 = vpop.f32.mrb[22].mxu1 }
 0x145   : > { %2409 = vst [vmem:[%s3214_s16 + $0x20] sm:$0xff] %v2284_v22   ;;  %v1359_v54 = vadd.f32 %v3200_v61, %v1094_v23  ;;  %v1097_v56 = vadd.f32 %v3198_v60, %v1096_v26  ;;  %v1098_v27 = vpop.f32.mrb[23].mxu1 }
 0x146   : > { %v3269_v46 = vpop.f32.mrb[48].mxu0 }
 0x147   : > { %v1362_v29 = vadd.f32 %v3202_v0, %v1097_v56  ;;  %v1559_v31 = vmax.f32 %v1359_v54, 0.0  ;;  %v2519_v52 = vpop.f32.mrb[49].mxu0 }
 0x148   : > { %v3271_v55 = vpop.f32.mrb[50].mxu0 }
 0x149   : > { %v1560_v32 = vmax.f32 %v1362_v29, 0.0  ;;  %v2520_v44 = vpop.f32.mrb[51].mxu0 }
 0x14a   : > { %v1101_v35 = vpop.f32.mrb[24].mxu1 }
 0x14b   : > { %v2289_v36 = vpack.c.bf16 %v1560_v32, %v1559_v31  ;;  %v1102_v38 = vadd.f32 %v3198_v60, %v1101_v35  ;;  %v1103_v40 = vpop.f32.mrb[25].mxu1 }
 0x14c   : > { %v1104_v41 = vpop.f32.mrb[26].mxu1 }
 0x14d   : > { %2410 = vst [vmem:[%s3214_s16 + $0x28] sm:$0xff] %v2289_v36   ;;  %v1367_v61 = vadd.f32 %v3209_v12, %v1102_v38  ;;  %v1105_v0 = vadd.f32 %v3198_v60, %v1104_v41  ;;  %v1106_v42 = vpop.f32.mrb[27].mxu1 }
 0x14e   : > { %v3278_v2 = vpop.f32.mrb[52].mxu0 }
 0x14f   : > { %v1370_v45 = vadd.f32 %v3216_v17, %v1105_v0  ;;  %v1561_v47 = vmax.f32 %v1367_v61, 0.0  ;;  %v2523_v7 = vpop.f32.mrb[53].mxu0 }
 0x150   : > { %v3280_v9 = vpop.f32.mrb[54].mxu0 }
 0x151   : > { %v1562_v49 = vmax.f32 %v1370_v45, 0.0  ;;  %v2524_v50 = vpop.f32.mrb[55].mxu0 }
 0x152   : > { %v1109_v53 = vpop.f32.mrb[28].mxu1 }
 0x153   : > { %v2294_v57 = vpack.c.bf16 %v1562_v49, %v1561_v47  ;;  %v1110_v58 = vadd.f32 %v3198_v60, %v1109_v53  ;;  %v1111_v3 = vpop.f32.mrb[29].mxu1 }
 0x154   : > { %v1112_v59 = vpop.f32.mrb[30].mxu1 }
 0x155   : > { %2411 = vst [vmem:[%s3214_s16 + $0x30] sm:$0xff] %v2294_v57   ;;  %v1375_v12 = vadd.f32 %v3224_v28, %v1110_v58  ;;  %v1113_v17 = vadd.f32 %v3198_v60, %v1112_v59  ;;  %v1114_v62 = vpop.f32.mrb[31].mxu1 }
 0x156   : > { %v3287_v18 = vpop.f32.mrb[56].mxu0 }
 0x157   : > { %v1378_v1 = vadd.f32 %v3226_v33, %v1113_v17  ;;  %v1563_v4 = vmax.f32 %v1375_v12, 0.0  ;;  %v2527_v22 = vpop.f32.mrb[57].mxu0 }
 0x158   : > { %v3289_v24 = vpop.f32.mrb[58].mxu0 }
 0x159   : > { %v1564_v5 = vmax.f32 %v1378_v1, 0.0  ;;  %v2528_v56 = vpop.f32.mrb[59].mxu0 }
 0x15a   : > { %v1117_v8 = vpop.f32.mrb[32].mxu1 }
 0x15b   : > { %v2299_v10 = vpack.c.bf16 %v1564_v5, %v1563_v4  ;;  %v1118_v11 = vadd.f32 %v3198_v60, %v1117_v8  ;;  %v1119_v48 = vpop.f32.mrb[33].mxu1 }
 0x15c   : > { %v1120_v13 = vpop.f32.mrb[34].mxu1 }
 0x15d   : > { %2412 = vst [vmem:[%s3214_s16 + $0x38] sm:$0xff] %v2299_v10   ;;  %v1383_v28 = vadd.f32 %v3233_v43, %v1118_v11  ;;  %v1121_v33 = vadd.f32 %v3198_v60, %v1120_v13  ;;  %v1122_v14 = vpop.f32.mrb[35].mxu1 }
 0x15e   : > { %v3296_v32 = vpop.f32.mrb[60].mxu0 }
 0x15f   : > { %v1386_v16 = vadd.f32 %v3235_v51, %v1121_v33  ;;  %v1565_v19 = vmax.f32 %v1383_v28, 0.0  ;;  %v2531_v36 = vpop.f32.mrb[61].mxu0 }
 0x160   : > { %v3298_v40 = vpop.f32.mrb[62].mxu0 }
 0x161   : > { %v1566_v20 = vmax.f32 %v1386_v16, 0.0  ;;  %v2532_v0 = vpop.f32.mrb[63].mxu0 }
 0x162   : > { %v1125_v23 = vpop.f32.mrb[36].mxu1 }
 0x163   : > { %v2304_v25 = vpack.c.bf16 %v1566_v20, %v1565_v19  ;;  %v1126_v26 = vadd.f32 %v3198_v60, %v1125_v23  ;;  %v1127_v54 = vpop.f32.mrb[37].mxu1 }
 0x164   : > { %v1128_v27 = vpop.f32.mrb[38].mxu1 }
 0x165   : > { %2413 = vst [vmem:[%s3214_s16 + $0x40] sm:$0xff] %v2304_v25   ;;  %v1391_v43 = vadd.f32 %v3242_v63, %v1126_v26  ;;  %v1129_v51 = vadd.f32 %v3198_v60, %v1128_v27  ;;  %v1130_v29 = vpop.f32.mrb[39].mxu1 }
 0x166   : > { %v3305_v49 = vpop.f32.mrb[64].mxu0 }
 0x167   : > { %v1394_v31 = vadd.f32 %v3244_v6, %v1129_v51  ;;  %v1567_v34 = vmax.f32 %v1391_v43, 0.0  ;;  %v2535_v57 = vpop.f32.mrb[65].mxu0 }
 0x168   : > { %v3307_v3 = vpop.f32.mrb[66].mxu0 }
 0x169   : > { %v1568_v35 = vmax.f32 %v1394_v31, 0.0  ;;  %v2536_v17 = vpop.f32.mrb[67].mxu0 }
 0x16a   : > { %v1133_v38 = vpop.f32.mrb[40].mxu1 }
 0x16b   : > { %v2309_v39 = vpack.c.bf16 %v1568_v35, %v1567_v34  ;;  %v1134_v41 = vadd.f32 %v3198_v60, %v1133_v38  ;;  %v1135_v61 = vpop.f32.mrb[41].mxu1 }
 0x16c   : > { %v1136_v42 = vpop.f32.mrb[42].mxu1 }
 0x16d   : > { %2414 = vst [vmem:[%s3214_s16 + $0x48] sm:$0xff] %v2309_v39   ;;  %v1399_v63 = vadd.f32 %v3251_v15, %v1134_v41  ;;  %v1137_v6 = vadd.f32 %v3198_v60, %v1136_v42  ;;  %v1138_v45 = vpop.f32.mrb[43].mxu1 }
 0x16e   : > { %v3314_v5 = vpop.f32.mrb[68].mxu0 }
 0x16f   : > { %v1402_v47 = vadd.f32 %v3253_v21, %v1137_v6  ;;  %v1569_v52 = vmax.f32 %v1399_v63, 0.0  ;;  %v2539_v10 = vpop.f32.mrb[69].mxu0 }
 0x170   : > { %v3316_v48 = vpop.f32.mrb[70].mxu0 }
 0x171   : > { %v1570_v53 = vmax.f32 %v1402_v47, 0.0  ;;  %v2540_v33 = vpop.f32.mrb[71].mxu0 }
 0x172   : > { %v1141_v58 = vpop.f32.mrb[44].mxu1 }
 0x173   : > { %v2314_v44 = vpack.c.bf16 %v1570_v53, %v1569_v52  ;;  %v1142_v59 = vadd.f32 %v3198_v60, %v1141_v58  ;;  %v1143_v12 = vpop.f32.mrb[45].mxu1 }
 0x174   : > { %v1144_v62 = vpop.f32.mrb[46].mxu1 }
 0x175   : > { %2415 = vst [vmem:[%s3214_s16 + $0x50] sm:$0xff] %v2314_v44   ;;  %v1407_v15 = vadd.f32 %v3260_v30, %v1142_v59  ;;  %v1145_v21 = vadd.f32 %v3198_v60, %v1144_v62  ;;  %v1146_v1 = vpop.f32.mrb[47].mxu1 }
 0x176   : > { %v3323_v20 = vpop.f32.mrb[72].mxu0 }
 0x177   : > { %v1410_v4 = vadd.f32 %v3262_v37, %v1145_v21  ;;  %v1571_v7 = vmax.f32 %v1407_v15, 0.0  ;;  %v2543_v25 = vpop.f32.mrb[73].mxu0 }
 0x178   : > { %v3325_v54 = vpop.f32.mrb[74].mxu0 }
 0x179   : > { %v1572_v8 = vmax.f32 %v1410_v4, 0.0  ;;  %v2544_v51 = vpop.f32.mrb[75].mxu0 }
 0x17a   : > { %v1149_v11 = vpop.f32.mrb[48].mxu1 }
 0x17b   : > { %v2319_v50 = vpack.c.bf16 %v1572_v8, %v1571_v7  ;;  %v1150_v13 = vadd.f32 %v3198_v60, %v1149_v11  ;;  %v1151_v28 = vpop.f32.mrb[49].mxu1 }
 0x17c   : > { %v1152_v14 = vpop.f32.mrb[50].mxu1 }
 0x17d   : > { %2416 = vst [vmem:[%s3214_s16 + $0x58] sm:$0xff] %v2319_v50   ;;  %v1415_v30 = vadd.f32 %v3269_v46, %v1150_v13  ;;  %v1153_v37 = vadd.f32 %v3198_v60, %v1152_v14  ;;  %v1154_v16 = vpop.f32.mrb[51].mxu1 }
 0x17e   : > { %v3332_v35 = vpop.f32.mrb[76].mxu0 }
 0x17f   : > { %v1418_v19 = vadd.f32 %v3271_v55, %v1153_v37  ;;  %v1573_v22 = vmax.f32 %v1415_v30, 0.0  ;;  %v2547_v39 = vpop.f32.mrb[77].mxu0 }
 0x180   : > { %v3334_v61 = vpop.f32.mrb[78].mxu0 }
 0x181   : > { %v1574_v23 = vmax.f32 %v1418_v19, 0.0  ;;  %v2548_v6 = vpop.f32.mrb[79].mxu0 }
 0x182   : > { %v1157_v26 = vpop.f32.mrb[52].mxu1 }
 0x183   : > { %v2324_v56 = vpack.c.bf16 %v1574_v23, %v1573_v22  ;;  %v1158_v27 = vadd.f32 %v3198_v60, %v1157_v26  ;;  %v1159_v43 = vpop.f32.mrb[53].mxu1 }
 0x184   : > { %v1160_v29 = vpop.f32.mrb[54].mxu1 }
 0x185   : > { %2417 = vst [vmem:[%s3214_s16 + $0x60] sm:$0xff] %v2324_v56   ;;  %v1423_v46 = vadd.f32 %v3278_v2, %v1158_v27  ;;  %v1161_v55 = vadd.f32 %v3198_v60, %v1160_v29  ;;  %v1162_v31 = vpop.f32.mrb[55].mxu1 }
 0x186   : > { %v3341_v53 = vpop.f32.mrb[80].mxu0 }
 0x187   : > { %v1426_v34 = vadd.f32 %v3280_v9, %v1161_v55  ;;  %v1575_v36 = vmax.f32 %v1423_v46, 0.0  ;;  %v2551_v44 = vpop.f32.mrb[81].mxu0 }
 0x188   : > { %v3343_v12 = vpop.f32.mrb[82].mxu0 }
 0x189   : > { %v1576_v38 = vmax.f32 %v1426_v34, 0.0  ;;  %v2552_v21 = vpop.f32.mrb[83].mxu0 }
 0x18a   : > { %v1165_v41 = vpop.f32.mrb[56].mxu1 }
 0x18b   : > { %v2329_v0 = vpack.c.bf16 %v1576_v38, %v1575_v36  ;;  %v1166_v42 = vadd.f32 %v3198_v60, %v1165_v41  ;;  %v1167_v63 = vpop.f32.mrb[57].mxu1 }
 0x18c   : > { %v1168_v45 = vpop.f32.mrb[58].mxu1 }
 0x18d   : > { %2418 = vst [vmem:[%s3214_s16 + $0x68] sm:$0xff] %v2329_v0   ;;  %v1431_v2 = vadd.f32 %v3287_v18, %v1166_v42  ;;  %v1169_v9 = vadd.f32 %v3198_v60, %v1168_v45  ;;  %v1170_v47 = vpop.f32.mrb[59].mxu1 }
 0x18e   : > { %v3350_v8 = vpop.f32.mrb[84].mxu0 }
 0x18f   : > { %v1434_v52 = vadd.f32 %v3289_v24, %v1169_v9  ;;  %v1577_v57 = vmax.f32 %v1431_v2, 0.0  ;;  %v2555_v50 = vpop.f32.mrb[85].mxu0 }
 0x190   : > { %v3352_v28 = vpop.f32.mrb[86].mxu0 }
 0x191   : > { %v1578_v58 = vmax.f32 %v1434_v52, 0.0  ;;  %v2556_v37 = vpop.f32.mrb[87].mxu0 }
 0x192   : > { %v1173_v59 = vpop.f32.mrb[60].mxu1 }
 0x193   : > { %v2334_v17 = vpack.c.bf16 %v1578_v58, %v1577_v57  ;;  %v1174_v62 = vadd.f32 %v3198_v60, %v1173_v59  ;;  %v1175_v15 = vpop.f32.mrb[61].mxu1 }
 0x194   : > { %v1176_v1 = vpop.f32.mrb[62].mxu1 }
 0x195   : > { %2419 = vst [vmem:[%s3214_s16 + $0x70] sm:$0xff] %v2334_v17   ;;  %v1439_v18 = vadd.f32 %v3296_v32, %v1174_v62  ;;  %v1177_v24 = vadd.f32 %v3198_v60, %v1176_v1  ;;  %v1178_v4 = vpop.f32.mrb[63].mxu1 }
 0x196   : > { %v3359_v23 = vpop.f32.mrb[88].mxu0 }
 0x197   : > { %v1442_v7 = vadd.f32 %v3298_v40, %v1177_v24  ;;  %v1579_v10 = vmax.f32 %v1439_v18, 0.0  ;;  %v2559_v56 = vpop.f32.mrb[89].mxu0 }
 0x198   : > { %v3361_v43 = vpop.f32.mrb[90].mxu0 }
 0x199   : > { %v1580_v11 = vmax.f32 %v1442_v7, 0.0  ;;  %v2560_v55 = vpop.f32.mrb[91].mxu0 }
 0x19a   : > { %v1181_v13 = vpop.f32.mrb[64].mxu1 }
 0x19b   : > { %v2339_v33 = vpack.c.bf16 %v1580_v11, %v1579_v10  ;;  %v1182_v14 = vadd.f32 %v3198_v60, %v1181_v13  ;;  %v1183_v30 = vpop.f32.mrb[65].mxu1 }
 0x19c   : > { %v1184_v16 = vpop.f32.mrb[66].mxu1 }
 0x19d   : > { %2420 = vst [vmem:[%s3214_s16 + $0x78] sm:$0xff] %v2339_v33   ;;  %v1447_v32 = vadd.f32 %v3305_v49, %v1182_v14  ;;  %v1185_v40 = vadd.f32 %v3198_v60, %v1184_v16  ;;  %v1186_v19 = vpop.f32.mrb[67].mxu1 }
 0x19e   : > { %v3368_v38 = vpop.f32.mrb[92].mxu0 }
 0x19f   : > { %v1450_v22 = vadd.f32 %v3307_v3, %v1185_v40  ;;  %v1581_v25 = vmax.f32 %v1447_v32, 0.0  ;;  %v2563_v0 = vpop.f32.mrb[93].mxu0 }
 0x1a0   : > { %v3370_v63 = vpop.f32.mrb[94].mxu0 }
 0x1a1   : > { %v1582_v26 = vmax.f32 %v1450_v22, 0.0  ;;  %v2564_v9 = vpop.f32.mrb[95].mxu0 }
 0x1a2   : > { %v1189_v27 = vpop.f32.mrb[68].mxu1 }
 0x1a3   : > { %v2344_v51 = vpack.c.bf16 %v1582_v26, %v1581_v25  ;;  %v1190_v29 = vadd.f32 %v3198_v60, %v1189_v27  ;;  %v1191_v46 = vpop.f32.mrb[69].mxu1 }
 0x1a4   : > { %v1192_v31 = vpop.f32.mrb[70].mxu1 }
 0x1a5   : > { %2421 = vst [vmem:[%s3214_s16 + $0x80] sm:$0xff] %v2344_v51   ;;  %v1455_v49 = vadd.f32 %v3314_v5, %v1190_v29  ;;  %v1193_v3 = vadd.f32 %v3198_v60, %v1192_v31  ;;  %v1194_v34 = vpop.f32.mrb[71].mxu1 }
 0x1a6   : > { %v3377_v58 = vpop.f32.mrb[96].mxu0 }
 0x1a7   : > { %v1458_v36 = vadd.f32 %v3316_v48, %v1193_v3  ;;  %v1583_v39 = vmax.f32 %v1455_v49, 0.0  ;;  %v2567_v17 = vpop.f32.mrb[97].mxu0 }
 0x1a8   : > { %v3379_v15 = vpop.f32.mrb[98].mxu0 }
 0x1a9   : > { %v1584_v41 = vmax.f32 %v1458_v36, 0.0  ;;  %v2568_v24 = vpop.f32.mrb[99].mxu0 }
 0x1aa   : > { %v1197_v42 = vpop.f32.mrb[72].mxu1 }
 0x1ab   : > { %v2349_v6 = vpack.c.bf16 %v1584_v41, %v1583_v39  ;;  %v1198_v45 = vadd.f32 %v3198_v60, %v1197_v42  ;;  %v1199_v2 = vpop.f32.mrb[73].mxu1 }
 0x1ac   : > { %v1200_v47 = vpop.f32.mrb[74].mxu1 }
 0x1ad   : > { %2422 = vst [vmem:[%s3214_s16 + $0x88] sm:$0xff] %v2349_v6   ;;  %v1463_v5 = vadd.f32 %v3323_v20, %v1198_v45  ;;  %v1201_v48 = vadd.f32 %v3198_v60, %v1200_v47  ;;  %v1202_v52 = vpop.f32.mrb[75].mxu1 }
 0x1ae   : > { %v3386_v11 = vpop.f32.mrb[100].mxu0 }
 0x1af   : > { %v1466_v57 = vadd.f32 %v3325_v54, %v1201_v48  ;;  %v1585_v44 = vmax.f32 %v1463_v5, 0.0  ;;  %v2571_v33 = vpop.f32.mrb[101].mxu0 }
 0x1b0   : > { %v3388_v30 = vpop.f32.mrb[102].mxu0 }
 0x1b1   : > { %v1586_v59 = vmax.f32 %v1466_v57, 0.0  ;;  %v2572_v40 = vpop.f32.mrb[103].mxu0 }
 0x1b2   : > { %v1205_v62 = vpop.f32.mrb[76].mxu1 }
 0x1b3   : > { %v2354_v21 = vpack.c.bf16 %v1586_v59, %v1585_v44  ;;  %v1206_v1 = vadd.f32 %v3198_v60, %v1205_v62  ;;  %v1207_v18 = vpop.f32.mrb[77].mxu1 }
 0x1b4   : > { %v1208_v4 = vpop.f32.mrb[78].mxu1 }
 0x1b5   : > { %2423 = vst [vmem:[%s3214_s16 + $0x90] sm:$0xff] %v2354_v21   ;;  %v1471_v20 = vadd.f32 %v3332_v35, %v1206_v1  ;;  %v1209_v54 = vadd.f32 %v3198_v60, %v1208_v4  ;;  %v1210_v7 = vpop.f32.mrb[79].mxu1 }
 0x1b6   : > { %v3395_v26 = vpop.f32.mrb[104].mxu0 }
 0x1b7   : > { %v1474_v10 = vadd.f32 %v3334_v61, %v1209_v54  ;;  %v1587_v50 = vmax.f32 %v1471_v20, 0.0  ;;  %v2575_v51 = vpop.f32.mrb[105].mxu0 }
 0x1b8   : > { %v3397_v46 = vpop.f32.mrb[106].mxu0 }
 0x1b9   : > { %v1588_v13 = vmax.f32 %v1474_v10, 0.0  ;;  %v2576_v3 = vpop.f32.mrb[107].mxu0 }
 0x1ba   : > { %v1213_v14 = vpop.f32.mrb[80].mxu1 }
 0x1bb   : > { %v2359_v37 = vpack.c.bf16 %v1588_v13, %v1587_v50  ;;  %v1214_v16 = vadd.f32 %v3198_v60, %v1213_v14  ;;  %v1215_v32 = vpop.f32.mrb[81].mxu1 }
 0x1bc   : > { %v1216_v19 = vpop.f32.mrb[82].mxu1 }
 0x1bd   : > { %2424 = vst [vmem:[%s3214_s16 + $0x98] sm:$0xff] %v2359_v37   ;;  %v1479_v35 = vadd.f32 %v3341_v53, %v1214_v16  ;;  %v1217_v61 = vadd.f32 %v3198_v60, %v1216_v19  ;;  %v1218_v22 = vpop.f32.mrb[83].mxu1 }
 0x1be   : > { %v3404_v41 = vpop.f32.mrb[108].mxu0 }
 0x1bf   : > { %v1482_v25 = vadd.f32 %v3343_v12, %v1217_v61  ;;  %v1589_v56 = vmax.f32 %v1479_v35, 0.0  ;;  %v2579_v6 = vpop.f32.mrb[109].mxu0 }
 0x1c0   : > { %v3406_v2 = vpop.f32.mrb[110].mxu0 }
 0x1c1   : > { %v1590_v27 = vmax.f32 %v1482_v25, 0.0  ;;  %v2580_v48 = vpop.f32.mrb[111].mxu0 }
 0x1c2   : > { %v1221_v29 = vpop.f32.mrb[84].mxu1 }
 0x1c3   : > { %v2364_v55 = vpack.c.bf16 %v1590_v27, %v1589_v56  ;;  %v1222_v31 = vadd.f32 %v3198_v60, %v1221_v29  ;;  %v1223_v49 = vpop.f32.mrb[85].mxu1 }
 0x1c4   : > { %v1224_v34 = vpop.f32.mrb[86].mxu1 }
 0x1c5   : > { %2425 = vst [vmem:[%s3214_s16 + $0xa0] sm:$0xff] %v2364_v55   ;;  %v1487_v53 = vadd.f32 %v3350_v8, %v1222_v31  ;;  %v1225_v12 = vadd.f32 %v3198_v60, %v1224_v34  ;;  %v1226_v36 = vpop.f32.mrb[87].mxu1 }
 0x1c6   : > { %v3413_v59 = vpop.f32.mrb[112].mxu0 }
 0x1c7   : > { %v1490_v39 = vadd.f32 %v3352_v28, %v1225_v12  ;;  %v1591_v0 = vmax.f32 %v1487_v53, 0.0  ;;  %v2583_v21 = vpop.f32.mrb[113].mxu0 }
 0x1c8   : > { %v3415_v18 = vpop.f32.mrb[114].mxu0 }
 0x1c9   : > { %v1592_v42 = vmax.f32 %v1490_v39, 0.0  ;;  %v2584_v54 = vpop.f32.mrb[115].mxu0 }
 0x1ca   : > { %v1229_v45 = vpop.f32.mrb[88].mxu1 }
 0x1cb   : > { %v2369_v9 = vpack.c.bf16 %v1592_v42, %v1591_v0  ;;  %v1230_v47 = vadd.f32 %v3198_v60, %v1229_v45  ;;  %v1231_v5 = vpop.f32.mrb[89].mxu1 }
 0x1cc   : > { %v1232_v52 = vpop.f32.mrb[90].mxu1 }
 0x1cd   : > { %2426 = vst [vmem:[%s3214_s16 + $0xa8] sm:$0xff] %v2369_v9   ;;  %v1495_v8 = vadd.f32 %v3359_v23, %v1230_v47  ;;  %v1233_v28 = vadd.f32 %v3198_v60, %v1232_v52  ;;  %v1234_v57 = vpop.f32.mrb[91].mxu1 }
 0x1cf   : > { %v1498_v44 = vadd.f32 %v3361_v43, %v1233_v28  ;;  %v1593_v17 = vmax.f32 %v1495_v8, 0.0 }
 0x1d1   : > { %v1594_v62 = vmax.f32 %v1498_v44, 0.0 }
 0x1d2   : > { %v1237_v1 = vpop.f32.mrb[92].mxu1 }
 0x1d3   : > { %v2374_v24 = vpack.c.bf16 %v1594_v62, %v1593_v17  ;;  %v1238_v4 = vadd.f32 %v3198_v60, %v1237_v1  ;;  %v1239_v20 = vpop.f32.mrb[93].mxu1 }
 0x1d4   : > { %v1240_v23 = vpop.f32.mrb[94].mxu1 }
 0x1d5   : > { %2427 = vst [vmem:[%s3214_s16 + $0xb0] sm:$0xff] %v2374_v24   ;;  %v1503_v7 = vadd.f32 %v3368_v38, %v1238_v4  ;;  %v1241_v43 = vadd.f32 %v3198_v60, %v1240_v23  ;;  %v1242_v10 = vpop.f32.mrb[95].mxu1 }
 0x1d7   : > { %v1506_v50 = vadd.f32 %v3370_v63, %v1241_v43  ;;  %v1595_v13 = vmax.f32 %v1503_v7, 0.0 }
 0x1d9   : > { %v1596_v33 = vmax.f32 %v1506_v50, 0.0 }
 0x1da   : > { %v1245_v14 = vpop.f32.mrb[96].mxu1 }
 0x1db   : > { %v2379_v37 = vpack.c.bf16 %v1596_v33, %v1595_v13  ;;  %v1246_v16 = vadd.f32 %v3198_v60, %v1245_v14  ;;  %v1247_v32 = vpop.f32.mrb[97].mxu1 }
 0x1dc   : > { %v1248_v40 = vpop.f32.mrb[98].mxu1 }
 0x1dd   : > { %2428 = vst [vmem:[%s3214_s16 + $0xb8] sm:$0xff] %v2379_v37   ;;  %v1511_v19 = vadd.f32 %v3377_v58, %v1246_v16  ;;  %v1249_v35 = vadd.f32 %v3198_v60, %v1248_v40  ;;  %v1250_v38 = vpop.f32.mrb[99].mxu1 }
 0x1df   : > { %v1514_v61 = vadd.f32 %v3379_v15, %v1249_v35  ;;  %v1597_v22 = vmax.f32 %v1511_v19, 0.0 }
 0x1e1   : > { %v1598_v25 = vmax.f32 %v1514_v61, 0.0 }
 0x1e2   : > { %v1253_v63 = vpop.f32.mrb[100].mxu1 }
 0x1e3   : > { %v2384_v56 = vpack.c.bf16 %v1598_v25, %v1597_v22  ;;  %v1254_v27 = vadd.f32 %v3198_v60, %v1253_v63  ;;  %v1255_v51 = vpop.f32.mrb[101].mxu1 }
 0x1e4   : > { %v1256_v29 = vpop.f32.mrb[102].mxu1 }
 0x1e5   : > { %2429 = vst [vmem:[%s3214_s16 + $0xc0] sm:$0xff] %v2384_v56   ;;  %v1519_v55 = vadd.f32 %v3386_v11, %v1254_v27  ;;  %v1257_v31 = vadd.f32 %v3198_v60, %v1256_v29  ;;  %v1258_v58 = vpop.f32.mrb[103].mxu1 }
 0x1e7   : > { %v1522_v49 = vadd.f32 %v3388_v30, %v1257_v31  ;;  %v1599_v3 = vmax.f32 %v1519_v55, 0.0 }
 0x1e9   : > { %v1600_v34 = vmax.f32 %v1522_v49, 0.0 }
 0x1ea   : > { %v1261_v15 = vpop.f32.mrb[104].mxu1 }
 0x1eb   : > { %v2389_v53 = vpack.c.bf16 %v1600_v34, %v1599_v3  ;;  %v1262_v12 = vadd.f32 %v3198_v60, %v1261_v15  ;;  %v1263_v36 = vpop.f32.mrb[105].mxu1 }
 0x1ec   : > { %v1264_v39 = vpop.f32.mrb[106].mxu1 }
 0x1ed   : > { %2430 = vst [vmem:[%s3214_s16 + $0xc8] sm:$0xff] %v2389_v53   ;;  %v1527_v0 = vadd.f32 %v3395_v26, %v1262_v12  ;;  %v1265_v42 = vadd.f32 %v3198_v60, %v1264_v39  ;;  %v1266_v11 = vpop.f32.mrb[107].mxu1 }
 0x1ef   : > { %v1530_v6 = vadd.f32 %v3397_v46, %v1265_v42  ;;  %v1601_v45 = vmax.f32 %v1527_v0, 0.0 }
 0x1f1   : > { %v1602_v9 = vmax.f32 %v1530_v6, 0.0 }
 0x1f2   : > { %v1269_v30 = vpop.f32.mrb[108].mxu1 }
 0x1f3   : > { %v2394_v47 = vpack.c.bf16 %v1602_v9, %v1601_v45  ;;  %v1270_v5 = vadd.f32 %v3198_v60, %v1269_v30  ;;  %v1271_v48 = vpop.f32.mrb[109].mxu1 }
 0x1f4   : > { %v1272_v52 = vpop.f32.mrb[110].mxu1 }
 0x1f5   : > { %2431 = vst [vmem:[%s3214_s16 + $0xd0] sm:$0xff] %v2394_v47   ;;  %v1535_v8 = vadd.f32 %v3404_v41, %v1270_v5  ;;  %v1273_v28 = vadd.f32 %v3198_v60, %v1272_v52  ;;  %v1274_v26 = vpop.f32.mrb[111].mxu1 }
 0x1f7   : > { %v1538_v57 = vadd.f32 %v3406_v2, %v1273_v28  ;;  %v1603_v44 = vmax.f32 %v1535_v8, 0.0 }
 0x1f9   : > { %v1604_v46 = vmax.f32 %v1538_v57, 0.0 }
 0x1fa   : > { %v1277_v17 = vpop.f32.mrb[112].mxu1 }
 0x1fb   : > { %v2399_v62 = vpack.c.bf16 %v1604_v46, %v1603_v44  ;;  %v1278_v21 = vadd.f32 %v3198_v60, %v1277_v17  ;;  %v1279_v1 = vpop.f32.mrb[113].mxu1 }
 0x1fc   : > { %v1280_v24 = vpop.f32.mrb[114].mxu1 }
 0x1fd   : > { %2432 = vst [vmem:[%s3214_s16 + $0xd8] sm:$0xff] %v2399_v62   ;;  %v1543_v4 = vadd.f32 %v3413_v59, %v1278_v21  ;;  %v1281_v20 = vadd.f32 %v3198_v60, %v1280_v24  ;;  %v1282_v41 = vpop.f32.mrb[115].mxu1 }
 0x1ff   : > { %v1546_v54 = vadd.f32 %v3415_v18, %v1281_v20  ;;  %v1605_v23 = vmax.f32 %v1543_v4, 0.0 }
 0x201   : > { %v1606_v7 = vmax.f32 %v1546_v54, 0.0 }
 0x203   : > { %v2404_v2 = vpack.c.bf16 %v1606_v7, %v1605_v23 }
 0x205   : > { %2433 = vst [vmem:[%s3214_s16 + $0xe0] sm:$0xff] %v2404_v2  }
 0x206 PF: > { %s13_s14 = sadd.s32 1, %s2885_s14   ;;  %s3461_s12 = smov %s2881_s13 }
 0x207   : > { %p10_p5 = scmp.ge.s32.totalorder %s13_s14, 9   ;;  %s3462_s13 = smov %s3464_s15 }
 0x209   :  { %12 = sbr.rel (!%p10_p5) target bundleno = 2 (0x2), region = 68 }

// kernel: net_forward.7
= control target key start
LH: loop header
LB: loop body
LE: loop exit
PB: predicated region body
PF: predicated region fallthrough
CT: control target
= control target key end

     0   :  { %s3154_s12 = smov 0   ;;  %s3156_s13 = smov 0   ;;  %s3724_s0 = inlined_call_operand.vmem [shape: bf16[672,576], index: 0, kind: input, shape index: {}]   ;;  %s3725_s1 = inlined_call_operand.vmem [shape: bf16[576,128], index: 1, kind: input, shape index: {}]   ;;  %s3726_s2 = inlined_call_operand.vmem [shape: f32[1,128], index: 2, kind: input, shape index: {}]   ;;  %s3727_s3 = inlined_call_operand.vmem [shape: bf16[672,128], index: 3, kind: output, shape index: {}]  }
   0x1   :  { %s3158_s14 = smov 0  }
   0x2 LB: > { %s25_s15 = sadd.s32 1, %s3125_s13  ;;  %p2202_p0 = scmp.ge.s32.totalorder %s3129_s14, 1  ;;  %s3129_s14 = sphi %s3158_s14, %s13_s14   ;;  %s3125_s13 = sphi %s3156_s13, %s3729_s13   ;;  %s3121_s12 = sphi %s3154_s12, %s3728_s12  }
   0x3   : > { %p27_p1 = scmp.ge.s32.totalorder %s25_s15, 2  ;;  %p170_p2 = scmp.lt.s32.totalorder %s3129_s14, 3 }
   0x5   : > { %s3731_s15 = smov (%p27_p1, %s25_s15), 0  ;;  %p171_p3 = pnand %p2202_p0, %p170_p2 }
   0x6   : > { %v2924_v0 = vld [vmem:[%s3725_s1] sm:$0xff] (!%p171_p3)   ;;  %v3131_v1 = vmov (!%p171_p3), 0   ;;  %v2926_v3 = vld [vmem:[%s3725_s1 + $0x8] sm:$0xff] (!%p171_p3)   ;;  %v2928_v5 = vld [vmem:[%s3725_s1 + $0x10] sm:$0xff] (!%p171_p3)   ;;  %s205_s7 = smul.u32 (!%p171_p3), 42, %s3121_s12  ;;  %v3132_v39 = vmov (!%p171_p3), 0.0  }
   0x7   : > { %174 = sbr.rel (%p171_p3) target bundleno = 540 (0x21c), region = 32  ;;  %1239 = vmatprep.subr.bf16.mxu1 (!%p171_p3), %v3131_v1  ;;  %1440 = vmatprep.subr.bf16.mxu0 (!%p171_p3), %v3131_v1  ;;  %v3182_v2 = vld [vmem:[%s3725_s1 + $0x80] sm:$0xff] (!%p171_p3)   ;;  %v3192_v4 = vld [vmem:[%s3725_s1 + $0x88] sm:$0xff] (!%p171_p3)   ;;  %v3203_v6 = vld [vmem:[%s3725_s1 + $0x90] sm:$0xff] (!%p171_p3)   ;;  %vm3133_vm0 = vmmov (!%p171_p3), 0   ;;  %vm1175_vm1 = vcmask (!%p171_p3), 523264  }
   0x8   : > { %1240 = vmatpush1.bf16.msra.mxu1 (!%p171_p3), %v2924_v0  ;;  %1441 = vmatpush1.bf16.msra.mxu0 (!%p171_p3), %v3182_v2  ;;  %v2930_v7 = vld [vmem:[%s3725_s1 + $0x18] sm:$0xff] (!%p171_p3)   ;;  %v2932_v9 = vld [vmem:[%s3725_s1 + $0x20] sm:$0xff] (!%p171_p3)   ;;  %v2934_v11 = vld [vmem:[%s3725_s1 + $0x28] sm:$0xff] (!%p171_p3)   ;;  %p206_p4 = scmp.lt.s32.totalorder (!%p171_p3), %s205_s7, 83 }
   0x9   : > { %1241 = vmatprep.subr.bf16.mxu1 (!%p171_p3), %v3131_v1  ;;  %1442 = vmatprep.subr.bf16.mxu0 (!%p171_p3), %v3131_v1  ;;  %v3214_v8 = vld [vmem:[%s3725_s1 + $0x98] sm:$0xff] (!%p171_p3)   ;;  %v3226_v10 = vld [vmem:[%s3725_s1 + $0xa0] sm:$0xff] (!%p171_p3)   ;;  %v3237_v12 = vld [vmem:[%s3725_s1 + $0xa8] sm:$0xff] (!%p171_p3)  }
   0xa   : > { %v2936_v13 = vld [vmem:[%s3725_s1 + $0x30] sm:$0xff] (!%p171_p3)   ;;  %v2938_v15 = vld [vmem:[%s3725_s1 + $0x38] sm:$0xff] (!%p171_p3)   ;;  %v2940_v17 = vld [vmem:[%s3725_s1 + $0x40] sm:$0xff] (!%p171_p3)  }
   0xb   : > { %v3250_v14 = vld [vmem:[%s3725_s1 + $0xb0] sm:$0xff] (!%p171_p3)   ;;  %v3262_v16 = vld [vmem:[%s3725_s1 + $0xb8] sm:$0xff] (!%p171_p3)   ;;  %v3278_v18 = vld [vmem:[%s3725_s1 + $0xc0] sm:$0xff] (!%p171_p3)  }
   0xc   : > { %1242 = vmatpush1.bf16.msra.mxu1 (!%p171_p3), %v2926_v3  ;;  %1443 = vmatpush1.bf16.msra.mxu0 (!%p171_p3), %v3192_v4  ;;  %v2942_v20 = vld [vmem:[%s3725_s1 + $0x48] sm:$0xff] (!%p171_p3)   ;;  %v2944_v23 = vld [vmem:[%s3725_s1 + $0x50] sm:$0xff] (!%p171_p3)   ;;  %v2946_v25 = vld [vmem:[%s3725_s1 + $0x58] sm:$0xff] (!%p171_p3)  }
   0xd   : > { %1243 = vmatprep.subr.bf16.mxu1 (!%p171_p3), %v3131_v1  ;;  %1444 = vmatprep.subr.bf16.mxu0 (!%p171_p3), %v3131_v1  ;;  %v3291_v22 = vld [vmem:[%s3725_s1 + $0xc8] sm:$0xff] (!%p171_p3)   ;;  %v3302_v24 = vld [vmem:[%s3725_s1 + $0xd0] sm:$0xff] (!%p171_p3)   ;;  %v3313_v26 = vld [vmem:[%s3725_s1 + $0xd8] sm:$0xff] (!%p171_p3)  }
   0xe   : > { %s3733_s7 = smov (!%p206_p4, %s205_s7), 83  ;;  %v2948_v27 = vld [vmem:[%s3725_s1 + $0x60] sm:$0xff]   ;;  %v2950_v29 = vld [vmem:[%s3725_s1 + $0x68] sm:$0xff]   ;;  %v2952_v31 = vld [vmem:[%s3725_s1 + $0x70] sm:$0xff]  }
   0xf   : > { %s2896_s23 = smul.u32 20, %s3733_s7  ;;  %v3324_v28 = vld [vmem:[%s3725_s1 + $0xe0] sm:$0xff]   ;;  %v3335_v30 = vld [vmem:[%s3725_s1 + $0xe8] sm:$0xff]   ;;  %v3346_v32 = vld [vmem:[%s3725_s1 + $0xf0] sm:$0xff]   ;;  %s2204_s25 = sshll.u32 %s3733_s7, 2 }
  0x10   : > { %1244 = vmatpush1.bf16.msra.mxu1 %v2928_v5  ;;  %1445 = vmatpush1.bf16.msra.mxu0 %v3203_v6  ;;  %v2954_v33 = vld [vmem:[%s3725_s1 + $0x78] sm:$0xff]   ;;  %v2962_v38 = vld [vmem:[%s3725_s1 + $0x100] sm:$0xff]   ;;  %v2979_v41 = vld [vmem:[%s3725_s1 + $0x108] sm:$0xff]   ;;  %s3632_s28 = scalar_lea.vmem %s3727_s3, %s2204_s25 }
  0x11   : > { %1245 = vmatprep.subr.bf16.mxu1 %v3131_v1  ;;  %1446 = vmatprep.subr.bf16.mxu0 %v3131_v1  ;;  %s3271_s30 = scalar_lea.vmem %s3724_s0, %s2896_s23  ;;  %v3357_v34 = vld [vmem:[%s3725_s1 + $0xf8] sm:$0xff]   ;;  %v2994_v46 = vld [vmem:[%s3725_s1 + $0x110] sm:$0xff]  }
  0x12   : > { %v2958_v19 = vld [vmem:[%s3271_s30 + $0x4] ss:$20 sps:$4 sm:$0xff]   ;;  %v2961_v21 = vld [vmem:[%s3271_s30 + $0xc] ss:$20 sps:$4 sm:$0xff]   ;;  %v2959_v36 = vld [vmem:[%s3271_s30 + $0x8] ss:$20 sps:$4 sm:$0xff]  }
  0x13   : > { %1271 = vmatprep.mubr.bf16.mxu1 %v2958_v19  ;;  %1472 = vmatprep.mubr.bf16.mxu0 %v2961_v21  ;;  %v2956_v35 = vld [vmem:[%s3271_s30] ss:$20 sps:$4 sm:$0xff]   ;;  %v2967_v42 = vld [vmem:[%s3271_s30 + $0x28] ss:$20 sps:$4 sm:$0xff]   ;;  %v2968_v43 = vld [vmem:[%s3271_s30 + $0x30] ss:$20 sps:$4 sm:$0xff]  }
  0x14   : > { %1246 = vmatpush1.bf16.msra.mxu1 %v2930_v7  ;;  %1447 = vmatpush1.bf16.msra.mxu0 %v3214_v8  ;;  %v2963_v37 = vld [vmem:[%s3271_s30 + $0x2c] ss:$20 sps:$4 sm:$0xff]   ;;  %v2965_v40 = vld [vmem:[%s3271_s30 + $0x34] ss:$20 sps:$4 sm:$0xff]   ;;  %v2971_v45 = vld [vmem:[%s3271_s30 + $0x5c] ss:$20 sps:$4 sm:$0xff]  }
  0x15   : > { %1247 = vmatprep.subr.bf16.mxu1 %v3131_v1  ;;  %1448 = vmatprep.subr.bf16.mxu0 %v3131_v1  ;;  %v2969_v44 = vld [vmem:[%s3271_s30 + $0x54] ss:$20 sps:$4 sm:$0xff]   ;;  %v2973_v47 = vld [vmem:[%s3271_s30 + $0x50] ss:$20 sps:$4 sm:$0xff]   ;;  %v3013_v48 = vld [vmem:[%s3725_s1 + $0x118] sm:$0xff]  }
  0x16   : > { %v2974_v49 = vld [vmem:[%s3271_s30 + $0x58] ss:$20 sps:$4 sm:$0xff]   ;;  %v2975_v50 = vld [vmem:[%s3271_s30 + $0x7c] ss:$20 sps:$4 sm:$0xff]   ;;  %v2981_v53 = vld [vmem:[%s3271_s30 + $0x80] ss:$20 sps:$4 sm:$0xff]  }
  0x17   : > { %v2977_v51 = vld [vmem:[%s3271_s30 + $0x84] ss:$20 sps:$4 sm:$0xff]   ;;  %v2984_v55 = vld [vmem:[%s3271_s30 + $0xac] ss:$20 sps:$4 sm:$0xff]   ;;  %v2987_v57 = vld [vmem:[%s3271_s30 + $0xa8] ss:$20 sps:$4 sm:$0xff]  }
  0x18   : > { %1248 = vmatpush1.bf16.msra.mxu1 %v2932_v9  ;;  %1449 = vmatpush1.bf16.msra.mxu0 %v3226_v10  ;;  %v2980_v52 = vld [vmem:[%s3271_s30 + $0x78] ss:$20 sps:$4 sm:$0xff]   ;;  %v2986_v56 = vld [vmem:[%s3271_s30 + $0xa0] ss:$20 sps:$4 sm:$0xff]   ;;  %v2992_v60 = vld [vmem:[%s3271_s30 + $0xc8] ss:$20 sps:$4 sm:$0xff]  }
  0x19   : > { %1249 = vmatprep.subr.bf16.mxu1 %v3131_v1  ;;  %1450 = vmatprep.subr.bf16.mxu0 %v3131_v1  ;;  %v2982_v54 = vld [vmem:[%s3271_s30 + $0xa4] ss:$20 sps:$4 sm:$0xff]   ;;  %v2988_v58 = vld [vmem:[%s3271_s30 + $0xcc] ss:$20 sps:$4 sm:$0xff]   ;;  %v2990_v59 = vld [vmem:[%s3271_s30 + $0xd4] ss:$20 sps:$4 sm:$0xff]  }
  0x1a   : > { %v2993_v61 = vld [vmem:[%s3271_s30 + $0xd0] ss:$20 sps:$4 sm:$0xff]   ;;  %v2995_v62 = vld [vmem:[%s3271_s30 + $0xf4] ss:$20 sps:$4 sm:$0xff]   ;;  %v3005_v5 = vld [vmem:[%s3271_s30 + $0x118] ss:$20 sps:$4 sm:$0xff]  }
  0x1b   : > { %v2997_v63 = vld [vmem:[%s3271_s30 + $0xfc] ss:$20 sps:$4 sm:$0xff]   ;;  %v3007_v7 = vld [vmem:[%s3271_s30 + $0x144] ss:$20 sps:$4 sm:$0xff]   ;;  %v3011_v9 = vld [vmem:[%s3271_s30 + $0x140] ss:$20 sps:$4 sm:$0xff]  }
  0x1c   : > { %1250 = vmatpush1.bf16.msra.mxu1 %v2934_v11  ;;  %1451 = vmatpush1.bf16.msra.mxu0 %v3237_v12  ;;  %v2999_v0 = vld [vmem:[%s3271_s30 + $0xf0] ss:$20 sps:$4 sm:$0xff]   ;;  %v3014_v11 = vld [vmem:[%s3271_s30 + $0x16c] ss:$20 sps:$4 sm:$0xff]  }
  0x1d   : > { %1251 = vmatprep.subr.bf16.mxu1 %v3131_v1  ;;  %1452 = vmatprep.subr.bf16.mxu0 %v3131_v1  ;;  %v3001_v3 = vld [vmem:[%s3271_s30 + $0x11c] ss:$20 sps:$4 sm:$0xff]   ;;  %v3028_v19 = vld [vmem:[%s3271_s30 + $0x1b8] ss:$20 sps:$4 sm:$0xff]  }
  0x1e   : > { %v3030_v21 = vld [vmem:[%s3271_s30 + $0x1e4] ss:$20 sps:$4 sm:$0xff]  }
  0x20   : > { %1252 = vmatpush1.bf16.msra.mxu1 %v2936_v13  ;;  %1453 = vmatpush1.bf16.msra.mxu0 %v3250_v14  ;;  %v3018_v13 = vld [vmem:[%s3271_s30 + $0x168] ss:$20 sps:$4 sm:$0xff]  }
  0x21   : > { %1253 = vmatprep.subr.bf16.mxu1 %v3131_v1  ;;  %1454 = vmatprep.subr.bf16.mxu0 %v3131_v1 }
  0x24   : > { %1254 = vmatpush1.bf16.msra.mxu1 %v2938_v15  ;;  %1455 = vmatpush1.bf16.msra.mxu0 %v3262_v16  ;;  %v3020_v15 = vld [vmem:[%s3271_s30 + $0x194] ss:$20 sps:$4 sm:$0xff]  }
  0x25   : > { %1255 = vmatprep.subr.bf16.mxu1 %v3131_v1  ;;  %1456 = vmatprep.subr.bf16.mxu0 %v3131_v1 }
  0x28   : > { %1256 = vmatpush1.bf16.msra.mxu1 %v2940_v17  ;;  %1457 = vmatpush1.bf16.msra.mxu0 %v3278_v18  ;;  %v3025_v17 = vld [vmem:[%s3271_s30 + $0x198] ss:$20 sps:$4 sm:$0xff]  }
  0x29   : > { %1257 = vmatprep.subr.bf16.mxu1 %v3131_v1  ;;  %1458 = vmatprep.subr.bf16.mxu0 %v3131_v1 }
  0x2c   : > { %1258 = vmatpush1.bf16.msra.mxu1 %v2942_v20  ;;  %1459 = vmatpush1.bf16.msra.mxu0 %v3291_v22  ;;  %v3029_v20 = vld [vmem:[%s3271_s30 + $0x10] ss:$20 sps:$4 sm:$0xff]  }
  0x2d   : > { %1259 = vmatprep.subr.bf16.mxu1 %v3131_v1  ;;  %1460 = vmatprep.subr.bf16.mxu0 %v3131_v1 }
  0x30   : > { %1260 = vmatpush1.bf16.msra.mxu1 %v2944_v23  ;;  %1461 = vmatpush1.bf16.msra.mxu0 %v3302_v24  ;;  %v3033_v23 = vld [vmem:[%s3271_s30 + $0x38] ss:$20 sps:$4 sm:$0xff]  }
  0x31   : > { %1261 = vmatprep.subr.bf16.mxu1 %v3131_v1  ;;  %1462 = vmatprep.subr.bf16.mxu0 %v3131_v1 }
  0x34   : > { %1262 = vmatpush1.bf16.msra.mxu1 %v2946_v25  ;;  %1463 = vmatpush1.bf16.msra.mxu0 %v3313_v26  ;;  %v3036_v25 = vld [vmem:[%s3271_s30 + $0x208] ss:$20 sps:$4 sm:$0xff]  }
  0x35   : > { %1263 = vmatprep.subr.bf16.mxu1 %v3131_v1  ;;  %1464 = vmatprep.subr.bf16.mxu0 %v3131_v1 }
  0x38   : > { %1264 = vmatpush1.bf16.msra.mxu1 %v2948_v27  ;;  %1465 = vmatpush1.bf16.msra.mxu0 %v3324_v28  ;;  %v3038_v27 = vld [vmem:[%s3271_s30 + $0x234] ss:$20 sps:$4 sm:$0xff]  }
  0x39   : > { %1265 = vmatprep.subr.bf16.mxu1 %v3131_v1  ;;  %1466 = vmatprep.subr.bf16.mxu0 %v3131_v1 }
  0x3c   : > { %1266 = vmatpush1.bf16.msra.mxu1 %v2950_v29  ;;  %1467 = vmatpush1.bf16.msra.mxu0 %v3335_v30  ;;  %v3041_v29 = vld [vmem:[%s3271_s30 + $0x88] ss:$20 sps:$4 sm:$0xff]  }
  0x3d   : > { %1267 = vmatprep.subr.bf16.mxu1 %v3131_v1  ;;  %1468 = vmatprep.subr.bf16.mxu0 %v3131_v1 }
  0x40   : > { %1268 = vmatpush1.bf16.msra.mxu1 %v2952_v31  ;;  %1469 = vmatpush1.bf16.msra.mxu0 %v3346_v32  ;;  %v3044_v31 = vld [vmem:[%s3271_s30 + $0x258] ss:$20 sps:$4 sm:$0xff]  }
  0x41   : > { %1269 = vmatprep.subr.bf16.mxu1 %v3131_v1  ;;  %1470 = vmatprep.subr.bf16.mxu0 %v3131_v1 }
  0x44   : > { %1270 = vmatpush1.bf16.msra.mxu1 %v2954_v33  ;;  %1471 = vmatpush1.bf16.msra.mxu0 %v3357_v34  ;;  %v3046_v33 = vld [vmem:[%s3271_s30 + $0x284] ss:$20 sps:$4 sm:$0xff]  }
  0x45   : > { %2696 = vmatprep.subr.bf16.mxu1 %v3131_v1  ;;  %2604 = vmatprep.subr.bf16.mxu0 %v3132_v39 }
  0x47   : > { %1272 = vmatmul.mubr.bf16.vlgmr.msra.gmra.mrb[0].mxu1 %v2956_v35  ;;  %1473 = vmatmul.mubr.bf16.vlgmr.msra.gmra.mrb[0].mxu0 %v2959_v36  ;;  %v3049_v35 = vld [vmem:[%s3271_s30 + $0xd8] ss:$20 sps:$4 sm:$0xff]  }
  0x48   : > { %1279 = vmatprep.mubr.bf16.mxu1 %v2963_v37  ;;  %2605 = vmatpush3.bf16.msra.mxu0 %v2962_v38  ;;  %v3050_v36 = vld [vmem:[%s3271_s30 + $0x2ac] ss:$20 sps:$4 sm:$0xff]   ;;  %v3052_v37 = vld [vmem:[%s3271_s30 + $0x2a8] ss:$20 sps:$4 sm:$0xff]  }
  0x49   : > { %2712 = vmatpush1.bf16.msra.mxu1 %v3182_v2  ;;  %1480 = vmatprep.mubr.bf16.mxu0 %v2965_v40  ;;  %v3000_v2 = vld [vmem:[%s3271_s30 + $0xf8] ss:$20 sps:$4 sm:$0xff]   ;;  %v3053_v38 = vld [vmem:[%s3271_s30 + $0x100] ss:$20 sps:$4 sm:$0xff]  }
  0x4a   : > { %2697 = vmatprep.subr.bf16.mxu1 %v3131_v1  ;;  %2606 = vmatprep.subr.bf16.mxu0 %v3132_v39  ;;  %v3054_v40 = vld [vmem:[%s3271_s30 + $0x2d4] ss:$20 sps:$4 sm:$0xff]  }
  0x4c   : > { %2607 = vmatpush3.bf16.msra.mxu0 %v2979_v41  ;;  %v3056_v41 = vld [vmem:[%s3271_s30 + $0x2d0] ss:$20 sps:$4 sm:$0xff]  }
  0x4d   : > { %2713 = vmatpush1.bf16.msra.mxu1 %v3192_v4  ;;  %2608 = vmatprep.subr.bf16.mxu0 %v3132_v39  ;;  %v3003_v4 = vld [vmem:[%s3271_s30 + $0x124] ss:$20 sps:$4 sm:$0xff]  }
  0x4e   : > { %2698 = vmatprep.subr.bf16.mxu1 %v3131_v1 }
  0x4f   : > { %1280 = vmatmul.mubr.bf16.gmra.mrb[4].mxu1 %v2967_v42  ;;  %1481 = vmatmul.mubr.bf16.gmra.mrb[4].mxu0 %v2968_v43  ;;  %v3057_v42 = vld [vmem:[%s3271_s30 + $0x128] ss:$20 sps:$4 sm:$0xff]  }
  0x50   : > { %1287 = vmatprep.mubr.bf16.mxu1 %v2969_v44  ;;  %1488 = vmatprep.mubr.bf16.mxu0 %v2971_v45  ;;  %v3058_v43 = vld [vmem:[%s3271_s30 + $0x2fc] ss:$20 sps:$4 sm:$0xff]   ;;  %v3060_v44 = vld [vmem:[%s3271_s30 + $0x2f8] ss:$20 sps:$4 sm:$0xff]  }
  0x51   : > { %2714 = vmatpush1.bf16.msra.mxu1 %v3203_v6  ;;  %2609 = vmatpush3.bf16.msra.mxu0 %v2994_v46  ;;  %v3006_v6 = vld [vmem:[%s3271_s30 + $0x120] ss:$20 sps:$4 sm:$0xff]   ;;  %v3061_v45 = vld [vmem:[%s3271_s30 + $0x150] ss:$20 sps:$4 sm:$0xff]  }
  0x52   : > { %2699 = vmatprep.subr.bf16.mxu1 %v3131_v1  ;;  %2610 = vmatprep.subr.bf16.mxu0 %v3132_v39  ;;  %v3062_v46 = vld [vmem:[%s3271_s30 + $0x324] ss:$20 sps:$4 sm:$0xff]  }
  0x55   : > { %2715 = vmatpush1.bf16.msra.mxu1 %v3214_v8  ;;  %2611 = vmatpush3.bf16.msra.mxu0 %v3013_v48  ;;  %v3009_v8 = vld [vmem:[%s3271_s30 + $0x14c] ss:$20 sps:$4 sm:$0xff]  }
  0x56   : > { %2700 = vmatprep.subr.bf16.mxu1 %v3131_v1  ;;  %v3065_v48 = vld [vmem:[%s3271_s30 + $0x178] ss:$20 sps:$4 sm:$0xff]  }
  0x57   : > { %1288 = vmatmul.mubr.bf16.gmra.mrb[8].mxu1 %v2973_v47  ;;  %1489 = vmatmul.mubr.bf16.gmra.mrb[8].mxu0 %v2974_v49  ;;  %v3064_v47 = vld [vmem:[%s3271_s30 + $0x320] ss:$20 sps:$4 sm:$0xff]   ;;  %v3068_v49 = vld [vmem:[%s3271_s30 + $0x1c4] ss:$20 sps:$4 sm:$0xff]  }
  0x58   : > { %1295 = vmatprep.mubr.bf16.mxu1 %v2975_v50  ;;  %1496 = vmatprep.mubr.bf16.mxu0 %v2977_v51  ;;  %v3066_v50 = vld [vmem:[%s3271_s30 + $0x1c0] ss:$20 sps:$4 sm:$0xff]  }
  0x59   : > { %2716 = vmatpush1.bf16.msra.mxu1 %v3226_v10  ;;  %v3012_v10 = vld [vmem:[%s3271_s30 + $0x148] ss:$20 sps:$4 sm:$0xff]   ;;  %v3069_v51 = vld [vmem:[%s3271_s30 + $0x1a0] ss:$20 sps:$4 sm:$0xff]  }
  0x5a   : > { %2701 = vmatprep.subr.bf16.mxu1 %v3131_v1 }
  0x5d   : > { %2717 = vmatpush1.bf16.msra.mxu1 %v3237_v12  ;;  %v3016_v12 = vld [vmem:[%s3271_s30 + $0x174] ss:$20 sps:$4 sm:$0xff]  }
  0x5e   : > { %2702 = vmatprep.subr.bf16.mxu1 %v3131_v1 }
  0x5f   : > { %1296 = vmatmul.mubr.bf16.gmra.mrb[12].mxu1 %v2980_v52  ;;  %1497 = vmatmul.mubr.bf16.gmra.mrb[12].mxu0 %v2981_v53  ;;  %v3070_v52 = vld [vmem:[%s3271_s30 + $0x1ec] ss:$20 sps:$4 sm:$0xff]   ;;  %v3072_v53 = vld [vmem:[%s3271_s30 + $0x1e8] ss:$20 sps:$4 sm:$0xff]  }
  0x60   : > { %1303 = vmatprep.mubr.bf16.mxu1 %v2982_v54  ;;  %1504 = vmatprep.mubr.bf16.mxu0 %v2984_v55  ;;  %v3073_v54 = vld [vmem:[%s3271_s30 + $0x1c8] ss:$20 sps:$4 sm:$0xff]  }
  0x61   : > { %2718 = vmatpush1.bf16.msra.mxu1 %v3250_v14  ;;  %v3019_v14 = vld [vmem:[%s3271_s30 + $0x170] ss:$20 sps:$4 sm:$0xff]   ;;  %v3074_v55 = vld [vmem:[%s3271_s30 + $0x214] ss:$20 sps:$4 sm:$0xff]  }
  0x62   : > { %2703 = vmatprep.subr.bf16.mxu1 %v3131_v1 }
  0x65   : > { %2719 = vmatpush1.bf16.msra.mxu1 %v3262_v16  ;;  %v3024_v16 = vld [vmem:[%s3271_s30 + $0x190] ss:$20 sps:$4 sm:$0xff]  }
  0x66   : > { %2704 = vmatprep.subr.bf16.mxu1 %v3131_v1 }
  0x67   : > { %1304 = vmatmul.mubr.bf16.gmra.mrb[16].mxu1 %v2986_v56  ;;  %1505 = vmatmul.mubr.bf16.gmra.mrb[16].mxu0 %v2987_v57  ;;  %v3076_v56 = vld [vmem:[%s3271_s30 + $0x210] ss:$20 sps:$4 sm:$0xff]  }
  0x68   : > { %1311 = vmatprep.mubr.bf16.mxu1 %v2988_v58  ;;  %1512 = vmatprep.mubr.bf16.mxu0 %v2990_v59  ;;  %v3077_v57 = vld [vmem:[%s3271_s30 + $0x1f0] ss:$20 sps:$4 sm:$0xff]   ;;  %v3080_v59 = vld [vmem:[%s3271_s30 + $0x238] ss:$20 sps:$4 sm:$0xff]  }
  0x69   : > { %2720 = vmatpush1.bf16.msra.mxu1 %v3278_v18  ;;  %v3026_v18 = vld [vmem:[%s3271_s30 + $0x1bc] ss:$20 sps:$4 sm:$0xff]  }
  0x6a   : > { %2705 = vmatprep.subr.bf16.mxu1 %v3131_v1  ;;  %v3078_v58 = vld [vmem:[%s3271_s30 + $0x23c] ss:$20 sps:$4 sm:$0xff]  }
  0x6d   : > { %2721 = vmatpush1.bf16.msra.mxu1 %v3291_v22  ;;  %v3032_v22 = vld [vmem:[%s3271_s30 + $0x1e0] ss:$20 sps:$4 sm:$0xff]  }
  0x6e   : > { %2706 = vmatprep.subr.bf16.mxu1 %v3131_v1 }
  0x6f   : > { %1312 = vmatmul.mubr.bf16.gmra.mrb[20].mxu1 %v2992_v60  ;;  %1513 = vmatmul.mubr.bf16.gmra.mrb[20].mxu0 %v2993_v61  ;;  %v3081_v60 = vld [vmem:[%s3271_s30 + $0x218] ss:$20 sps:$4 sm:$0xff]  }
  0x70   : > { %1319 = vmatprep.mubr.bf16.mxu1 %v2995_v62  ;;  %1520 = vmatprep.mubr.bf16.mxu0 %v2997_v63  ;;  %v3082_v61 = vld [vmem:[%s3271_s30 + $0x264] ss:$20 sps:$4 sm:$0xff]   ;;  %v3084_v62 = vld [vmem:[%s3271_s30 + $0x260] ss:$20 sps:$4 sm:$0xff]  }
  0x71   : > { %2722 = vmatpush1.bf16.msra.mxu1 %v3302_v24  ;;  %v3034_v24 = vld [vmem:[%s3271_s30 + $0x20c] ss:$20 sps:$4 sm:$0xff]  }
  0x72   : > { %2707 = vmatprep.subr.bf16.mxu1 %v3131_v1  ;;  %v3085_v63 = vld [vmem:[%s3271_s30 + $0x240] ss:$20 sps:$4 sm:$0xff]  }
  0x75   : > { %2723 = vmatpush1.bf16.msra.mxu1 %v3313_v26  ;;  %v3037_v26 = vld [vmem:[%s3271_s30 + $0x60] ss:$20 sps:$4 sm:$0xff]  }
  0x76   : > { %2708 = vmatprep.subr.bf16.mxu1 %v3131_v1 }
  0x77   : > { %1320 = vmatmul.mubr.bf16.gmra.mrb[24].mxu1 %v2999_v0  ;;  %1521 = vmatmul.mubr.bf16.gmra.mrb[24].mxu0 %v3000_v2  ;;  %v3086_v0 = vld [vmem:[%s3271_s30 + $0x28c] ss:$20 sps:$4 sm:$0xff]   ;;  %v3088_v2 = vld [vmem:[%s3271_s30 + $0x288] ss:$20 sps:$4 sm:$0xff]  }
  0x78   : > { %1327 = vmatprep.mubr.bf16.mxu1 %v3001_v3  ;;  %1528 = vmatprep.mubr.bf16.mxu0 %v3003_v4  ;;  %v3089_v3 = vld [vmem:[%s3271_s30 + $0x268] ss:$20 sps:$4 sm:$0xff]  }
  0x79   : > { %2724 = vmatpush1.bf16.msra.mxu1 %v3324_v28  ;;  %v3040_v28 = vld [vmem:[%s3271_s30 + $0x230] ss:$20 sps:$4 sm:$0xff]   ;;  %v3090_v4 = vld [vmem:[%s3271_s30 + $0x2b4] ss:$20 sps:$4 sm:$0xff]  }
  0x7a   : > { %2709 = vmatprep.subr.bf16.mxu1 %v3131_v1 }
  0x7d   : > { %2725 = vmatpush1.bf16.msra.mxu1 %v3335_v30  ;;  %v3042_v30 = vld [vmem:[%s3271_s30 + $0x25c] ss:$20 sps:$4 sm:$0xff]  }
  0x7e   : > { %2710 = vmatprep.subr.bf16.mxu1 %v3131_v1 }
  0x7f   : > { %1328 = vmatmul.mubr.bf16.gmra.mrb[28].mxu1 %v3005_v5  ;;  %1529 = vmatmul.mubr.bf16.gmra.mrb[28].mxu0 %v3006_v6 }
  0x80   : > { %1335 = vmatprep.mubr.bf16.mxu1 %v3007_v7  ;;  %1536 = vmatprep.mubr.bf16.mxu0 %v3009_v8  ;;  %v3092_v7 = vld [vmem:[%s3271_s30 + $0x2b0] ss:$20 sps:$4 sm:$0xff]  }
  0x81   : > { %2726 = vmatpush1.bf16.msra.mxu1 %v3346_v32  ;;  %v3045_v32 = vld [vmem:[%s3271_s30 + $0xb0] ss:$20 sps:$4 sm:$0xff]  }
  0x82   : > { %2711 = vmatprep.subr.bf16.mxu1 %v3131_v1  ;;  %v3022_v1 = vld [vmem:[%s3271_s30 + $0x19c] ss:$20 sps:$4 sm:$0xff]  }
  0x83   : > { %v3093_v8 = vld [vmem:[%s3271_s30 + $0x290] ss:$20 sps:$4 sm:$0xff]  }
  0x85   : > { %2727 = vmatpush1.bf16.msra.mxu1 %v3357_v34  ;;  %v3048_v34 = vld [vmem:[%s3271_s30 + $0x280] ss:$20 sps:$4 sm:$0xff]  }
  0x87   : > { %1336 = vmatmul.mubr.bf16.gmra.mrb[32].mxu1 %v3011_v9  ;;  %1537 = vmatmul.mubr.bf16.gmra.mrb[32].mxu0 %v3012_v10  ;;  %v3094_v10 = vld [vmem:[%s3271_s30 + $0x2dc] ss:$20 sps:$4 sm:$0xff]  }
  0x88   : > { %1343 = vmatprep.mubr.bf16.mxu1 %v3014_v11  ;;  %1544 = vmatprep.mubr.bf16.mxu0 %v3016_v12 }
  0x8f   : > { %1344 = vmatmul.mubr.bf16.gmra.mrb[36].mxu1 %v3018_v13  ;;  %1545 = vmatmul.mubr.bf16.gmra.mrb[36].mxu0 %v3019_v14  ;;  %v3096_v14 = vld [vmem:[%s3271_s30 + $0x2d8] ss:$20 sps:$4 sm:$0xff]  }
  0x90   : > { %1351 = vmatprep.mubr.bf16.mxu1 %v3020_v15  ;;  %1552 = vmatprep.mubr.bf16.mxu0 %v3022_v1  ;;  %v3097_v15 = vld [vmem:[%s3271_s30 + $0x2b8] ss:$20 sps:$4 sm:$0xff]  }
  0x97   : > { %1352 = vmatmul.mubr.bf16.gmra.mrb[40].mxu1 %v3024_v16  ;;  %1553 = vmatmul.mubr.bf16.gmra.mrb[40].mxu0 %v3025_v17  ;;  %v3098_v16 = vld [vmem:[%s3271_s30 + $0x304] ss:$20 sps:$4 sm:$0xff]  }
  0x98   : > { %1359 = vmatprep.mubr.bf16.mxu1 %v3026_v18  ;;  %2612 = vmatprep.mubr.msk.bf16.mxu0 %vm3133_vm0, %v3132_v39 }
  0x9f   : > { %1360 = vmatmul.mubr.bf16.gmra.mrb[44].mxu1 %v3028_v19  ;;  %2613 = vmatmul.mubr.msk.bf16.vlgmr.msra.gmra.mrb[0].mxu0 %vm1175_vm1, %v3029_v20  ;;  %v3100_v20 = vld [vmem:[%s3271_s30 + $0x300] ss:$20 sps:$4 sm:$0xff]  }
  0xa0   : > { %1367 = vmatprep.mubr.bf16.mxu1 %v3030_v21  ;;  %2616 = vmatprep.mubr.msk.bf16.mxu0 %vm3133_vm0, %v3132_v39  ;;  %v3101_v21 = vld [vmem:[%s3271_s30 + $0x2e0] ss:$20 sps:$4 sm:$0xff]  }
  0xa7   : > { %1368 = vmatmul.mubr.bf16.gmra.mrb[48].mxu1 %v3032_v22  ;;  %2617 = vmatmul.mubr.msk.bf16.gmra.mrb[4].mxu0 %vm1175_vm1, %v3033_v23  ;;  %v3102_v23 = vld [vmem:[%s3271_s30 + $0x32c] ss:$20 sps:$4 sm:$0xff]  }
  0xa8   : > { %1375 = vmatprep.mubr.bf16.mxu1 %v3034_v24  ;;  %2620 = vmatprep.mubr.msk.bf16.mxu0 %vm3133_vm0, %v3132_v39 }
  0xaf   : > { %1376 = vmatmul.mubr.bf16.gmra.mrb[52].mxu1 %v3036_v25  ;;  %2621 = vmatmul.mubr.msk.bf16.gmra.mrb[8].mxu0 %vm1175_vm1, %v3037_v26 }
  0xb0   : > { %1383 = vmatprep.mubr.bf16.mxu1 %v3038_v27  ;;  %2624 = vmatprep.mubr.msk.bf16.mxu0 %vm3133_vm0, %v3132_v39  ;;  %v3104_v27 = vld [vmem:[%s3271_s30 + $0x328] ss:$20 sps:$4 sm:$0xff]  }
  0xb7   : > { %1384 = vmatmul.mubr.bf16.gmra.mrb[56].mxu1 %v3040_v28  ;;  %2625 = vmatmul.mubr.msk.bf16.gmra.mrb[12].mxu0 %vm1175_vm1, %v3041_v29  ;;  %v3105_v28 = vld [vmem:[%s3271_s30 + $0x308] ss:$20 sps:$4 sm:$0xff]  }
  0xb8   : > { %1391 = vmatprep.mubr.bf16.mxu1 %v3042_v30  ;;  %2628 = vmatprep.mubr.msk.bf16.mxu0 %vm3133_vm0, %v3132_v39 }
  0xbf   : > { %1392 = vmatmul.mubr.bf16.gmra.mrb[60].mxu1 %v3044_v31  ;;  %2629 = vmatmul.mubr.msk.bf16.gmra.mrb[16].mxu0 %vm1175_vm1, %v3045_v32 }
  0xc0   : > { %1399 = vmatprep.mubr.bf16.mxu1 %v3046_v33  ;;  %2632 = vmatprep.mubr.msk.bf16.mxu0 %vm3133_vm0, %v3132_v39  ;;  %v3106_v33 = vld [vmem:[%s3271_s30 + $0x330] ss:$20 sps:$4 sm:$0xff]  }
  0xc7   : > { %1400 = vmatmul.mubr.bf16.gmra.mrb[64].mxu1 %v3048_v34  ;;  %2633 = vmatmul.mubr.msk.bf16.gmra.mrb[20].mxu0 %vm1175_vm1, %v3049_v35 }
  0xc8   : > { %1407 = vmatprep.mubr.bf16.mxu1 %v3050_v36  ;;  %2636 = vmatprep.mubr.msk.bf16.mxu0 %vm3133_vm0, %v3132_v39 }
  0xcf   : > { %1408 = vmatmul.mubr.bf16.gmra.mrb[68].mxu1 %v3052_v37  ;;  %2637 = vmatmul.mubr.msk.bf16.gmra.mrb[24].mxu0 %vm1175_vm1, %v3053_v38 }
  0xd0   : > { %1415 = vmatprep.mubr.bf16.mxu1 %v3054_v40  ;;  %2640 = vmatprep.mubr.msk.bf16.mxu0 %vm3133_vm0, %v3132_v39 }
  0xd7   : > { %1416 = vmatmul.mubr.bf16.gmra.mrb[72].mxu1 %v3056_v41  ;;  %2641 = vmatmul.mubr.msk.bf16.gmra.mrb[28].mxu0 %vm1175_vm1, %v3057_v42 }
  0xd8   : > { %1423 = vmatprep.mubr.bf16.mxu1 %v3058_v43  ;;  %2644 = vmatprep.mubr.msk.bf16.mxu0 %vm3133_vm0, %v3132_v39 }
  0xdf   : > { %1424 = vmatmul.mubr.bf16.gmra.mrb[76].mxu1 %v3060_v44  ;;  %2645 = vmatmul.mubr.msk.bf16.gmra.mrb[32].mxu0 %vm1175_vm1, %v3061_v45 }
  0xe0   : > { %1431 = vmatprep.mubr.bf16.mxu1 %v3062_v46  ;;  %2648 = vmatprep.mubr.msk.bf16.mxu0 %vm3133_vm0, %v3132_v39 }
  0xe7   : > { %1432 = vmatmul.mubr.bf16.gmra.mrb[80].mxu1 %v3064_v47  ;;  %2649 = vmatmul.mubr.msk.bf16.gmra.mrb[36].mxu0 %vm1175_vm1, %v3065_v48 }
  0xe8   : > { %1560 = vmatprep.mubr.bf16.mxu1 %v3068_v49  ;;  %2652 = vmatprep.mubr.msk.bf16.mxu0 %vm3133_vm0, %v3132_v39 }
  0xef   : > { %1561 = vmatmul.mubr.bf16.vlgmr.msra.gmra.mrb[44].mxu1 %v3066_v50  ;;  %2653 = vmatmul.mubr.msk.bf16.gmra.mrb[40].mxu0 %vm1175_vm1, %v3069_v51 }
  0xf0   : > { %1568 = vmatprep.mubr.bf16.mxu1 %v3070_v52  ;;  %2656 = vmatprep.mubr.msk.bf16.mxu0 %vm3133_vm0, %v3132_v39 }
  0xf7   : > { %1569 = vmatmul.mubr.bf16.gmra.mrb[48].mxu1 %v3072_v53  ;;  %2657 = vmatmul.mubr.msk.bf16.gmra.mrb[44].mxu0 %vm1175_vm1, %v3073_v54 }
  0xf8   : > { %1576 = vmatprep.mubr.bf16.mxu1 %v3074_v55  ;;  %2660 = vmatprep.mubr.msk.bf16.mxu0 %vm3133_vm0, %v3132_v39 }
  0xff   : > { %1577 = vmatmul.mubr.bf16.gmra.mrb[52].mxu1 %v3076_v56  ;;  %2661 = vmatmul.mubr.msk.bf16.gmra.mrb[48].mxu0 %vm1175_vm1, %v3077_v57 }
 0x100   : > { %1584 = vmatprep.mubr.bf16.mxu1 %v3078_v58  ;;  %2664 = vmatprep.mubr.msk.bf16.mxu0 %vm3133_vm0, %v3132_v39 }
 0x107   : > { %1585 = vmatmul.mubr.bf16.gmra.mrb[56].mxu1 %v3080_v59  ;;  %2665 = vmatmul.mubr.msk.bf16.gmra.mrb[52].mxu0 %vm1175_vm1, %v3081_v60  ;;  %v3622_v60 = vld [vmem:[%s3726_s2] ss:$0 sm:$0xff] }
 0x108   : > { %1592 = vmatprep.mubr.bf16.mxu1 %v3082_v61  ;;  %2668 = vmatprep.mubr.msk.bf16.mxu0 %vm3133_vm0, %v3132_v39 }
 0x10f   : > { %1593 = vmatmul.mubr.bf16.gmra.mrb[60].mxu1 %v3084_v62  ;;  %2669 = vmatmul.mubr.msk.bf16.gmra.mrb[56].mxu0 %vm1175_vm1, %v3085_v63 }
 0x110   : > { %1600 = vmatprep.mubr.bf16.mxu1 %v3086_v0  ;;  %2672 = vmatprep.mubr.msk.bf16.mxu0 %vm3133_vm0, %v3132_v39 }
 0x117   : > { %1601 = vmatmul.mubr.bf16.gmra.mrb[64].mxu1 %v3088_v2  ;;  %2673 = vmatmul.mubr.msk.bf16.gmra.mrb[60].mxu0 %vm1175_vm1, %v3089_v3 }
 0x118   : > { %1608 = vmatprep.mubr.bf16.mxu1 %v3090_v4  ;;  %2676 = vmatprep.mubr.msk.bf16.mxu0 %vm3133_vm0, %v3132_v39 }
 0x11a   : > { %v3550_v5 = vpop.f32.mrb[0].mxu1 }
 0x11b   : > { %v1275_v6 = vpop.f32.mrb[1].mxu1  ;;  %v1274_v61 = vadd.f32 %v3622_v60, %v3550_v5 }
 0x11c   : > { %v3554_v9 = vpop.f32.mrb[2].mxu1 }
 0x11d   : > { %v1278_v11 = vpop.f32.mrb[3].mxu1  ;;  %v1277_v63 = vadd.f32 %v3622_v60, %v3554_v9 }
 0x11f   : > { %1609 = vmatmul.mubr.bf16.gmra.mrb[68].mxu1 %v3092_v7  ;;  %2677 = vmatmul.mubr.msk.bf16.gmra.mrb[64].mxu0 %vm1175_vm1, %v3093_v8 }
 0x120   : > { %1616 = vmatprep.mubr.bf16.mxu1 %v3094_v10  ;;  %2680 = vmatprep.mubr.msk.bf16.mxu0 %vm3133_vm0, %v3132_v39 }
 0x122   : > { %v3560_v12 = vpop.f32.mrb[4].mxu1 }
 0x123   : > { %v1283_v13 = vpop.f32.mrb[5].mxu1  ;;  %v1282_v5 = vadd.f32 %v3622_v60, %v3560_v12 }
 0x124   : > { %v3564_v1 = vpop.f32.mrb[6].mxu1 }
 0x125   : > { %v1286_v17 = vpop.f32.mrb[7].mxu1  ;;  %v1285_v11 = vadd.f32 %v3622_v60, %v3564_v1 }
 0x127   : > { %1617 = vmatmul.mubr.bf16.gmra.mrb[72].mxu1 %v3096_v14  ;;  %2681 = vmatmul.mubr.msk.bf16.gmra.mrb[68].mxu0 %vm1175_vm1, %v3097_v15 }
 0x128   : > { %1624 = vmatprep.mubr.bf16.mxu1 %v3098_v16  ;;  %2684 = vmatprep.mubr.msk.bf16.mxu0 %vm3133_vm0, %v3132_v39 }
 0x12a   : > { %v3570_v18 = vpop.f32.mrb[8].mxu1 }
 0x12b   : > { %v1291_v19 = vpop.f32.mrb[9].mxu1 }
 0x12c   : > { %v3574_v22 = vpop.f32.mrb[10].mxu1 }
 0x12d   : > { %v1294_v24 = vpop.f32.mrb[11].mxu1 }
 0x12e   : > { %v1293_v24 = vadd.f32 %v3622_v60, %v3574_v22 }
 0x12f   : > { %1625 = vmatmul.mubr.bf16.gmra.mrb[76].mxu1 %v3100_v20  ;;  %2685 = vmatmul.mubr.msk.bf16.gmra.mrb[72].mxu0 %vm1175_vm1, %v3101_v21  ;;  %v1290_v21 = vadd.f32 %v3622_v60, %v3570_v18 }
 0x130   : > { %1632 = vmatprep.mubr.bf16.mxu1 %v3102_v23  ;;  %2688 = vmatprep.mubr.msk.bf16.mxu0 %vm3133_vm0, %v3132_v39 }
 0x132   : > { %v3580_v25 = vpop.f32.mrb[12].mxu1 }
 0x133   : > { %v1299_v26 = vpop.f32.mrb[13].mxu1 }
 0x134   : > { %v3584_v29 = vpop.f32.mrb[14].mxu1 }
 0x135   : > { %v1302_v30 = vpop.f32.mrb[15].mxu1 }
 0x137   : > { %1633 = vmatmul.mubr.bf16.gmra.mrb[80].mxu1 %v3104_v27  ;;  %2689 = vmatmul.mubr.msk.bf16.gmra.mrb[76].mxu0 %vm1175_vm1, %v3105_v28 }
 0x138   : > { %2692 = vmatprep.mubr.msk.bf16.mxu0 %vm3133_vm0, %v3132_v39 }
 0x13a   : > { %v3589_v31 = vpop.f32.mrb[16].mxu1 }
 0x13b   : > { %v1307_v32 = vpop.f32.mrb[17].mxu1 }
 0x13c   : > { %v3592_v34 = vpop.f32.mrb[18].mxu1 }
 0x13d   : > { %v1310_v35 = vpop.f32.mrb[19].mxu1 }
 0x13e   : > { %v1298_v35 = vadd.f32 %v3622_v60, %v3580_v25 }
 0x13f   : > { %2693 = vmatmul.mubr.msk.bf16.gmra.mrb[80].mxu0 %vm1175_vm1, %v3106_v33 }
 0x142   : > { %v3595_v36 = vpop.f32.mrb[20].mxu1 }
 0x143   : > { %v1315_v37 = vpop.f32.mrb[21].mxu1 }
 0x144   : > { %v3597_v38 = vpop.f32.mrb[22].mxu1 }
 0x145   : > { %v1318_v40 = vpop.f32.mrb[23].mxu1 }
 0x146   : > { %v1301_v40 = vadd.f32 %v3622_v60, %v3584_v29 }
 0x14a   : > { %v3599_v41 = vpop.f32.mrb[24].mxu1 }
 0x14b   : > { %v1323_v42 = vpop.f32.mrb[25].mxu1 }
 0x14c   : > { %v3601_v43 = vpop.f32.mrb[26].mxu1 }
 0x14d   : > { %v1326_v39 = vpop.f32.mrb[27].mxu1 }
 0x152   : > { %v3603_v44 = vpop.f32.mrb[28].mxu1 }
 0x153   : > { %v1331_v45 = vpop.f32.mrb[29].mxu1 }
 0x154   : > { %v3605_v46 = vpop.f32.mrb[30].mxu1 }
 0x155   : > { %v1334_v47 = vpop.f32.mrb[31].mxu1 }
 0x15a   : > { %v3607_v48 = vpop.f32.mrb[32].mxu1 }
 0x15b   : > { %v1339_v49 = vpop.f32.mrb[33].mxu1 }
 0x15c   : > { %v3609_v50 = vpop.f32.mrb[34].mxu1 }
 0x15d   : > { %v1342_v51 = vpop.f32.mrb[35].mxu1 }
 0x162   : > { %v3611_v52 = vpop.f32.mrb[36].mxu1 }
 0x163   : > { %v1347_v53 = vpop.f32.mrb[37].mxu1 }
 0x164   : > { %v3613_v54 = vpop.f32.mrb[38].mxu1  ;;  %v1306_v53 = vadd.f32 %v3622_v60, %v3589_v31 }
 0x165   : > { %v1350_v55 = vpop.f32.mrb[39].mxu1 }
 0x16a   : > { %v3615_v56 = vpop.f32.mrb[40].mxu1 }
 0x16b   : > { %v1355_v57 = vpop.f32.mrb[41].mxu1 }
 0x16c   : > { %v3617_v58 = vpop.f32.mrb[42].mxu1  ;;  %v1309_v57 = vadd.f32 %v3622_v60, %v3592_v34 }
 0x16d   : > { %v1358_v59 = vpop.f32.mrb[43].mxu1 }
 0x172   : > { %v1675_v62 = vpop.f32.mrb[0].mxu0 }
 0x173   : > { %v2729_v0 = vadd.f32 %v1675_v62, %v1274_v61  ;;  %v2614_v2 = vpop.f32.mrb[1].mxu0 }
 0x174   : > { %v1678_v3 = vpop.f32.mrb[2].mxu0 }
 0x175   : > { %v2731_v4 = vadd.f32 %v1678_v3, %v1277_v63  ;;  %v2615_v6 = vpop.f32.mrb[3].mxu0  ;;  %v1842_v7 = vmax.f32 %v2729_v0, 0.0  ;;  %v1314_v3 = vadd.f32 %v3622_v60, %v3595_v36 }
 0x176   : > { %v1317_v6 = vadd.f32 %v3622_v60, %v3597_v38 }
 0x177   : > { %v1843_v8 = vmax.f32 %v2731_v4, 0.0 }
 0x179   : > { %v2457_v10 = vpack.c.bf16 %v1843_v8, %v1842_v7 }
 0x17a   : > { %v1683_v9 = vpop.f32.mrb[4].mxu0 }
 0x17b   : > { %2458 = vst [vmem:[%s3632_s28] sm:$0xff] %v2457_v10   ;;  %v2733_v13 = vadd.f32 %v1683_v9, %v1282_v5  ;;  %v2618_v14 = vpop.f32.mrb[5].mxu0 }
 0x17c   : > { %v1686_v15 = vpop.f32.mrb[6].mxu0 }
 0x17d   : > { %v2735_v16 = vadd.f32 %v1686_v15, %v1285_v11  ;;  %v2619_v17 = vpop.f32.mrb[7].mxu0  ;;  %v1844_v19 = vmax.f32 %v2733_v13, 0.0  ;;  %v1322_v13 = vadd.f32 %v3622_v60, %v3599_v41  ;;  %v1325_v15 = vadd.f32 %v3622_v60, %v3601_v43 }
 0x17f   : > { %v1845_v20 = vmax.f32 %v2735_v16, 0.0 }
 0x181   : > { %v2462_v23 = vpack.c.bf16 %v1845_v20, %v1844_v19 }
 0x182   : > { %v1691_v12 = vpop.f32.mrb[8].mxu0 }
 0x183   : > { %2559 = vst [vmem:[%s3632_s28 + $0x8] sm:$0xff] %v2462_v23   ;;  %v2737_v26 = vadd.f32 %v1691_v12, %v1290_v21  ;;  %v2622_v1 = vpop.f32.mrb[9].mxu0  ;;  %v1330_v12 = vadd.f32 %v3622_v60, %v3603_v44 }
 0x184   : > { %v1694_v27 = vpop.f32.mrb[10].mxu0 }
 0x185   : > { %v2739_v28 = vadd.f32 %v1694_v27, %v1293_v24  ;;  %v2623_v30 = vpop.f32.mrb[11].mxu0  ;;  %v1846_v32 = vmax.f32 %v2737_v26, 0.0  ;;  %v1333_v26 = vadd.f32 %v3622_v60, %v3605_v46 }
 0x187   : > { %v1847_v33 = vmax.f32 %v2739_v28, 0.0 }
 0x189   : > { %v2467_v37 = vpack.c.bf16 %v1847_v33, %v1846_v32 }
 0x18a   : > { %v1699_v18 = vpop.f32.mrb[12].mxu0 }
 0x18b   : > { %2560 = vst [vmem:[%s3632_s28 + $0x10] sm:$0xff] %v2467_v37   ;;  %v2741_v42 = vadd.f32 %v1699_v18, %v1298_v35  ;;  %v2626_v22 = vpop.f32.mrb[13].mxu0  ;;  %v1338_v35 = vadd.f32 %v3622_v60, %v3607_v48  ;;  %v1341_v18 = vadd.f32 %v3622_v60, %v3609_v50  ;;  %v1349_v48 = vadd.f32 %v3622_v60, %v3613_v54 }
 0x18c   : > { %v1702_v39 = vpop.f32.mrb[14].mxu0 }
 0x18d   : > { %v2743_v45 = vadd.f32 %v1702_v39, %v1301_v40  ;;  %v2627_v47 = vpop.f32.mrb[15].mxu0  ;;  %v1848_v49 = vmax.f32 %v2741_v42, 0.0 }
 0x18f   : > { %v1849_v51 = vmax.f32 %v2743_v45, 0.0 }
 0x191   : > { %v2472_v55 = vpack.c.bf16 %v1849_v51, %v1848_v49  ;;  %v1346_v49 = vadd.f32 %v3622_v60, %v3611_v52 }
 0x192   : > { %v1707_v25 = vpop.f32.mrb[16].mxu0 }
 0x193   : > { %2561 = vst [vmem:[%s3632_s28 + $0x18] sm:$0xff] %v2472_v55   ;;  %v2745_v59 = vadd.f32 %v1707_v25, %v1306_v53  ;;  %v2630_v29 = vpop.f32.mrb[17].mxu0 }
 0x194   : > { %v1710_v61 = vpop.f32.mrb[18].mxu0 }
 0x195   : > { %v2747_v62 = vadd.f32 %v1710_v61, %v1309_v57  ;;  %v2631_v63 = vpop.f32.mrb[19].mxu0  ;;  %v1850_v0 = vmax.f32 %v2745_v59, 0.0 }
 0x197   : > { %v1851_v2 = vmax.f32 %v2747_v62, 0.0  ;;  %v1354_v62 = vadd.f32 %v3622_v60, %v3615_v56 }
 0x199   : > { %v2477_v4 = vpack.c.bf16 %v1851_v2, %v1850_v0 }
 0x19a   : > { %v1715_v31 = vpop.f32.mrb[20].mxu0 }
 0x19b   : > { %2562 = vst [vmem:[%s3632_s28 + $0x20] sm:$0xff] %v2477_v4   ;;  %v2749_v7 = vadd.f32 %v1715_v31, %v1314_v3  ;;  %v2634_v34 = vpop.f32.mrb[21].mxu0  ;;  %v1357_v3 = vadd.f32 %v3622_v60, %v3617_v58 }
 0x19c   : > { %v1718_v8 = vpop.f32.mrb[22].mxu0 }
 0x19d   : > { %v2751_v5 = vadd.f32 %v1718_v8, %v1317_v6  ;;  %v2635_v10 = vpop.f32.mrb[23].mxu0  ;;  %v1852_v9 = vmax.f32 %v2749_v7, 0.0 }
 0x19f   : > { %v1853_v11 = vmax.f32 %v2751_v5, 0.0 }
 0x1a1   : > { %v2482_v14 = vpack.c.bf16 %v1853_v11, %v1852_v9 }
 0x1a2   : > { %v1723_v36 = vpop.f32.mrb[24].mxu0 }
 0x1a3   : > { %2563 = vst [vmem:[%s3632_s28 + $0x28] sm:$0xff] %v2482_v14   ;;  %v2753_v16 = vadd.f32 %v1723_v36, %v1322_v13  ;;  %v2638_v38 = vpop.f32.mrb[25].mxu0 }
 0x1a4   : > { %v1726_v17 = vpop.f32.mrb[26].mxu0 }
 0x1a5   : > { %v2755_v19 = vadd.f32 %v1726_v17, %v1325_v15  ;;  %v2639_v20 = vpop.f32.mrb[27].mxu0  ;;  %v1854_v21 = vmax.f32 %v2753_v16, 0.0 }
 0x1a7   : > { %v1855_v23 = vmax.f32 %v2755_v19, 0.0 }
 0x1a9   : > { %v2487_v24 = vpack.c.bf16 %v1855_v23, %v1854_v21 }
 0x1aa   : > { %v1731_v41 = vpop.f32.mrb[28].mxu0 }
 0x1ab   : > { %2564 = vst [vmem:[%s3632_s28 + $0x30] sm:$0xff] %v2487_v24   ;;  %v2757_v1 = vadd.f32 %v1731_v41, %v1330_v12  ;;  %v2642_v43 = vpop.f32.mrb[29].mxu0 }
 0x1ac   : > { %v1734_v27 = vpop.f32.mrb[30].mxu0 }
 0x1ad   : > { %v2759_v28 = vadd.f32 %v1734_v27, %v1333_v26  ;;  %v2643_v30 = vpop.f32.mrb[31].mxu0  ;;  %v1856_v32 = vmax.f32 %v2757_v1, 0.0 }
 0x1af   : > { %v1857_v33 = vmax.f32 %v2759_v28, 0.0 }
 0x1b1   : > { %v2492_v37 = vpack.c.bf16 %v1857_v33, %v1856_v32 }
 0x1b2   : > { %v1739_v44 = vpop.f32.mrb[32].mxu0 }
 0x1b3   : > { %2565 = vst [vmem:[%s3632_s28 + $0x38] sm:$0xff] %v2492_v37   ;;  %v2761_v40 = vadd.f32 %v1739_v44, %v1338_v35  ;;  %v2646_v46 = vpop.f32.mrb[33].mxu0 }
 0x1b4   : > { %v1742_v42 = vpop.f32.mrb[34].mxu0 }
 0x1b5   : > { %v2763_v22 = vadd.f32 %v1742_v42, %v1341_v18  ;;  %v2647_v39 = vpop.f32.mrb[35].mxu0  ;;  %v1858_v45 = vmax.f32 %v2761_v40, 0.0 }
 0x1b7   : > { %v1859_v47 = vmax.f32 %v2763_v22, 0.0 }
 0x1b9   : > { %v2497_v51 = vpack.c.bf16 %v1859_v47, %v1858_v45 }
 0x1ba   : > { %v1747_v53 = vpop.f32.mrb[36].mxu0 }
 0x1bb   : > { %2566 = vst [vmem:[%s3632_s28 + $0x40] sm:$0xff] %v2497_v51   ;;  %v2765_v55 = vadd.f32 %v1747_v53, %v1346_v49  ;;  %v2650_v50 = vpop.f32.mrb[37].mxu0 }
 0x1bc   : > { %v1750_v25 = vpop.f32.mrb[38].mxu0 }
 0x1bd   : > { %v2767_v57 = vadd.f32 %v1750_v25, %v1349_v48  ;;  %v2651_v59 = vpop.f32.mrb[39].mxu0  ;;  %v1860_v29 = vmax.f32 %v2765_v55, 0.0 }
 0x1bf   : > { %v1861_v61 = vmax.f32 %v2767_v57, 0.0 }
 0x1c1   : > { %v2502_v63 = vpack.c.bf16 %v1861_v61, %v1860_v29 }
 0x1c2   : > { %v1562_v0 = vpop.f32.mrb[44].mxu1  ;;  %v1755_v52 = vpop.f32.mrb[40].mxu0 }
 0x1c3   : > { %v1564_v2 = vpop.f32.mrb[45].mxu1  ;;  %2567 = vst [vmem:[%s3632_s28 + $0x48] sm:$0xff] %v2502_v63   ;;  %v2769_v54 = vadd.f32 %v1755_v52, %v1354_v62  ;;  %v2654_v4 = vpop.f32.mrb[41].mxu0  ;;  %v2772_v56 = vadd.f32 %v3622_v60, %v1562_v0 }
 0x1c4   : > { %v1565_v31 = vpop.f32.mrb[46].mxu1  ;;  %v1758_v6 = vpop.f32.mrb[42].mxu0 }
 0x1c5   : > { %v1567_v7 = vpop.f32.mrb[47].mxu1  ;;  %v2771_v34 = vadd.f32 %v1758_v6, %v1357_v3  ;;  %v2655_v8 = vpop.f32.mrb[43].mxu0  ;;  %v1862_v5 = vmax.f32 %v2769_v54, 0.0  ;;  %v2774_v36 = vadd.f32 %v3622_v60, %v1565_v31 }
 0x1c7   : > { %v1863_v10 = vmax.f32 %v2771_v34, 0.0 }
 0x1c9   : > { %v2507_v9 = vpack.c.bf16 %v1863_v10, %v1862_v5 }
 0x1ca   : > { %v1570_v11 = vpop.f32.mrb[48].mxu1  ;;  %v1763_v13 = vpop.f32.mrb[44].mxu0 }
 0x1cb   : > { %v1572_v14 = vpop.f32.mrb[49].mxu1  ;;  %2568 = vst [vmem:[%s3632_s28 + $0x50] sm:$0xff] %v2507_v9   ;;  %v2773_v58 = vadd.f32 %v2772_v56, %v1763_v13  ;;  %v2658_v15 = vpop.f32.mrb[45].mxu0  ;;  %v2776_v12 = vadd.f32 %v3622_v60, %v1570_v11 }
 0x1cc   : > { %v1573_v16 = vpop.f32.mrb[50].mxu1  ;;  %v1766_v38 = vpop.f32.mrb[46].mxu0 }
 0x1cd   : > { %v1575_v17 = vpop.f32.mrb[51].mxu1  ;;  %v2775_v19 = vadd.f32 %v2774_v36, %v1766_v38  ;;  %v2659_v20 = vpop.f32.mrb[47].mxu0  ;;  %v1864_v21 = vmax.f32 %v2773_v58, 0.0  ;;  %v2778_v43 = vadd.f32 %v3622_v60, %v1573_v16 }
 0x1cf   : > { %v1865_v23 = vmax.f32 %v2775_v19, 0.0 }
 0x1d1   : > { %v2512_v24 = vpack.c.bf16 %v1865_v23, %v1864_v21 }
 0x1d2   : > { %v1578_v41 = vpop.f32.mrb[52].mxu1  ;;  %v1771_v26 = vpop.f32.mrb[48].mxu0 }
 0x1d3   : > { %v1580_v1 = vpop.f32.mrb[53].mxu1  ;;  %2569 = vst [vmem:[%s3632_s28 + $0x58] sm:$0xff] %v2512_v24   ;;  %v2777_v27 = vadd.f32 %v2776_v12, %v1771_v26  ;;  %v2662_v28 = vpop.f32.mrb[49].mxu0  ;;  %v2780_v40 = vadd.f32 %v3622_v60, %v1578_v41 }
 0x1d4   : > { %v1581_v30 = vpop.f32.mrb[54].mxu1  ;;  %v1774_v32 = vpop.f32.mrb[50].mxu0 }
 0x1d5   : > { %v1583_v33 = vpop.f32.mrb[55].mxu1  ;;  %v2779_v35 = vadd.f32 %v2778_v43, %v1774_v32  ;;  %v2663_v37 = vpop.f32.mrb[51].mxu0  ;;  %v1866_v44 = vmax.f32 %v2777_v27, 0.0  ;;  %v2782_v45 = vadd.f32 %v3622_v60, %v1581_v30 }
 0x1d7   : > { %v1867_v18 = vmax.f32 %v2779_v35, 0.0 }
 0x1d9   : > { %v2517_v46 = vpack.c.bf16 %v1867_v18, %v1866_v44 }
 0x1da   : > { %v1586_v42 = vpop.f32.mrb[56].mxu1  ;;  %v1779_v22 = vpop.f32.mrb[52].mxu0 }
 0x1db   : > { %v1588_v39 = vpop.f32.mrb[57].mxu1  ;;  %2570 = vst [vmem:[%s3632_s28 + $0x60] sm:$0xff] %v2517_v46   ;;  %v2781_v47 = vadd.f32 %v2780_v40, %v1779_v22  ;;  %v2666_v49 = vpop.f32.mrb[53].mxu0  ;;  %v2784_v59 = vadd.f32 %v3622_v60, %v1586_v42 }
 0x1dc   : > { %v1589_v51 = vpop.f32.mrb[58].mxu1  ;;  %v1782_v53 = vpop.f32.mrb[54].mxu0 }
 0x1dd   : > { %v1591_v48 = vpop.f32.mrb[59].mxu1  ;;  %v2783_v55 = vadd.f32 %v2782_v45, %v1782_v53  ;;  %v2667_v50 = vpop.f32.mrb[55].mxu0  ;;  %v1868_v25 = vmax.f32 %v2781_v47, 0.0  ;;  %v2786_v0 = vadd.f32 %v3622_v60, %v1589_v51 }
 0x1df   : > { %v1869_v57 = vmax.f32 %v2783_v55, 0.0 }
 0x1e1   : > { %v2522_v29 = vpack.c.bf16 %v1869_v57, %v1868_v25 }
 0x1e2   : > { %v1594_v61 = vpop.f32.mrb[60].mxu1  ;;  %v1787_v62 = vpop.f32.mrb[56].mxu0 }
 0x1e3   : > { %v1596_v63 = vpop.f32.mrb[61].mxu1  ;;  %2571 = vst [vmem:[%s3632_s28 + $0x68] sm:$0xff] %v2522_v29   ;;  %v2785_v52 = vadd.f32 %v2784_v59, %v1787_v62  ;;  %v2670_v2 = vpop.f32.mrb[57].mxu0  ;;  %v2788_v8 = vadd.f32 %v3622_v60, %v1594_v61 }
 0x1e4   : > { %v1597_v3 = vpop.f32.mrb[62].mxu1  ;;  %v1790_v54 = vpop.f32.mrb[58].mxu0 }
 0x1e5   : > { %v1599_v4 = vpop.f32.mrb[63].mxu1  ;;  %v2787_v31 = vadd.f32 %v2786_v0, %v1790_v54  ;;  %v2671_v6 = vpop.f32.mrb[59].mxu0  ;;  %v1870_v7 = vmax.f32 %v2785_v52, 0.0  ;;  %v2790_v11 = vadd.f32 %v3622_v60, %v1597_v3 }
 0x1e7   : > { %v1871_v34 = vmax.f32 %v2787_v31, 0.0 }
 0x1e9   : > { %v2527_v5 = vpack.c.bf16 %v1871_v34, %v1870_v7 }
 0x1ea   : > { %v1602_v10 = vpop.f32.mrb[64].mxu1  ;;  %v1795_v56 = vpop.f32.mrb[60].mxu0 }
 0x1eb   : > { %v1604_v9 = vpop.f32.mrb[65].mxu1  ;;  %2572 = vst [vmem:[%s3632_s28 + $0x70] sm:$0xff] %v2527_v5   ;;  %v2789_v13 = vadd.f32 %v2788_v8, %v1795_v56  ;;  %v2674_v14 = vpop.f32.mrb[61].mxu0  ;;  %v2792_v20 = vadd.f32 %v3622_v60, %v1602_v10 }
 0x1ec   : > { %v1605_v36 = vpop.f32.mrb[66].mxu1  ;;  %v1798_v58 = vpop.f32.mrb[62].mxu0 }
 0x1ed   : > { %v1607_v15 = vpop.f32.mrb[67].mxu1  ;;  %v2791_v16 = vadd.f32 %v2790_v11, %v1798_v58  ;;  %v2675_v38 = vpop.f32.mrb[63].mxu0  ;;  %v1872_v17 = vmax.f32 %v2789_v13, 0.0  ;;  %v2794_v41 = vadd.f32 %v3622_v60, %v1605_v36 }
 0x1ef   : > { %v1873_v19 = vmax.f32 %v2791_v16, 0.0 }
 0x1f1   : > { %v2532_v21 = vpack.c.bf16 %v1873_v19, %v1872_v17 }
 0x1f2   : > { %v1610_v23 = vpop.f32.mrb[68].mxu1  ;;  %v1803_v12 = vpop.f32.mrb[64].mxu0 }
 0x1f3   : > { %v1612_v24 = vpop.f32.mrb[69].mxu1  ;;  %2573 = vst [vmem:[%s3632_s28 + $0x78] sm:$0xff] %v2532_v21   ;;  %v2793_v26 = vadd.f32 %v2792_v20, %v1803_v12  ;;  %v2678_v1 = vpop.f32.mrb[65].mxu0  ;;  %v2796_v37 = vadd.f32 %v3622_v60, %v1610_v23 }
 0x1f4   : > { %v1613_v43 = vpop.f32.mrb[70].mxu1  ;;  %v1806_v27 = vpop.f32.mrb[66].mxu0 }
 0x1f5   : > { %v1615_v28 = vpop.f32.mrb[71].mxu1  ;;  %v2795_v30 = vadd.f32 %v2794_v41, %v1806_v27  ;;  %v2679_v32 = vpop.f32.mrb[67].mxu0  ;;  %v1874_v33 = vmax.f32 %v2793_v26, 0.0  ;;  %v2798_v42 = vadd.f32 %v3622_v60, %v1613_v43 }
 0x1f7   : > { %v1875_v35 = vmax.f32 %v2795_v30, 0.0 }
 0x1f9   : > { %v2537_v44 = vpack.c.bf16 %v1875_v35, %v1874_v33 }
 0x1fa   : > { %v1618_v18 = vpop.f32.mrb[72].mxu1  ;;  %v1811_v40 = vpop.f32.mrb[68].mxu0 }
 0x1fb   : > { %v1620_v46 = vpop.f32.mrb[73].mxu1  ;;  %2574 = vst [vmem:[%s3632_s28 + $0x80] sm:$0xff] %v2537_v44   ;;  %v2797_v22 = vadd.f32 %v2796_v37, %v1811_v40  ;;  %v2682_v39 = vpop.f32.mrb[69].mxu0  ;;  %v2800_v50 = vadd.f32 %v3622_v60, %v1618_v18 }
 0x1fc   : > { %v1621_v45 = vpop.f32.mrb[74].mxu1  ;;  %v1814_v47 = vpop.f32.mrb[70].mxu0 }
 0x1fd   : > { %v1623_v49 = vpop.f32.mrb[75].mxu1  ;;  %v2799_v51 = vadd.f32 %v2798_v42, %v1814_v47  ;;  %v2683_v53 = vpop.f32.mrb[71].mxu0  ;;  %v1876_v48 = vmax.f32 %v2797_v22, 0.0  ;;  %v2802_v61 = vadd.f32 %v3622_v60, %v1621_v45 }
 0x1ff   : > { %v1877_v55 = vmax.f32 %v2799_v51, 0.0 }
 0x201   : > { %v2542_v25 = vpack.c.bf16 %v1877_v55, %v1876_v48 }
 0x202   : > { %v1626_v57 = vpop.f32.mrb[76].mxu1  ;;  %v1819_v59 = vpop.f32.mrb[72].mxu0 }
 0x203   : > { %v1628_v29 = vpop.f32.mrb[77].mxu1  ;;  %2575 = vst [vmem:[%s3632_s28 + $0x88] sm:$0xff] %v2542_v25   ;;  %v2801_v62 = vadd.f32 %v2800_v50, %v1819_v59  ;;  %v2686_v63 = vpop.f32.mrb[73].mxu0  ;;  %v2804_v6 = vadd.f32 %v3622_v60, %v1626_v57 }
 0x204   : > { %v1629_v0 = vpop.f32.mrb[78].mxu1  ;;  %v1822_v52 = vpop.f32.mrb[74].mxu0 }
 0x205   : > { %v1631_v2 = vpop.f32.mrb[79].mxu1  ;;  %v2803_v3 = vadd.f32 %v2802_v61, %v1822_v52  ;;  %v2687_v54 = vpop.f32.mrb[75].mxu0  ;;  %v1878_v4 = vmax.f32 %v2801_v62, 0.0  ;;  %v2806_v10 = vadd.f32 %v3622_v60, %v1629_v0 }
 0x207   : > { %v1879_v31 = vmax.f32 %v2803_v3, 0.0 }
 0x209   : > { %v2547_v7 = vpack.c.bf16 %v1879_v31, %v1878_v4 }
 0x20a   : > { %v1634_v34 = vpop.f32.mrb[80].mxu1  ;;  %v1827_v8 = vpop.f32.mrb[76].mxu0 }
 0x20b   : > { %v1636_v5 = vpop.f32.mrb[81].mxu1  ;;  %2576 = vst [vmem:[%s3632_s28 + $0x90] sm:$0xff] %v2547_v7   ;;  %v2805_v56 = vadd.f32 %v2804_v6, %v1827_v8  ;;  %v2690_v9 = vpop.f32.mrb[77].mxu0  ;;  %v2808_v38 = vadd.f32 %v3622_v60, %v1634_v34 }
 0x20c   : > { %v1637_v11 = vpop.f32.mrb[82].mxu1  ;;  %v1830_v13 = vpop.f32.mrb[78].mxu0 }
 0x20d   : > { %v1639_v14 = vpop.f32.mrb[83].mxu1  ;;  %v2807_v36 = vadd.f32 %v2806_v10, %v1830_v13  ;;  %v2691_v58 = vpop.f32.mrb[79].mxu0  ;;  %v1880_v15 = vmax.f32 %v2805_v56, 0.0  ;;  %v2810_v20 = vadd.f32 %v3622_v60, %v1637_v11 }
 0x20f   : > { %v1881_v16 = vmax.f32 %v2807_v36, 0.0 }
 0x211   : > { %v2552_v17 = vpack.c.bf16 %v1881_v16, %v1880_v15 }
 0x212   : > { %v1835_v19 = vpop.f32.mrb[80].mxu0 }
 0x213   : > { %2577 = vst [vmem:[%s3632_s28 + $0x98] sm:$0xff] %v2552_v17   ;;  %v2809_v21 = vadd.f32 %v2808_v38, %v1835_v19  ;;  %v2694_v23 = vpop.f32.mrb[81].mxu0 }
 0x214   : > { %v1838_v12 = vpop.f32.mrb[82].mxu0 }
 0x215   : > { %v2811_v24 = vadd.f32 %v2810_v20, %v1838_v12  ;;  %v2695_v41 = vpop.f32.mrb[83].mxu0  ;;  %v1882_v26 = vmax.f32 %v2809_v21, 0.0 }
 0x217   : > { %v1883_v1 = vmax.f32 %v2811_v24, 0.0 }
 0x219   : > { %v2557_v43 = vpack.c.bf16 %v1883_v1, %v1882_v26 }
 0x21b   : > { %2578 = vst [vmem:[%s3632_s28 + $0xa0] sm:$0xff] %v2557_v43  }
 0x21c PF: > { %s13_s14 = sadd.s32 1, %s3129_s14   ;;  %s3728_s12 = smov %s3125_s13 }
 0x21d   : > { %p10_p5 = scmp.ge.s32.totalorder %s13_s14, 4   ;;  %s3729_s13 = smov %s3731_s15 }
 0x21f   :  { %12 = sbr.rel (!%p10_p5) target bundleno = 2 (0x2), region = 68 }

// kernel: net_forward.8
= control target key start
LH: loop header
LB: loop body
LE: loop exit
PB: predicated region body
PF: predicated region fallthrough
CT: control target
= control target key end

     0   :  { %s4626_s12 = smov 0   ;;  %s4628_s13 = smov 0   ;;  %s5533_s0 = inlined_call_operand.vmem [shape: bf16[512,1152], index: 0, kind: input, shape index: {}]   ;;  %s5534_s1 = inlined_call_operand.vmem [shape: bf16[1152,256], index: 1, kind: input, shape index: {}]   ;;  %s5535_s2 = inlined_call_operand.vmem [shape: f32[1,256], index: 2, kind: input, shape index: {}]   ;;  %s5536_s3 = inlined_call_operand.vmem [shape: bf16[512,256], index: 3, kind: output, shape index: {}]  }
   0x1   :  { %s4630_s14 = smov 0  }
   0x2 LB: > { %s25_s15 = sadd.s32 1, %s4599_s13  ;;  %p3386_p0 = scmp.ge.s32.totalorder %s4603_s14, 1  ;;  %s4603_s14 = sphi %s4630_s14, %s13_s14   ;;  %s4599_s13 = sphi %s4628_s13, %s5538_s13   ;;  %s4595_s12 = sphi %s4626_s12, %s5537_s12  }
   0x3   : > { %p27_p1 = scmp.ge.s32.totalorder %s25_s15, 2  ;;  %p174_p2 = scmp.lt.s32.totalorder %s4603_s14, 3 }
   0x5   : > { %s5540_s15 = smov (%p27_p1, %s25_s15), 0  ;;  %p175_p3 = pnand %p3386_p0, %p174_p2 }
   0x6   : > { %v4125_v0 = vld [vmem:[%s5534_s1 + $0x4] ss:$8 sps:$4 sm:$0xff] (!%p175_p3)   ;;  %v4129_v2 = vld [vmem:[%s5534_s1] ss:$8 sps:$4 sm:$0xff] (!%p175_p3)   ;;  %v4131_v4 = vld [vmem:[%s5534_s1 + $0x14] ss:$8 sps:$4 sm:$0xff] (!%p175_p3)  }
   0x7   : > { %178 = sbr.rel (%p175_p3) target bundleno = 607 (0x25f), region = 32  ;;  %v4127_v1 = vld [vmem:[%s5534_s1 + $0x204] ss:$8 sps:$4 sm:$0xff] (!%p175_p3)   ;;  %2016 = vmatprep.subr.bf16.mxu1 (!%p175_p3), %v4125_v0  ;;  %v4130_v3 = vld [vmem:[%s5534_s1 + $0x200] ss:$8 sps:$4 sm:$0xff] (!%p175_p3)   ;;  %s3387_s30 = sshll.u32 (!%p175_p3), %s4595_s12, 5 }
   0x8   : > { %2402 = vmatprep.subr.bf16.mxu0 (!%p175_p3), %v4127_v1  ;;  %2017 = vmatpush1.bf16.msra.mxu1 (!%p175_p3), %v4129_v2  ;;  %v4133_v5 = vld [vmem:[%s5534_s1 + $0x214] ss:$8 sps:$4 sm:$0xff] (!%p175_p3)   ;;  %v4135_v6 = vld [vmem:[%s5534_s1 + $0x10] ss:$8 sps:$4 sm:$0xff] (!%p175_p3)   ;;  %v4137_v8 = vld [vmem:[%s5534_s1 + $0x24] ss:$8 sps:$4 sm:$0xff] (!%p175_p3)  }
   0x9   : > { %2403 = vmatpush1.bf16.msra.mxu0 (!%p175_p3), %v4130_v3  ;;  %2018 = vmatprep.subr.bf16.mxu1 (!%p175_p3), %v4131_v4  ;;  %v4136_v7 = vld [vmem:[%s5534_s1 + $0x210] ss:$8 sps:$4 sm:$0xff] (!%p175_p3)   ;;  %v4139_v9 = vld [vmem:[%s5534_s1 + $0x224] ss:$8 sps:$4 sm:$0xff] (!%p175_p3)   ;;  %v4141_v10 = vld [vmem:[%s5534_s1 + $0x20] ss:$8 sps:$4 sm:$0xff] (!%p175_p3)  }
   0xa   : > { %2404 = vmatprep.subr.bf16.mxu0 (!%p175_p3), %v4133_v5  ;;  %v4142_v11 = vld [vmem:[%s5534_s1 + $0x220] ss:$8 sps:$4 sm:$0xff] (!%p175_p3)   ;;  %v4143_v12 = vld [vmem:[%s5534_s1 + $0x34] ss:$8 sps:$4 sm:$0xff] (!%p175_p3)   ;;  %v4147_v14 = vld [vmem:[%s5534_s1 + $0x30] ss:$8 sps:$4 sm:$0xff] (!%p175_p3)  }
   0xb   : > { %v4145_v13 = vld [vmem:[%s5534_s1 + $0x234] ss:$8 sps:$4 sm:$0xff] (!%p175_p3)   ;;  %v4148_v15 = vld [vmem:[%s5534_s1 + $0x230] ss:$8 sps:$4 sm:$0xff] (!%p175_p3)   ;;  %v4149_v16 = vld [vmem:[%s5534_s1 + $0x44] ss:$8 sps:$4 sm:$0xff] (!%p175_p3)  }
   0xc   : > { %2019 = vmatpush1.bf16.msra.mxu1 (!%p175_p3), %v4135_v6  ;;  %v4151_v17 = vld [vmem:[%s5534_s1 + $0x244] ss:$8 sps:$4 sm:$0xff] (!%p175_p3)   ;;  %v4153_v18 = vld [vmem:[%s5534_s1 + $0x40] ss:$8 sps:$4 sm:$0xff] (!%p175_p3)   ;;  %v4155_v20 = vld [vmem:[%s5534_s1 + $0x54] ss:$8 sps:$4 sm:$0xff] (!%p175_p3)  }
   0xd   : > { %2405 = vmatpush1.bf16.msra.mxu0 (!%p175_p3), %v4136_v7  ;;  %2020 = vmatprep.subr.bf16.mxu1 (!%p175_p3), %v4137_v8  ;;  %v4154_v19 = vld [vmem:[%s5534_s1 + $0x240] ss:$8 sps:$4 sm:$0xff] (!%p175_p3)   ;;  %v4157_v21 = vld [vmem:[%s5534_s1 + $0x254] ss:$8 sps:$4 sm:$0xff] (!%p175_p3)   ;;  %v4159_v22 = vld [vmem:[%s5534_s1 + $0x50] ss:$8 sps:$4 sm:$0xff] (!%p175_p3)  }
   0xe   : > { %2406 = vmatprep.subr.bf16.mxu0 %v4139_v9  ;;  %v4160_v23 = vld [vmem:[%s5534_s1 + $0x250] ss:$8 sps:$4 sm:$0xff]   ;;  %v4161_v24 = vld [vmem:[%s5534_s1 + $0x64] ss:$8 sps:$4 sm:$0xff]   ;;  %v4165_v26 = vld [vmem:[%s5534_s1 + $0x60] ss:$8 sps:$4 sm:$0xff]  }
   0xf   : > { %v4163_v25 = vld [vmem:[%s5534_s1 + $0x264] ss:$8 sps:$4 sm:$0xff]   ;;  %v4166_v27 = vld [vmem:[%s5534_s1 + $0x260] ss:$8 sps:$4 sm:$0xff]   ;;  %v4167_v28 = vld [vmem:[%s5534_s1 + $0x74] ss:$8 sps:$4 sm:$0xff]  }
  0x10   : > { %2021 = vmatpush1.bf16.msra.mxu1 %v4141_v10  ;;  %v4169_v29 = vld [vmem:[%s5534_s1 + $0x274] ss:$8 sps:$4 sm:$0xff]   ;;  %v4171_v30 = vld [vmem:[%s5534_s1 + $0x70] ss:$8 sps:$4 sm:$0xff]   ;;  %v4173_v32 = vld [vmem:[%s5534_s1 + $0x84] ss:$8 sps:$4 sm:$0xff]  }
  0x11   : > { %2407 = vmatpush1.bf16.msra.mxu0 %v4142_v11  ;;  %2022 = vmatprep.subr.bf16.mxu1 %v4143_v12  ;;  %v4172_v31 = vld [vmem:[%s5534_s1 + $0x270] ss:$8 sps:$4 sm:$0xff]   ;;  %p214_p4 = scmp.lt.s32.totalorder %s3387_s30, 63  ;;  %v4175_v33 = vld [vmem:[%s5534_s1 + $0x284] ss:$8 sps:$4 sm:$0xff]  }
  0x12   : > { %2408 = vmatprep.subr.bf16.mxu0 %v4145_v13  ;;  %v4177_v34 = vld [vmem:[%s5534_s1 + $0x80] ss:$8 sps:$4 sm:$0xff]   ;;  %v4179_v36 = vld [vmem:[%s5534_s1 + $0x94] ss:$8 sps:$4 sm:$0xff]   ;;  %v4183_v38 = vld [vmem:[%s5534_s1 + $0x90] ss:$8 sps:$4 sm:$0xff]  }
  0x13   : > { %v4178_v35 = vld [vmem:[%s5534_s1 + $0x280] ss:$8 sps:$4 sm:$0xff]   ;;  %s5542_s30 = smov (!%p214_p4, %s3387_s30), 63  ;;  %v4181_v37 = vld [vmem:[%s5534_s1 + $0x294] ss:$8 sps:$4 sm:$0xff]  }
  0x14   : > { %2023 = vmatpush1.bf16.msra.mxu1 %v4147_v14  ;;  %v4184_v39 = vld [vmem:[%s5534_s1 + $0x290] ss:$8 sps:$4 sm:$0xff]   ;;  %v4185_v40 = vld [vmem:[%s5534_s1 + $0xa4] ss:$8 sps:$4 sm:$0xff]   ;;  %s4099_s29 = smul.u32 36, %s5542_s30  ;;  %s3714_s16 = sshll.u32 %s5542_s30, 3 }
  0x15   : > { %2409 = vmatpush1.bf16.msra.mxu0 %v4148_v15  ;;  %2024 = vmatprep.subr.bf16.mxu1 %v4149_v16  ;;  %v4187_v41 = vld [vmem:[%s5534_s1 + $0x2a4] ss:$8 sps:$4 sm:$0xff]   ;;  %v4189_v42 = vld [vmem:[%s5534_s1 + $0xa0] ss:$8 sps:$4 sm:$0xff]   ;;  %v4191_v44 = vld [vmem:[%s5534_s1 + $0xb4] ss:$8 sps:$4 sm:$0xff]   ;;  %s5406_s20 = scalar_lea.vmem %s5536_s3, %s3714_s16 }
  0x16   : > { %2410 = vmatprep.subr.bf16.mxu0 %v4151_v17  ;;  %v4190_v43 = vld [vmem:[%s5534_s1 + $0x2a0] ss:$8 sps:$4 sm:$0xff]   ;;  %s4788_s17 = scalar_lea.vmem %s5533_s0, %s4099_s29  ;;  %v4193_v45 = vld [vmem:[%s5534_s1 + $0x2b4] ss:$8 sps:$4 sm:$0xff]   ;;  %v4195_v46 = vld [vmem:[%s5534_s1 + $0xb0] ss:$8 sps:$4 sm:$0xff]  }
  0x17   : > { %v4196_v47 = vld [vmem:[%s5534_s1 + $0x2b0] ss:$8 sps:$4 sm:$0xff]   ;;  %v4197_v48 = vld [vmem:[%s5534_s1 + $0xc4] ss:$8 sps:$4 sm:$0xff]   ;;  %v4201_v52 = vld [vmem:[%s5534_s1 + $0xc0] ss:$8 sps:$4 sm:$0xff]  }
  0x18   : > { %2025 = vmatpush1.bf16.msra.mxu1 %v4153_v18  ;;  %v4223_v49 = vld [vmem:[%s4788_s17 + $0x4] ss:$36 sps:$4 sm:$0xff]   ;;  %v4226_v51 = vld [vmem:[%s4788_s17 + $0x14] ss:$36 sps:$4 sm:$0xff]   ;;  %v4236_v9 = vld [vmem:[%s4788_s17 + $0x4c] ss:$36 sps:$4 sm:$0xff]  }
  0x19   : > { %2411 = vmatpush1.bf16.msra.mxu0 %v4154_v19  ;;  %2026 = vmatprep.subr.bf16.mxu1 %v4155_v20  ;;  %v4199_v50 = vld [vmem:[%s5534_s1 + $0x2c4] ss:$8 sps:$4 sm:$0xff]   ;;  %v4202_v53 = vld [vmem:[%s5534_s1 + $0x2c0] ss:$8 sps:$4 sm:$0xff]   ;;  %v4203_v54 = vld [vmem:[%s5534_s1 + $0xd4] ss:$8 sps:$4 sm:$0xff]  }
  0x1a   : > { %2412 = vmatprep.subr.bf16.mxu0 %v4157_v21  ;;  %2048 = vmatprep.mubr.bf16.mxu1 %v4223_v49  ;;  %v4205_v55 = vld [vmem:[%s5534_s1 + $0x2d4] ss:$8 sps:$4 sm:$0xff]   ;;  %v4207_v56 = vld [vmem:[%s5534_s1 + $0xd0] ss:$8 sps:$4 sm:$0xff]   ;;  %v4209_v58 = vld [vmem:[%s5534_s1 + $0xe4] ss:$8 sps:$4 sm:$0xff]  }
  0x1b   : > { %2434 = vmatprep.mubr.bf16.mxu0 %v4226_v51  ;;  %v4208_v57 = vld [vmem:[%s5534_s1 + $0x2d0] ss:$8 sps:$4 sm:$0xff]   ;;  %v4211_v59 = vld [vmem:[%s5534_s1 + $0x2e4] ss:$8 sps:$4 sm:$0xff]   ;;  %v4213_v60 = vld [vmem:[%s5534_s1 + $0xe0] ss:$8 sps:$4 sm:$0xff]  }
  0x1c   : > { %2027 = vmatpush1.bf16.msra.mxu1 %v4159_v22  ;;  %v4214_v61 = vld [vmem:[%s5534_s1 + $0x2e0] ss:$8 sps:$4 sm:$0xff]   ;;  %v4215_v62 = vld [vmem:[%s5534_s1 + $0xf4] ss:$8 sps:$4 sm:$0xff]   ;;  %v4219_v0 = vld [vmem:[%s5534_s1 + $0xf0] ss:$8 sps:$4 sm:$0xff]  }
  0x1d   : > { %2413 = vmatpush1.bf16.msra.mxu0 %v4160_v23  ;;  %2028 = vmatprep.subr.bf16.mxu1 %v4161_v24  ;;  %v4217_v63 = vld [vmem:[%s5534_s1 + $0x2f4] ss:$8 sps:$4 sm:$0xff]   ;;  %v4220_v1 = vld [vmem:[%s5534_s1 + $0x2f0] ss:$8 sps:$4 sm:$0xff]   ;;  %v4229_v2 = vld [vmem:[%s5534_s1 + $0x104] ss:$8 sps:$4 sm:$0xff]  }
  0x1e   : > { %2414 = vmatprep.subr.bf16.mxu0 %v4163_v25  ;;  %v4232_v3 = vld [vmem:[%s5534_s1 + $0x304] ss:$8 sps:$4 sm:$0xff]   ;;  %v4224_v5 = vld [vmem:[%s4788_s17 + $0x10] ss:$36 sps:$4 sm:$0xff]   ;;  %v4227_v6 = vld [vmem:[%s5534_s1 + $0x100] ss:$8 sps:$4 sm:$0xff]  }
  0x1f   : > { %v4221_v4 = vld [vmem:[%s4788_s17] ss:$36 sps:$4 sm:$0xff]   ;;  %v4235_v8 = vld [vmem:[%s5534_s1 + $0x314] ss:$8 sps:$4 sm:$0xff]   ;;  %v4233_v12 = vld [vmem:[%s5534_s1 + $0x310] ss:$8 sps:$4 sm:$0xff]  }
  0x20   : > { %2029 = vmatpush1.bf16.msra.mxu1 %v4165_v26  ;;  %v4230_v7 = vld [vmem:[%s5534_s1 + $0x300] ss:$8 sps:$4 sm:$0xff]   ;;  %v4243_v11 = vld [vmem:[%s5534_s1 + $0x114] ss:$8 sps:$4 sm:$0xff]   ;;  %v4241_v13 = vld [vmem:[%s5534_s1 + $0x110] ss:$8 sps:$4 sm:$0xff]  }
  0x21   : > { %2415 = vmatpush1.bf16.msra.mxu0 %v4166_v27  ;;  %2030 = vmatprep.subr.bf16.mxu1 %v4167_v28  ;;  %v4238_v10 = vld [vmem:[%s4788_s17 + $0x5c] ss:$36 sps:$4 sm:$0xff]   ;;  %v4247_v14 = vld [vmem:[%s5534_s1 + $0x324] ss:$8 sps:$4 sm:$0xff]   ;;  %v4251_v20 = vld [vmem:[%s4788_s17 + $0x94] ss:$36 sps:$4 sm:$0xff]  }
  0x22   : > { %2416 = vmatprep.subr.bf16.mxu0 %v4169_v29  ;;  %v4258_v15 = vld [vmem:[%s5534_s1 + $0x124] ss:$8 sps:$4 sm:$0xff]   ;;  %v4244_v17 = vld [vmem:[%s4788_s17 + $0x58] ss:$36 sps:$4 sm:$0xff]   ;;  %v4245_v18 = vld [vmem:[%s5534_s1 + $0x320] ss:$8 sps:$4 sm:$0xff]  }
  0x23   : > { %v4240_v16 = vld [vmem:[%s4788_s17 + $0x48] ss:$36 sps:$4 sm:$0xff]   ;;  %v4250_v19 = vld [vmem:[%s5534_s1 + $0x334] ss:$8 sps:$4 sm:$0xff]   ;;  %v4248_v24 = vld [vmem:[%s5534_s1 + $0x330] ss:$8 sps:$4 sm:$0xff]  }
  0x24   : > { %2031 = vmatpush1.bf16.msra.mxu1 %v4171_v30  ;;  %v4253_v21 = vld [vmem:[%s4788_s17 + $0xa4] ss:$36 sps:$4 sm:$0xff]   ;;  %v4273_v23 = vld [vmem:[%s5534_s1 + $0x134] ss:$8 sps:$4 sm:$0xff]   ;;  %v4271_v27 = vld [vmem:[%s5534_s1 + $0x130] ss:$8 sps:$4 sm:$0xff]  }
  0x25   : > { %2417 = vmatpush1.bf16.msra.mxu0 %v4172_v31  ;;  %2032 = vmatprep.subr.bf16.mxu1 %v4173_v32  ;;  %v4256_v22 = vld [vmem:[%s5534_s1 + $0x120] ss:$8 sps:$4 sm:$0xff]   ;;  %v4255_v25 = vld [vmem:[%s4788_s17 + $0x90] ss:$36 sps:$4 sm:$0xff]   ;;  %v4262_v26 = vld [vmem:[%s5534_s1 + $0x344] ss:$8 sps:$4 sm:$0xff]  }
  0x26   : > { %2418 = vmatprep.subr.bf16.mxu0 %v4175_v33  ;;  %v4259_v28 = vld [vmem:[%s4788_s17 + $0xa0] ss:$36 sps:$4 sm:$0xff]   ;;  %v4265_v30 = vld [vmem:[%s5534_s1 + $0x354] ss:$8 sps:$4 sm:$0xff]   ;;  %v4268_v32 = vld [vmem:[%s4788_s17 + $0xec] ss:$36 sps:$4 sm:$0xff]  }
  0x27   : > { %v4260_v29 = vld [vmem:[%s5534_s1 + $0x340] ss:$8 sps:$4 sm:$0xff]   ;;  %v4288_v33 = vld [vmem:[%s5534_s1 + $0x144] ss:$8 sps:$4 sm:$0xff]   ;;  %v4289_v49 = vld [vmem:[%s4788_s17 + $0x130] ss:$36 sps:$4 sm:$0xff]  }
  0x28   : > { %2033 = vmatpush1.bf16.msra.mxu1 %v4177_v34  ;;  %v4266_v31 = vld [vmem:[%s4788_s17 + $0xdc] ss:$36 sps:$4 sm:$0xff]  }
  0x29   : > { %2419 = vmatpush1.bf16.msra.mxu0 %v4178_v35  ;;  %2034 = vmatprep.subr.bf16.mxu1 %v4179_v36  ;;  %v4286_v34 = vld [vmem:[%s5534_s1 + $0x140] ss:$8 sps:$4 sm:$0xff]   ;;  %v4263_v35 = vld [vmem:[%s5534_s1 + $0x350] ss:$8 sps:$4 sm:$0xff]   ;;  %v4303_v36 = vld [vmem:[%s5534_s1 + $0x154] ss:$8 sps:$4 sm:$0xff]  }
  0x2a   : > { %2420 = vmatprep.subr.bf16.mxu0 %v4181_v37  ;;  %v4277_v37 = vld [vmem:[%s5534_s1 + $0x364] ss:$8 sps:$4 sm:$0xff]   ;;  %v4290_v51 = vld [vmem:[%s5534_s1 + $0x380] ss:$8 sps:$4 sm:$0xff]  }
  0x2c   : > { %2035 = vmatpush1.bf16.msra.mxu1 %v4183_v38  ;;  %v4270_v38 = vld [vmem:[%s4788_s17 + $0xd8] ss:$36 sps:$4 sm:$0xff]  }
  0x2d   : > { %2421 = vmatpush1.bf16.msra.mxu0 %v4184_v39  ;;  %2036 = vmatprep.subr.bf16.mxu1 %v4185_v40  ;;  %v4274_v39 = vld [vmem:[%s4788_s17 + $0xe8] ss:$36 sps:$4 sm:$0xff]  }
  0x2e   : > { %2422 = vmatprep.subr.bf16.mxu0 %v4187_v41  ;;  %v4275_v40 = vld [vmem:[%s5534_s1 + $0x360] ss:$8 sps:$4 sm:$0xff]   ;;  %v4280_v41 = vld [vmem:[%s5534_s1 + $0x374] ss:$8 sps:$4 sm:$0xff]  }
  0x30   : > { %2037 = vmatpush1.bf16.msra.mxu1 %v4189_v42  ;;  %v4281_v42 = vld [vmem:[%s4788_s17 + $0x124] ss:$36 sps:$4 sm:$0xff]  }
  0x31   : > { %2423 = vmatpush1.bf16.msra.mxu0 %v4190_v43  ;;  %2038 = vmatprep.subr.bf16.mxu1 %v4191_v44  ;;  %v4283_v43 = vld [vmem:[%s4788_s17 + $0x134] ss:$36 sps:$4 sm:$0xff]  }
  0x32   : > { %2424 = vmatprep.subr.bf16.mxu0 %v4193_v45  ;;  %v4301_v44 = vld [vmem:[%s5534_s1 + $0x150] ss:$8 sps:$4 sm:$0xff]   ;;  %v4318_v45 = vld [vmem:[%s5534_s1 + $0x164] ss:$8 sps:$4 sm:$0xff]  }
  0x34   : > { %2039 = vmatpush1.bf16.msra.mxu1 %v4195_v46  ;;  %v4278_v46 = vld [vmem:[%s5534_s1 + $0x370] ss:$8 sps:$4 sm:$0xff]  }
  0x35   : > { %2425 = vmatpush1.bf16.msra.mxu0 %v4196_v47  ;;  %2040 = vmatprep.subr.bf16.mxu1 %v4197_v48  ;;  %v4285_v47 = vld [vmem:[%s4788_s17 + $0x120] ss:$36 sps:$4 sm:$0xff]  }
  0x36   : > { %2426 = vmatprep.subr.bf16.mxu0 %v4199_v50  ;;  %v4292_v48 = vld [vmem:[%s5534_s1 + $0x384] ss:$8 sps:$4 sm:$0xff]   ;;  %v4316_v50 = vld [vmem:[%s5534_s1 + $0x160] ss:$8 sps:$4 sm:$0xff]  }
  0x38   : > { %2041 = vmatpush1.bf16.msra.mxu1 %v4201_v52  ;;  %v4295_v52 = vld [vmem:[%s5534_s1 + $0x394] ss:$8 sps:$4 sm:$0xff]  }
  0x39   : > { %2427 = vmatpush1.bf16.msra.mxu0 %v4202_v53  ;;  %2042 = vmatprep.subr.bf16.mxu1 %v4203_v54  ;;  %v4296_v53 = vld [vmem:[%s4788_s17 + $0x16c] ss:$36 sps:$4 sm:$0xff]   ;;  %v4298_v54 = vld [vmem:[%s4788_s17 + $0x17c] ss:$36 sps:$4 sm:$0xff]  }
  0x3a   : > { %2428 = vmatprep.subr.bf16.mxu0 %v4205_v55  ;;  %v4333_v55 = vld [vmem:[%s5534_s1 + $0x174] ss:$8 sps:$4 sm:$0xff]  }
  0x3c   : > { %2043 = vmatpush1.bf16.msra.mxu1 %v4207_v56  ;;  %v4293_v56 = vld [vmem:[%s5534_s1 + $0x390] ss:$8 sps:$4 sm:$0xff]  }
  0x3d   : > { %2429 = vmatpush1.bf16.msra.mxu0 %v4208_v57  ;;  %2044 = vmatprep.subr.bf16.mxu1 %v4209_v58  ;;  %v4331_v57 = vld [vmem:[%s5534_s1 + $0x170] ss:$8 sps:$4 sm:$0xff]   ;;  %v4349_v58 = vld [vmem:[%s5534_s1 + $0x184] ss:$8 sps:$4 sm:$0xff]  }
  0x3e   : > { %2430 = vmatprep.subr.bf16.mxu0 %v4211_v59  ;;  %v4307_v59 = vld [vmem:[%s5534_s1 + $0x3a4] ss:$8 sps:$4 sm:$0xff]  }
  0x40   : > { %2045 = vmatpush1.bf16.msra.mxu1 %v4213_v60  ;;  %v4300_v60 = vld [vmem:[%s4788_s17 + $0x168] ss:$36 sps:$4 sm:$0xff]  }
  0x41   : > { %2431 = vmatpush1.bf16.msra.mxu0 %v4214_v61  ;;  %2046 = vmatprep.subr.bf16.mxu1 %v4215_v62  ;;  %v4304_v61 = vld [vmem:[%s4788_s17 + $0x178] ss:$36 sps:$4 sm:$0xff]   ;;  %v4305_v62 = vld [vmem:[%s5534_s1 + $0x3a0] ss:$8 sps:$4 sm:$0xff]  }
  0x42   : > { %2432 = vmatprep.subr.bf16.mxu0 %v4217_v63  ;;  %v4310_v63 = vld [vmem:[%s5534_s1 + $0x3b4] ss:$8 sps:$4 sm:$0xff]  }
  0x44   : > { %2047 = vmatpush1.bf16.msra.mxu1 %v4219_v0  ;;  %v4311_v0 = vld [vmem:[%s4788_s17 + $0x1b4] ss:$36 sps:$4 sm:$0xff]  }
  0x45   : > { %2433 = vmatpush1.bf16.msra.mxu0 %v4220_v1  ;;  %2209 = vmatprep.subr.bf16.mxu1 %v4229_v2  ;;  %v4313_v1 = vld [vmem:[%s4788_s17 + $0x1c4] ss:$36 sps:$4 sm:$0xff]  }
  0x46   : > { %2595 = vmatprep.subr.bf16.mxu0 %v4232_v3  ;;  %v4347_v2 = vld [vmem:[%s5534_s1 + $0x180] ss:$8 sps:$4 sm:$0xff]   ;;  %v4360_v3 = vld [vmem:[%s5534_s1 + $0x194] ss:$8 sps:$4 sm:$0xff]  }
  0x47   : > { %2049 = vmatmul.mubr.bf16.vlgmr.msra.gmra.mrb[0].mxu1 %v4221_v4  ;;  %v4308_v4 = vld [vmem:[%s5534_s1 + $0x3b0] ss:$8 sps:$4 sm:$0xff]  }
  0x48   : > { %2435 = vmatmul.mubr.bf16.vlgmr.msra.gmra.mrb[0].mxu0 %v4224_v5  ;;  %2210 = vmatpush1.bf16.msra.mxu1 %v4227_v6  ;;  %v4315_v5 = vld [vmem:[%s4788_s17 + $0x1b0] ss:$36 sps:$4 sm:$0xff]   ;;  %v4322_v6 = vld [vmem:[%s5534_s1 + $0x3c4] ss:$8 sps:$4 sm:$0xff]  }
  0x49   : > { %2596 = vmatpush1.bf16.msra.mxu0 %v4230_v7  ;;  %2058 = vmatprep.mubr.bf16.mxu1 %v4236_v9  ;;  %v4319_v7 = vld [vmem:[%s4788_s17 + $0x1c0] ss:$36 sps:$4 sm:$0xff]  }
  0x4a   : > { %2597 = vmatprep.subr.bf16.mxu0 %v4235_v8  ;;  %2444 = vmatprep.mubr.bf16.mxu0 %v4238_v10  ;;  %v4358_v8 = vld [vmem:[%s5534_s1 + $0x190] ss:$8 sps:$4 sm:$0xff]   ;;  %v4320_v9 = vld [vmem:[%s5534_s1 + $0x3c0] ss:$8 sps:$4 sm:$0xff]   ;;  %v4325_v10 = vld [vmem:[%s5534_s1 + $0x3d4] ss:$8 sps:$4 sm:$0xff]  }
  0x4b   : > { %2211 = vmatprep.subr.bf16.mxu1 %v4243_v11  ;;  %v4326_v11 = vld [vmem:[%s4788_s17 + $0x1fc] ss:$36 sps:$4 sm:$0xff]  }
  0x4c   : > { %2212 = vmatpush1.bf16.msra.mxu1 %v4241_v13  ;;  %v4369_v13 = vld [vmem:[%s5534_s1 + $0x1a4] ss:$8 sps:$4 sm:$0xff]  }
  0x4d   : > { %2598 = vmatpush1.bf16.msra.mxu0 %v4233_v12  ;;  %2213 = vmatprep.subr.bf16.mxu1 %v4258_v15  ;;  %v4328_v12 = vld [vmem:[%s4788_s17 + $0x20c] ss:$36 sps:$4 sm:$0xff]  }
  0x4e   : > { %2599 = vmatprep.subr.bf16.mxu0 %v4247_v14  ;;  %v4367_v14 = vld [vmem:[%s5534_s1 + $0x1a0] ss:$8 sps:$4 sm:$0xff]   ;;  %v4323_v15 = vld [vmem:[%s5534_s1 + $0x3d0] ss:$8 sps:$4 sm:$0xff]  }
  0x4f   : > { %2059 = vmatmul.mubr.bf16.gmra.mrb[4].mxu1 %v4240_v16  ;;  %v4381_v16 = vld [vmem:[%s5534_s1 + $0x1b4] ss:$8 sps:$4 sm:$0xff]  }
  0x50   : > { %2445 = vmatmul.mubr.bf16.gmra.mrb[4].mxu0 %v4244_v17  ;;  %2068 = vmatprep.mubr.bf16.mxu1 %v4251_v20  ;;  %v4337_v17 = vld [vmem:[%s5534_s1 + $0x3e4] ss:$8 sps:$4 sm:$0xff]   ;;  %v4335_v20 = vld [vmem:[%s5534_s1 + $0x3e0] ss:$8 sps:$4 sm:$0xff]  }
  0x51   : > { %2600 = vmatpush1.bf16.msra.mxu0 %v4245_v18  ;;  %2454 = vmatprep.mubr.bf16.mxu0 %v4253_v21  ;;  %v4330_v18 = vld [vmem:[%s4788_s17 + $0x1f8] ss:$36 sps:$4 sm:$0xff]  }
  0x52   : > { %2601 = vmatprep.subr.bf16.mxu0 %v4250_v19  ;;  %2214 = vmatpush1.bf16.msra.mxu1 %v4256_v22  ;;  %v4334_v19 = vld [vmem:[%s4788_s17 + $0x208] ss:$36 sps:$4 sm:$0xff]   ;;  %v4340_v21 = vld [vmem:[%s5534_s1 + $0x3f4] ss:$8 sps:$4 sm:$0xff]  }
  0x53   : > { %2215 = vmatprep.subr.bf16.mxu1 %v4273_v23  ;;  %v4341_v22 = vld [vmem:[%s4788_s17 + $0x244] ss:$36 sps:$4 sm:$0xff]   ;;  %v4345_v23 = vld [vmem:[%s4788_s17 + $0x1c] ss:$36 sps:$4 sm:$0xff]  }
  0x55   : > { %2602 = vmatpush1.bf16.msra.mxu0 %v4248_v24  ;;  %v4379_v24 = vld [vmem:[%s5534_s1 + $0x1b0] ss:$8 sps:$4 sm:$0xff]  }
  0x56   : > { %2603 = vmatprep.subr.bf16.mxu0 %v4262_v26  ;;  %2216 = vmatpush1.bf16.msra.mxu1 %v4271_v27  ;;  %v4338_v26 = vld [vmem:[%s5534_s1 + $0x3f0] ss:$8 sps:$4 sm:$0xff]  }
  0x57   : > { %2069 = vmatmul.mubr.bf16.gmra.mrb[8].mxu1 %v4255_v25  ;;  %2217 = vmatprep.subr.bf16.mxu1 %v4288_v33  ;;  %v4390_v25 = vld [vmem:[%s5534_s1 + $0x1c4] ss:$8 sps:$4 sm:$0xff]   ;;  %v4343_v27 = vld [vmem:[%s4788_s17 + $0x18] ss:$36 sps:$4 sm:$0xff]  }
  0x58   : > { %2455 = vmatmul.mubr.bf16.gmra.mrb[8].mxu0 %v4259_v28  ;;  %2078 = vmatprep.mubr.bf16.mxu1 %v4266_v31  ;;  %v4352_v28 = vld [vmem:[%s5534_s1 + $0x404] ss:$8 sps:$4 sm:$0xff]   ;;  %v4350_v31 = vld [vmem:[%s5534_s1 + $0x400] ss:$8 sps:$4 sm:$0xff]  }
  0x59   : > { %2604 = vmatpush1.bf16.msra.mxu0 %v4260_v29  ;;  %2464 = vmatprep.mubr.bf16.mxu0 %v4268_v32  ;;  %v4388_v29 = vld [vmem:[%s5534_s1 + $0x1c0] ss:$8 sps:$4 sm:$0xff]   ;;  %v4353_v32 = vld [vmem:[%s4788_s17 + $0x28c] ss:$36 sps:$4 sm:$0xff]  }
  0x5a   : > { %2605 = vmatprep.subr.bf16.mxu0 %v4265_v30  ;;  %2218 = vmatpush1.bf16.msra.mxu1 %v4286_v34  ;;  %v4346_v30 = vld [vmem:[%s4788_s17 + $0x240] ss:$36 sps:$4 sm:$0xff]   ;;  %v4373_v34 = vld [vmem:[%s5534_s1 + $0x414] ss:$8 sps:$4 sm:$0xff]  }
  0x5b   : > { %2219 = vmatprep.subr.bf16.mxu1 %v4303_v36  ;;  %v4355_v33 = vld [vmem:[%s4788_s17 + $0x64] ss:$36 sps:$4 sm:$0xff]   ;;  %v4400_v36 = vld [vmem:[%s5534_s1 + $0x1d0] ss:$8 sps:$4 sm:$0xff]  }
  0x5d   : > { %2606 = vmatpush1.bf16.msra.mxu0 %v4263_v35  ;;  %v4402_v35 = vld [vmem:[%s5534_s1 + $0x1d4] ss:$8 sps:$4 sm:$0xff]  }
  0x5e   : > { %2607 = vmatprep.subr.bf16.mxu0 %v4277_v37  ;;  %2220 = vmatpush1.bf16.msra.mxu1 %v4301_v44  ;;  %v4371_v37 = vld [vmem:[%s5534_s1 + $0x410] ss:$8 sps:$4 sm:$0xff]   ;;  %v4392_v44 = vld [vmem:[%s5534_s1 + $0x420] ss:$8 sps:$4 sm:$0xff]  }
  0x5f   : > { %2079 = vmatmul.mubr.bf16.gmra.mrb[12].mxu1 %v4270_v38  ;;  %2221 = vmatprep.subr.bf16.mxu1 %v4318_v45  ;;  %v4411_v38 = vld [vmem:[%s5534_s1 + $0x1e4] ss:$8 sps:$4 sm:$0xff]   ;;  %v4409_v45 = vld [vmem:[%s5534_s1 + $0x1e0] ss:$8 sps:$4 sm:$0xff]  }
  0x60   : > { %2465 = vmatmul.mubr.bf16.gmra.mrb[12].mxu0 %v4274_v39  ;;  %2088 = vmatprep.mubr.bf16.mxu1 %v4281_v42  ;;  %v4357_v39 = vld [vmem:[%s4788_s17 + $0x288] ss:$36 sps:$4 sm:$0xff]   ;;  %v4362_v42 = vld [vmem:[%s4788_s17 + $0x2d4] ss:$36 sps:$4 sm:$0xff]  }
  0x61   : > { %2608 = vmatpush1.bf16.msra.mxu0 %v4275_v40  ;;  %2474 = vmatprep.mubr.bf16.mxu0 %v4283_v43  ;;  %v4394_v40 = vld [vmem:[%s5534_s1 + $0x424] ss:$8 sps:$4 sm:$0xff]  }
  0x62   : > { %2609 = vmatprep.subr.bf16.mxu0 %v4280_v41  ;;  %2222 = vmatpush1.bf16.msra.mxu1 %v4316_v50  ;;  %v4361_v41 = vld [vmem:[%s4788_s17 + $0x60] ss:$36 sps:$4 sm:$0xff]   ;;  %v4364_v43 = vld [vmem:[%s4788_s17 + $0xac] ss:$36 sps:$4 sm:$0xff]  }
  0x63   : > { %2223 = vmatprep.subr.bf16.mxu1 %v4333_v55  ;;  %v4366_v50 = vld [vmem:[%s4788_s17 + $0x2d0] ss:$36 sps:$4 sm:$0xff]   ;;  %v4431_v55 = vld [vmem:[%s5534_s1 + $0x440] ss:$8 sps:$4 sm:$0xff]  }
  0x65   : > { %2610 = vmatpush1.bf16.msra.mxu0 %v4278_v46  ;;  %v4415_v46 = vld [vmem:[%s5534_s1 + $0x434] ss:$8 sps:$4 sm:$0xff]  }
  0x66   : > { %2611 = vmatprep.subr.bf16.mxu0 %v4292_v48  ;;  %2224 = vmatpush1.bf16.msra.mxu1 %v4331_v57  ;;  %v4413_v48 = vld [vmem:[%s5534_s1 + $0x430] ss:$8 sps:$4 sm:$0xff]   ;;  %v4448_v57 = vld [vmem:[%s5534_s1 + $0x454] ss:$8 sps:$4 sm:$0xff]  }
  0x67   : > { %2089 = vmatmul.mubr.bf16.gmra.mrb[16].mxu1 %v4285_v47  ;;  %2225 = vmatprep.subr.bf16.mxu1 %v4349_v58  ;;  %v4423_v47 = vld [vmem:[%s5534_s1 + $0x1f4] ss:$8 sps:$4 sm:$0xff]   ;;  %v4446_v58 = vld [vmem:[%s5534_s1 + $0x450] ss:$8 sps:$4 sm:$0xff]  }
  0x68   : > { %2475 = vmatmul.mubr.bf16.gmra.mrb[16].mxu0 %v4289_v49  ;;  %2098 = vmatprep.mubr.bf16.mxu1 %v4296_v53  ;;  %v4421_v49 = vld [vmem:[%s5534_s1 + $0x1f0] ss:$8 sps:$4 sm:$0xff]   ;;  %v4374_v53 = vld [vmem:[%s4788_s17 + $0x31c] ss:$36 sps:$4 sm:$0xff]  }
  0x69   : > { %2612 = vmatpush1.bf16.msra.mxu0 %v4290_v51  ;;  %2484 = vmatprep.mubr.bf16.mxu0 %v4298_v54  ;;  %v4433_v51 = vld [vmem:[%s5534_s1 + $0x444] ss:$8 sps:$4 sm:$0xff]   ;;  %v4376_v54 = vld [vmem:[%s4788_s17 + $0xf4] ss:$36 sps:$4 sm:$0xff]  }
  0x6a   : > { %2613 = vmatprep.subr.bf16.mxu0 %v4295_v52  ;;  %2226 = vmatpush1.bf16.msra.mxu1 %v4347_v2  ;;  %v4370_v52 = vld [vmem:[%s4788_s17 + $0xa8] ss:$36 sps:$4 sm:$0xff]   ;;  %v4478_v2 = vld [vmem:[%s5534_s1 + $0x474] ss:$8 sps:$4 sm:$0xff]  }
  0x6b   : > { %2227 = vmatprep.subr.bf16.mxu1 %v4360_v3  ;;  %v4387_v3 = vld [vmem:[%s4788_s17 + $0x360] ss:$36 sps:$4 sm:$0xff]  }
  0x6d   : > { %2614 = vmatpush1.bf16.msra.mxu0 %v4293_v56  ;;  %v4549_v56 = vld [vmem:[%s5534_s1 + $0x204] ss:$8 sps:$4 sm:$0xff]  }
  0x6e   : > { %2615 = vmatprep.subr.bf16.mxu0 %v4307_v59  ;;  %2228 = vmatpush1.bf16.msra.mxu1 %v4358_v8  ;;  %v4378_v59 = vld [vmem:[%s4788_s17 + $0x318] ss:$36 sps:$4 sm:$0xff]   ;;  %v4403_v8 = vld [vmem:[%s4788_s17 + $0x180] ss:$36 sps:$4 sm:$0xff]  }
  0x6f   : > { %2099 = vmatmul.mubr.bf16.gmra.mrb[20].mxu1 %v4300_v60  ;;  %2229 = vmatprep.subr.bf16.mxu1 %v4369_v13  ;;  %v4463_v60 = vld [vmem:[%s5534_s1 + $0x464] ss:$8 sps:$4 sm:$0xff]   ;;  %v4416_v13 = vld [vmem:[%s4788_s17 + $0x43c] ss:$36 sps:$4 sm:$0xff]  }
  0x70   : > { %2485 = vmatmul.mubr.bf16.gmra.mrb[20].mxu0 %v4304_v61  ;;  %2108 = vmatprep.mubr.bf16.mxu1 %v4311_v0  ;;  %v4382_v61 = vld [vmem:[%s4788_s17 + $0xf0] ss:$36 sps:$4 sm:$0xff]   ;;  %v4461_v0 = vld [vmem:[%s5534_s1 + $0x460] ss:$8 sps:$4 sm:$0xff]  }
  0x71   : > { %2616 = vmatpush1.bf16.msra.mxu0 %v4305_v62  ;;  %2494 = vmatprep.mubr.bf16.mxu0 %v4313_v1  ;;  %v4383_v62 = vld [vmem:[%s4788_s17 + $0x364] ss:$36 sps:$4 sm:$0xff]   ;;  %v4476_v1 = vld [vmem:[%s5534_s1 + $0x470] ss:$8 sps:$4 sm:$0xff]  }
  0x72   : > { %2617 = vmatprep.subr.bf16.mxu0 %v4310_v63  ;;  %2230 = vmatpush1.bf16.msra.mxu1 %v4367_v14  ;;  %v4385_v63 = vld [vmem:[%s4788_s17 + $0x13c] ss:$36 sps:$4 sm:$0xff]   ;;  %v4418_v14 = vld [vmem:[%s4788_s17 + $0x214] ss:$36 sps:$4 sm:$0xff]  }
  0x73   : > { %2231 = vmatprep.subr.bf16.mxu1 %v4381_v16  ;;  %v4424_v16 = vld [vmem:[%s4788_s17 + $0x210] ss:$36 sps:$4 sm:$0xff]  }
  0x75   : > { %2618 = vmatpush1.bf16.msra.mxu0 %v4308_v4  ;;  %v4391_v4 = vld [vmem:[%s4788_s17 + $0x138] ss:$36 sps:$4 sm:$0xff]  }
  0x76   : > { %2619 = vmatprep.subr.bf16.mxu0 %v4322_v6  ;;  %2232 = vmatpush1.bf16.msra.mxu1 %v4379_v24  ;;  %v4397_v6 = vld [vmem:[%s4788_s17 + $0x184] ss:$36 sps:$4 sm:$0xff]   ;;  %v4551_v24 = vld [vmem:[%s5534_s1 + $0x214] ss:$8 sps:$4 sm:$0xff]  }
  0x77   : > { %2109 = vmatmul.mubr.bf16.gmra.mrb[24].mxu1 %v4315_v5  ;;  %2233 = vmatprep.subr.bf16.mxu1 %v4390_v25  ;;  %v4395_v5 = vld [vmem:[%s4788_s17 + $0x3ac] ss:$36 sps:$4 sm:$0xff]  }
  0x78   : > { %2495 = vmatmul.mubr.bf16.gmra.mrb[24].mxu0 %v4319_v7  ;;  %2118 = vmatprep.mubr.bf16.mxu1 %v4326_v11  ;;  %v4399_v7 = vld [vmem:[%s4788_s17 + $0x3a8] ss:$36 sps:$4 sm:$0xff]   ;;  %v4408_v11 = vld [vmem:[%s4788_s17 + $0x3f0] ss:$36 sps:$4 sm:$0xff]  }
  0x79   : > { %2620 = vmatpush1.bf16.msra.mxu0 %v4320_v9  ;;  %2504 = vmatprep.mubr.bf16.mxu0 %v4328_v12  ;;  %v4404_v9 = vld [vmem:[%s4788_s17 + $0x3f4] ss:$36 sps:$4 sm:$0xff]   ;;  %v4412_v12 = vld [vmem:[%s4788_s17 + $0x1c8] ss:$36 sps:$4 sm:$0xff]  }
  0x7a   : > { %2621 = vmatprep.subr.bf16.mxu0 %v4325_v10  ;;  %2234 = vmatpush1.bf16.msra.mxu1 %v4388_v29  ;;  %v4406_v10 = vld [vmem:[%s4788_s17 + $0x1cc] ss:$36 sps:$4 sm:$0xff]  }
  0x7b   : > { %2235 = vmatprep.subr.bf16.mxu1 %v4402_v35  ;;  %v4438_v25 = vld [vmem:[%s4788_s17 + $0x50] ss:$36 sps:$4 sm:$0xff]   ;;  %v4449_v35 = vld [vmem:[%s4788_s17 + $0xe4] ss:$36 sps:$4 sm:$0xff]  }
  0x7c   : > { %v4442_v29 = vld [vmem:[%s4788_s17 + $0x2ec] ss:$36 sps:$4 sm:$0xff]  }
  0x7d   : > { %2622 = vmatpush1.bf16.msra.mxu0 %v4323_v15  ;;  %v4420_v15 = vld [vmem:[%s4788_s17 + $0x438] ss:$36 sps:$4 sm:$0xff]  }
  0x7e   : > { %2623 = vmatprep.subr.bf16.mxu0 %v4337_v17  ;;  %2236 = vmatpush1.bf16.msra.mxu1 %v4400_v36  ;;  %v4427_v17 = vld [vmem:[%s4788_s17 + $0xc] ss:$36 sps:$4 sm:$0xff]   ;;  %v4451_v36 = vld [vmem:[%s4788_s17 + $0x334] ss:$36 sps:$4 sm:$0xff]  }
  0x7f   : > { %2119 = vmatmul.mubr.bf16.gmra.mrb[28].mxu1 %v4330_v18  ;;  %2237 = vmatprep.subr.bf16.mxu1 %v4411_v38  ;;  %v4428_v18 = vld [vmem:[%s4788_s17 + $0x25c] ss:$36 sps:$4 sm:$0xff]   ;;  %v4557_v38 = vld [vmem:[%s5534_s1 + $0x244] ss:$8 sps:$4 sm:$0xff]  }
  0x80   : > { %2505 = vmatmul.mubr.bf16.gmra.mrb[28].mxu0 %v4334_v19  ;;  %2128 = vmatprep.mubr.bf16.mxu1 %v4341_v22  ;;  %v4425_v19 = vld [vmem:[%s4788_s17 + $0x8] ss:$36 sps:$4 sm:$0xff]  }
  0x81   : > { %2624 = vmatpush1.bf16.msra.mxu0 %v4335_v20  ;;  %2627 = vmatprep.mubr.bf16.mxu0 %v4345_v23  ;;  %v4430_v20 = vld [vmem:[%s4788_s17 + $0x258] ss:$36 sps:$4 sm:$0xff]   ;;  %v4436_v22 = vld [vmem:[%s4788_s17 + $0x2a4] ss:$36 sps:$4 sm:$0xff]  }
  0x82   : > { %2625 = vmatprep.subr.bf16.mxu0 %v4340_v21  ;;  %2238 = vmatpush1.bf16.msra.mxu1 %v4409_v45  ;;  %v4434_v21 = vld [vmem:[%s4788_s17 + $0x54] ss:$36 sps:$4 sm:$0xff]   ;;  %v4550_v23 = vld [vmem:[%s5534_s1 + $0x200] ss:$8 sps:$4 sm:$0xff]  }
  0x83   : > { %2239 = vmatprep.subr.bf16.mxu1 %v4423_v47  ;;  %v4560_v45 = vld [vmem:[%s5534_s1 + $0x250] ss:$8 sps:$4 sm:$0xff]   ;;  %v4562_v47 = vld [vmem:[%s5534_s1 + $0x260] ss:$8 sps:$4 sm:$0xff]  }
  0x85   : > { %2626 = vmatpush1.bf16.msra.mxu0 %v4338_v26  ;;  %v4439_v26 = vld [vmem:[%s4788_s17 + $0x2a0] ss:$36 sps:$4 sm:$0xff]  }
  0x86   : > { %2788 = vmatprep.subr.bf16.mxu0 %v4352_v28  ;;  %2240 = vmatpush1.bf16.msra.mxu1 %v4421_v49  ;;  %v4440_v28 = vld [vmem:[%s4788_s17 + $0x9c] ss:$36 sps:$4 sm:$0xff]   ;;  %v4459_v49 = vld [vmem:[%s4788_s17 + $0x128] ss:$36 sps:$4 sm:$0xff]  }
  0x87   : > { %2129 = vmatmul.mubr.bf16.gmra.mrb[32].mxu1 %v4346_v30  ;;  %3747 = vmatprep.subr.bf16.mxu1 %v4549_v56  ;;  %v4553_v30 = vld [vmem:[%s5534_s1 + $0x224] ss:$8 sps:$4 sm:$0xff]   ;;  %v4567_v56 = vld [vmem:[%s5534_s1 + $0x294] ss:$8 sps:$4 sm:$0xff]  }
  0x88   : > { %2628 = vmatmul.mubr.bf16.vlgmr.msra.gmra.mrb[0].mxu0 %v4343_v27  ;;  %2138 = vmatprep.mubr.bf16.mxu1 %v4353_v32  ;;  %v4552_v27 = vld [vmem:[%s5534_s1 + $0x210] ss:$8 sps:$4 sm:$0xff]   ;;  %v4555_v32 = vld [vmem:[%s5534_s1 + $0x234] ss:$8 sps:$4 sm:$0xff]  }
  0x89   : > { %2789 = vmatpush1.bf16.msra.mxu0 %v4350_v31  ;;  %2637 = vmatprep.mubr.bf16.mxu0 %v4355_v33  ;;  %v4554_v31 = vld [vmem:[%s5534_s1 + $0x220] ss:$8 sps:$4 sm:$0xff]   ;;  %v4444_v33 = vld [vmem:[%s4788_s17 + $0x98] ss:$36 sps:$4 sm:$0xff]  }
  0x8a   : > { %2790 = vmatprep.subr.bf16.mxu0 %v4373_v34  ;;  %v4445_v34 = vld [vmem:[%s4788_s17 + $0x2e8] ss:$36 sps:$4 sm:$0xff]  }
  0x8d   : > { %2791 = vmatpush1.bf16.msra.mxu0 %v4371_v37  ;;  %v4556_v37 = vld [vmem:[%s5534_s1 + $0x230] ss:$8 sps:$4 sm:$0xff]  }
  0x8e   : > { %2792 = vmatprep.subr.bf16.mxu0 %v4394_v40  ;;  %v4559_v40 = vld [vmem:[%s5534_s1 + $0x254] ss:$8 sps:$4 sm:$0xff]  }
  0x8f   : > { %2139 = vmatmul.mubr.bf16.gmra.mrb[36].mxu1 %v4357_v39  ;;  %v4558_v39 = vld [vmem:[%s5534_s1 + $0x240] ss:$8 sps:$4 sm:$0xff]  }
  0x90   : > { %2638 = vmatmul.mubr.bf16.gmra.mrb[4].mxu0 %v4361_v41  ;;  %2148 = vmatprep.mubr.bf16.mxu1 %v4362_v42  ;;  %v4453_v41 = vld [vmem:[%s4788_s17 + $0xe0] ss:$36 sps:$4 sm:$0xff]   ;;  %v4454_v42 = vld [vmem:[%s4788_s17 + $0x330] ss:$36 sps:$4 sm:$0xff]  }
  0x91   : > { %2647 = vmatprep.mubr.bf16.mxu0 %v4364_v43  ;;  %2793 = vmatpush1.bf16.msra.mxu0 %v4392_v44  ;;  %v4455_v43 = vld [vmem:[%s4788_s17 + $0x12c] ss:$36 sps:$4 sm:$0xff]   ;;  %v4457_v44 = vld [vmem:[%s4788_s17 + $0x37c] ss:$36 sps:$4 sm:$0xff]  }
  0x92   : > { %2794 = vmatprep.subr.bf16.mxu0 %v4415_v46  ;;  %v4561_v46 = vld [vmem:[%s5534_s1 + $0x264] ss:$8 sps:$4 sm:$0xff]  }
  0x95   : > { %2795 = vmatpush1.bf16.msra.mxu0 %v4413_v48  ;;  %v4563_v48 = vld [vmem:[%s5534_s1 + $0x274] ss:$8 sps:$4 sm:$0xff]  }
  0x96   : > { %2796 = vmatprep.subr.bf16.mxu0 %v4433_v51  ;;  %v4464_v51 = vld [vmem:[%s4788_s17 + $0x174] ss:$36 sps:$4 sm:$0xff]  }
  0x97   : > { %2149 = vmatmul.mubr.bf16.gmra.mrb[40].mxu1 %v4366_v50  ;;  %v4460_v50 = vld [vmem:[%s4788_s17 + $0x378] ss:$36 sps:$4 sm:$0xff]  }
  0x98   : > { %2648 = vmatmul.mubr.bf16.gmra.mrb[8].mxu0 %v4370_v52  ;;  %2158 = vmatprep.mubr.bf16.mxu1 %v4374_v53  ;;  %v4466_v52 = vld [vmem:[%s4788_s17 + $0x3c4] ss:$36 sps:$4 sm:$0xff]   ;;  %v4564_v53 = vld [vmem:[%s5534_s1 + $0x270] ss:$8 sps:$4 sm:$0xff]  }
  0x99   : > { %2657 = vmatprep.mubr.bf16.mxu0 %v4376_v54  ;;  %2797 = vmatpush1.bf16.msra.mxu0 %v4431_v55  ;;  %v4565_v54 = vld [vmem:[%s5534_s1 + $0x284] ss:$8 sps:$4 sm:$0xff]   ;;  %v4566_v55 = vld [vmem:[%s5534_s1 + $0x280] ss:$8 sps:$4 sm:$0xff]  }
  0x9a   : > { %2798 = vmatprep.subr.bf16.mxu0 %v4448_v57  ;;  %v4468_v57 = vld [vmem:[%s4788_s17 + $0x170] ss:$36 sps:$4 sm:$0xff]  }
  0x9d   : > { %2799 = vmatpush1.bf16.msra.mxu0 %v4446_v58  ;;  %v4469_v58 = vld [vmem:[%s4788_s17 + $0x3c0] ss:$36 sps:$4 sm:$0xff]  }
  0x9e   : > { %2800 = vmatprep.subr.bf16.mxu0 %v4463_v60  ;;  %v4472_v60 = vld [vmem:[%s4788_s17 + $0x40c] ss:$36 sps:$4 sm:$0xff]  }
  0x9f   : > { %2159 = vmatmul.mubr.bf16.gmra.mrb[44].mxu1 %v4378_v59  ;;  %v4470_v59 = vld [vmem:[%s4788_s17 + $0x1bc] ss:$36 sps:$4 sm:$0xff]  }
  0xa0   : > { %2658 = vmatmul.mubr.bf16.gmra.mrb[12].mxu0 %v4382_v61  ;;  %2168 = vmatprep.mubr.bf16.mxu1 %v4383_v62  ;;  %v4568_v61 = vld [vmem:[%s5534_s1 + $0x290] ss:$8 sps:$4 sm:$0xff]   ;;  %v4569_v62 = vld [vmem:[%s5534_s1 + $0x2a4] ss:$8 sps:$4 sm:$0xff]  }
  0xa1   : > { %2667 = vmatprep.mubr.bf16.mxu0 %v4385_v63  ;;  %2801 = vmatpush1.bf16.msra.mxu0 %v4461_v0  ;;  %v4570_v63 = vld [vmem:[%s5534_s1 + $0x2a0] ss:$8 sps:$4 sm:$0xff]   ;;  %v4571_v0 = vld [vmem:[%s5534_s1 + $0x2b4] ss:$8 sps:$4 sm:$0xff]  }
  0xa2   : > { %2802 = vmatprep.subr.bf16.mxu0 %v4478_v2  ;;  %v4475_v2 = vld [vmem:[%s4788_s17 + $0x408] ss:$36 sps:$4 sm:$0xff]  }
  0xa5   : > { %2803 = vmatpush1.bf16.msra.mxu0 %v4476_v1  ;;  %v4474_v1 = vld [vmem:[%s4788_s17 + $0x1b8] ss:$36 sps:$4 sm:$0xff]  }
  0xa7   : > { %2169 = vmatmul.mubr.bf16.gmra.mrb[48].mxu1 %v4387_v3  ;;  %v4479_v3 = vld [vmem:[%s4788_s17 + $0x204] ss:$36 sps:$4 sm:$0xff]  }
  0xa8   : > { %2668 = vmatmul.mubr.bf16.gmra.mrb[16].mxu0 %v4391_v4  ;;  %2178 = vmatprep.mubr.bf16.mxu1 %v4395_v5  ;;  %v4481_v4 = vld [vmem:[%s4788_s17 + $0x454] ss:$36 sps:$4 sm:$0xff]  }
  0xa9   : > { %2677 = vmatprep.mubr.bf16.mxu0 %v4397_v6  ;;  %v4572_v5 = vld [vmem:[%s5534_s1 + $0x2b0] ss:$8 sps:$4 sm:$0xff]   ;;  %v4573_v6 = vld [vmem:[%s5534_s1 + $0x2c4] ss:$8 sps:$4 sm:$0xff]  }
  0xaf   : > { %2179 = vmatmul.mubr.bf16.gmra.mrb[52].mxu1 %v4399_v7  ;;  %v4574_v7 = vld [vmem:[%s5534_s1 + $0x2c0] ss:$8 sps:$4 sm:$0xff]  }
  0xb0   : > { %2678 = vmatmul.mubr.bf16.gmra.mrb[20].mxu0 %v4403_v8  ;;  %2188 = vmatprep.mubr.bf16.mxu1 %v4404_v9  ;;  %v4575_v8 = vld [vmem:[%s5534_s1 + $0x2d4] ss:$8 sps:$4 sm:$0xff]   ;;  %v4483_v9 = vld [vmem:[%s4788_s17 + $0x200] ss:$36 sps:$4 sm:$0xff]  }
  0xb1   : > { %2687 = vmatprep.mubr.bf16.mxu0 %v4406_v10  ;;  %v4484_v10 = vld [vmem:[%s4788_s17 + $0x450] ss:$36 sps:$4 sm:$0xff]  }
  0xb7   : > { %2189 = vmatmul.mubr.bf16.gmra.mrb[56].mxu1 %v4408_v11  ;;  %v4485_v11 = vld [vmem:[%s4788_s17 + $0x24c] ss:$36 sps:$4 sm:$0xff]  }
  0xb8   : > { %2688 = vmatmul.mubr.bf16.gmra.mrb[24].mxu0 %v4412_v12  ;;  %2198 = vmatprep.mubr.bf16.mxu1 %v4416_v13  ;;  %v4576_v12 = vld [vmem:[%s5534_s1 + $0x2d0] ss:$8 sps:$4 sm:$0xff]   ;;  %v4577_v13 = vld [vmem:[%s5534_s1 + $0x2e4] ss:$8 sps:$4 sm:$0xff]  }
  0xb9   : > { %2697 = vmatprep.mubr.bf16.mxu0 %v4418_v14  ;;  %v4605_v14 = vmov 0  }
  0xbf   : > { %2199 = vmatmul.mubr.bf16.gmra.mrb[60].mxu1 %v4420_v15  ;;  %v4578_v15 = vld [vmem:[%s5534_s1 + $0x2e0] ss:$8 sps:$4 sm:$0xff]  }
  0xc0   : > { %2698 = vmatmul.mubr.bf16.gmra.mrb[28].mxu0 %v4424_v16  ;;  %2241 = vmatprep.mubr.bf16.mxu1 %v4427_v17  ;;  %v4579_v16 = vld [vmem:[%s5534_s1 + $0x2f4] ss:$8 sps:$4 sm:$0xff]   ;;  %v4487_v17 = vld [vmem:[%s4788_s17 + $0x248] ss:$36 sps:$4 sm:$0xff]  }
  0xc1   : > { %2707 = vmatprep.mubr.bf16.mxu0 %v4428_v18  ;;  %v4488_v18 = vld [vmem:[%s4788_s17 + $0x20] ss:$36 sps:$4 sm:$0xff]  }
  0xc7   : > { %2242 = vmatmul.mubr.bf16.vlgmr.msra.gmra.mrb[0].mxu1 %v4425_v19  ;;  %v4489_v19 = vld [vmem:[%s4788_s17 + $0x294] ss:$36 sps:$4 sm:$0xff]  }
  0xc8   : > { %2708 = vmatmul.mubr.bf16.gmra.mrb[32].mxu0 %v4430_v20  ;;  %3763 = vmatpush1.bf16.msra.mxu1 %v4550_v23  ;;  %v4580_v20 = vld [vmem:[%s5534_s1 + $0x2f0] ss:$8 sps:$4 sm:$0xff]   ;;  %v4493_v23 = vld [vmem:[%s4788_s17 + $0x2dc] ss:$36 sps:$4 sm:$0xff]  }
  0xc9   : > { %2251 = vmatprep.mubr.bf16.mxu1 %v4434_v21  ;;  %2717 = vmatprep.mubr.bf16.mxu0 %v4436_v22  ;;  %v4491_v21 = vld [vmem:[%s4788_s17 + $0x290] ss:$36 sps:$4 sm:$0xff]   ;;  %v4492_v22 = vld [vmem:[%s4788_s17 + $0x68] ss:$36 sps:$4 sm:$0xff]  }
  0xca   : > { %3748 = vmatprep.subr.bf16.mxu1 %v4551_v24  ;;  %v4495_v24 = vld [vmem:[%s4788_s17 + $0x2d8] ss:$36 sps:$4 sm:$0xff]  }
  0xcc   : > { %3764 = vmatpush1.bf16.msra.mxu1 %v4552_v27  ;;  %v4499_v27 = vld [vmem:[%s4788_s17 + $0x320] ss:$36 sps:$4 sm:$0xff]  }
  0xcd   : > { %3749 = vmatprep.subr.bf16.mxu1 %v4553_v30  ;;  %v4503_v30 = vld [vmem:[%s4788_s17 + $0x368] ss:$36 sps:$4 sm:$0xff]  }
  0xcf   : > { %2252 = vmatmul.mubr.bf16.gmra.mrb[4].mxu1 %v4438_v25  ;;  %v4496_v25 = vld [vmem:[%s4788_s17 + $0xb0] ss:$36 sps:$4 sm:$0xff]  }
  0xd0   : > { %2718 = vmatmul.mubr.bf16.gmra.mrb[36].mxu0 %v4439_v26  ;;  %2261 = vmatprep.mubr.bf16.mxu1 %v4440_v28  ;;  %v4497_v26 = vld [vmem:[%s4788_s17 + $0x324] ss:$36 sps:$4 sm:$0xff]   ;;  %v4500_v28 = vld [vmem:[%s4788_s17 + $0xf8] ss:$36 sps:$4 sm:$0xff]  }
  0xd1   : > { %2727 = vmatprep.mubr.bf16.mxu0 %v4442_v29  ;;  %3765 = vmatpush1.bf16.msra.mxu1 %v4554_v31  ;;  %v4501_v29 = vld [vmem:[%s4788_s17 + $0x36c] ss:$36 sps:$4 sm:$0xff]   ;;  %v4504_v31 = vld [vmem:[%s4788_s17 + $0x140] ss:$36 sps:$4 sm:$0xff]  }
  0xd2   : > { %3750 = vmatprep.subr.bf16.mxu1 %v4555_v32  ;;  %v4505_v32 = vld [vmem:[%s4788_s17 + $0x3b4] ss:$36 sps:$4 sm:$0xff]  }
  0xd5   : > { %3766 = vmatpush1.bf16.msra.mxu1 %v4556_v37  ;;  %v4512_v37 = vld [vmem:[%s4788_s17 + $0x1d0] ss:$36 sps:$4 sm:$0xff]  }
  0xd6   : > { %3751 = vmatprep.subr.bf16.mxu1 %v4557_v38  ;;  %v4513_v38 = vld [vmem:[%s4788_s17 + $0x444] ss:$36 sps:$4 sm:$0xff]  }
  0xd7   : > { %2262 = vmatmul.mubr.bf16.gmra.mrb[8].mxu1 %v4444_v33  ;;  %v4507_v33 = vld [vmem:[%s4788_s17 + $0x3b0] ss:$36 sps:$4 sm:$0xff]  }
  0xd8   : > { %2728 = vmatmul.mubr.bf16.gmra.mrb[40].mxu0 %v4445_v34  ;;  %2271 = vmatprep.mubr.bf16.mxu1 %v4449_v35  ;;  %v4508_v34 = vld [vmem:[%s4788_s17 + $0x188] ss:$36 sps:$4 sm:$0xff]   ;;  %v4509_v35 = vld [vmem:[%s4788_s17 + $0x3fc] ss:$36 sps:$4 sm:$0xff]  }
  0xd9   : > { %2737 = vmatprep.mubr.bf16.mxu0 %v4451_v36  ;;  %3767 = vmatpush1.bf16.msra.mxu1 %v4558_v39  ;;  %v4511_v36 = vld [vmem:[%s4788_s17 + $0x3f8] ss:$36 sps:$4 sm:$0xff]   ;;  %v4515_v39 = vld [vmem:[%s4788_s17 + $0x440] ss:$36 sps:$4 sm:$0xff]  }
  0xda   : > { %3752 = vmatprep.subr.bf16.mxu1 %v4559_v40  ;;  %v4516_v40 = vld [vmem:[%s4788_s17 + $0x218] ss:$36 sps:$4 sm:$0xff]  }
  0xdd   : > { %3768 = vmatpush1.bf16.msra.mxu1 %v4560_v45  ;;  %v4523_v45 = vld [vmem:[%s4788_s17 + $0x298] ss:$36 sps:$4 sm:$0xff]  }
  0xde   : > { %3753 = vmatprep.subr.bf16.mxu1 %v4561_v46  ;;  %v4524_v46 = vld [vmem:[%s4788_s17 + $0x2a8] ss:$36 sps:$4 sm:$0xff]  }
  0xdf   : > { %2272 = vmatmul.mubr.bf16.gmra.mrb[12].mxu1 %v4453_v41  ;;  %v4519_v41 = vld [vmem:[%s4788_s17 + $0x254] ss:$36 sps:$4 sm:$0xff]  }
  0xe0   : > { %2738 = vmatmul.mubr.bf16.gmra.mrb[44].mxu0 %v4454_v42  ;;  %2281 = vmatprep.mubr.bf16.mxu1 %v4455_v43  ;;  %v4517_v42 = vld [vmem:[%s4788_s17 + $0x250] ss:$36 sps:$4 sm:$0xff]   ;;  %v4520_v43 = vld [vmem:[%s4788_s17 + $0x260] ss:$36 sps:$4 sm:$0xff]  }
  0xe1   : > { %2747 = vmatprep.mubr.bf16.mxu0 %v4457_v44  ;;  %3769 = vmatpush1.bf16.msra.mxu1 %v4562_v47  ;;  %v4521_v44 = vld [vmem:[%s4788_s17 + $0x29c] ss:$36 sps:$4 sm:$0xff]   ;;  %v4525_v47 = vld [vmem:[%s4788_s17 + $0x2e4] ss:$36 sps:$4 sm:$0xff]  }
  0xe2   : > { %3754 = vmatprep.subr.bf16.mxu1 %v4563_v48  ;;  %v4527_v48 = vld [vmem:[%s4788_s17 + $0x2e0] ss:$36 sps:$4 sm:$0xff]  }
  0xe5   : > { %3770 = vmatpush1.bf16.msra.mxu1 %v4564_v53  ;;  %v4533_v53 = vld [vmem:[%s4788_s17 + $0x374] ss:$36 sps:$4 sm:$0xff]  }
  0xe6   : > { %3755 = vmatprep.subr.bf16.mxu1 %v4565_v54  ;;  %v4535_v54 = vld [vmem:[%s4788_s17 + $0x370] ss:$36 sps:$4 sm:$0xff]  }
  0xe7   : > { %2282 = vmatmul.mubr.bf16.gmra.mrb[16].mxu1 %v4459_v49  ;;  %v4528_v49 = vld [vmem:[%s4788_s17 + $0x2f0] ss:$36 sps:$4 sm:$0xff]  }
  0xe8   : > { %2748 = vmatmul.mubr.bf16.gmra.mrb[48].mxu0 %v4460_v50  ;;  %2291 = vmatprep.mubr.bf16.mxu1 %v4464_v51  ;;  %v4529_v50 = vld [vmem:[%s4788_s17 + $0x32c] ss:$36 sps:$4 sm:$0xff]  }
  0xe9   : > { %2757 = vmatprep.mubr.bf16.mxu0 %v4466_v52  ;;  %3771 = vmatpush1.bf16.msra.mxu1 %v4566_v55  ;;  %v4531_v51 = vld [vmem:[%s4788_s17 + $0x328] ss:$36 sps:$4 sm:$0xff]   ;;  %v4532_v52 = vld [vmem:[%s4788_s17 + $0x338] ss:$36 sps:$4 sm:$0xff]   ;;  %v4536_v55 = vld [vmem:[%s4788_s17 + $0x380] ss:$36 sps:$4 sm:$0xff]  }
  0xea   : > { %3756 = vmatprep.subr.bf16.mxu1 %v4567_v56  ;;  %v4537_v56 = vld [vmem:[%s4788_s17 + $0x3bc] ss:$36 sps:$4 sm:$0xff]  }
  0xed   : > { %3772 = vmatpush1.bf16.msra.mxu1 %v4568_v61  ;;  %v4544_v61 = vld [vmem:[%s4788_s17 + $0x410] ss:$36 sps:$4 sm:$0xff]  }
  0xee   : > { %3757 = vmatprep.subr.bf16.mxu1 %v4569_v62  ;;  %v4545_v62 = vld [vmem:[%s4788_s17 + $0x44c] ss:$36 sps:$4 sm:$0xff]  }
  0xef   : > { %2292 = vmatmul.mubr.bf16.gmra.mrb[20].mxu1 %v4468_v57  ;;  %v4539_v57 = vld [vmem:[%s4788_s17 + $0x3b8] ss:$36 sps:$4 sm:$0xff]  }
  0xf0   : > { %2758 = vmatmul.mubr.bf16.gmra.mrb[52].mxu0 %v4469_v58  ;;  %2301 = vmatprep.mubr.bf16.mxu1 %v4470_v59  ;;  %v4540_v58 = vld [vmem:[%s4788_s17 + $0x3c8] ss:$36 sps:$4 sm:$0xff]  }
  0xf1   : > { %2767 = vmatprep.mubr.bf16.mxu0 %v4472_v60  ;;  %3773 = vmatpush1.bf16.msra.mxu1 %v4570_v63  ;;  %v4541_v59 = vld [vmem:[%s4788_s17 + $0x404] ss:$36 sps:$4 sm:$0xff]  }
  0xf2   : > { %3758 = vmatprep.subr.bf16.mxu1 %v4571_v0  ;;  %v4543_v60 = vld [vmem:[%s4788_s17 + $0x400] ss:$36 sps:$4 sm:$0xff]   ;;  %v4547_v63 = vld [vmem:[%s4788_s17 + $0x448] ss:$36 sps:$4 sm:$0xff]   ;;  %v4548_v0 = vld [vmem:[%s4788_s17 + $0x458] ss:$36 sps:$4 sm:$0xff]  }
  0xf5   : > { %3774 = vmatpush1.bf16.msra.mxu1 %v4572_v5 }
  0xf6   : > { %3759 = vmatprep.subr.bf16.mxu1 %v4573_v6 }
  0xf7   : > { %2302 = vmatmul.mubr.bf16.gmra.mrb[24].mxu1 %v4474_v1 }
  0xf8   : > { %2768 = vmatmul.mubr.bf16.gmra.mrb[56].mxu0 %v4475_v2  ;;  %2311 = vmatprep.mubr.bf16.mxu1 %v4479_v3 }
  0xf9   : > { %2777 = vmatprep.mubr.bf16.mxu0 %v4481_v4  ;;  %3775 = vmatpush1.bf16.msra.mxu1 %v4574_v7 }
  0xfa   : > { %3760 = vmatprep.subr.bf16.mxu1 %v4575_v8 }
  0xfd   : > { %3776 = vmatpush1.bf16.msra.mxu1 %v4576_v12 }
  0xfe   : > { %3761 = vmatprep.subr.bf16.mxu1 %v4577_v13 }
  0xff   : > { %2312 = vmatmul.mubr.bf16.gmra.mrb[28].mxu1 %v4483_v9 }
 0x100   : > { %2778 = vmatmul.mubr.bf16.gmra.mrb[60].mxu0 %v4484_v10  ;;  %2321 = vmatprep.mubr.bf16.mxu1 %v4485_v11 }
 0x101   : > { %2820 = vmatprep.mubr.bf16.mxu0 %v4605_v14  ;;  %3777 = vmatpush1.bf16.msra.mxu1 %v4578_v15 }
 0x102   : > { %3762 = vmatprep.subr.bf16.mxu1 %v4579_v16 }
 0x105   : > { %3778 = vmatpush1.bf16.msra.mxu1 %v4580_v20 }
 0x107   : > { %2322 = vmatmul.mubr.bf16.gmra.mrb[32].mxu1 %v4487_v17 }
 0x108   : > { %2821 = vmatmul.mubr.bf16.vlgmr.msra.gmra.mrb[0].mxu0 %v4488_v18  ;;  %2331 = vmatprep.mubr.bf16.mxu1 %v4489_v19 }
 0x109   : > { %2830 = vmatprep.mubr.bf16.mxu0 %v4605_v14 }
 0x10f   : > { %2332 = vmatmul.mubr.bf16.gmra.mrb[36].mxu1 %v4491_v21 }
 0x110   : > { %2831 = vmatmul.mubr.bf16.gmra.mrb[4].mxu0 %v4492_v22  ;;  %2341 = vmatprep.mubr.bf16.mxu1 %v4493_v23 }
 0x111   : > { %2840 = vmatprep.mubr.bf16.mxu0 %v4605_v14 }
 0x117   : > { %2342 = vmatmul.mubr.bf16.gmra.mrb[40].mxu1 %v4495_v24 }
 0x118   : > { %2841 = vmatmul.mubr.bf16.gmra.mrb[8].mxu0 %v4496_v25  ;;  %2351 = vmatprep.mubr.bf16.mxu1 %v4497_v26  ;;  %v550_v25 = vlaneseq }
 0x119   : > { %2850 = vmatprep.mubr.bf16.mxu0 %v4605_v14 }
 0x11f   : > { %2352 = vmatmul.mubr.bf16.gmra.mrb[44].mxu1 %v4499_v27 }
 0x120   : > { %2851 = vmatmul.mubr.bf16.gmra.mrb[12].mxu0 %v4500_v28  ;;  %2361 = vmatprep.mubr.bf16.mxu1 %v4501_v29  ;;  %v551_v29 = vshrl.u32 %v550_v25, 7 }
 0x121   : > { %2860 = vmatprep.mubr.bf16.mxu0 %v4605_v14 }
 0x127   : > { %2362 = vmatmul.mubr.bf16.gmra.mrb[48].mxu1 %v4503_v30 }
 0x128   : > { %2861 = vmatmul.mubr.bf16.gmra.mrb[16].mxu0 %v4504_v31  ;;  %2371 = vmatprep.mubr.bf16.mxu1 %v4505_v32  ;;  %v552_v31 = vsub.s32 0, %v551_v29  ;;  %v548_v32 = vld [vmem:[%s5535_s2] sm:$0x3] }
 0x129   : > { %2870 = vmatprep.mubr.bf16.mxu0 %v4605_v14 }
 0x12f   : > { %2372 = vmatmul.mubr.bf16.gmra.mrb[52].mxu1 %v4507_v33  ;;  %v556_v33 = vsub.s32 1, %v551_v29 }
 0x130   : > { %2871 = vmatmul.mubr.bf16.gmra.mrb[20].mxu0 %v4508_v34  ;;  %2381 = vmatprep.mubr.bf16.mxu1 %v4509_v35 }
 0x131   : > { %2880 = vmatprep.mubr.bf16.mxu0 %v4605_v14 }
 0x137   : > { %2382 = vmatmul.mubr.bf16.gmra.mrb[56].mxu1 %v4511_v36 }
 0x138   : > { %2881 = vmatmul.mubr.bf16.gmra.mrb[24].mxu0 %v4512_v37  ;;  %2391 = vmatprep.mubr.bf16.mxu1 %v4513_v38  ;;  %v5392_v37 = vrot.slane %v548_v32, %v552_v31 }
 0x139   : > { %2890 = vmatprep.mubr.bf16.mxu0 %v4605_v14 }
 0x13f   : > { %2392 = vmatmul.mubr.bf16.gmra.mrb[60].mxu1 %v4515_v39  ;;  %v5396_v39 = vrot.slane %v548_v32, %v556_v33 }
 0x140   : > { %2891 = vmatmul.mubr.bf16.gmra.mrb[28].mxu0 %v4516_v40  ;;  %2514 = vmatprep.mubr.bf16.mxu1 %v4519_v41 }
 0x141   : > { %2900 = vmatprep.mubr.bf16.mxu0 %v4605_v14 }
 0x147   : > { %2515 = vmatmul.mubr.bf16.vlgmr.msra.gmra.mrb[32].mxu1 %v4517_v42 }
 0x148   : > { %2901 = vmatmul.mubr.bf16.gmra.mrb[32].mxu0 %v4520_v43  ;;  %2524 = vmatprep.mubr.bf16.mxu1 %v4521_v44 }
 0x149   : > { %2910 = vmatprep.mubr.bf16.mxu0 %v4605_v14 }
 0x14f   : > { %2525 = vmatmul.mubr.bf16.gmra.mrb[36].mxu1 %v4523_v45 }
 0x150   : > { %2911 = vmatmul.mubr.bf16.gmra.mrb[36].mxu0 %v4524_v46  ;;  %2534 = vmatprep.mubr.bf16.mxu1 %v4525_v47 }
 0x151   : > { %2920 = vmatprep.mubr.bf16.mxu0 %v4605_v14 }
 0x157   : > { %2535 = vmatmul.mubr.bf16.gmra.mrb[40].mxu1 %v4527_v48 }
 0x158   : > { %2921 = vmatmul.mubr.bf16.gmra.mrb[40].mxu0 %v4528_v49  ;;  %2544 = vmatprep.mubr.bf16.mxu1 %v4529_v50 }
 0x159   : > { %2930 = vmatprep.mubr.bf16.mxu0 %v4605_v14 }
 0x15f   : > { %2545 = vmatmul.mubr.bf16.gmra.mrb[44].mxu1 %v4531_v51 }
 0x160   : > { %2931 = vmatmul.mubr.bf16.gmra.mrb[44].mxu0 %v4532_v52  ;;  %2554 = vmatprep.mubr.bf16.mxu1 %v4533_v53 }
 0x161   : > { %2940 = vmatprep.mubr.bf16.mxu0 %v4605_v14 }
 0x167   : > { %2555 = vmatmul.mubr.bf16.gmra.mrb[48].mxu1 %v4535_v54 }
 0x168   : > { %2941 = vmatmul.mubr.bf16.gmra.mrb[48].mxu0 %v4536_v55  ;;  %2564 = vmatprep.mubr.bf16.mxu1 %v4537_v56 }
 0x169   : > { %2950 = vmatprep.mubr.bf16.mxu0 %v4605_v14 }
 0x16f   : > { %2565 = vmatmul.mubr.bf16.gmra.mrb[52].mxu1 %v4539_v57 }
 0x170   : > { %2951 = vmatmul.mubr.bf16.gmra.mrb[52].mxu0 %v4540_v58  ;;  %2574 = vmatprep.mubr.bf16.mxu1 %v4541_v59 }
 0x171   : > { %2960 = vmatprep.mubr.bf16.mxu0 %v4605_v14 }
 0x177   : > { %2575 = vmatmul.mubr.bf16.gmra.mrb[56].mxu1 %v4543_v60 }
 0x178   : > { %2961 = vmatmul.mubr.bf16.gmra.mrb[56].mxu0 %v4544_v61  ;;  %2584 = vmatprep.mubr.bf16.mxu1 %v4545_v62 }
 0x179   : > { %2970 = vmatprep.mubr.bf16.mxu0 %v4605_v14 }
 0x17f   : > { %2585 = vmatmul.mubr.bf16.gmra.mrb[60].mxu1 %v4547_v63 }
 0x180   : > { %2971 = vmatmul.mubr.bf16.gmra.mrb[60].mxu0 %v4548_v0 }
 0x19a   : > { %v2243_v1 = vpop.f32.mrb[0].mxu1 }
 0x19b   : > { %v2245_v2 = vpop.f32.mrb[1].mxu1  ;;  %v3779_v40 = vadd.f32 %v2243_v1, %v5392_v37 }
 0x19c   : > { %v2247_v3 = vpop.f32.mrb[2].mxu1  ;;  %v3781_v41 = vadd.f32 %v2245_v2, %v5396_v39 }
 0x19d   : > { %v2249_v4 = vpop.f32.mrb[3].mxu1  ;;  %v3783_v43 = vadd.f32 %v2247_v3, %v5392_v37 }
 0x19e   : > { %v3785_v46 = vadd.f32 %v2249_v4, %v5396_v39 }
 0x1a2   : > { %v2253_v5 = vpop.f32.mrb[4].mxu1 }
 0x1a3   : > { %v2255_v6 = vpop.f32.mrb[5].mxu1  ;;  %v3787_v57 = vadd.f32 %v2253_v5, %v5392_v37 }
 0x1a4   : > { %v2257_v7 = vpop.f32.mrb[6].mxu1  ;;  %v3789_v58 = vadd.f32 %v2255_v6, %v5396_v39 }
 0x1a5   : > { %v2259_v8 = vpop.f32.mrb[7].mxu1  ;;  %v3791_v61 = vadd.f32 %v2257_v7, %v5392_v37 }
 0x1a6   : > { %v3793_v0 = vadd.f32 %v2259_v8, %v5396_v39 }
 0x1aa   : > { %v5343_v9 = vpop.f32.mrb[8].mxu1 }
 0x1ab   : > { %v5345_v10 = vpop.f32.mrb[9].mxu1  ;;  %v3795_v7 = vadd.f32 %v5343_v9, %v5392_v37 }
 0x1ac   : > { %v5347_v11 = vpop.f32.mrb[10].mxu1  ;;  %v3797_v33 = vadd.f32 %v5345_v10, %v5396_v39 }
 0x1ad   : > { %v5349_v12 = vpop.f32.mrb[11].mxu1 }
 0x1b2   : > { %v5351_v13 = vpop.f32.mrb[12].mxu1 }
 0x1b3   : > { %v5353_v14 = vpop.f32.mrb[13].mxu1 }
 0x1b4   : > { %v5355_v15 = vpop.f32.mrb[14].mxu1 }
 0x1b5   : > { %v5357_v16 = vpop.f32.mrb[15].mxu1 }
 0x1ba   : > { %v5359_v17 = vpop.f32.mrb[16].mxu1 }
 0x1bb   : > { %v5361_v18 = vpop.f32.mrb[17].mxu1 }
 0x1bc   : > { %v5363_v19 = vpop.f32.mrb[18].mxu1 }
 0x1bd   : > { %v5365_v20 = vpop.f32.mrb[19].mxu1 }
 0x1c2   : > { %v5367_v21 = vpop.f32.mrb[20].mxu1 }
 0x1c3   : > { %v5369_v22 = vpop.f32.mrb[21].mxu1 }
 0x1c4   : > { %v5371_v23 = vpop.f32.mrb[22].mxu1 }
 0x1c5   : > { %v5373_v24 = vpop.f32.mrb[23].mxu1 }
 0x1ca   : > { %v5375_v26 = vpop.f32.mrb[24].mxu1 }
 0x1cb   : > { %v5377_v27 = vpop.f32.mrb[25].mxu1 }
 0x1cc   : > { %v5379_v28 = vpop.f32.mrb[26].mxu1 }
 0x1cd   : > { %v5381_v30 = vpop.f32.mrb[27].mxu1 }
 0x1d2   : > { %v5386_v34 = vpop.f32.mrb[28].mxu1 }
 0x1d3   : > { %v5388_v35 = vpop.f32.mrb[29].mxu1 }
 0x1d4   : > { %v5390_v36 = vpop.f32.mrb[30].mxu1 }
 0x1d5   : > { %v5394_v38 = vpop.f32.mrb[31].mxu1 }
 0x1db   : > { %v2822_v42 = vpop.f32.mrb[0].mxu0 }
 0x1dc   : > { %v3780_v44 = vadd.f32 %v3779_v40, %v2822_v42  ;;  %v2824_v45 = vpop.f32.mrb[1].mxu0 }
 0x1dd   : > { %v3782_v47 = vadd.f32 %v3781_v41, %v2824_v45  ;;  %v2826_v48 = vpop.f32.mrb[2].mxu0  ;;  %v3799_v41 = vadd.f32 %v5347_v11, %v5392_v37  ;;  %v3803_v11 = vadd.f32 %v5351_v13, %v5392_v37 }
 0x1de   : > { %v2981_v49 = vmax.f32 %v3780_v44, 0.0  ;;  %v3784_v50 = vadd.f32 %v3783_v43, %v2826_v48  ;;  %v2828_v51 = vpop.f32.mrb[3].mxu0  ;;  %v3801_v44 = vadd.f32 %v5349_v12, %v5396_v39 }
 0x1df   : > { %v2982_v52 = vmax.f32 %v3782_v47, 0.0  ;;  %v3786_v53 = vadd.f32 %v3785_v46, %v2828_v51 }
 0x1e0   : > { %v2983_v54 = vmax.f32 %v3784_v50, 0.0 }
 0x1e1   : > { %v3715_v55 = vpack.c.bf16 %v2982_v52, %v2981_v49  ;;  %v2984_v56 = vmax.f32 %v3786_v53, 0.0  ;;  %v3805_v53 = vadd.f32 %v5353_v14, %v5396_v39 }
 0x1e3   : > { %3237 = vst [vmem:[%s5406_s20] sm:$0xff] %v3715_v55  ;;  %v3716_v59 = vpack.c.bf16 %v2984_v56, %v2983_v54  ;;  %v2832_v60 = vpop.f32.mrb[4].mxu0  ;;  %v3807_v55 = vadd.f32 %v5355_v15, %v5392_v37  ;;  %v3811_v15 = vadd.f32 %v5359_v17, %v5392_v37 }
 0x1e4   : > { %v3788_v62 = vadd.f32 %v3787_v57, %v2832_v60  ;;  %v2834_v63 = vpop.f32.mrb[5].mxu0 }
 0x1e5   : > { %3238 = vst [vmem:[%s5406_s20 + $0x8] sm:$0xff] %v3716_v59  ;;  %v3790_v1 = vadd.f32 %v3789_v58, %v2834_v63  ;;  %v2836_v2 = vpop.f32.mrb[6].mxu0  ;;  %v3809_v58 = vadd.f32 %v5357_v16, %v5396_v39 }
 0x1e6   : > { %v2985_v3 = vmax.f32 %v3788_v62, 0.0  ;;  %v3792_v4 = vadd.f32 %v3791_v61, %v2836_v2  ;;  %v2838_v25 = vpop.f32.mrb[7].mxu0 }
 0x1e7   : > { %v2986_v5 = vmax.f32 %v3790_v1, 0.0  ;;  %v3794_v29 = vadd.f32 %v3793_v0, %v2838_v25  ;;  %v3815_v25 = vadd.f32 %v5363_v19, %v5392_v37  ;;  %v3819_v19 = vadd.f32 %v5367_v21, %v5392_v37 }
 0x1e8   : > { %v2987_v6 = vmax.f32 %v3792_v4, 0.0 }
 0x1e9   : > { %v3717_v31 = vpack.c.bf16 %v2986_v5, %v2985_v3  ;;  %v2988_v32 = vmax.f32 %v3794_v29, 0.0  ;;  %v3813_v3 = vadd.f32 %v5361_v18, %v5396_v39 }
 0x1eb   : > { %3239 = vst [vmem:[%s5406_s20 + $0x10] sm:$0xff] %v3717_v31  ;;  %v3718_v8 = vpack.c.bf16 %v2988_v32, %v2987_v6  ;;  %v2842_v40 = vpop.f32.mrb[8].mxu0  ;;  %v3817_v6 = vadd.f32 %v5365_v20, %v5396_v39 }
 0x1ec   : > { %v3796_v42 = vadd.f32 %v3795_v7, %v2842_v40  ;;  %v2844_v43 = vpop.f32.mrb[9].mxu0 }
 0x1ed   : > { %3240 = vst [vmem:[%s5406_s20 + $0x18] sm:$0xff] %v3718_v8  ;;  %v3798_v45 = vadd.f32 %v3797_v33, %v2844_v43  ;;  %v2846_v46 = vpop.f32.mrb[10].mxu0  ;;  %v3821_v43 = vadd.f32 %v5369_v22, %v5396_v39 }
 0x1ee   : > { %v2989_v47 = vmax.f32 %v3796_v42, 0.0  ;;  %v3800_v9 = vadd.f32 %v3799_v41, %v2846_v46  ;;  %v2848_v48 = vpop.f32.mrb[11].mxu0 }
 0x1ef   : > { %v2990_v10 = vmax.f32 %v3798_v45, 0.0  ;;  %v3802_v49 = vadd.f32 %v3801_v44, %v2848_v48  ;;  %v3823_v45 = vadd.f32 %v5371_v23, %v5392_v37  ;;  %v3827_v23 = vadd.f32 %v5375_v26, %v5392_v37 }
 0x1f0   : > { %v2991_v50 = vmax.f32 %v3800_v9, 0.0  ;;  %v3825_v9 = vadd.f32 %v5373_v24, %v5396_v39 }
 0x1f1   : > { %v3719_v51 = vpack.c.bf16 %v2990_v10, %v2989_v47  ;;  %v2992_v52 = vmax.f32 %v3802_v49, 0.0 }
 0x1f3   : > { %3241 = vst [vmem:[%s5406_s20 + $0x20] sm:$0xff] %v3719_v51  ;;  %v3720_v12 = vpack.c.bf16 %v2992_v52, %v2991_v50  ;;  %v2852_v54 = vpop.f32.mrb[12].mxu0 }
 0x1f4   : > { %v3804_v56 = vadd.f32 %v3803_v11, %v2852_v54  ;;  %v2854_v57 = vpop.f32.mrb[13].mxu0 }
 0x1f5   : > { %3242 = vst [vmem:[%s5406_s20 + $0x28] sm:$0xff] %v3720_v12  ;;  %v3806_v59 = vadd.f32 %v3805_v53, %v2854_v57  ;;  %v2856_v60 = vpop.f32.mrb[14].mxu0  ;;  %v3829_v12 = vadd.f32 %v5377_v27, %v5396_v39 }
 0x1f6   : > { %v2993_v61 = vmax.f32 %v3804_v56, 0.0  ;;  %v3808_v13 = vadd.f32 %v3807_v55, %v2856_v60  ;;  %v2858_v62 = vpop.f32.mrb[15].mxu0  ;;  %v3831_v55 = vadd.f32 %v5379_v28, %v5392_v37  ;;  %v3835_v28 = vadd.f32 %v5386_v34, %v5392_v37 }
 0x1f7   : > { %v2994_v14 = vmax.f32 %v3806_v59, 0.0  ;;  %v3810_v63 = vadd.f32 %v3809_v58, %v2858_v62  ;;  %v3833_v58 = vadd.f32 %v5381_v30, %v5396_v39 }
 0x1f8   : > { %v2995_v0 = vmax.f32 %v3808_v13, 0.0 }
 0x1f9   : > { %v3721_v1 = vpack.c.bf16 %v2994_v14, %v2993_v61  ;;  %v2996_v2 = vmax.f32 %v3810_v63, 0.0 }
 0x1fb   : > { %3243 = vst [vmem:[%s5406_s20 + $0x30] sm:$0xff] %v3721_v1  ;;  %v3722_v16 = vpack.c.bf16 %v2996_v2, %v2995_v0  ;;  %v2862_v4 = vpop.f32.mrb[16].mxu0  ;;  %v3837_v1 = vadd.f32 %v5388_v35, %v5396_v39 }
 0x1fc   : > { %v3812_v5 = vadd.f32 %v3811_v15, %v2862_v4  ;;  %v2864_v29 = vpop.f32.mrb[17].mxu0  ;;  %v3839_v15 = vadd.f32 %v5390_v36, %v5392_v37  ;;  %v3841_v4 = vadd.f32 %v5394_v38, %v5396_v39 }
 0x1fd   : > { %3244 = vst [vmem:[%s5406_s20 + $0x38] sm:$0xff] %v3722_v16  ;;  %v3814_v31 = vadd.f32 %v3813_v3, %v2864_v29  ;;  %v2866_v32 = vpop.f32.mrb[18].mxu0 }
 0x1fe   : > { %v2997_v7 = vmax.f32 %v3812_v5, 0.0  ;;  %v3816_v17 = vadd.f32 %v3815_v25, %v2866_v32  ;;  %v2868_v33 = vpop.f32.mrb[19].mxu0 }
 0x1ff   : > { %v2998_v18 = vmax.f32 %v3814_v31, 0.0  ;;  %v3818_v8 = vadd.f32 %v3817_v6, %v2868_v33 }
 0x200   : > { %v2999_v40 = vmax.f32 %v3816_v17, 0.0 }
 0x201   : > { %v3723_v41 = vpack.c.bf16 %v2998_v18, %v2997_v7  ;;  %v3000_v42 = vmax.f32 %v3818_v8, 0.0 }
 0x203   : > { %3245 = vst [vmem:[%s5406_s20 + $0x40] sm:$0xff] %v3723_v41  ;;  %v3724_v20 = vpack.c.bf16 %v3000_v42, %v2999_v40  ;;  %v2872_v44 = vpop.f32.mrb[20].mxu0 }
 0x204   : > { %v3820_v46 = vadd.f32 %v3819_v19, %v2872_v44  ;;  %v2874_v47 = vpop.f32.mrb[21].mxu0 }
 0x205   : > { %3246 = vst [vmem:[%s5406_s20 + $0x48] sm:$0xff] %v3724_v20  ;;  %v3822_v48 = vadd.f32 %v3821_v43, %v2874_v47  ;;  %v2876_v10 = vpop.f32.mrb[22].mxu0 }
 0x206   : > { %v3001_v49 = vmax.f32 %v3820_v46, 0.0  ;;  %v3824_v21 = vadd.f32 %v3823_v45, %v2876_v10  ;;  %v2878_v50 = vpop.f32.mrb[23].mxu0 }
 0x207   : > { %v3002_v22 = vmax.f32 %v3822_v48, 0.0  ;;  %v3826_v51 = vadd.f32 %v3825_v9, %v2878_v50 }
 0x208   : > { %v3003_v52 = vmax.f32 %v3824_v21, 0.0 }
 0x209   : > { %v3725_v11 = vpack.c.bf16 %v3002_v22, %v3001_v49  ;;  %v3004_v53 = vmax.f32 %v3826_v51, 0.0 }
 0x20b   : > { %3247 = vst [vmem:[%s5406_s20 + $0x50] sm:$0xff] %v3725_v11  ;;  %v3726_v24 = vpack.c.bf16 %v3004_v53, %v3003_v52  ;;  %v2882_v54 = vpop.f32.mrb[24].mxu0 }
 0x20c   : > { %v3828_v56 = vadd.f32 %v3827_v23, %v2882_v54  ;;  %v2884_v57 = vpop.f32.mrb[25].mxu0 }
 0x20d   : > { %3248 = vst [vmem:[%s5406_s20 + $0x58] sm:$0xff] %v3726_v24  ;;  %v3830_v59 = vadd.f32 %v3829_v12, %v2884_v57  ;;  %v2886_v60 = vpop.f32.mrb[26].mxu0 }
 0x20e   : > { %v3005_v61 = vmax.f32 %v3828_v56, 0.0  ;;  %v3832_v26 = vadd.f32 %v3831_v55, %v2886_v60  ;;  %v2888_v13 = vpop.f32.mrb[27].mxu0 }
 0x20f   : > { %v3006_v27 = vmax.f32 %v3830_v59, 0.0  ;;  %v3834_v62 = vadd.f32 %v3833_v58, %v2888_v13 }
 0x210   : > { %v3007_v14 = vmax.f32 %v3832_v26, 0.0 }
 0x211   : > { %v3727_v63 = vpack.c.bf16 %v3006_v27, %v3005_v61  ;;  %v3008_v0 = vmax.f32 %v3834_v62, 0.0 }
 0x213   : > { %3249 = vst [vmem:[%s5406_s20 + $0x60] sm:$0xff] %v3727_v63  ;;  %v3728_v30 = vpack.c.bf16 %v3008_v0, %v3007_v14  ;;  %v2892_v2 = vpop.f32.mrb[28].mxu0 }
 0x214   : > { %v3836_v3 = vadd.f32 %v3835_v28, %v2892_v2  ;;  %v2894_v16 = vpop.f32.mrb[29].mxu0 }
 0x215   : > { %3250 = vst [vmem:[%s5406_s20 + $0x68] sm:$0xff] %v3728_v30  ;;  %v3838_v25 = vadd.f32 %v3837_v1, %v2894_v16  ;;  %v2896_v5 = vpop.f32.mrb[30].mxu0 }
 0x216   : > { %v3009_v34 = vmax.f32 %v3836_v3, 0.0  ;;  %v3840_v29 = vadd.f32 %v3839_v15, %v2896_v5  ;;  %v2898_v6 = vpop.f32.mrb[31].mxu0 }
 0x217   : > { %v3010_v35 = vmax.f32 %v3838_v25, 0.0  ;;  %v3842_v31 = vadd.f32 %v3841_v4, %v2898_v6 }
 0x218   : > { %v3011_v32 = vmax.f32 %v3840_v29, 0.0 }
 0x219   : > { %v3729_v7 = vpack.c.bf16 %v3010_v35, %v3009_v34  ;;  %v3012_v17 = vmax.f32 %v3842_v31, 0.0 }
 0x21a   : > { %v2516_v36 = vpop.f32.mrb[32].mxu1 }
 0x21b   : > { %3251 = vst [vmem:[%s5406_s20 + $0x70] sm:$0xff] %v3729_v7  ;;  %v3730_v33 = vpack.c.bf16 %v3012_v17, %v3011_v32  ;;  %v2902_v18 = vpop.f32.mrb[32].mxu0  ;;  %v3843_v8 = vadd.f32 %v2516_v36, %v5392_v37  ;;  %v2518_v40 = vpop.f32.mrb[33].mxu1 }
 0x21c   : > { %v2904_v38 = vpop.f32.mrb[33].mxu0  ;;  %v3845_v41 = vadd.f32 %v2518_v40, %v5396_v39  ;;  %v2520_v42 = vpop.f32.mrb[34].mxu1 }
 0x21d   : > { %3252 = vst [vmem:[%s5406_s20 + $0x78] sm:$0xff] %v3730_v33  ;;  %v2906_v19 = vpop.f32.mrb[34].mxu0  ;;  %v3844_v43 = vadd.f32 %v3843_v8, %v2902_v18  ;;  %v3847_v20 = vadd.f32 %v2520_v42, %v5392_v37  ;;  %v2522_v44 = vpop.f32.mrb[35].mxu1 }
 0x21e   : > { %v2908_v45 = vpop.f32.mrb[35].mxu0  ;;  %v3846_v46 = vadd.f32 %v3845_v41, %v2904_v38  ;;  %v3849_v47 = vadd.f32 %v2522_v44, %v5396_v39 }
 0x21f   : > { %v3013_v9 = vmax.f32 %v3844_v43, 0.0  ;;  %v3848_v48 = vadd.f32 %v3847_v20, %v2906_v19 }
 0x220   : > { %v3014_v10 = vmax.f32 %v3846_v46, 0.0  ;;  %v3850_v49 = vadd.f32 %v3849_v47, %v2908_v45 }
 0x221   : > { %v3015_v21 = vmax.f32 %v3848_v48, 0.0 }
 0x222   : > { %v3731_v50 = vpack.c.bf16 %v3014_v10, %v3013_v9  ;;  %v3016_v22 = vmax.f32 %v3850_v49, 0.0  ;;  %v2526_v51 = vpop.f32.mrb[36].mxu1 }
 0x223   : > { %v2912_v52 = vpop.f32.mrb[36].mxu0  ;;  %v3851_v11 = vadd.f32 %v2526_v51, %v5392_v37  ;;  %v2528_v53 = vpop.f32.mrb[37].mxu1 }
 0x224   : > { %v2914_v23 = vpop.f32.mrb[37].mxu0  ;;  %3253 = vst [vmem:[%s5406_s20 + $0x80] sm:$0xff] %v3731_v50  ;;  %v3732_v12 = vpack.c.bf16 %v3016_v22, %v3015_v21  ;;  %v3853_v24 = vadd.f32 %v2528_v53, %v5396_v39  ;;  %v2530_v54 = vpop.f32.mrb[38].mxu1 }
 0x225   : > { %v2916_v55 = vpop.f32.mrb[38].mxu0  ;;  %v3852_v56 = vadd.f32 %v3851_v11, %v2912_v52  ;;  %v3855_v57 = vadd.f32 %v2530_v54, %v5392_v37  ;;  %v2532_v58 = vpop.f32.mrb[39].mxu1 }
 0x226   : > { %v2918_v59 = vpop.f32.mrb[39].mxu0  ;;  %3254 = vst [vmem:[%s5406_s20 + $0x88] sm:$0xff] %v3732_v12  ;;  %v3854_v60 = vadd.f32 %v3853_v24, %v2914_v23  ;;  %v3857_v61 = vadd.f32 %v2532_v58, %v5396_v39 }
 0x227   : > { %v3017_v26 = vmax.f32 %v3852_v56, 0.0  ;;  %v3856_v13 = vadd.f32 %v3855_v57, %v2916_v55 }
 0x228   : > { %v3018_v27 = vmax.f32 %v3854_v60, 0.0  ;;  %v3858_v62 = vadd.f32 %v3857_v61, %v2918_v59 }
 0x229   : > { %v3019_v14 = vmax.f32 %v3856_v13, 0.0 }
 0x22a   : > { %v3733_v63 = vpack.c.bf16 %v3018_v27, %v3017_v26  ;;  %v3020_v0 = vmax.f32 %v3858_v62, 0.0  ;;  %v2536_v28 = vpop.f32.mrb[40].mxu1 }
 0x22b   : > { %v2922_v1 = vpop.f32.mrb[40].mxu0  ;;  %v3859_v30 = vadd.f32 %v2536_v28, %v5392_v37  ;;  %v2538_v2 = vpop.f32.mrb[41].mxu1 }
 0x22c   : > { %v2924_v15 = vpop.f32.mrb[41].mxu0  ;;  %3255 = vst [vmem:[%s5406_s20 + $0x90] sm:$0xff] %v3733_v63  ;;  %v3734_v3 = vpack.c.bf16 %v3020_v0, %v3019_v14  ;;  %v3861_v16 = vadd.f32 %v2538_v2, %v5396_v39  ;;  %v2540_v4 = vpop.f32.mrb[42].mxu1 }
 0x22d   : > { %v2926_v25 = vpop.f32.mrb[42].mxu0  ;;  %v3860_v5 = vadd.f32 %v3859_v30, %v2922_v1  ;;  %v3863_v34 = vadd.f32 %v2540_v4, %v5392_v37  ;;  %v2542_v29 = vpop.f32.mrb[43].mxu1 }
 0x22e   : > { %v2928_v6 = vpop.f32.mrb[43].mxu0  ;;  %3256 = vst [vmem:[%s5406_s20 + $0x98] sm:$0xff] %v3734_v3  ;;  %v3862_v35 = vadd.f32 %v3861_v16, %v2924_v15  ;;  %v3865_v31 = vadd.f32 %v2542_v29, %v5396_v39 }
 0x22f   : > { %v3021_v32 = vmax.f32 %v3860_v5, 0.0  ;;  %v3864_v7 = vadd.f32 %v3863_v34, %v2926_v25 }
 0x230   : > { %v3022_v17 = vmax.f32 %v3862_v35, 0.0  ;;  %v3866_v33 = vadd.f32 %v3865_v31, %v2928_v6 }
 0x231   : > { %v3023_v36 = vmax.f32 %v3864_v7, 0.0 }
 0x232   : > { %v3735_v18 = vpack.c.bf16 %v3022_v17, %v3021_v32  ;;  %v3024_v8 = vmax.f32 %v3866_v33, 0.0  ;;  %v2546_v40 = vpop.f32.mrb[44].mxu1 }
 0x233   : > { %v2932_v38 = vpop.f32.mrb[44].mxu0  ;;  %v3867_v41 = vadd.f32 %v2546_v40, %v5392_v37  ;;  %v2548_v42 = vpop.f32.mrb[45].mxu1 }
 0x234   : > { %v2934_v19 = vpop.f32.mrb[45].mxu0  ;;  %3257 = vst [vmem:[%s5406_s20 + $0xa0] sm:$0xff] %v3735_v18  ;;  %v3736_v43 = vpack.c.bf16 %v3024_v8, %v3023_v36  ;;  %v3869_v20 = vadd.f32 %v2548_v42, %v5396_v39  ;;  %v2550_v44 = vpop.f32.mrb[46].mxu1 }
 0x235   : > { %v2936_v45 = vpop.f32.mrb[46].mxu0  ;;  %v3868_v46 = vadd.f32 %v3867_v41, %v2932_v38  ;;  %v3871_v47 = vadd.f32 %v2550_v44, %v5392_v37  ;;  %v2552_v9 = vpop.f32.mrb[47].mxu1 }
 0x236   : > { %v2938_v48 = vpop.f32.mrb[47].mxu0  ;;  %3258 = vst [vmem:[%s5406_s20 + $0xa8] sm:$0xff] %v3736_v43  ;;  %v3870_v10 = vadd.f32 %v3869_v20, %v2934_v19  ;;  %v3873_v49 = vadd.f32 %v2552_v9, %v5396_v39 }
 0x237   : > { %v3025_v21 = vmax.f32 %v3868_v46, 0.0  ;;  %v3872_v50 = vadd.f32 %v3871_v47, %v2936_v45 }
 0x238   : > { %v3026_v22 = vmax.f32 %v3870_v10, 0.0  ;;  %v3874_v51 = vadd.f32 %v3873_v49, %v2938_v48 }
 0x239   : > { %v3027_v52 = vmax.f32 %v3872_v50, 0.0 }
 0x23a   : > { %v3737_v11 = vpack.c.bf16 %v3026_v22, %v3025_v21  ;;  %v3028_v53 = vmax.f32 %v3874_v51, 0.0  ;;  %v2556_v23 = vpop.f32.mrb[48].mxu1 }
 0x23b   : > { %v2942_v12 = vpop.f32.mrb[48].mxu0  ;;  %v3875_v24 = vadd.f32 %v2556_v23, %v5392_v37  ;;  %v2558_v54 = vpop.f32.mrb[49].mxu1 }
 0x23c   : > { %v2944_v55 = vpop.f32.mrb[49].mxu0  ;;  %3259 = vst [vmem:[%s5406_s20 + $0xb0] sm:$0xff] %v3737_v11  ;;  %v3738_v56 = vpack.c.bf16 %v3028_v53, %v3027_v52  ;;  %v3877_v57 = vadd.f32 %v2558_v54, %v5396_v39  ;;  %v2560_v58 = vpop.f32.mrb[50].mxu1 }
 0x23d   : > { %v2946_v59 = vpop.f32.mrb[50].mxu0  ;;  %v3876_v60 = vadd.f32 %v3875_v24, %v2942_v12  ;;  %v3879_v61 = vadd.f32 %v2560_v58, %v5392_v37  ;;  %v2562_v26 = vpop.f32.mrb[51].mxu1 }
 0x23e   : > { %v2948_v13 = vpop.f32.mrb[51].mxu0  ;;  %3260 = vst [vmem:[%s5406_s20 + $0xb8] sm:$0xff] %v3738_v56  ;;  %v3878_v27 = vadd.f32 %v3877_v57, %v2944_v55  ;;  %v3881_v62 = vadd.f32 %v2562_v26, %v5396_v39 }
 0x23f   : > { %v3029_v14 = vmax.f32 %v3876_v60, 0.0  ;;  %v3880_v63 = vadd.f32 %v3879_v61, %v2946_v59 }
 0x240   : > { %v3030_v0 = vmax.f32 %v3878_v27, 0.0  ;;  %v3882_v28 = vadd.f32 %v3881_v62, %v2948_v13 }
 0x241   : > { %v3031_v1 = vmax.f32 %v3880_v63, 0.0 }
 0x242   : > { %v3739_v30 = vpack.c.bf16 %v3030_v0, %v3029_v14  ;;  %v3032_v2 = vmax.f32 %v3882_v28, 0.0  ;;  %v2566_v15 = vpop.f32.mrb[52].mxu1 }
 0x243   : > { %v2952_v3 = vpop.f32.mrb[52].mxu0  ;;  %v3883_v16 = vadd.f32 %v2566_v15, %v5392_v37  ;;  %v2568_v4 = vpop.f32.mrb[53].mxu1 }
 0x244   : > { %v2954_v25 = vpop.f32.mrb[53].mxu0  ;;  %3261 = vst [vmem:[%s5406_s20 + $0xc0] sm:$0xff] %v3739_v30  ;;  %v3740_v5 = vpack.c.bf16 %v3032_v2, %v3031_v1  ;;  %v3885_v34 = vadd.f32 %v2568_v4, %v5396_v39  ;;  %v2570_v29 = vpop.f32.mrb[54].mxu1 }
 0x245   : > { %v2956_v6 = vpop.f32.mrb[54].mxu0  ;;  %v3884_v35 = vadd.f32 %v3883_v16, %v2952_v3  ;;  %v3887_v31 = vadd.f32 %v2570_v29, %v5392_v37  ;;  %v2572_v32 = vpop.f32.mrb[55].mxu1 }
 0x246   : > { %v2958_v7 = vpop.f32.mrb[55].mxu0  ;;  %3262 = vst [vmem:[%s5406_s20 + $0xc8] sm:$0xff] %v3740_v5  ;;  %v3886_v17 = vadd.f32 %v3885_v34, %v2954_v25  ;;  %v3889_v33 = vadd.f32 %v2572_v32, %v5396_v39 }
 0x247   : > { %v3033_v36 = vmax.f32 %v3884_v35, 0.0  ;;  %v3888_v18 = vadd.f32 %v3887_v31, %v2956_v6 }
 0x248   : > { %v3034_v8 = vmax.f32 %v3886_v17, 0.0  ;;  %v3890_v40 = vadd.f32 %v3889_v33, %v2958_v7 }
 0x249   : > { %v3035_v38 = vmax.f32 %v3888_v18, 0.0 }
 0x24a   : > { %v3741_v41 = vpack.c.bf16 %v3034_v8, %v3033_v36  ;;  %v3036_v42 = vmax.f32 %v3890_v40, 0.0  ;;  %v2576_v19 = vpop.f32.mrb[56].mxu1 }
 0x24b   : > { %v2962_v43 = vpop.f32.mrb[56].mxu0  ;;  %v3891_v20 = vadd.f32 %v2576_v19, %v5392_v37  ;;  %v2578_v44 = vpop.f32.mrb[57].mxu1 }
 0x24c   : > { %v2964_v45 = vpop.f32.mrb[57].mxu0  ;;  %3263 = vst [vmem:[%s5406_s20 + $0xd0] sm:$0xff] %v3741_v41  ;;  %v3742_v46 = vpack.c.bf16 %v3036_v42, %v3035_v38  ;;  %v3893_v47 = vadd.f32 %v2578_v44, %v5396_v39  ;;  %v2580_v9 = vpop.f32.mrb[58].mxu1 }
 0x24d   : > { %v2966_v48 = vpop.f32.mrb[58].mxu0  ;;  %v3892_v10 = vadd.f32 %v3891_v20, %v2962_v43  ;;  %v3895_v49 = vadd.f32 %v2580_v9, %v5392_v37  ;;  %v2582_v21 = vpop.f32.mrb[59].mxu1 }
 0x24e   : > { %v2968_v50 = vpop.f32.mrb[59].mxu0  ;;  %3264 = vst [vmem:[%s5406_s20 + $0xd8] sm:$0xff] %v3742_v46  ;;  %v3894_v22 = vadd.f32 %v3893_v47, %v2964_v45  ;;  %v3897_v51 = vadd.f32 %v2582_v21, %v5396_v39 }
 0x24f   : > { %v3037_v52 = vmax.f32 %v3892_v10, 0.0  ;;  %v3896_v11 = vadd.f32 %v3895_v49, %v2966_v48 }
 0x250   : > { %v3038_v53 = vmax.f32 %v3894_v22, 0.0  ;;  %v3898_v23 = vadd.f32 %v3897_v51, %v2968_v50 }
 0x251   : > { %v3039_v12 = vmax.f32 %v3896_v11, 0.0 }
 0x252   : > { %v3743_v24 = vpack.c.bf16 %v3038_v53, %v3037_v52  ;;  %v3040_v54 = vmax.f32 %v3898_v23, 0.0  ;;  %v2586_v55 = vpop.f32.mrb[60].mxu1 }
 0x253   : > { %v2972_v56 = vpop.f32.mrb[60].mxu0  ;;  %v3899_v57 = vadd.f32 %v2586_v55, %v5392_v37  ;;  %v2588_v58 = vpop.f32.mrb[61].mxu1 }
 0x254   : > { %v2974_v59 = vpop.f32.mrb[61].mxu0  ;;  %3265 = vst [vmem:[%s5406_s20 + $0xe0] sm:$0xff] %v3743_v24  ;;  %v3744_v60 = vpack.c.bf16 %v3040_v54, %v3039_v12  ;;  %v3901_v61 = vadd.f32 %v2588_v58, %v5396_v39  ;;  %v2590_v26 = vpop.f32.mrb[62].mxu1 }
 0x255   : > { %v2976_v13 = vpop.f32.mrb[62].mxu0  ;;  %v3900_v27 = vadd.f32 %v3899_v57, %v2972_v56  ;;  %v3903_v62 = vadd.f32 %v2590_v26, %v5392_v37  ;;  %v2592_v14 = vpop.f32.mrb[63].mxu1 }
 0x256   : > { %v2978_v63 = vpop.f32.mrb[63].mxu0  ;;  %3266 = vst [vmem:[%s5406_s20 + $0xe8] sm:$0xff] %v3744_v60  ;;  %v3902_v0 = vadd.f32 %v3901_v61, %v2974_v59  ;;  %v3905_v28 = vadd.f32 %v2592_v14, %v5396_v39 }
 0x257   : > { %v3041_v1 = vmax.f32 %v3900_v27, 0.0  ;;  %v3904_v30 = vadd.f32 %v3903_v62, %v2976_v13 }
 0x258   : > { %v3042_v2 = vmax.f32 %v3902_v0, 0.0  ;;  %v3906_v15 = vadd.f32 %v3905_v28, %v2978_v63 }
 0x259   : > { %v3043_v3 = vmax.f32 %v3904_v30, 0.0 }
 0x25a   : > { %v3745_v16 = vpack.c.bf16 %v3042_v2, %v3041_v1  ;;  %v3044_v4 = vmax.f32 %v3906_v15, 0.0 }
 0x25c   : > { %3267 = vst [vmem:[%s5406_s20 + $0xf0] sm:$0xff] %v3745_v16  ;;  %v3746_v25 = vpack.c.bf16 %v3044_v4, %v3043_v3 }
 0x25e   : > { %3268 = vst [vmem:[%s5406_s20 + $0xf8] sm:$0xff] %v3746_v25 }
 0x25f PF: > { %s13_s14 = sadd.s32 1, %s4603_s14   ;;  %s5537_s12 = smov %s4599_s13 }
 0x260   : > { %p10_p5 = scmp.ge.s32.totalorder %s13_s14, 4   ;;  %s5538_s13 = smov %s5540_s15 }
 0x262   :  { %12 = sbr.rel (!%p10_p5) target bundleno = 2 (0x2), region = 68 }

// kernel: net_forward.9
= control target key start
LH: loop header
LB: loop body
LE: loop exit
PB: predicated region body
PF: predicated region fallthrough
CT: control target
= control target key end

     0   :  { %s8300_s18 = smov 0   ;;  %s8302_s19 = smov 0   ;;  %s9151_s0 = inlined_call_operand.vmem [shape: bf16[16,16384], index: 0, kind: input, shape index: {}]   ;;  %s9152_s1 = inlined_call_operand.vmem [shape: bf16[16384,128], index: 1, kind: input, shape index: {}]   ;;  %s9153_s2 = inlined_call_operand.vmem [shape: f32[1,128], index: 2, kind: input, shape index: {}]   ;;  %s9154_s3 = inlined_call_operand.vmem [shape: bf16[128,128], index: 3, kind: input, shape index: {}]   ;;  %s9155_s4 = inlined_call_operand.vmem [shape: f32[1,128], index: 4, kind: input, shape index: {}]   ;;  %s9156_s5 = inlined_call_operand.vmem [shape: f32[16,128], index: 5, kind: output, shape index: {}]  }
   0x1   :  { %s8304_s20 = smov 0  }
   0x2 LB: > { %s8316_s21 = sadd.s32 4294967295, %s8265_s20   ;;  %s8319_s22 = sadd.s32 1, %s8265_s20   ;;  %s8265_s20 = sphi %s8304_s20, %s9159_s20   ;;  %s8261_s19 = sphi %s8302_s19, %s9158_s19   ;;  %s8257_s18 = sphi %s8300_s18, %s9157_s18  }
   0x3   : > { %s19_s23 = ssub.s32 %s8265_s20, %s8319_s22  ;;  %s22_s24 = sadd.s32 1, %s8261_s19 }
   0x4   : > { %p20_p0 = scmp.eq.s32.totalorder %s19_s23, 0  ;;  %p29_p1 = scmp.ne.s32.totalorder %s8261_s19, %s8257_s18 }
   0x5   : > { %p30_p2 = scmp.eq.s32.totalorder %s8265_s20, 0  ;;  %p6364_p4 = scmp.ge.s32.totalorder %s8265_s20, 2 }
   0x6   : > { %s8328_s25 = scalar_select %p20_p0, %s8261_s19, %s22_s24  }
   0x7   : > { %p31_p3 = por %p30_p2, %p29_p1  ;;  %174 = sbr.rel (%p6364_p4) target bundleno = 50 (0x32), region = 28 }
   0xe   : > { %177 = sbr.rel (!%p31_p3) target bundleno = 50 (0x32), region = 32  ;;  %s179_s26 = sand.u32 (%p31_p3), 1, %s8261_s19  }
   0xf   : > { %s6962_s27 = sshll.u32 (%p31_p3), %s8265_s20, 8  ;;  %s6365_s28 = sshll.u32 (%p31_p3), %s179_s26, 9 }
  0x10   : > { %s8336_s6 = scalar_lea.vmem (%p31_p3), %s9151_s0, %s6962_s27  ;;  %s8341_s7 = scalar_lea.vmem (%p31_p3), [#allocation3], %s6365_s28 }
  0x11   : > { %v197_v0 = vld [vmem:[%s8336_s6] sm:$0xff] (%p31_p3)  ;;  %v199_v1 = vld [vmem:[%s8336_s6 + $0x8] sm:$0xff] (%p31_p3)  ;;  %v201_v2 = vld [vmem:[%s8336_s6 + $0x10] sm:$0xff] (%p31_p3) }
  0x12   : > { %198 = vst [vmem:[%s8341_s7] sm:$0xff] (%p31_p3), %v197_v0  ;;  %200 = vst [vmem:[%s8341_s7 + $0x8] sm:$0xff] (%p31_p3), %v199_v1  ;;  %v203_v3 = vld [vmem:[%s8336_s6 + $0x18] sm:$0xff] (%p31_p3)  ;;  %v205_v4 = vld [vmem:[%s8336_s6 + $0x20] sm:$0xff] (%p31_p3) }
  0x13   : > { %202 = vst [vmem:[%s8341_s7 + $0x10] sm:$0xff] (%p31_p3), %v201_v2  ;;  %v207_v5 = vld [vmem:[%s8336_s6 + $0x28] sm:$0xff] (%p31_p3)  ;;  %204 = vst [vmem:[%s8341_s7 + $0x18] sm:$0xff] (%p31_p3), %v203_v3  ;;  %v209_v6 = vld [vmem:[%s8336_s6 + $0x30] sm:$0xff] (%p31_p3) }
  0x14   : > { %206 = vst [vmem:[%s8341_s7 + $0x20] sm:$0xff] (%p31_p3), %v205_v4  ;;  %208 = vst [vmem:[%s8341_s7 + $0x28] sm:$0xff] (%p31_p3), %v207_v5  ;;  %v211_v7 = vld [vmem:[%s8336_s6 + $0x38] sm:$0xff] (%p31_p3)  ;;  %v213_v8 = vld [vmem:[%s8336_s6 + $0x40] sm:$0xff] (%p31_p3) }
  0x15   : > { %210 = vst [vmem:[%s8341_s7 + $0x30] sm:$0xff] %v209_v6  ;;  %212 = vst [vmem:[%s8341_s7 + $0x38] sm:$0xff] %v211_v7  ;;  %v215_v9 = vld [vmem:[%s8336_s6 + $0x48] sm:$0xff]  ;;  %v217_v10 = vld [vmem:[%s8336_s6 + $0x50] sm:$0xff] }
  0x16   : > { %214 = vst [vmem:[%s8341_s7 + $0x40] sm:$0xff] %v213_v8  ;;  %v219_v11 = vld [vmem:[%s8336_s6 + $0x58] sm:$0xff]  ;;  %216 = vst [vmem:[%s8341_s7 + $0x48] sm:$0xff] %v215_v9  ;;  %v221_v12 = vld [vmem:[%s8336_s6 + $0x60] sm:$0xff] }
  0x17   : > { %218 = vst [vmem:[%s8341_s7 + $0x50] sm:$0xff] %v217_v10  ;;  %220 = vst [vmem:[%s8341_s7 + $0x58] sm:$0xff] %v219_v11  ;;  %v223_v13 = vld [vmem:[%s8336_s6 + $0x68] sm:$0xff]  ;;  %v225_v14 = vld [vmem:[%s8336_s6 + $0x70] sm:$0xff] }
  0x18   : > { %222 = vst [vmem:[%s8341_s7 + $0x60] sm:$0xff] %v221_v12  ;;  %224 = vst [vmem:[%s8341_s7 + $0x68] sm:$0xff] %v223_v13  ;;  %v227_v15 = vld [vmem:[%s8336_s6 + $0x78] sm:$0xff]  ;;  %v229_v16 = vld [vmem:[%s8336_s6 + $0x80] sm:$0xff] }
  0x19   : > { %226 = vst [vmem:[%s8341_s7 + $0x70] sm:$0xff] %v225_v14  ;;  %v231_v17 = vld [vmem:[%s8336_s6 + $0x88] sm:$0xff]  ;;  %228 = vst [vmem:[%s8341_s7 + $0x78] sm:$0xff] %v227_v15  ;;  %v233_v18 = vld [vmem:[%s8336_s6 + $0x90] sm:$0xff] }
  0x1a   : > { %230 = vst [vmem:[%s8341_s7 + $0x80] sm:$0xff] %v229_v16  ;;  %232 = vst [vmem:[%s8341_s7 + $0x88] sm:$0xff] %v231_v17  ;;  %v235_v19 = vld [vmem:[%s8336_s6 + $0x98] sm:$0xff]  ;;  %v237_v20 = vld [vmem:[%s8336_s6 + $0xa0] sm:$0xff] }
  0x1b   : > { %234 = vst [vmem:[%s8341_s7 + $0x90] sm:$0xff] %v233_v18  ;;  %236 = vst [vmem:[%s8341_s7 + $0x98] sm:$0xff] %v235_v19  ;;  %v239_v21 = vld [vmem:[%s8336_s6 + $0xa8] sm:$0xff]  ;;  %v241_v22 = vld [vmem:[%s8336_s6 + $0xb0] sm:$0xff] }
  0x1c   : > { %238 = vst [vmem:[%s8341_s7 + $0xa0] sm:$0xff] %v237_v20  ;;  %v243_v23 = vld [vmem:[%s8336_s6 + $0xb8] sm:$0xff]  ;;  %240 = vst [vmem:[%s8341_s7 + $0xa8] sm:$0xff] %v239_v21  ;;  %v245_v24 = vld [vmem:[%s8336_s6 + $0xc0] sm:$0xff] }
  0x1d   : > { %242 = vst [vmem:[%s8341_s7 + $0xb0] sm:$0xff] %v241_v22  ;;  %244 = vst [vmem:[%s8341_s7 + $0xb8] sm:$0xff] %v243_v23  ;;  %v247_v25 = vld [vmem:[%s8336_s6 + $0xc8] sm:$0xff]  ;;  %v249_v26 = vld [vmem:[%s8336_s6 + $0xd0] sm:$0xff] }
  0x1e   : > { %246 = vst [vmem:[%s8341_s7 + $0xc0] sm:$0xff] %v245_v24  ;;  %248 = vst [vmem:[%s8341_s7 + $0xc8] sm:$0xff] %v247_v25  ;;  %v251_v27 = vld [vmem:[%s8336_s6 + $0xd8] sm:$0xff]  ;;  %v253_v28 = vld [vmem:[%s8336_s6 + $0xe0] sm:$0xff] }
  0x1f   : > { %250 = vst [vmem:[%s8341_s7 + $0xd0] sm:$0xff] %v249_v26  ;;  %v255_v29 = vld [vmem:[%s8336_s6 + $0xe8] sm:$0xff]  ;;  %252 = vst [vmem:[%s8341_s7 + $0xd8] sm:$0xff] %v251_v27  ;;  %v257_v30 = vld [vmem:[%s8336_s6 + $0xf0] sm:$0xff] }
  0x20   : > { %254 = vst [vmem:[%s8341_s7 + $0xe0] sm:$0xff] %v253_v28  ;;  %256 = vst [vmem:[%s8341_s7 + $0xe8] sm:$0xff] %v255_v29  ;;  %v259_v31 = vld [vmem:[%s8336_s6 + $0xf8] sm:$0xff]  ;;  %v261_v32 = vld [vmem:[%s8336_s6 + $0x200] sm:$0xff] }
  0x21   : > { %258 = vst [vmem:[%s8341_s7 + $0xf0] sm:$0xff] %v257_v30  ;;  %260 = vst [vmem:[%s8341_s7 + $0xf8] sm:$0xff] %v259_v31  ;;  %v263_v33 = vld [vmem:[%s8336_s6 + $0x208] sm:$0xff]  ;;  %v265_v34 = vld [vmem:[%s8336_s6 + $0x210] sm:$0xff] }
  0x22   : > { %262 = vst [vmem:[%s8341_s7 + $0x100] sm:$0xff] %v261_v32  ;;  %v267_v35 = vld [vmem:[%s8336_s6 + $0x218] sm:$0xff]  ;;  %264 = vst [vmem:[%s8341_s7 + $0x108] sm:$0xff] %v263_v33  ;;  %v269_v36 = vld [vmem:[%s8336_s6 + $0x220] sm:$0xff] }
  0x23   : > { %266 = vst [vmem:[%s8341_s7 + $0x110] sm:$0xff] %v265_v34  ;;  %268 = vst [vmem:[%s8341_s7 + $0x118] sm:$0xff] %v267_v35  ;;  %v271_v37 = vld [vmem:[%s8336_s6 + $0x228] sm:$0xff]  ;;  %v273_v38 = vld [vmem:[%s8336_s6 + $0x230] sm:$0xff] }
  0x24   : > { %270 = vst [vmem:[%s8341_s7 + $0x120] sm:$0xff] %v269_v36  ;;  %272 = vst [vmem:[%s8341_s7 + $0x128] sm:$0xff] %v271_v37  ;;  %v275_v39 = vld [vmem:[%s8336_s6 + $0x238] sm:$0xff]  ;;  %v277_v40 = vld [vmem:[%s8336_s6 + $0x240] sm:$0xff] }
  0x25   : > { %274 = vst [vmem:[%s8341_s7 + $0x130] sm:$0xff] %v273_v38  ;;  %v279_v41 = vld [vmem:[%s8336_s6 + $0x248] sm:$0xff]  ;;  %276 = vst [vmem:[%s8341_s7 + $0x138] sm:$0xff] %v275_v39  ;;  %v281_v42 = vld [vmem:[%s8336_s6 + $0x250] sm:$0xff] }
  0x26   : > { %278 = vst [vmem:[%s8341_s7 + $0x140] sm:$0xff] %v277_v40  ;;  %280 = vst [vmem:[%s8341_s7 + $0x148] sm:$0xff] %v279_v41  ;;  %v283_v43 = vld [vmem:[%s8336_s6 + $0x258] sm:$0xff]  ;;  %v285_v44 = vld [vmem:[%s8336_s6 + $0x260] sm:$0xff] }
  0x27   : > { %282 = vst [vmem:[%s8341_s7 + $0x150] sm:$0xff] %v281_v42  ;;  %284 = vst [vmem:[%s8341_s7 + $0x158] sm:$0xff] %v283_v43  ;;  %v287_v45 = vld [vmem:[%s8336_s6 + $0x268] sm:$0xff]  ;;  %v289_v46 = vld [vmem:[%s8336_s6 + $0x270] sm:$0xff] }
  0x28   : > { %286 = vst [vmem:[%s8341_s7 + $0x160] sm:$0xff] %v285_v44  ;;  %v291_v47 = vld [vmem:[%s8336_s6 + $0x278] sm:$0xff]  ;;  %288 = vst [vmem:[%s8341_s7 + $0x168] sm:$0xff] %v287_v45  ;;  %v293_v48 = vld [vmem:[%s8336_s6 + $0x280] sm:$0xff] }
  0x29   : > { %290 = vst [vmem:[%s8341_s7 + $0x170] sm:$0xff] %v289_v46  ;;  %292 = vst [vmem:[%s8341_s7 + $0x178] sm:$0xff] %v291_v47  ;;  %v295_v49 = vld [vmem:[%s8336_s6 + $0x288] sm:$0xff]  ;;  %v297_v50 = vld [vmem:[%s8336_s6 + $0x290] sm:$0xff] }
  0x2a   : > { %294 = vst [vmem:[%s8341_s7 + $0x180] sm:$0xff] %v293_v48  ;;  %296 = vst [vmem:[%s8341_s7 + $0x188] sm:$0xff] %v295_v49  ;;  %v299_v51 = vld [vmem:[%s8336_s6 + $0x298] sm:$0xff]  ;;  %v301_v52 = vld [vmem:[%s8336_s6 + $0x2a0] sm:$0xff] }
  0x2b   : > { %298 = vst [vmem:[%s8341_s7 + $0x190] sm:$0xff] %v297_v50  ;;  %v303_v53 = vld [vmem:[%s8336_s6 + $0x2a8] sm:$0xff]  ;;  %300 = vst [vmem:[%s8341_s7 + $0x198] sm:$0xff] %v299_v51  ;;  %v305_v54 = vld [vmem:[%s8336_s6 + $0x2b0] sm:$0xff] }
  0x2c   : > { %302 = vst [vmem:[%s8341_s7 + $0x1a0] sm:$0xff] %v301_v52  ;;  %304 = vst [vmem:[%s8341_s7 + $0x1a8] sm:$0xff] %v303_v53  ;;  %v307_v55 = vld [vmem:[%s8336_s6 + $0x2b8] sm:$0xff]  ;;  %v309_v56 = vld [vmem:[%s8336_s6 + $0x2c0] sm:$0xff] }
  0x2d   : > { %306 = vst [vmem:[%s8341_s7 + $0x1b0] sm:$0xff] %v305_v54  ;;  %308 = vst [vmem:[%s8341_s7 + $0x1b8] sm:$0xff] %v307_v55  ;;  %v311_v57 = vld [vmem:[%s8336_s6 + $0x2c8] sm:$0xff]  ;;  %v313_v58 = vld [vmem:[%s8336_s6 + $0x2d0] sm:$0xff] }
  0x2e   : > { %310 = vst [vmem:[%s8341_s7 + $0x1c0] sm:$0xff] %v309_v56  ;;  %v315_v59 = vld [vmem:[%s8336_s6 + $0x2d8] sm:$0xff]  ;;  %312 = vst [vmem:[%s8341_s7 + $0x1c8] sm:$0xff] %v311_v57  ;;  %v317_v60 = vld [vmem:[%s8336_s6 + $0x2e0] sm:$0xff] }
  0x2f   : > { %314 = vst [vmem:[%s8341_s7 + $0x1d0] sm:$0xff] %v313_v58  ;;  %316 = vst [vmem:[%s8341_s7 + $0x1d8] sm:$0xff] %v315_v59  ;;  %v319_v61 = vld [vmem:[%s8336_s6 + $0x2e8] sm:$0xff]  ;;  %v321_v62 = vld [vmem:[%s8336_s6 + $0x2f0] sm:$0xff] }
  0x30   : > { %318 = vst [vmem:[%s8341_s7 + $0x1e0] sm:$0xff] %v317_v60  ;;  %320 = vst [vmem:[%s8341_s7 + $0x1e8] sm:$0xff] %v319_v61  ;;  %v323_v63 = vld [vmem:[%s8336_s6 + $0x2f8] sm:$0xff] }
  0x31   : > { %322 = vst [vmem:[%s8341_s7 + $0x1f0] sm:$0xff] %v321_v62  ;;  %324 = vst [vmem:[%s8341_s7 + $0x1f8] sm:$0xff] %v323_v63 }
  0x32 PF: > { %p6368_p5 = scmp.ge.s32.totalorder %s8265_s20, 1  ;;  %p338_p6 = scmp.lt.s32.totalorder %s8265_s20, 3 }
  0x34   : > { %p339_p7 = pnand %p6368_p5, %p338_p6 }
  0x35   : > { %s345_s8 = sand.u32 (!%p339_p7), 1, %s8257_s18   ;;  %s6370_s9 = sshll.u32 (!%p339_p7), %s8316_s21, 10 }
  0x36   : > { %342 = sbr.rel (%p339_p7) target bundleno = 1037 (0x40d), region = 59  ;;  %s6369_s10 = sshll.u32 (!%p339_p7), %s345_s8, 9 }
  0x37   : > { %p374_p8 = scmp.lt.s32.totalorder (!%p339_p7), %s6370_s9, 2047  ;;  %s8477_s15 = scalar_lea.vmem (!%p339_p7), [#allocation3], %s6369_s10 }
  0x38   : > { %p6372_p9 = scmp.ne.s32.totalorder (!%p339_p7), %s8316_s21, 0 }
  0x3d   : > { %s9161_s9 = smov (!%p374_p8, %s6370_s9), 2047  ;;  %383 = sbr.rel (%p6372_p9) target bundleno = 68 (0x44), region = 67 }
  0x3e   : > { %s6371_s11 = sshll.u32 %s9161_s9, 2  ;;  %v8267_v0 = vmov (!%p6372_p9), 0.0  }
  0x3f   : > { %s8475_s14 = scalar_lea.vmem %s9152_s1, %s6371_s11  ;;  %384 = vst [vmem:[#allocation2] sm:$0xff] (!%p6372_p9), %v8267_v0  ;;  %385 = vst [vmem:[#allocation2 + $0x8] sm:$0xff] (!%p6372_p9), %v8267_v0 }
  0x44 PF: > { %v7723_v1 = vld [vmem:[%s8475_s14 + $0x40] sm:$0xff]   ;;  %v7727_v5 = vld [vmem:[%s8475_s14 + $0x48] sm:$0xff]   ;;  %v7731_v9 = vld [vmem:[%s8475_s14 + $0x50] sm:$0xff]   ;;  %p6949_p10 = scmp.ne.s32.totalorder %s8316_s21, 1 }
  0x45   : > { %v7724_v2 = vld [vmem:[%s8475_s14 + $0xc0] sm:$0xff]   ;;  %6963 = vmatprep.subr.bf16.mxu0 %v7723_v1  ;;  %v7728_v6 = vld [vmem:[%s8475_s14 + $0xc8] sm:$0xff]   ;;  %v7732_v10 = vld [vmem:[%s8475_s14 + $0xd0] sm:$0xff]   ;;  %vm8269_vm0 = vmmov (!%p6949_p10), 0  }
  0x46   : > { %v7725_v3 = vld [vmem:[%s8475_s14] sm:$0xff]   ;;  %6985 = vmatprep.subr.bf16.mxu1 %v7724_v2  ;;  %v7729_v7 = vld [vmem:[%s8475_s14 + $0x8] sm:$0xff]   ;;  %v7733_v11 = vld [vmem:[%s8475_s14 + $0x10] sm:$0xff]  }
  0x47   : > { %v7726_v4 = vld [vmem:[%s8475_s14 + $0x80] sm:$0xff]   ;;  %6964 = vmatpush3.bf16.msra.mxu0 %v7725_v3  ;;  %v7730_v8 = vld [vmem:[%s8475_s14 + $0x88] sm:$0xff]   ;;  %v7734_v12 = vld [vmem:[%s8475_s14 + $0x90] sm:$0xff]  }
  0x48   : > { %6986 = vmatpush3.bf16.msra.mxu1 %v7726_v4  ;;  %6965 = vmatprep.subr.bf16.mxu0 %v7727_v5  ;;  %v7735_v13 = vld [vmem:[%s8475_s14 + $0x58] sm:$0xff]   ;;  %v7739_v17 = vld [vmem:[%s8475_s14 + $0x60] sm:$0xff]   ;;  %v7743_v21 = vld [vmem:[%s8475_s14 + $0x68] sm:$0xff]  }
  0x49   : > { %6987 = vmatprep.subr.bf16.mxu1 %v7728_v6  ;;  %v7736_v14 = vld [vmem:[%s8475_s14 + $0xd8] sm:$0xff]   ;;  %v7740_v18 = vld [vmem:[%s8475_s14 + $0xe0] sm:$0xff]   ;;  %v7744_v22 = vld [vmem:[%s8475_s14 + $0xe8] sm:$0xff]  }
  0x4a   : > { %v7737_v15 = vld [vmem:[%s8475_s14 + $0x18] sm:$0xff]   ;;  %v7741_v19 = vld [vmem:[%s8475_s14 + $0x20] sm:$0xff]   ;;  %v7745_v23 = vld [vmem:[%s8475_s14 + $0x28] sm:$0xff]  }
  0x4b   : > { %6966 = vmatpush3.bf16.msra.mxu0 %v7729_v7  ;;  %v7738_v16 = vld [vmem:[%s8475_s14 + $0x98] sm:$0xff]   ;;  %v7742_v20 = vld [vmem:[%s8475_s14 + $0xa0] sm:$0xff]   ;;  %v7746_v24 = vld [vmem:[%s8475_s14 + $0xa8] sm:$0xff]  }
  0x4c   : > { %6988 = vmatpush3.bf16.msra.mxu1 %v7730_v8  ;;  %6967 = vmatprep.subr.bf16.mxu0 %v7731_v9  ;;  %v7747_v25 = vld [vmem:[%s8475_s14 + $0x70] sm:$0xff]   ;;  %v7751_v29 = vld [vmem:[%s8475_s14 + $0x78] sm:$0xff]   ;;  %v7755_v41 = vld [vmem:[%s8475_s14 + $0x140] sm:$0xff]  }
  0x4d   : > { %6989 = vmatprep.subr.bf16.mxu1 %v7732_v10  ;;  %v7748_v26 = vld [vmem:[%s8475_s14 + $0xf0] sm:$0xff]   ;;  %v7752_v30 = vld [vmem:[%s8475_s14 + $0xf8] sm:$0xff]   ;;  %v7756_v42 = vld [vmem:[%s8475_s14 + $0x1c0] sm:$0xff]  }
  0x4e   : > { %v7749_v27 = vld [vmem:[%s8475_s14 + $0x30] sm:$0xff]   ;;  %v7753_v31 = vld [vmem:[%s8475_s14 + $0x38] sm:$0xff]   ;;  %v7757_v43 = vld [vmem:[%s8475_s14 + $0x100] sm:$0xff]  }
  0x4f   : > { %6968 = vmatpush3.bf16.msra.mxu0 %v7733_v11  ;;  %v7750_v28 = vld [vmem:[%s8475_s14 + $0xb0] sm:$0xff]   ;;  %v7754_v32 = vld [vmem:[%s8475_s14 + $0xb8] sm:$0xff]   ;;  %v7758_v44 = vld [vmem:[%s8475_s14 + $0x180] sm:$0xff]  }
  0x50   : > { %6990 = vmatpush3.bf16.msra.mxu1 %v7734_v12  ;;  %6969 = vmatprep.subr.bf16.mxu0 %v7735_v13  ;;  %v388_v33 = vld [vmem:[%s8477_s15] sm:$0xff]  ;;  %v389_v35 = vld [vmem:[%s8477_s15 + $0x8] sm:$0xff]  ;;  %v7759_v45 = vld [vmem:[%s8475_s14 + $0x148] sm:$0xff]  }
  0x51   : > { %6991 = vmatprep.subr.bf16.mxu1 %v7736_v14  ;;  %v420_v34 = vld [vmem:[%s8477_s15 + $0x100] sm:$0xff]  ;;  %v421_v38 = vld [vmem:[%s8477_s15 + $0x108] sm:$0xff]  ;;  %v7760_v46 = vld [vmem:[%s8475_s14 + $0x1c8] sm:$0xff]  }
  0x52   : > { %v6373_v36 = vcombine.low %v388_v33, %v420_v34  ;;  %v6374_v37 = vcombine.high %v388_v33, %v420_v34  ;;  %v6375_v39 = vcombine.low %v389_v35, %v421_v38  ;;  %v6376_v40 = vcombine.high %v389_v35, %v421_v38  ;;  %v7761_v47 = vld [vmem:[%s8475_s14 + $0x108] sm:$0xff]   ;;  %v7763_v49 = vld [vmem:[%s8475_s14 + $0x150] sm:$0xff]   ;;  %v7767_v53 = vld [vmem:[%s8475_s14 + $0x158] sm:$0xff]  }
  0x53   : > { %6970 = vmatpush3.bf16.msra.mxu0 %v7737_v15  ;;  %v7762_v48 = vld [vmem:[%s8475_s14 + $0x188] sm:$0xff]   ;;  %v7764_v50 = vld [vmem:[%s8475_s14 + $0x1d0] sm:$0xff]   ;;  %v7768_v54 = vld [vmem:[%s8475_s14 + $0x1d8] sm:$0xff]  }
  0x54   : > { %6992 = vmatpush3.bf16.msra.mxu1 %v7738_v16  ;;  %6971 = vmatprep.subr.bf16.mxu0 %v7739_v17  ;;  %v7765_v51 = vld [vmem:[%s8475_s14 + $0x110] sm:$0xff]   ;;  %v7769_v55 = vld [vmem:[%s8475_s14 + $0x118] sm:$0xff]   ;;  %v7771_v57 = vld [vmem:[%s8475_s14 + $0x160] sm:$0xff]  }
  0x55   : > { %6993 = vmatprep.subr.bf16.mxu1 %v7740_v18  ;;  %4900 = vmatprep.mubr.bf16.mxu0 %v6374_v37  ;;  %v7766_v52 = vld [vmem:[%s8475_s14 + $0x190] sm:$0xff]   ;;  %v7770_v56 = vld [vmem:[%s8475_s14 + $0x198] sm:$0xff]   ;;  %v7772_v58 = vld [vmem:[%s8475_s14 + $0x1e0] sm:$0xff]  }
  0x56   : > { %4941 = vmatprep.mubr.bf16.mxu1 %v6376_v40  ;;  %v7773_v59 = vld [vmem:[%s8475_s14 + $0x120] sm:$0xff]   ;;  %v7775_v61 = vld [vmem:[%s8475_s14 + $0x168] sm:$0xff]   ;;  %v7779_v1 = vld [vmem:[%s8475_s14 + $0x170] sm:$0xff]  }
  0x57   : > { %6972 = vmatpush3.bf16.msra.mxu0 %v7741_v19  ;;  %v7774_v60 = vld [vmem:[%s8475_s14 + $0x1a0] sm:$0xff]   ;;  %v7776_v62 = vld [vmem:[%s8475_s14 + $0x1e8] sm:$0xff]   ;;  %v7780_v2 = vld [vmem:[%s8475_s14 + $0x1f0] sm:$0xff]  }
  0x58   : > { %6994 = vmatpush3.bf16.msra.mxu1 %v7742_v20  ;;  %6973 = vmatprep.subr.bf16.mxu0 %v7743_v21  ;;  %v7777_v63 = vld [vmem:[%s8475_s14 + $0x128] sm:$0xff]   ;;  %v7781_v3 = vld [vmem:[%s8475_s14 + $0x130] sm:$0xff]   ;;  %v7783_v5 = vld [vmem:[%s8475_s14 + $0x178] sm:$0xff]  }
  0x59   : > { %6995 = vmatprep.subr.bf16.mxu1 %v7744_v22  ;;  %v7778_v0 = vld [vmem:[%s8475_s14 + $0x1a8] sm:$0xff]   ;;  %v7782_v4 = vld [vmem:[%s8475_s14 + $0x1b0] sm:$0xff]   ;;  %v7784_v6 = vld [vmem:[%s8475_s14 + $0x1f8] sm:$0xff]  }
  0x5a   : > { %v7785_v7 = vld [vmem:[%s8475_s14 + $0x138] sm:$0xff]   ;;  %v390_v9 = vld [vmem:[%s8477_s15 + $0x10] sm:$0xff]  ;;  %v391_v13 = vld [vmem:[%s8477_s15 + $0x18] sm:$0xff] }
  0x5b   : > { %6974 = vmatpush3.bf16.msra.mxu0 %v7745_v23  ;;  %v7786_v8 = vld [vmem:[%s8475_s14 + $0x1b8] sm:$0xff]   ;;  %v422_v10 = vld [vmem:[%s8477_s15 + $0x110] sm:$0xff]  ;;  %v423_v14 = vld [vmem:[%s8477_s15 + $0x118] sm:$0xff] }
  0x5c   : > { %6996 = vmatpush3.bf16.msra.mxu1 %v7746_v24  ;;  %6975 = vmatprep.subr.bf16.mxu0 %v7747_v25  ;;  %v6377_v11 = vcombine.low %v390_v9, %v422_v10  ;;  %v6378_v12 = vcombine.high %v390_v9, %v422_v10  ;;  %v6379_v15 = vcombine.low %v391_v13, %v423_v14  ;;  %v7787_v17 = vld [vmem:[%s8475_s14 + $0x240] sm:$0xff]   ;;  %v7791_v21 = vld [vmem:[%s8475_s14 + $0x248] sm:$0xff]   ;;  %v7795_v25 = vld [vmem:[%s8475_s14 + $0x250] sm:$0xff]  }
  0x5d   : > { %6997 = vmatprep.subr.bf16.mxu1 %v7748_v26  ;;  %v6380_v16 = vcombine.high %v391_v13, %v423_v14  ;;  %v7788_v18 = vld [vmem:[%s8475_s14 + $0x2c0] sm:$0xff]   ;;  %v7792_v22 = vld [vmem:[%s8475_s14 + $0x2c8] sm:$0xff]   ;;  %v7796_v26 = vld [vmem:[%s8475_s14 + $0x2d0] sm:$0xff]  }
  0x5e   : > { %v7789_v19 = vld [vmem:[%s8475_s14 + $0x200] sm:$0xff]   ;;  %v7793_v23 = vld [vmem:[%s8475_s14 + $0x208] sm:$0xff]  }
  0x5f   : > { %6976 = vmatpush3.bf16.msra.mxu0 %v7749_v27  ;;  %v7790_v20 = vld [vmem:[%s8475_s14 + $0x280] sm:$0xff]   ;;  %v7794_v24 = vld [vmem:[%s8475_s14 + $0x288] sm:$0xff]   ;;  %v7797_v27 = vld [vmem:[%s8475_s14 + $0x210] sm:$0xff]  }
  0x60   : > { %6998 = vmatpush3.bf16.msra.mxu1 %v7750_v28  ;;  %6977 = vmatprep.subr.bf16.mxu0 %v7751_v29  ;;  %v7798_v28 = vld [vmem:[%s8475_s14 + $0x290] sm:$0xff]   ;;  %v7799_v29 = vld [vmem:[%s8475_s14 + $0x258] sm:$0xff]   ;;  %v7803_v33 = vld [vmem:[%s8475_s14 + $0x260] sm:$0xff]  }
  0x61   : > { %6999 = vmatprep.subr.bf16.mxu1 %v7752_v30  ;;  %v7800_v30 = vld [vmem:[%s8475_s14 + $0x2d8] sm:$0xff]   ;;  %v7804_v34 = vld [vmem:[%s8475_s14 + $0x2e0] sm:$0xff]   ;;  %v7807_v37 = vld [vmem:[%s8475_s14 + $0x268] sm:$0xff]  }
  0x62   : > { %v7805_v35 = vld [vmem:[%s8475_s14 + $0x220] sm:$0xff]   ;;  %v7808_v38 = vld [vmem:[%s8475_s14 + $0x2e8] sm:$0xff]  }
  0x63   : > { %6978 = vmatpush3.bf16.msra.mxu0 %v7753_v31  ;;  %v7801_v31 = vld [vmem:[%s8475_s14 + $0x218] sm:$0xff]   ;;  %v7810_v40 = vld [vmem:[%s8475_s14 + $0x2a8] sm:$0xff]   ;;  %v7835_v9 = vld [vmem:[%s8475_s14 + $0x360] sm:$0xff]  }
  0x64   : > { %7000 = vmatpush3.bf16.msra.mxu1 %v7754_v32  ;;  %7007 = vmatprep.subr.bf16.mxu0 %v7755_v41  ;;  %v7802_v32 = vld [vmem:[%s8475_s14 + $0x298] sm:$0xff]   ;;  %v7811_v41 = vld [vmem:[%s8475_s14 + $0x270] sm:$0xff]   ;;  %v7836_v10 = vld [vmem:[%s8475_s14 + $0x3e0] sm:$0xff]  }
  0x65   : > { %7029 = vmatprep.subr.bf16.mxu1 %v7756_v42  ;;  %v7812_v42 = vld [vmem:[%s8475_s14 + $0x2f0] sm:$0xff]   ;;  %v7839_v13 = vld [vmem:[%s8475_s14 + $0x368] sm:$0xff]  }
  0x66   : > { %4901 = vmatmul.mubr.bf16.vlgmr.msra.gmra.mrb[0].mxu0 %v6373_v36  ;;  %v7806_v36 = vld [vmem:[%s8475_s14 + $0x2a0] sm:$0xff]   ;;  %v7840_v14 = vld [vmem:[%s8475_s14 + $0x3e8] sm:$0xff]  }
  0x67   : > { %4942 = vmatmul.mubr.bf16.vlgmr.msra.gmra.mrb[0].mxu1 %v6375_v39  ;;  %7008 = vmatpush3.bf16.msra.mxu0 %v7757_v43  ;;  %v7809_v39 = vld [vmem:[%s8475_s14 + $0x228] sm:$0xff]   ;;  %v7813_v43 = vld [vmem:[%s8475_s14 + $0x230] sm:$0xff]  }
  0x68   : > { %7030 = vmatpush3.bf16.msra.mxu1 %v7758_v44  ;;  %7009 = vmatprep.subr.bf16.mxu0 %v7759_v45  ;;  %v7814_v44 = vld [vmem:[%s8475_s14 + $0x2b0] sm:$0xff]   ;;  %v7815_v45 = vld [vmem:[%s8475_s14 + $0x278] sm:$0xff]  }
  0x69   : > { %7031 = vmatprep.subr.bf16.mxu1 %v7760_v46  ;;  %4982 = vmatprep.mubr.bf16.mxu0 %v6378_v12  ;;  %v7816_v46 = vld [vmem:[%s8475_s14 + $0x2f8] sm:$0xff]   ;;  %v7838_v12 = vld [vmem:[%s8475_s14 + $0x3a0] sm:$0xff]  }
  0x6a   : > { %5023 = vmatprep.mubr.bf16.mxu1 %v6380_v16  ;;  %v7842_v16 = vld [vmem:[%s8475_s14 + $0x3a8] sm:$0xff]  }
  0x6b   : > { %7010 = vmatpush3.bf16.msra.mxu0 %v7761_v47  ;;  %v7817_v47 = vld [vmem:[%s8475_s14 + $0x238] sm:$0xff]  }
  0x6c   : > { %7032 = vmatpush3.bf16.msra.mxu1 %v7762_v48  ;;  %7011 = vmatprep.subr.bf16.mxu0 %v7763_v49  ;;  %v7818_v48 = vld [vmem:[%s8475_s14 + $0x2b8] sm:$0xff]   ;;  %v392_v49 = vld [vmem:[%s8477_s15 + $0x20] sm:$0xff] }
  0x6d   : > { %7033 = vmatprep.subr.bf16.mxu1 %v7764_v50  ;;  %v424_v50 = vld [vmem:[%s8477_s15 + $0x120] sm:$0xff] }
  0x6f   : > { %7012 = vmatpush3.bf16.msra.mxu0 %v7765_v51  ;;  %v393_v51 = vld [vmem:[%s8477_s15 + $0x28] sm:$0xff] }
  0x70   : > { %7034 = vmatpush3.bf16.msra.mxu1 %v7766_v52  ;;  %7013 = vmatprep.subr.bf16.mxu0 %v7767_v53  ;;  %v425_v52 = vld [vmem:[%s8477_s15 + $0x128] sm:$0xff]  ;;  %v6381_v53 = vcombine.low %v392_v49, %v424_v50 }
  0x71   : > { %7035 = vmatprep.subr.bf16.mxu1 %v7768_v54  ;;  %v6382_v54 = vcombine.high %v392_v49, %v424_v50  ;;  %v7867_v49 = vld [vmem:[%s8475_s14 + $0x460] sm:$0xff]  }
  0x72   : > { %v7868_v50 = vld [vmem:[%s8475_s14 + $0x4e0] sm:$0xff]  }
  0x73   : > { %7014 = vmatpush3.bf16.msra.mxu0 %v7769_v55  ;;  %v6383_v55 = vcombine.low %v393_v51, %v425_v52 }
  0x74   : > { %7036 = vmatpush3.bf16.msra.mxu1 %v7770_v56  ;;  %7015 = vmatprep.subr.bf16.mxu0 %v7771_v57  ;;  %v6384_v56 = vcombine.high %v393_v51, %v425_v52  ;;  %v7819_v57 = vld [vmem:[%s8475_s14 + $0x340] sm:$0xff]  }
  0x75   : > { %7037 = vmatprep.subr.bf16.mxu1 %v7772_v58  ;;  %v7820_v58 = vld [vmem:[%s8475_s14 + $0x3c0] sm:$0xff]  }
  0x76   : > { %v7869_v51 = vld [vmem:[%s8475_s14 + $0x420] sm:$0xff]  }
  0x77   : > { %7016 = vmatpush3.bf16.msra.mxu0 %v7773_v59  ;;  %v7821_v59 = vld [vmem:[%s8475_s14 + $0x300] sm:$0xff]  }
  0x78   : > { %7038 = vmatpush3.bf16.msra.mxu1 %v7774_v60  ;;  %7017 = vmatprep.subr.bf16.mxu0 %v7775_v61  ;;  %v7822_v60 = vld [vmem:[%s8475_s14 + $0x380] sm:$0xff]   ;;  %v7823_v61 = vld [vmem:[%s8475_s14 + $0x348] sm:$0xff]  }
  0x79   : > { %7039 = vmatprep.subr.bf16.mxu1 %v7776_v62  ;;  %v7824_v62 = vld [vmem:[%s8475_s14 + $0x3c8] sm:$0xff]   ;;  %v7870_v52 = vld [vmem:[%s8475_s14 + $0x4a0] sm:$0xff]  }
  0x7b   : > { %7018 = vmatpush3.bf16.msra.mxu0 %v7777_v63  ;;  %v7825_v63 = vld [vmem:[%s8475_s14 + $0x308] sm:$0xff]  }
  0x7c   : > { %7040 = vmatpush3.bf16.msra.mxu1 %v7778_v0  ;;  %7019 = vmatprep.subr.bf16.mxu0 %v7779_v1  ;;  %v7826_v0 = vld [vmem:[%s8475_s14 + $0x388] sm:$0xff]   ;;  %v7827_v1 = vld [vmem:[%s8475_s14 + $0x350] sm:$0xff]  }
  0x7d   : > { %7041 = vmatprep.subr.bf16.mxu1 %v7780_v2  ;;  %v7828_v2 = vld [vmem:[%s8475_s14 + $0x3d0] sm:$0xff]  }
  0x7f   : > { %7020 = vmatpush3.bf16.msra.mxu0 %v7781_v3  ;;  %v7829_v3 = vld [vmem:[%s8475_s14 + $0x310] sm:$0xff]  }
  0x80   : > { %7042 = vmatpush3.bf16.msra.mxu1 %v7782_v4  ;;  %7021 = vmatprep.subr.bf16.mxu0 %v7783_v5  ;;  %v7830_v4 = vld [vmem:[%s8475_s14 + $0x390] sm:$0xff]   ;;  %v7831_v5 = vld [vmem:[%s8475_s14 + $0x358] sm:$0xff]  }
  0x81   : > { %7043 = vmatprep.subr.bf16.mxu1 %v7784_v6  ;;  %v7832_v6 = vld [vmem:[%s8475_s14 + $0x3d8] sm:$0xff]  }
  0x83   : > { %7022 = vmatpush3.bf16.msra.mxu0 %v7785_v7  ;;  %v7833_v7 = vld [vmem:[%s8475_s14 + $0x318] sm:$0xff]  }
  0x84   : > { %7044 = vmatpush3.bf16.msra.mxu1 %v7786_v8  ;;  %7051 = vmatprep.subr.bf16.mxu0 %v7787_v17  ;;  %v7834_v8 = vld [vmem:[%s8475_s14 + $0x398] sm:$0xff]   ;;  %v7843_v17 = vld [vmem:[%s8475_s14 + $0x370] sm:$0xff]  }
  0x85   : > { %7073 = vmatprep.subr.bf16.mxu1 %v7788_v18  ;;  %v7844_v18 = vld [vmem:[%s8475_s14 + $0x3f0] sm:$0xff]  }
  0x86   : > { %4983 = vmatmul.mubr.bf16.vlgmr.msra.gmra.mrb[4].mxu0 %v6377_v11  ;;  %v7837_v11 = vld [vmem:[%s8475_s14 + $0x320] sm:$0xff]  }
  0x87   : > { %5024 = vmatmul.mubr.bf16.vlgmr.msra.gmra.mrb[4].mxu1 %v6379_v15  ;;  %7052 = vmatpush3.bf16.msra.mxu0 %v7789_v19  ;;  %v7841_v15 = vld [vmem:[%s8475_s14 + $0x328] sm:$0xff]   ;;  %v7845_v19 = vld [vmem:[%s8475_s14 + $0x330] sm:$0xff]  }
  0x88   : > { %7074 = vmatpush3.bf16.msra.mxu1 %v7790_v20  ;;  %7053 = vmatprep.subr.bf16.mxu0 %v7791_v21  ;;  %v7846_v20 = vld [vmem:[%s8475_s14 + $0x3b0] sm:$0xff]   ;;  %v7847_v21 = vld [vmem:[%s8475_s14 + $0x378] sm:$0xff]  }
  0x89   : > { %7075 = vmatprep.subr.bf16.mxu1 %v7792_v22  ;;  %5064 = vmatprep.mubr.bf16.mxu0 %v6382_v54  ;;  %v7848_v22 = vld [vmem:[%s8475_s14 + $0x3f8] sm:$0xff]   ;;  %v7872_v54 = vld [vmem:[%s8475_s14 + $0x4e8] sm:$0xff]  }
  0x8a   : > { %5105 = vmatprep.mubr.bf16.mxu1 %v6384_v56  ;;  %v7874_v56 = vld [vmem:[%s8475_s14 + $0x4a8] sm:$0xff]  }
  0x8b   : > { %7054 = vmatpush3.bf16.msra.mxu0 %v7793_v23  ;;  %v7849_v23 = vld [vmem:[%s8475_s14 + $0x338] sm:$0xff]  }
  0x8c   : > { %7076 = vmatpush3.bf16.msra.mxu1 %v7794_v24  ;;  %7055 = vmatprep.subr.bf16.mxu0 %v7795_v25  ;;  %v7850_v24 = vld [vmem:[%s8475_s14 + $0x3b8] sm:$0xff]   ;;  %v394_v25 = vld [vmem:[%s8477_s15 + $0x30] sm:$0xff] }
  0x8d   : > { %7077 = vmatprep.subr.bf16.mxu1 %v7796_v26  ;;  %v426_v26 = vld [vmem:[%s8477_s15 + $0x130] sm:$0xff] }
  0x8f   : > { %7056 = vmatpush3.bf16.msra.mxu0 %v7797_v27  ;;  %v395_v27 = vld [vmem:[%s8477_s15 + $0x38] sm:$0xff] }
  0x90   : > { %7078 = vmatpush3.bf16.msra.mxu1 %v7798_v28  ;;  %7057 = vmatprep.subr.bf16.mxu0 %v7799_v29  ;;  %v6385_v28 = vcombine.low %v394_v25, %v426_v26  ;;  %v6386_v29 = vcombine.high %v394_v25, %v426_v26  ;;  %v7899_v25 = vld [vmem:[%s8475_s14 + $0x560] sm:$0xff]  }
  0x91   : > { %7079 = vmatprep.subr.bf16.mxu1 %v7800_v30  ;;  %v427_v30 = vld [vmem:[%s8477_s15 + $0x138] sm:$0xff]  ;;  %v7900_v26 = vld [vmem:[%s8475_s14 + $0x5e0] sm:$0xff]  }
  0x93   : > { %7058 = vmatpush3.bf16.msra.mxu0 %v7801_v31  ;;  %v6387_v31 = vcombine.low %v395_v27, %v427_v30 }
  0x94   : > { %7080 = vmatpush3.bf16.msra.mxu1 %v7802_v32  ;;  %7059 = vmatprep.subr.bf16.mxu0 %v7803_v33  ;;  %v6388_v32 = vcombine.high %v395_v27, %v427_v30  ;;  %v7851_v33 = vld [vmem:[%s8475_s14 + $0x440] sm:$0xff]   ;;  %v7904_v30 = vld [vmem:[%s8475_s14 + $0x5e8] sm:$0xff]  }
  0x95   : > { %7081 = vmatprep.subr.bf16.mxu1 %v7804_v34  ;;  %v7852_v34 = vld [vmem:[%s8475_s14 + $0x4c0] sm:$0xff]  }
  0x96   : > { %v7901_v27 = vld [vmem:[%s8475_s14 + $0x520] sm:$0xff]  }
  0x97   : > { %7060 = vmatpush3.bf16.msra.mxu0 %v7805_v35  ;;  %v7853_v35 = vld [vmem:[%s8475_s14 + $0x400] sm:$0xff]  }
  0x98   : > { %7082 = vmatpush3.bf16.msra.mxu1 %v7806_v36  ;;  %7061 = vmatprep.subr.bf16.mxu0 %v7807_v37  ;;  %v7854_v36 = vld [vmem:[%s8475_s14 + $0x480] sm:$0xff]   ;;  %v7855_v37 = vld [vmem:[%s8475_s14 + $0x448] sm:$0xff]  }
  0x99   : > { %7083 = vmatprep.subr.bf16.mxu1 %v7808_v38  ;;  %v7856_v38 = vld [vmem:[%s8475_s14 + $0x4c8] sm:$0xff]  }
  0x9b   : > { %7062 = vmatpush3.bf16.msra.mxu0 %v7809_v39  ;;  %v7857_v39 = vld [vmem:[%s8475_s14 + $0x408] sm:$0xff]  }
  0x9c   : > { %7084 = vmatpush3.bf16.msra.mxu1 %v7810_v40  ;;  %7063 = vmatprep.subr.bf16.mxu0 %v7811_v41  ;;  %v7858_v40 = vld [vmem:[%s8475_s14 + $0x488] sm:$0xff]   ;;  %v7859_v41 = vld [vmem:[%s8475_s14 + $0x450] sm:$0xff]  }
  0x9d   : > { %7085 = vmatprep.subr.bf16.mxu1 %v7812_v42  ;;  %v7860_v42 = vld [vmem:[%s8475_s14 + $0x4d0] sm:$0xff]  }
  0x9f   : > { %7064 = vmatpush3.bf16.msra.mxu0 %v7813_v43  ;;  %v7861_v43 = vld [vmem:[%s8475_s14 + $0x410] sm:$0xff]  }
  0xa0   : > { %7086 = vmatpush3.bf16.msra.mxu1 %v7814_v44  ;;  %7065 = vmatprep.subr.bf16.mxu0 %v7815_v45  ;;  %v7862_v44 = vld [vmem:[%s8475_s14 + $0x490] sm:$0xff]   ;;  %v7863_v45 = vld [vmem:[%s8475_s14 + $0x458] sm:$0xff]  }
  0xa1   : > { %7087 = vmatprep.subr.bf16.mxu1 %v7816_v46  ;;  %v7864_v46 = vld [vmem:[%s8475_s14 + $0x4d8] sm:$0xff]  }
  0xa3   : > { %7066 = vmatpush3.bf16.msra.mxu0 %v7817_v47  ;;  %v7865_v47 = vld [vmem:[%s8475_s14 + $0x418] sm:$0xff]  }
  0xa4   : > { %7088 = vmatpush3.bf16.msra.mxu1 %v7818_v48  ;;  %7095 = vmatprep.subr.bf16.mxu0 %v7819_v57  ;;  %v7866_v48 = vld [vmem:[%s8475_s14 + $0x498] sm:$0xff]   ;;  %v7875_v57 = vld [vmem:[%s8475_s14 + $0x470] sm:$0xff]  }
  0xa5   : > { %7117 = vmatprep.subr.bf16.mxu1 %v7820_v58  ;;  %v7876_v58 = vld [vmem:[%s8475_s14 + $0x4f0] sm:$0xff]  }
  0xa6   : > { %5065 = vmatmul.mubr.bf16.vlgmr.msra.gmra.mrb[8].mxu0 %v6381_v53  ;;  %v7871_v53 = vld [vmem:[%s8475_s14 + $0x468] sm:$0xff]  }
  0xa7   : > { %5106 = vmatmul.mubr.bf16.vlgmr.msra.gmra.mrb[8].mxu1 %v6383_v55  ;;  %7096 = vmatpush3.bf16.msra.mxu0 %v7821_v59  ;;  %v7873_v55 = vld [vmem:[%s8475_s14 + $0x428] sm:$0xff]   ;;  %v7877_v59 = vld [vmem:[%s8475_s14 + $0x430] sm:$0xff]  }
  0xa8   : > { %7118 = vmatpush3.bf16.msra.mxu1 %v7822_v60  ;;  %7097 = vmatprep.subr.bf16.mxu0 %v7823_v61  ;;  %v7878_v60 = vld [vmem:[%s8475_s14 + $0x4b0] sm:$0xff]   ;;  %v7879_v61 = vld [vmem:[%s8475_s14 + $0x478] sm:$0xff]  }
  0xa9   : > { %7119 = vmatprep.subr.bf16.mxu1 %v7824_v62  ;;  %5146 = vmatprep.mubr.bf16.mxu0 %v6386_v29  ;;  %v7880_v62 = vld [vmem:[%s8475_s14 + $0x4f8] sm:$0xff]   ;;  %v7903_v29 = vld [vmem:[%s8475_s14 + $0x568] sm:$0xff]  }
  0xaa   : > { %5187 = vmatprep.mubr.bf16.mxu1 %v6388_v32  ;;  %v7906_v32 = vld [vmem:[%s8475_s14 + $0x5a8] sm:$0xff]  }
  0xab   : > { %7098 = vmatpush3.bf16.msra.mxu0 %v7825_v63  ;;  %v7881_v63 = vld [vmem:[%s8475_s14 + $0x438] sm:$0xff]  }
  0xac   : > { %7120 = vmatpush3.bf16.msra.mxu1 %v7826_v0  ;;  %7099 = vmatprep.subr.bf16.mxu0 %v7827_v1  ;;  %v7882_v0 = vld [vmem:[%s8475_s14 + $0x4b8] sm:$0xff]   ;;  %v396_v1 = vld [vmem:[%s8477_s15 + $0x40] sm:$0xff] }
  0xad   : > { %7121 = vmatprep.subr.bf16.mxu1 %v7828_v2  ;;  %v428_v2 = vld [vmem:[%s8477_s15 + $0x140] sm:$0xff] }
  0xaf   : > { %7100 = vmatpush3.bf16.msra.mxu0 %v7829_v3  ;;  %v6389_v3 = vcombine.low %v396_v1, %v428_v2 }
  0xb0   : > { %7122 = vmatpush3.bf16.msra.mxu1 %v7830_v4  ;;  %7101 = vmatprep.subr.bf16.mxu0 %v7831_v5  ;;  %v6390_v4 = vcombine.high %v396_v1, %v428_v2  ;;  %v397_v5 = vld [vmem:[%s8477_s15 + $0x48] sm:$0xff]  ;;  %v7931_v1 = vld [vmem:[%s8475_s14 + $0x660] sm:$0xff]  }
  0xb1   : > { %7123 = vmatprep.subr.bf16.mxu1 %v7832_v6  ;;  %v429_v6 = vld [vmem:[%s8477_s15 + $0x148] sm:$0xff]  ;;  %v7932_v2 = vld [vmem:[%s8475_s14 + $0x6e0] sm:$0xff]  }
  0xb3   : > { %7102 = vmatpush3.bf16.msra.mxu0 %v7833_v7  ;;  %v6391_v7 = vcombine.low %v397_v5, %v429_v6 }
  0xb4   : > { %7124 = vmatpush3.bf16.msra.mxu1 %v7834_v8  ;;  %7103 = vmatprep.subr.bf16.mxu0 %v7835_v9  ;;  %v6392_v8 = vcombine.high %v397_v5, %v429_v6  ;;  %v7883_v9 = vld [vmem:[%s8475_s14 + $0x540] sm:$0xff]   ;;  %v7935_v5 = vld [vmem:[%s8475_s14 + $0x668] sm:$0xff]  }
  0xb5   : > { %7125 = vmatprep.subr.bf16.mxu1 %v7836_v10  ;;  %v7884_v10 = vld [vmem:[%s8475_s14 + $0x5c0] sm:$0xff]   ;;  %v7936_v6 = vld [vmem:[%s8475_s14 + $0x6e8] sm:$0xff]  }
  0xb7   : > { %7104 = vmatpush3.bf16.msra.mxu0 %v7837_v11  ;;  %v7885_v11 = vld [vmem:[%s8475_s14 + $0x500] sm:$0xff]  }
  0xb8   : > { %7126 = vmatpush3.bf16.msra.mxu1 %v7838_v12  ;;  %7105 = vmatprep.subr.bf16.mxu0 %v7839_v13  ;;  %v7886_v12 = vld [vmem:[%s8475_s14 + $0x580] sm:$0xff]   ;;  %v7887_v13 = vld [vmem:[%s8475_s14 + $0x548] sm:$0xff]  }
  0xb9   : > { %7127 = vmatprep.subr.bf16.mxu1 %v7840_v14  ;;  %v7888_v14 = vld [vmem:[%s8475_s14 + $0x5c8] sm:$0xff]  }
  0xbb   : > { %7106 = vmatpush3.bf16.msra.mxu0 %v7841_v15  ;;  %v7889_v15 = vld [vmem:[%s8475_s14 + $0x508] sm:$0xff]  }
  0xbc   : > { %7128 = vmatpush3.bf16.msra.mxu1 %v7842_v16  ;;  %7107 = vmatprep.subr.bf16.mxu0 %v7843_v17  ;;  %v7890_v16 = vld [vmem:[%s8475_s14 + $0x588] sm:$0xff]   ;;  %v7891_v17 = vld [vmem:[%s8475_s14 + $0x550] sm:$0xff]  }
  0xbd   : > { %7129 = vmatprep.subr.bf16.mxu1 %v7844_v18  ;;  %v7892_v18 = vld [vmem:[%s8475_s14 + $0x5d0] sm:$0xff]  }
  0xbf   : > { %7108 = vmatpush3.bf16.msra.mxu0 %v7845_v19  ;;  %v7893_v19 = vld [vmem:[%s8475_s14 + $0x510] sm:$0xff]  }
  0xc0   : > { %7130 = vmatpush3.bf16.msra.mxu1 %v7846_v20  ;;  %7109 = vmatprep.subr.bf16.mxu0 %v7847_v21  ;;  %v7894_v20 = vld [vmem:[%s8475_s14 + $0x590] sm:$0xff]   ;;  %v7895_v21 = vld [vmem:[%s8475_s14 + $0x558] sm:$0xff]  }
  0xc1   : > { %7131 = vmatprep.subr.bf16.mxu1 %v7848_v22  ;;  %v7896_v22 = vld [vmem:[%s8475_s14 + $0x5d8] sm:$0xff]  }
  0xc3   : > { %7110 = vmatpush3.bf16.msra.mxu0 %v7849_v23  ;;  %v7897_v23 = vld [vmem:[%s8475_s14 + $0x518] sm:$0xff]  }
  0xc4   : > { %7132 = vmatpush3.bf16.msra.mxu1 %v7850_v24  ;;  %7139 = vmatprep.subr.bf16.mxu0 %v7851_v33  ;;  %v7898_v24 = vld [vmem:[%s8475_s14 + $0x598] sm:$0xff]   ;;  %v7907_v33 = vld [vmem:[%s8475_s14 + $0x570] sm:$0xff]  }
  0xc5   : > { %7161 = vmatprep.subr.bf16.mxu1 %v7852_v34  ;;  %v7908_v34 = vld [vmem:[%s8475_s14 + $0x5f0] sm:$0xff]  }
  0xc6   : > { %5147 = vmatmul.mubr.bf16.vlgmr.msra.gmra.mrb[12].mxu0 %v6385_v28  ;;  %v7902_v28 = vld [vmem:[%s8475_s14 + $0x5a0] sm:$0xff]  }
  0xc7   : > { %5188 = vmatmul.mubr.bf16.vlgmr.msra.gmra.mrb[12].mxu1 %v6387_v31  ;;  %7140 = vmatpush3.bf16.msra.mxu0 %v7853_v35  ;;  %v7905_v31 = vld [vmem:[%s8475_s14 + $0x528] sm:$0xff]   ;;  %v7909_v35 = vld [vmem:[%s8475_s14 + $0x530] sm:$0xff]  }
  0xc8   : > { %7162 = vmatpush3.bf16.msra.mxu1 %v7854_v36  ;;  %7141 = vmatprep.subr.bf16.mxu0 %v7855_v37  ;;  %v7910_v36 = vld [vmem:[%s8475_s14 + $0x5b0] sm:$0xff]   ;;  %v7911_v37 = vld [vmem:[%s8475_s14 + $0x578] sm:$0xff]  }
  0xc9   : > { %7163 = vmatprep.subr.bf16.mxu1 %v7856_v38  ;;  %5228 = vmatprep.mubr.bf16.mxu0 %v6390_v4  ;;  %v7912_v38 = vld [vmem:[%s8475_s14 + $0x5f8] sm:$0xff]   ;;  %v7934_v4 = vld [vmem:[%s8475_s14 + $0x6a0] sm:$0xff]  }
  0xca   : > { %5269 = vmatprep.mubr.bf16.mxu1 %v6392_v8  ;;  %v7938_v8 = vld [vmem:[%s8475_s14 + $0x6a8] sm:$0xff]  }
  0xcb   : > { %7142 = vmatpush3.bf16.msra.mxu0 %v7857_v39  ;;  %v7913_v39 = vld [vmem:[%s8475_s14 + $0x538] sm:$0xff]  }
  0xcc   : > { %7164 = vmatpush3.bf16.msra.mxu1 %v7858_v40  ;;  %7143 = vmatprep.subr.bf16.mxu0 %v7859_v41  ;;  %v7914_v40 = vld [vmem:[%s8475_s14 + $0x5b8] sm:$0xff]   ;;  %v398_v41 = vld [vmem:[%s8477_s15 + $0x50] sm:$0xff] }
  0xcd   : > { %7165 = vmatprep.subr.bf16.mxu1 %v7860_v42  ;;  %v430_v42 = vld [vmem:[%s8477_s15 + $0x150] sm:$0xff] }
  0xcf   : > { %7144 = vmatpush3.bf16.msra.mxu0 %v7861_v43  ;;  %v399_v43 = vld [vmem:[%s8477_s15 + $0x58] sm:$0xff] }
  0xd0   : > { %7166 = vmatpush3.bf16.msra.mxu1 %v7862_v44  ;;  %7145 = vmatprep.subr.bf16.mxu0 %v7863_v45  ;;  %v431_v44 = vld [vmem:[%s8477_s15 + $0x158] sm:$0xff]  ;;  %v6393_v45 = vcombine.low %v398_v41, %v430_v42 }
  0xd1   : > { %7167 = vmatprep.subr.bf16.mxu1 %v7864_v46  ;;  %v6394_v46 = vcombine.high %v398_v41, %v430_v42  ;;  %v7962_v42 = vld [vmem:[%s8475_s14 + $0x798] sm:$0xff]  }
  0xd3   : > { %7146 = vmatpush3.bf16.msra.mxu0 %v7865_v47  ;;  %v6395_v47 = vcombine.low %v399_v43, %v431_v44 }
  0xd4   : > { %7168 = vmatpush3.bf16.msra.mxu1 %v7866_v48  ;;  %7147 = vmatprep.subr.bf16.mxu0 %v7867_v49  ;;  %v6396_v48 = vcombine.high %v399_v43, %v431_v44  ;;  %v7915_v49 = vld [vmem:[%s8475_s14 + $0x640] sm:$0xff]  }
  0xd5   : > { %7169 = vmatprep.subr.bf16.mxu1 %v7868_v50  ;;  %v7916_v50 = vld [vmem:[%s8475_s14 + $0x6c0] sm:$0xff]  }
  0xd6   : > { %v7963_v44 = vld [vmem:[%s8475_s14 + $0x760] sm:$0xff]  }
  0xd7   : > { %7148 = vmatpush3.bf16.msra.mxu0 %v7869_v51  ;;  %v7917_v51 = vld [vmem:[%s8475_s14 + $0x600] sm:$0xff]  }
  0xd8   : > { %7170 = vmatpush3.bf16.msra.mxu1 %v7870_v52  ;;  %7149 = vmatprep.subr.bf16.mxu0 %v7871_v53  ;;  %v7918_v52 = vld [vmem:[%s8475_s14 + $0x680] sm:$0xff]   ;;  %v7919_v53 = vld [vmem:[%s8475_s14 + $0x648] sm:$0xff]  }
  0xd9   : > { %7171 = vmatprep.subr.bf16.mxu1 %v7872_v54  ;;  %v7920_v54 = vld [vmem:[%s8475_s14 + $0x6c8] sm:$0xff]  }
  0xdb   : > { %7150 = vmatpush3.bf16.msra.mxu0 %v7873_v55  ;;  %v7921_v55 = vld [vmem:[%s8475_s14 + $0x608] sm:$0xff]  }
  0xdc   : > { %7172 = vmatpush3.bf16.msra.mxu1 %v7874_v56  ;;  %7151 = vmatprep.subr.bf16.mxu0 %v7875_v57  ;;  %v7922_v56 = vld [vmem:[%s8475_s14 + $0x688] sm:$0xff]   ;;  %v7923_v57 = vld [vmem:[%s8475_s14 + $0x650] sm:$0xff]  }
  0xdd   : > { %7173 = vmatprep.subr.bf16.mxu1 %v7876_v58  ;;  %v7924_v58 = vld [vmem:[%s8475_s14 + $0x6d0] sm:$0xff]  }
  0xdf   : > { %7152 = vmatpush3.bf16.msra.mxu0 %v7877_v59  ;;  %v7925_v59 = vld [vmem:[%s8475_s14 + $0x610] sm:$0xff]  }
  0xe0   : > { %7174 = vmatpush3.bf16.msra.mxu1 %v7878_v60  ;;  %7153 = vmatprep.subr.bf16.mxu0 %v7879_v61  ;;  %v7926_v60 = vld [vmem:[%s8475_s14 + $0x690] sm:$0xff]   ;;  %v7927_v61 = vld [vmem:[%s8475_s14 + $0x658] sm:$0xff]  }
  0xe1   : > { %7175 = vmatprep.subr.bf16.mxu1 %v7880_v62  ;;  %v7928_v62 = vld [vmem:[%s8475_s14 + $0x6d8] sm:$0xff]  }
  0xe3   : > { %7154 = vmatpush3.bf16.msra.mxu0 %v7881_v63  ;;  %v7929_v63 = vld [vmem:[%s8475_s14 + $0x618] sm:$0xff]  }
  0xe4   : > { %7176 = vmatpush3.bf16.msra.mxu1 %v7882_v0  ;;  %7183 = vmatprep.subr.bf16.mxu0 %v7883_v9  ;;  %v7930_v0 = vld [vmem:[%s8475_s14 + $0x698] sm:$0xff]   ;;  %v7939_v9 = vld [vmem:[%s8475_s14 + $0x670] sm:$0xff]  }
  0xe5   : > { %7205 = vmatprep.subr.bf16.mxu1 %v7884_v10  ;;  %v7940_v10 = vld [vmem:[%s8475_s14 + $0x6f0] sm:$0xff]  }
  0xe6   : > { %5229 = vmatmul.mubr.bf16.vlgmr.msra.gmra.mrb[16].mxu0 %v6389_v3  ;;  %v7933_v3 = vld [vmem:[%s8475_s14 + $0x620] sm:$0xff]  }
  0xe7   : > { %5270 = vmatmul.mubr.bf16.vlgmr.msra.gmra.mrb[16].mxu1 %v6391_v7  ;;  %7184 = vmatpush3.bf16.msra.mxu0 %v7885_v11  ;;  %v7937_v7 = vld [vmem:[%s8475_s14 + $0x628] sm:$0xff]   ;;  %v7941_v11 = vld [vmem:[%s8475_s14 + $0x630] sm:$0xff]  }
  0xe8   : > { %7206 = vmatpush3.bf16.msra.mxu1 %v7886_v12  ;;  %7185 = vmatprep.subr.bf16.mxu0 %v7887_v13  ;;  %v7942_v12 = vld [vmem:[%s8475_s14 + $0x6b0] sm:$0xff]   ;;  %v7943_v13 = vld [vmem:[%s8475_s14 + $0x678] sm:$0xff]  }
  0xe9   : > { %7207 = vmatprep.subr.bf16.mxu1 %v7888_v14  ;;  %5310 = vmatprep.mubr.bf16.mxu0 %v6394_v46  ;;  %v7944_v14 = vld [vmem:[%s8475_s14 + $0x6f8] sm:$0xff]  }
  0xea   : > { %5351 = vmatprep.mubr.bf16.mxu1 %v6396_v48 }
  0xeb   : > { %7186 = vmatpush3.bf16.msra.mxu0 %v7889_v15  ;;  %v7945_v15 = vld [vmem:[%s8475_s14 + $0x638] sm:$0xff]  }
  0xec   : > { %7208 = vmatpush3.bf16.msra.mxu1 %v7890_v16  ;;  %7187 = vmatprep.subr.bf16.mxu0 %v7891_v17  ;;  %v7946_v16 = vld [vmem:[%s8475_s14 + $0x6b8] sm:$0xff]   ;;  %v400_v17 = vld [vmem:[%s8477_s15 + $0x60] sm:$0xff] }
  0xed   : > { %7209 = vmatprep.subr.bf16.mxu1 %v7892_v18  ;;  %v432_v18 = vld [vmem:[%s8477_s15 + $0x160] sm:$0xff] }
  0xef   : > { %7188 = vmatpush3.bf16.msra.mxu0 %v7893_v19  ;;  %v401_v19 = vld [vmem:[%s8477_s15 + $0x68] sm:$0xff] }
  0xf0   : > { %7210 = vmatpush3.bf16.msra.mxu1 %v7894_v20  ;;  %7189 = vmatprep.subr.bf16.mxu0 %v7895_v21  ;;  %v6397_v20 = vcombine.low %v400_v17, %v432_v18  ;;  %v6398_v21 = vcombine.high %v400_v17, %v432_v18  ;;  %v7981_v17 = vld [vmem:[%s8475_s14 + $0x800] sm:$0xff]  }
  0xf1   : > { %7211 = vmatprep.subr.bf16.mxu1 %v7896_v22  ;;  %v433_v22 = vld [vmem:[%s8477_s15 + $0x168] sm:$0xff]  ;;  %v7982_v18 = vld [vmem:[%s8475_s14 + $0x880] sm:$0xff]  }
  0xf3   : > { %7190 = vmatpush3.bf16.msra.mxu0 %v7897_v23  ;;  %v6399_v23 = vcombine.low %v401_v19, %v433_v22 }
  0xf4   : > { %7212 = vmatpush3.bf16.msra.mxu1 %v7898_v24  ;;  %7191 = vmatprep.subr.bf16.mxu0 %v7899_v25  ;;  %v6400_v24 = vcombine.high %v401_v19, %v433_v22  ;;  %v7947_v25 = vld [vmem:[%s8475_s14 + $0x740] sm:$0xff]   ;;  %v7983_v19 = vld [vmem:[%s8475_s14 + $0x848] sm:$0xff]  }
  0xf5   : > { %7213 = vmatprep.subr.bf16.mxu1 %v7900_v26  ;;  %v7948_v26 = vld [vmem:[%s8475_s14 + $0x7c0] sm:$0xff]   ;;  %v7986_v22 = vld [vmem:[%s8475_s14 + $0x888] sm:$0xff]  }
  0xf7   : > { %7192 = vmatpush3.bf16.msra.mxu0 %v7901_v27  ;;  %v7949_v27 = vld [vmem:[%s8475_s14 + $0x700] sm:$0xff]  }
  0xf8   : > { %7214 = vmatpush3.bf16.msra.mxu1 %v7902_v28  ;;  %7193 = vmatprep.subr.bf16.mxu0 %v7903_v29  ;;  %v7950_v28 = vld [vmem:[%s8475_s14 + $0x780] sm:$0xff]   ;;  %v7951_v29 = vld [vmem:[%s8475_s14 + $0x748] sm:$0xff]  }
  0xf9   : > { %7215 = vmatprep.subr.bf16.mxu1 %v7904_v30  ;;  %v7952_v30 = vld [vmem:[%s8475_s14 + $0x7c8] sm:$0xff]  }
  0xfb   : > { %7194 = vmatpush3.bf16.msra.mxu0 %v7905_v31  ;;  %v7953_v31 = vld [vmem:[%s8475_s14 + $0x708] sm:$0xff]  }
  0xfc   : > { %7216 = vmatpush3.bf16.msra.mxu1 %v7906_v32  ;;  %7195 = vmatprep.subr.bf16.mxu0 %v7907_v33  ;;  %v7954_v32 = vld [vmem:[%s8475_s14 + $0x788] sm:$0xff]   ;;  %v7955_v33 = vld [vmem:[%s8475_s14 + $0x750] sm:$0xff]  }
  0xfd   : > { %7217 = vmatprep.subr.bf16.mxu1 %v7908_v34  ;;  %v7956_v34 = vld [vmem:[%s8475_s14 + $0x7d0] sm:$0xff]  }
  0xff   : > { %7196 = vmatpush3.bf16.msra.mxu0 %v7909_v35  ;;  %v7957_v35 = vld [vmem:[%s8475_s14 + $0x710] sm:$0xff]  }
 0x100   : > { %7218 = vmatpush3.bf16.msra.mxu1 %v7910_v36  ;;  %7197 = vmatprep.subr.bf16.mxu0 %v7911_v37  ;;  %v7958_v36 = vld [vmem:[%s8475_s14 + $0x790] sm:$0xff]   ;;  %v7959_v37 = vld [vmem:[%s8475_s14 + $0x758] sm:$0xff]  }
 0x101   : > { %7219 = vmatprep.subr.bf16.mxu1 %v7912_v38  ;;  %v7960_v38 = vld [vmem:[%s8475_s14 + $0x7d8] sm:$0xff]  }
 0x103   : > { %7198 = vmatpush3.bf16.msra.mxu0 %v7913_v39 }
 0x104   : > { %7220 = vmatpush3.bf16.msra.mxu1 %v7914_v40  ;;  %7227 = vmatprep.subr.bf16.mxu0 %v7915_v49  ;;  %v7961_v40 = vld [vmem:[%s8475_s14 + $0x718] sm:$0xff]  }
 0x105   : > { %7249 = vmatprep.subr.bf16.mxu1 %v7916_v50  ;;  %v7965_v50 = vld [vmem:[%s8475_s14 + $0x720] sm:$0xff]  }
 0x106   : > { %5311 = vmatmul.mubr.bf16.vlgmr.msra.gmra.mrb[20].mxu0 %v6393_v45 }
 0x107   : > { %5352 = vmatmul.mubr.bf16.vlgmr.msra.gmra.mrb[20].mxu1 %v6395_v47  ;;  %7228 = vmatpush3.bf16.msra.mxu0 %v7917_v51  ;;  %v7964_v47 = vld [vmem:[%s8475_s14 + $0x7e0] sm:$0xff]  }
 0x108   : > { %7250 = vmatpush3.bf16.msra.mxu1 %v7918_v52  ;;  %7229 = vmatprep.subr.bf16.mxu0 %v7919_v53  ;;  %v7966_v52 = vld [vmem:[%s8475_s14 + $0x7a0] sm:$0xff]  }
 0x109   : > { %7251 = vmatprep.subr.bf16.mxu1 %v7920_v54  ;;  %5392 = vmatprep.mubr.bf16.mxu0 %v6398_v21  ;;  %v7985_v21 = vld [vmem:[%s8475_s14 + $0x808] sm:$0xff]  }
 0x10a   : > { %5433 = vmatprep.mubr.bf16.mxu1 %v6400_v24  ;;  %v7988_v24 = vld [vmem:[%s8475_s14 + $0x8d0] sm:$0xff]  }
 0x10b   : > { %7230 = vmatpush3.bf16.msra.mxu0 %v7921_v55  ;;  %v7967_v55 = vld [vmem:[%s8475_s14 + $0x768] sm:$0xff]  }
 0x10c   : > { %7252 = vmatpush3.bf16.msra.mxu1 %v7922_v56  ;;  %7231 = vmatprep.subr.bf16.mxu0 %v7923_v57 }
 0x10d   : > { %7253 = vmatprep.subr.bf16.mxu1 %v7924_v58  ;;  %v7968_v58 = vld [vmem:[%s8475_s14 + $0x7e8] sm:$0xff]  }
 0x10f   : > { %7232 = vmatpush3.bf16.msra.mxu0 %v7925_v59 }
 0x110   : > { %7254 = vmatpush3.bf16.msra.mxu1 %v7926_v60  ;;  %7233 = vmatprep.subr.bf16.mxu0 %v7927_v61  ;;  %v7969_v60 = vld [vmem:[%s8475_s14 + $0x728] sm:$0xff]  }
 0x111   : > { %7255 = vmatprep.subr.bf16.mxu1 %v7928_v62  ;;  %v7970_v61 = vld [vmem:[%s8475_s14 + $0x7a8] sm:$0xff]  }
 0x113   : > { %7234 = vmatpush3.bf16.msra.mxu0 %v7929_v63  ;;  %v7971_v63 = vld [vmem:[%s8475_s14 + $0x770] sm:$0xff]  }
 0x114   : > { %7256 = vmatpush3.bf16.msra.mxu1 %v7930_v0  ;;  %7235 = vmatprep.subr.bf16.mxu0 %v7931_v1  ;;  %v7972_v0 = vld [vmem:[%s8475_s14 + $0x7f0] sm:$0xff]  }
 0x115   : > { %7257 = vmatprep.subr.bf16.mxu1 %v7932_v2  ;;  %v7973_v1 = vld [vmem:[%s8475_s14 + $0x730] sm:$0xff]  }
 0x116   : > { %v7974_v2 = vld [vmem:[%s8475_s14 + $0x7b0] sm:$0xff]  }
 0x117   : > { %7236 = vmatpush3.bf16.msra.mxu0 %v7933_v3  ;;  %v7975_v3 = vld [vmem:[%s8475_s14 + $0x778] sm:$0xff]  }
 0x118   : > { %7258 = vmatpush3.bf16.msra.mxu1 %v7934_v4  ;;  %7237 = vmatprep.subr.bf16.mxu0 %v7935_v5  ;;  %v7976_v4 = vld [vmem:[%s8475_s14 + $0x7f8] sm:$0xff]  }
 0x119   : > { %7259 = vmatprep.subr.bf16.mxu1 %v7936_v6  ;;  %v7977_v5 = vld [vmem:[%s8475_s14 + $0x738] sm:$0xff]  }
 0x11a   : > { %v7978_v6 = vld [vmem:[%s8475_s14 + $0x7b8] sm:$0xff]  }
 0x11b   : > { %7238 = vmatpush3.bf16.msra.mxu0 %v7937_v7  ;;  %v402_v7 = vld [vmem:[%s8477_s15 + $0x70] sm:$0xff] }
 0x11c   : > { %7260 = vmatpush3.bf16.msra.mxu1 %v7938_v8  ;;  %7239 = vmatprep.subr.bf16.mxu0 %v7939_v9  ;;  %v434_v8 = vld [vmem:[%s8477_s15 + $0x170] sm:$0xff] }
 0x11d   : > { %7261 = vmatprep.subr.bf16.mxu1 %v7940_v10  ;;  %v6401_v9 = vcombine.low %v402_v7, %v434_v8  ;;  %v6402_v10 = vcombine.high %v402_v7, %v434_v8  ;;  %v8011_v7 = vld [vmem:[%s8475_s14 + $0x940] sm:$0xff]  }
 0x11e   : > { %v8012_v8 = vld [vmem:[%s8475_s14 + $0x9c0] sm:$0xff]  }
 0x11f   : > { %7240 = vmatpush3.bf16.msra.mxu0 %v7941_v11  ;;  %v403_v11 = vld [vmem:[%s8477_s15 + $0x78] sm:$0xff] }
 0x120   : > { %7262 = vmatpush3.bf16.msra.mxu1 %v7942_v12  ;;  %7241 = vmatprep.subr.bf16.mxu0 %v7943_v13  ;;  %v435_v12 = vld [vmem:[%s8477_s15 + $0x178] sm:$0xff] }
 0x121   : > { %7263 = vmatprep.subr.bf16.mxu1 %v7944_v14  ;;  %v6403_v13 = vcombine.low %v403_v11, %v435_v12  ;;  %v6404_v14 = vcombine.high %v403_v11, %v435_v12  ;;  %v8015_v11 = vld [vmem:[%s8475_s14 + $0x948] sm:$0xff]  }
 0x122   : > { %v8016_v12 = vld [vmem:[%s8475_s14 + $0x9c8] sm:$0xff]  }
 0x123   : > { %7242 = vmatpush3.bf16.msra.mxu0 %v7945_v15  ;;  %v7979_v15 = vld [vmem:[%s8475_s14 + $0x840] sm:$0xff]  }
 0x124   : > { %7264 = vmatpush3.bf16.msra.mxu1 %v7946_v16  ;;  %7271 = vmatprep.subr.bf16.mxu0 %v7947_v25  ;;  %v7980_v16 = vld [vmem:[%s8475_s14 + $0x8c0] sm:$0xff]   ;;  %v7989_v25 = vld [vmem:[%s8475_s14 + $0x810] sm:$0xff]  }
 0x125   : > { %7293 = vmatprep.subr.bf16.mxu1 %v7948_v26  ;;  %v7990_v26 = vld [vmem:[%s8475_s14 + $0x890] sm:$0xff]  }
 0x126   : > { %5393 = vmatmul.mubr.bf16.vlgmr.msra.gmra.mrb[24].mxu0 %v6397_v20  ;;  %v7984_v20 = vld [vmem:[%s8475_s14 + $0x8c8] sm:$0xff]  }
 0x127   : > { %5434 = vmatmul.mubr.bf16.vlgmr.msra.gmra.mrb[24].mxu1 %v6399_v23  ;;  %7272 = vmatpush3.bf16.msra.mxu0 %v7949_v27  ;;  %v7987_v23 = vld [vmem:[%s8475_s14 + $0x850] sm:$0xff]   ;;  %v7991_v27 = vld [vmem:[%s8475_s14 + $0x858] sm:$0xff]  }
 0x128   : > { %7294 = vmatpush3.bf16.msra.mxu1 %v7950_v28  ;;  %7273 = vmatprep.subr.bf16.mxu0 %v7951_v29  ;;  %v7992_v28 = vld [vmem:[%s8475_s14 + $0x8d8] sm:$0xff]  }
 0x129   : > { %7295 = vmatprep.subr.bf16.mxu1 %v7952_v30  ;;  %5474 = vmatprep.mubr.bf16.mxu0 %v6402_v10  ;;  %v7993_v30 = vld [vmem:[%s8475_s14 + $0x818] sm:$0xff]   ;;  %v8014_v10 = vld [vmem:[%s8475_s14 + $0x980] sm:$0xff]  }
 0x12a   : > { %5515 = vmatprep.mubr.bf16.mxu1 %v6404_v14  ;;  %v8018_v14 = vld [vmem:[%s8475_s14 + $0x988] sm:$0xff]  }
 0x12b   : > { %7274 = vmatpush3.bf16.msra.mxu0 %v7953_v31 }
 0x12c   : > { %7296 = vmatpush3.bf16.msra.mxu1 %v7954_v32  ;;  %7275 = vmatprep.subr.bf16.mxu0 %v7955_v33  ;;  %v7994_v32 = vld [vmem:[%s8475_s14 + $0x898] sm:$0xff]  }
 0x12d   : > { %7297 = vmatprep.subr.bf16.mxu1 %v7956_v34  ;;  %v7995_v34 = vld [vmem:[%s8475_s14 + $0x860] sm:$0xff]  }
 0x12f   : > { %7276 = vmatpush3.bf16.msra.mxu0 %v7957_v35 }
 0x130   : > { %7298 = vmatpush3.bf16.msra.mxu1 %v7958_v36  ;;  %7277 = vmatprep.subr.bf16.mxu0 %v7959_v37  ;;  %v7996_v37 = vld [vmem:[%s8475_s14 + $0x8e0] sm:$0xff]  }
 0x131   : > { %7299 = vmatprep.subr.bf16.mxu1 %v7960_v38 }
 0x133   : > { %7278 = vmatpush3.bf16.msra.mxu0 %v7961_v40  ;;  %v7997_v40 = vld [vmem:[%s8475_s14 + $0x820] sm:$0xff]  }
 0x134   : > { %7300 = vmatpush3.bf16.msra.mxu1 %v7962_v42  ;;  %7279 = vmatprep.subr.bf16.mxu0 %v7963_v44 }
 0x135   : > { %7301 = vmatprep.subr.bf16.mxu1 %v7964_v47 }
 0x137   : > { %7280 = vmatpush3.bf16.msra.mxu0 %v7965_v50 }
 0x138   : > { %7302 = vmatpush3.bf16.msra.mxu1 %v7966_v52  ;;  %7281 = vmatprep.subr.bf16.mxu0 %v7967_v55  ;;  %v8003_v55 = vld [vmem:[%s8475_s14 + $0x870] sm:$0xff]  }
 0x139   : > { %v6979_v39 = vpop.f32.mrb[0].mxu0  ;;  %7303 = vmatprep.subr.bf16.mxu1 %v7968_v58  ;;  %v8006_v58 = vld [vmem:[%s8475_s14 + $0x8b0] sm:$0xff]  }
 0x13a   : > { %v7001_v41 = vpop.f32.mrb[0].mxu1  ;;  %v6980_v43 = vpop.f32.mrb[1].mxu0 }
 0x13b   : > { %v6981_v45 = vadd.f32 %v6980_v43, %v6979_v39  ;;  %v7002_v46 = vpop.f32.mrb[1].mxu1  ;;  %v6982_v49 = vpop.f32.mrb[2].mxu0  ;;  %7282 = vmatpush3.bf16.msra.mxu0 %v7969_v60  ;;  %v7998_v43 = vld [vmem:[%s8475_s14 + $0x8a0] sm:$0xff]   ;;  %v8008_v60 = vld [vmem:[%s8475_s14 + $0x8f8] sm:$0xff]  }
 0x13c   : > { %v7003_v48 = vadd.f32 %v7002_v46, %v7001_v41  ;;  %v7004_v51 = vpop.f32.mrb[2].mxu1  ;;  %v6983_v54 = vpop.f32.mrb[3].mxu0  ;;  %7304 = vmatpush3.bf16.msra.mxu1 %v7970_v61  ;;  %7283 = vmatprep.subr.bf16.mxu0 %v7971_v63  ;;  %v7999_v46 = vld [vmem:[%s8475_s14 + $0x868] sm:$0xff]   ;;  %v8009_v61 = vld [vmem:[%s8475_s14 + $0x838] sm:$0xff]   ;;  %v404_v63 = vld [vmem:[%s8477_s15 + $0x80] sm:$0xff] }
 0x13d   : > { %v6984_v56 = vadd.f32 %v6983_v54, %v6982_v49  ;;  %v7005_v57 = vpop.f32.mrb[3].mxu1  ;;  %7305 = vmatprep.subr.bf16.mxu1 %v7972_v0  ;;  %v8000_v49 = vld [vmem:[%s8475_s14 + $0x8e8] sm:$0xff]   ;;  %v436_v0 = vld [vmem:[%s8477_s15 + $0x180] sm:$0xff] }
 0x13e   : > { %v8752_v53 = vadd.f32 %v7003_v48, %v6981_v45  ;;  %v7006_v59 = vadd.f32 %v7005_v57, %v7004_v51  ;;  %v8001_v51 = vld [vmem:[%s8475_s14 + $0x828] sm:$0xff]   ;;  %v8005_v57 = vld [vmem:[%s8475_s14 + $0x830] sm:$0xff]  }
 0x13f   : > { %7284 = vmatpush3.bf16.msra.mxu0 %v7973_v1  ;;  %v405_v1 = vld [vmem:[%s8477_s15 + $0x88] sm:$0xff] }
 0x140   : > { %v8758_v62 = vadd.f32 %v7006_v59, %v6984_v56  ;;  %7306 = vmatpush3.bf16.msra.mxu1 %v7974_v2  ;;  %7285 = vmatprep.subr.bf16.mxu0 %v7975_v3  ;;  %v8004_v56 = vld [vmem:[%s8475_s14 + $0x8f0] sm:$0xff]   ;;  %v8007_v59 = vld [vmem:[%s8475_s14 + $0x878] sm:$0xff]   ;;  %v6405_v3 = vcombine.low %v404_v63, %v436_v0 }
 0x141   : > { %7307 = vmatprep.subr.bf16.mxu1 %v7976_v4  ;;  %v437_v2 = vld [vmem:[%s8477_s15 + $0x188] sm:$0xff]  ;;  %v6406_v4 = vcombine.high %v404_v63, %v436_v0  ;;  %v8043_v63 = vld [vmem:[%s8475_s14 + $0xa40] sm:$0xff]  }
 0x142   : > { %v8044_v0 = vld [vmem:[%s8475_s14 + $0xac0] sm:$0xff]  }
 0x143   : > { %7286 = vmatpush3.bf16.msra.mxu0 %v7977_v5  ;;  %v6407_v5 = vcombine.low %v405_v1, %v437_v2 }
 0x144   : > { %7308 = vmatpush3.bf16.msra.mxu1 %v7978_v6  ;;  %7315 = vmatprep.subr.bf16.mxu0 %v7979_v15  ;;  %v6408_v6 = vcombine.high %v405_v1, %v437_v2  ;;  %v8019_v15 = vld [vmem:[%s8475_s14 + $0x950] sm:$0xff]   ;;  %v8045_v1 = vld [vmem:[%s8475_s14 + $0xa00] sm:$0xff]  }
 0x145   : > { %7337 = vmatprep.subr.bf16.mxu1 %v7980_v16  ;;  %v8020_v16 = vld [vmem:[%s8475_s14 + $0x9d0] sm:$0xff]   ;;  %v8046_v2 = vld [vmem:[%s8475_s14 + $0xa80] sm:$0xff]  }
 0x146   : > { %5475 = vmatmul.mubr.bf16.vlgmr.msra.gmra.mrb[28].mxu0 %v6401_v9  ;;  %v8013_v9 = vld [vmem:[%s8475_s14 + $0x900] sm:$0xff]  }
 0x147   : > { %5516 = vmatmul.mubr.bf16.vlgmr.msra.gmra.mrb[28].mxu1 %v6403_v13  ;;  %7316 = vmatpush3.bf16.msra.mxu0 %v7981_v17  ;;  %v8017_v13 = vld [vmem:[%s8475_s14 + $0x908] sm:$0xff]   ;;  %v8021_v17 = vld [vmem:[%s8475_s14 + $0x910] sm:$0xff]  }
 0x148   : > { %7338 = vmatpush3.bf16.msra.mxu1 %v7982_v18  ;;  %7317 = vmatprep.subr.bf16.mxu0 %v7983_v19  ;;  %v8022_v18 = vld [vmem:[%s8475_s14 + $0x990] sm:$0xff]   ;;  %v8023_v19 = vld [vmem:[%s8475_s14 + $0x958] sm:$0xff]  }
 0x149   : > { %7339 = vmatprep.subr.bf16.mxu1 %v7984_v20  ;;  %5556 = vmatprep.mubr.bf16.mxu0 %v6406_v4  ;;  %v8024_v20 = vld [vmem:[%s8475_s14 + $0x9d8] sm:$0xff]   ;;  %v8048_v4 = vld [vmem:[%s8475_s14 + $0xac8] sm:$0xff]  }
 0x14a   : > { %5597 = vmatprep.mubr.bf16.mxu1 %v6408_v6  ;;  %v8050_v6 = vld [vmem:[%s8475_s14 + $0xa88] sm:$0xff]  }
 0x14b   : > { %7318 = vmatpush3.bf16.msra.mxu0 %v7985_v21  ;;  %v8025_v21 = vld [vmem:[%s8475_s14 + $0x918] sm:$0xff]  }
 0x14c   : > { %7340 = vmatpush3.bf16.msra.mxu1 %v7986_v22  ;;  %7319 = vmatprep.subr.bf16.mxu0 %v7987_v23  ;;  %v8026_v23 = vld [vmem:[%s8475_s14 + $0x998] sm:$0xff]  }
 0x14d   : > { %7341 = vmatprep.subr.bf16.mxu1 %v7988_v24 }
 0x14f   : > { %7320 = vmatpush3.bf16.msra.mxu0 %v7989_v25  ;;  %v8027_v25 = vld [vmem:[%s8475_s14 + $0x960] sm:$0xff]  }
 0x150   : > { %7342 = vmatpush3.bf16.msra.mxu1 %v7990_v26  ;;  %7321 = vmatprep.subr.bf16.mxu0 %v7991_v27  ;;  %v8028_v27 = vld [vmem:[%s8475_s14 + $0x9e0] sm:$0xff]  }
 0x151   : > { %7343 = vmatprep.subr.bf16.mxu1 %v7992_v28 }
 0x153   : > { %7322 = vmatpush3.bf16.msra.mxu0 %v7993_v30  ;;  %v8029_v30 = vld [vmem:[%s8475_s14 + $0x920] sm:$0xff]  }
 0x154   : > { %7344 = vmatpush3.bf16.msra.mxu1 %v7994_v32  ;;  %7323 = vmatprep.subr.bf16.mxu0 %v7995_v34 }
 0x155   : > { %7345 = vmatprep.subr.bf16.mxu1 %v7996_v37 }
 0x157   : > { %7324 = vmatpush3.bf16.msra.mxu0 %v7997_v40 }
 0x158   : > { %7346 = vmatpush3.bf16.msra.mxu1 %v7998_v43  ;;  %7325 = vmatprep.subr.bf16.mxu0 %v7999_v46  ;;  %v8035_v46 = vld [vmem:[%s8475_s14 + $0x970] sm:$0xff]  }
 0x159   : > { %v7023_v29 = vpop.f32.mrb[4].mxu0  ;;  %7347 = vmatprep.subr.bf16.mxu1 %v8000_v49  ;;  %v8037_v49 = vld [vmem:[%s8475_s14 + $0x930] sm:$0xff]  }
 0x15a   : > { %v7045_v31 = vpop.f32.mrb[4].mxu1  ;;  %v7024_v33 = vpop.f32.mrb[5].mxu0 }
 0x15b   : > { %v7025_v35 = vadd.f32 %v7024_v33, %v7023_v29  ;;  %v7046_v36 = vpop.f32.mrb[5].mxu1  ;;  %v7026_v39 = vpop.f32.mrb[6].mxu0  ;;  %7326 = vmatpush3.bf16.msra.mxu0 %v8001_v51  ;;  %v8030_v33 = vld [vmem:[%s8475_s14 + $0x9a0] sm:$0xff]   ;;  %v8039_v51 = vld [vmem:[%s8475_s14 + $0x978] sm:$0xff]  }
 0x15c   : > { %v7047_v38 = vadd.f32 %v7046_v36, %v7045_v31  ;;  %v7048_v42 = vpop.f32.mrb[6].mxu1  ;;  %v7027_v44 = vpop.f32.mrb[7].mxu0  ;;  %7327 = vmatprep.subr.bf16.mxu0 %v8003_v55  ;;  %v8031_v36 = vld [vmem:[%s8475_s14 + $0x968] sm:$0xff]   ;;  %v406_v55 = vld [vmem:[%s8477_s15 + $0x90] sm:$0xff] }
 0x15d   : > { %v4985_v41 = vadd.f32 %v7025_v35, %v8752_v53  ;;  %v7028_v47 = vadd.f32 %v7027_v44, %v7026_v39  ;;  %v7049_v48 = vpop.f32.mrb[7].mxu1  ;;  %v8002_v53 = vld [vmem:[%s8475_s14 + $0x8a8] sm:$0xff]  }
 0x15e   : > { %v7050_v50 = vadd.f32 %v7049_v48, %v7048_v42  ;;  %7348 = vmatpush3.bf16.msra.mxu1 %v8002_v53  ;;  %v8032_v39 = vld [vmem:[%s8475_s14 + $0x9e8] sm:$0xff]   ;;  %v8036_v48 = vld [vmem:[%s8475_s14 + $0x9f0] sm:$0xff]   ;;  %v8041_v53 = vld [vmem:[%s8475_s14 + $0x938] sm:$0xff]  }
 0x15f   : > { %v8793_v45 = vadd.f32 %v7047_v38, %v4985_v41  ;;  %v4988_v52 = vadd.f32 %v7028_v47, %v8758_v62  ;;  %7349 = vmatprep.subr.bf16.mxu1 %v8004_v56  ;;  %7328 = vmatpush3.bf16.msra.mxu0 %v8005_v57  ;;  %v8010_v62 = vld [vmem:[%s8475_s14 + $0x8b8] sm:$0xff]   ;;  %v8033_v42 = vld [vmem:[%s8475_s14 + $0x928] sm:$0xff]   ;;  %v438_v56 = vld [vmem:[%s8477_s15 + $0x190] sm:$0xff] }
 0x160   : > { %7329 = vmatprep.subr.bf16.mxu0 %v8007_v59  ;;  %v8034_v44 = vld [vmem:[%s8475_s14 + $0x9a8] sm:$0xff]   ;;  %v6410_v59 = vcombine.high %v406_v55, %v438_v56 }
 0x161   : > { %v8800_v54 = vadd.f32 %v7050_v50, %v4988_v52  ;;  %v8038_v50 = vld [vmem:[%s8475_s14 + $0x9b0] sm:$0xff]   ;;  %v8040_v52 = vld [vmem:[%s8475_s14 + $0x9f8] sm:$0xff]   ;;  %v407_v57 = vld [vmem:[%s8477_s15 + $0x98] sm:$0xff] }
 0x162   : > { %7350 = vmatpush3.bf16.msra.mxu1 %v8006_v58  ;;  %v6409_v58 = vcombine.low %v406_v55, %v438_v56  ;;  %v8075_v55 = vld [vmem:[%s8475_s14 + $0xb40] sm:$0xff]  }
 0x163   : > { %7351 = vmatprep.subr.bf16.mxu1 %v8008_v60  ;;  %7330 = vmatpush3.bf16.msra.mxu0 %v8009_v61  ;;  %v439_v60 = vld [vmem:[%s8477_s15 + $0x198] sm:$0xff]  ;;  %v8076_v56 = vld [vmem:[%s8475_s14 + $0xbc0] sm:$0xff]  }
 0x164   : > { %7359 = vmatprep.subr.bf16.mxu0 %v8011_v7  ;;  %v6411_v61 = vcombine.low %v407_v57, %v439_v60  ;;  %v8051_v7 = vld [vmem:[%s8475_s14 + $0xa50] sm:$0xff]  }
 0x166   : > { %7352 = vmatpush3.bf16.msra.mxu1 %v8010_v62  ;;  %5557 = vmatmul.mubr.bf16.vlgmr.msra.gmra.mrb[32].mxu0 %v6405_v3  ;;  %v6412_v62 = vcombine.high %v407_v57, %v439_v60  ;;  %v8047_v3 = vld [vmem:[%s8475_s14 + $0xa48] sm:$0xff]   ;;  %v8077_v57 = vld [vmem:[%s8475_s14 + $0xb00] sm:$0xff]  }
 0x167   : > { %7381 = vmatprep.subr.bf16.mxu1 %v8012_v8  ;;  %7360 = vmatpush3.bf16.msra.mxu0 %v8013_v9  ;;  %v8052_v8 = vld [vmem:[%s8475_s14 + $0xad0] sm:$0xff]   ;;  %v8080_v60 = vld [vmem:[%s8475_s14 + $0xbc8] sm:$0xff]  }
 0x168   : > { %7361 = vmatprep.subr.bf16.mxu0 %v8015_v11  ;;  %5638 = vmatprep.mubr.bf16.mxu0 %v6410_v59  ;;  %v8053_v9 = vld [vmem:[%s8475_s14 + $0xa10] sm:$0xff]   ;;  %v8055_v11 = vld [vmem:[%s8475_s14 + $0xa58] sm:$0xff]   ;;  %v8079_v59 = vld [vmem:[%s8475_s14 + $0xb48] sm:$0xff]  }
 0x169   : > { %5598 = vmatmul.mubr.bf16.vlgmr.msra.gmra.mrb[32].mxu1 %v6407_v5  ;;  %v8049_v5 = vld [vmem:[%s8475_s14 + $0xa08] sm:$0xff]  }
 0x16a   : > { %7382 = vmatpush3.bf16.msra.mxu1 %v8014_v10  ;;  %5679 = vmatprep.mubr.bf16.mxu1 %v6412_v62  ;;  %v8054_v10 = vld [vmem:[%s8475_s14 + $0xa90] sm:$0xff]   ;;  %v8082_v62 = vld [vmem:[%s8475_s14 + $0xb88] sm:$0xff]  }
 0x16b   : > { %7383 = vmatprep.subr.bf16.mxu1 %v8016_v12  ;;  %7362 = vmatpush3.bf16.msra.mxu0 %v8017_v13  ;;  %v8056_v12 = vld [vmem:[%s8475_s14 + $0xad8] sm:$0xff]  }
 0x16c   : > { %7363 = vmatprep.subr.bf16.mxu0 %v8019_v15 }
 0x16e   : > { %7384 = vmatpush3.bf16.msra.mxu1 %v8018_v14  ;;  %v8057_v14 = vld [vmem:[%s8475_s14 + $0xa18] sm:$0xff]  }
 0x16f   : > { %7385 = vmatprep.subr.bf16.mxu1 %v8020_v16  ;;  %7364 = vmatpush3.bf16.msra.mxu0 %v8021_v17  ;;  %v8058_v16 = vld [vmem:[%s8475_s14 + $0xa98] sm:$0xff]  }
 0x170   : > { %7365 = vmatprep.subr.bf16.mxu0 %v8023_v19 }
 0x172   : > { %7386 = vmatpush3.bf16.msra.mxu1 %v8022_v18  ;;  %v8059_v18 = vld [vmem:[%s8475_s14 + $0xa60] sm:$0xff]  }
 0x173   : > { %7387 = vmatprep.subr.bf16.mxu1 %v8024_v20  ;;  %7366 = vmatpush3.bf16.msra.mxu0 %v8025_v21  ;;  %v8060_v21 = vld [vmem:[%s8475_s14 + $0xae0] sm:$0xff]  }
 0x174   : > { %7367 = vmatprep.subr.bf16.mxu0 %v8027_v25 }
 0x176   : > { %7388 = vmatpush3.bf16.msra.mxu1 %v8026_v23 }
 0x177   : > { %7389 = vmatprep.subr.bf16.mxu1 %v8028_v27  ;;  %7368 = vmatpush3.bf16.msra.mxu0 %v8029_v30  ;;  %v8062_v27 = vld [vmem:[%s8475_s14 + $0xaa0] sm:$0xff]   ;;  %v8063_v30 = vld [vmem:[%s8475_s14 + $0xa68] sm:$0xff]  }
 0x178   : > { %7369 = vmatprep.subr.bf16.mxu0 %v8031_v36 }
 0x179   : > { %v7067_v22 = vpop.f32.mrb[8].mxu0 }
 0x17a   : > { %v7089_v24 = vpop.f32.mrb[8].mxu1  ;;  %v7068_v26 = vpop.f32.mrb[9].mxu0  ;;  %7390 = vmatpush3.bf16.msra.mxu1 %v8030_v33  ;;  %v8064_v33 = vld [vmem:[%s8475_s14 + $0xae8] sm:$0xff]  }
 0x17b   : > { %v7069_v28 = vadd.f32 %v7068_v26, %v7067_v22  ;;  %v7090_v29 = vpop.f32.mrb[9].mxu1  ;;  %v7070_v32 = vpop.f32.mrb[10].mxu0  ;;  %7391 = vmatprep.subr.bf16.mxu1 %v8032_v39  ;;  %7370 = vmatpush3.bf16.msra.mxu0 %v8033_v42  ;;  %v8067_v39 = vld [vmem:[%s8475_s14 + $0xa70] sm:$0xff]  }
 0x17c   : > { %v7091_v31 = vadd.f32 %v7090_v29, %v7089_v24  ;;  %v7092_v35 = vpop.f32.mrb[10].mxu1  ;;  %v7071_v37 = vpop.f32.mrb[11].mxu0  ;;  %7371 = vmatprep.subr.bf16.mxu0 %v8035_v46  ;;  %v8061_v24 = vld [vmem:[%s8475_s14 + $0xa20] sm:$0xff]   ;;  %v8070_v42 = vld [vmem:[%s8475_s14 + $0xab0] sm:$0xff]   ;;  %v8074_v46 = vld [vmem:[%s8475_s14 + $0xab8] sm:$0xff]  }
 0x17d   : > { %v5067_v34 = vadd.f32 %v7069_v28, %v8793_v45  ;;  %v7072_v40 = vadd.f32 %v7071_v37, %v7070_v32  ;;  %v7093_v41 = vpop.f32.mrb[11].mxu1  ;;  %v8066_v37 = vld [vmem:[%s8475_s14 + $0xaa8] sm:$0xff]  }
 0x17e   : > { %v7094_v43 = vadd.f32 %v7093_v41, %v7092_v35  ;;  %7392 = vmatpush3.bf16.msra.mxu1 %v8034_v44  ;;  %v8065_v35 = vld [vmem:[%s8475_s14 + $0xa28] sm:$0xff]   ;;  %v8069_v41 = vld [vmem:[%s8475_s14 + $0xa30] sm:$0xff]   ;;  %v8072_v44 = vld [vmem:[%s8475_s14 + $0xaf8] sm:$0xff]  }
 0x17f   : > { %v8836_v38 = vadd.f32 %v7091_v31, %v5067_v34  ;;  %v5070_v45 = vadd.f32 %v7072_v40, %v8800_v54  ;;  %7393 = vmatprep.subr.bf16.mxu1 %v8036_v48  ;;  %7372 = vmatpush3.bf16.msra.mxu0 %v8037_v49  ;;  %v8042_v54 = vld [vmem:[%s8475_s14 + $0x9b8] sm:$0xff]   ;;  %v8068_v40 = vld [vmem:[%s8475_s14 + $0xaf0] sm:$0xff]  }
 0x180   : > { %7373 = vmatprep.subr.bf16.mxu0 %v8039_v51  ;;  %v440_v48 = vld [vmem:[%s8477_s15 + $0x1a0] sm:$0xff]  ;;  %v409_v51 = vld [vmem:[%s8477_s15 + $0xa8] sm:$0xff] }
 0x181   : > { %v8843_v47 = vadd.f32 %v7094_v43, %v5070_v45  ;;  %v8071_v43 = vld [vmem:[%s8475_s14 + $0xa78] sm:$0xff]  }
 0x182   : > { %7394 = vmatpush3.bf16.msra.mxu1 %v8038_v50  ;;  %v8073_v45 = vld [vmem:[%s8475_s14 + $0xa38] sm:$0xff]  }
 0x183   : > { %7395 = vmatprep.subr.bf16.mxu1 %v8040_v52  ;;  %7374 = vmatpush3.bf16.msra.mxu0 %v8041_v53  ;;  %v441_v52 = vld [vmem:[%s8477_s15 + $0x1a8] sm:$0xff] }
 0x184   : > { %7403 = vmatprep.subr.bf16.mxu0 %v8043_v63  ;;  %v6415_v53 = vcombine.low %v409_v51, %v441_v52  ;;  %v8083_v63 = vld [vmem:[%s8475_s14 + $0xb50] sm:$0xff]  }
 0x186   : > { %7396 = vmatpush3.bf16.msra.mxu1 %v8042_v54  ;;  %5639 = vmatmul.mubr.bf16.vlgmr.msra.gmra.mrb[36].mxu0 %v6409_v58  ;;  %v6416_v54 = vcombine.high %v409_v51, %v441_v52  ;;  %v8078_v58 = vld [vmem:[%s8475_s14 + $0xb80] sm:$0xff]   ;;  %v8111_v51 = vld [vmem:[%s8475_s14 + $0xc48] sm:$0xff]  }
 0x187   : > { %7425 = vmatprep.subr.bf16.mxu1 %v8044_v0  ;;  %7404 = vmatpush3.bf16.msra.mxu0 %v8045_v1  ;;  %v8084_v0 = vld [vmem:[%s8475_s14 + $0xbd0] sm:$0xff]   ;;  %v8112_v52 = vld [vmem:[%s8475_s14 + $0xcc8] sm:$0xff]  }
 0x188   : > { %7405 = vmatprep.subr.bf16.mxu0 %v8047_v3  ;;  %v8085_v1 = vld [vmem:[%s8475_s14 + $0xb10] sm:$0xff]   ;;  %v8087_v3 = vld [vmem:[%s8475_s14 + $0xb58] sm:$0xff]  }
 0x189   : > { %5680 = vmatmul.mubr.bf16.vlgmr.msra.gmra.mrb[36].mxu1 %v6411_v61  ;;  %v8081_v61 = vld [vmem:[%s8475_s14 + $0xb08] sm:$0xff]  }
 0x18a   : > { %7426 = vmatpush3.bf16.msra.mxu1 %v8046_v2  ;;  %5761 = vmatprep.mubr.bf16.mxu1 %v6416_v54  ;;  %v8086_v2 = vld [vmem:[%s8475_s14 + $0xb90] sm:$0xff]   ;;  %v8114_v54 = vld [vmem:[%s8475_s14 + $0xc88] sm:$0xff]  }
 0x18b   : > { %7427 = vmatprep.subr.bf16.mxu1 %v8048_v4  ;;  %7406 = vmatpush3.bf16.msra.mxu0 %v8049_v5  ;;  %v8088_v4 = vld [vmem:[%s8475_s14 + $0xbd8] sm:$0xff]  }
 0x18c   : > { %7407 = vmatprep.subr.bf16.mxu0 %v8051_v7 }
 0x18e   : > { %7428 = vmatpush3.bf16.msra.mxu1 %v8050_v6  ;;  %v8089_v6 = vld [vmem:[%s8475_s14 + $0xb18] sm:$0xff]  }
 0x18f   : > { %7429 = vmatprep.subr.bf16.mxu1 %v8052_v8  ;;  %7408 = vmatpush3.bf16.msra.mxu0 %v8053_v9  ;;  %v8090_v8 = vld [vmem:[%s8475_s14 + $0xb98] sm:$0xff]  }
 0x190   : > { %7409 = vmatprep.subr.bf16.mxu0 %v8055_v11 }
 0x192   : > { %7430 = vmatpush3.bf16.msra.mxu1 %v8054_v10  ;;  %v8091_v10 = vld [vmem:[%s8475_s14 + $0xb60] sm:$0xff]  }
 0x193   : > { %7431 = vmatprep.subr.bf16.mxu1 %v8056_v12  ;;  %7410 = vmatpush3.bf16.msra.mxu0 %v8057_v14 }
 0x194   : > { %7411 = vmatprep.subr.bf16.mxu0 %v8059_v18 }
 0x196   : > { %7432 = vmatpush3.bf16.msra.mxu1 %v8058_v16  ;;  %v8093_v16 = vld [vmem:[%s8475_s14 + $0xb20] sm:$0xff]  }
 0x197   : > { %7433 = vmatprep.subr.bf16.mxu1 %v8060_v21  ;;  %7412 = vmatpush3.bf16.msra.mxu0 %v8061_v24 }
 0x198   : > { %7413 = vmatprep.subr.bf16.mxu0 %v8063_v30 }
 0x199   : > { %v7111_v13 = vpop.f32.mrb[12].mxu0 }
 0x19a   : > { %v7133_v15 = vpop.f32.mrb[12].mxu1  ;;  %v7112_v17 = vpop.f32.mrb[13].mxu0  ;;  %7434 = vmatpush3.bf16.msra.mxu1 %v8062_v27  ;;  %v8097_v27 = vld [vmem:[%s8475_s14 + $0xb28] sm:$0xff]  }
 0x19b   : > { %v7113_v19 = vadd.f32 %v7112_v17, %v7111_v13  ;;  %v7134_v20 = vpop.f32.mrb[13].mxu1  ;;  %v7114_v23 = vpop.f32.mrb[14].mxu0  ;;  %7435 = vmatprep.subr.bf16.mxu1 %v8064_v33  ;;  %7414 = vmatpush3.bf16.msra.mxu0 %v8065_v35  ;;  %v8092_v13 = vld [vmem:[%s8475_s14 + $0xbe0] sm:$0xff]   ;;  %v8101_v33 = vld [vmem:[%s8475_s14 + $0xb30] sm:$0xff]   ;;  %v8103_v35 = vld [vmem:[%s8475_s14 + $0xb78] sm:$0xff]  }
 0x19c   : > { %v7135_v22 = vadd.f32 %v7134_v20, %v7133_v15  ;;  %v7136_v26 = vpop.f32.mrb[14].mxu1  ;;  %v7115_v28 = vpop.f32.mrb[15].mxu0  ;;  %7415 = vmatprep.subr.bf16.mxu0 %v8067_v39  ;;  %v410_v39 = vld [vmem:[%s8477_s15 + $0xb0] sm:$0xff] }
 0x19d   : > { %v5149_v25 = vadd.f32 %v7113_v19, %v8836_v38  ;;  %v7116_v31 = vadd.f32 %v7115_v28, %v7114_v23  ;;  %v7137_v32 = vpop.f32.mrb[15].mxu1  ;;  %v8094_v19 = vld [vmem:[%s8475_s14 + $0xba0] sm:$0xff]  }
 0x19e   : > { %v7138_v34 = vadd.f32 %v7137_v32, %v7136_v26  ;;  %7436 = vmatpush3.bf16.msra.mxu1 %v8066_v37  ;;  %v8100_v32 = vld [vmem:[%s8475_s14 + $0xbf0] sm:$0xff]   ;;  %v8105_v37 = vld [vmem:[%s8475_s14 + $0xb38] sm:$0xff]  }
 0x19f   : > { %v8877_v29 = vadd.f32 %v7135_v22, %v5149_v25  ;;  %v5152_v36 = vadd.f32 %v7116_v31, %v8843_v47  ;;  %7437 = vmatprep.subr.bf16.mxu1 %v8068_v40  ;;  %7416 = vmatpush3.bf16.msra.mxu0 %v8069_v41  ;;  %v408_v47 = vld [vmem:[%s8477_s15 + $0xa0] sm:$0xff]  ;;  %v8095_v22 = vld [vmem:[%s8475_s14 + $0xb68] sm:$0xff]   ;;  %v442_v40 = vld [vmem:[%s8477_s15 + $0x1b0] sm:$0xff] }
 0x1a0   : > { %7417 = vmatprep.subr.bf16.mxu0 %v8071_v43  ;;  %v6413_v49 = vcombine.low %v408_v47, %v440_v48  ;;  %v6414_v50 = vcombine.high %v408_v47, %v440_v48  ;;  %v8096_v25 = vld [vmem:[%s8475_s14 + $0xbe8] sm:$0xff]   ;;  %v8099_v31 = vld [vmem:[%s8475_s14 + $0xb70] sm:$0xff]   ;;  %v6417_v43 = vcombine.low %v410_v39, %v442_v40  ;;  %v8107_v47 = vld [vmem:[%s8475_s14 + $0xc40] sm:$0xff]  }
 0x1a1   : > { %v8884_v38 = vadd.f32 %v7138_v34, %v5152_v36  ;;  %v8102_v34 = vld [vmem:[%s8475_s14 + $0xbb0] sm:$0xff]   ;;  %v8104_v36 = vld [vmem:[%s8475_s14 + $0xbf8] sm:$0xff]   ;;  %v411_v41 = vld [vmem:[%s8477_s15 + $0xb8] sm:$0xff] }
 0x1a2   : > { %7438 = vmatpush3.bf16.msra.mxu1 %v8070_v42  ;;  %5720 = vmatprep.mubr.bf16.mxu0 %v6414_v50  ;;  %v443_v42 = vld [vmem:[%s8477_s15 + $0x1b8] sm:$0xff]  ;;  %v8108_v48 = vld [vmem:[%s8475_s14 + $0xcc0] sm:$0xff]  }
 0x1a3   : > { %7439 = vmatprep.subr.bf16.mxu1 %v8072_v44  ;;  %7418 = vmatpush3.bf16.msra.mxu0 %v8073_v45  ;;  %v6418_v44 = vcombine.high %v410_v39, %v442_v40  ;;  %v6419_v45 = vcombine.low %v411_v41, %v443_v42  ;;  %v8110_v50 = vld [vmem:[%s8475_s14 + $0xc80] sm:$0xff]  }
 0x1a4   : > { %7447 = vmatprep.subr.bf16.mxu0 %v8075_v55  ;;  %v8115_v55 = vld [vmem:[%s8475_s14 + $0xc50] sm:$0xff]   ;;  %v8139_v39 = vld [vmem:[%s8475_s14 + $0xd40] sm:$0xff]  }
 0x1a5   : > { %v8140_v40 = vld [vmem:[%s8475_s14 + $0xdc0] sm:$0xff]  }
 0x1a6   : > { %7440 = vmatpush3.bf16.msra.mxu1 %v8074_v46  ;;  %5721 = vmatmul.mubr.bf16.vlgmr.msra.gmra.mrb[40].mxu0 %v6413_v49  ;;  %v6420_v46 = vcombine.high %v411_v41, %v443_v42  ;;  %v8109_v49 = vld [vmem:[%s8475_s14 + $0xc00] sm:$0xff]  }
 0x1a7   : > { %7469 = vmatprep.subr.bf16.mxu1 %v8076_v56  ;;  %7448 = vmatpush3.bf16.msra.mxu0 %v8077_v57  ;;  %v8116_v56 = vld [vmem:[%s8475_s14 + $0xcd0] sm:$0xff]   ;;  %v8141_v41 = vld [vmem:[%s8475_s14 + $0xd00] sm:$0xff]  }
 0x1a8   : > { %7449 = vmatprep.subr.bf16.mxu0 %v8079_v59  ;;  %5802 = vmatprep.mubr.bf16.mxu0 %v6418_v44  ;;  %v8117_v57 = vld [vmem:[%s8475_s14 + $0xc10] sm:$0xff]   ;;  %v8119_v59 = vld [vmem:[%s8475_s14 + $0xc58] sm:$0xff]   ;;  %v8142_v42 = vld [vmem:[%s8475_s14 + $0xd80] sm:$0xff]  }
 0x1a9   : > { %5762 = vmatmul.mubr.bf16.vlgmr.msra.gmra.mrb[40].mxu1 %v6415_v53  ;;  %v8113_v53 = vld [vmem:[%s8475_s14 + $0xc08] sm:$0xff]  }
 0x1aa   : > { %7470 = vmatpush3.bf16.msra.mxu1 %v8078_v58  ;;  %5843 = vmatprep.mubr.bf16.mxu1 %v6420_v46  ;;  %v8118_v58 = vld [vmem:[%s8475_s14 + $0xc90] sm:$0xff]   ;;  %v8144_v44 = vld [vmem:[%s8475_s14 + $0xdc8] sm:$0xff]  }
 0x1ab   : > { %7471 = vmatprep.subr.bf16.mxu1 %v8080_v60  ;;  %7450 = vmatpush3.bf16.msra.mxu0 %v8081_v61  ;;  %v8120_v60 = vld [vmem:[%s8475_s14 + $0xcd8] sm:$0xff]   ;;  %v8146_v46 = vld [vmem:[%s8475_s14 + $0xd88] sm:$0xff]  }
 0x1ac   : > { %7451 = vmatprep.subr.bf16.mxu0 %v8083_v63  ;;  %v8121_v61 = vld [vmem:[%s8475_s14 + $0xc18] sm:$0xff]  }
 0x1ad   : > { %v8122_v63 = vld [vmem:[%s8475_s14 + $0xc98] sm:$0xff]  }
 0x1ae   : > { %7472 = vmatpush3.bf16.msra.mxu1 %v8082_v62 }
 0x1af   : > { %7473 = vmatprep.subr.bf16.mxu1 %v8084_v0  ;;  %7452 = vmatpush3.bf16.msra.mxu0 %v8085_v1  ;;  %v8123_v1 = vld [vmem:[%s8475_s14 + $0xc60] sm:$0xff]  }
 0x1b0   : > { %7453 = vmatprep.subr.bf16.mxu0 %v8087_v3  ;;  %v8124_v3 = vld [vmem:[%s8475_s14 + $0xce0] sm:$0xff]  }
 0x1b2   : > { %7474 = vmatpush3.bf16.msra.mxu1 %v8086_v2 }
 0x1b3   : > { %7475 = vmatprep.subr.bf16.mxu1 %v8088_v4  ;;  %7454 = vmatpush3.bf16.msra.mxu0 %v8089_v6  ;;  %v8125_v6 = vld [vmem:[%s8475_s14 + $0xc20] sm:$0xff]  }
 0x1b4   : > { %7455 = vmatprep.subr.bf16.mxu0 %v8091_v10 }
 0x1b6   : > { %7476 = vmatpush3.bf16.msra.mxu1 %v8090_v8 }
 0x1b7   : > { %7477 = vmatprep.subr.bf16.mxu1 %v8092_v13  ;;  %7456 = vmatpush3.bf16.msra.mxu0 %v8093_v16 }
 0x1b8   : > { %7457 = vmatprep.subr.bf16.mxu0 %v8095_v22  ;;  %v8131_v22 = vld [vmem:[%s8475_s14 + $0xc70] sm:$0xff]  }
 0x1b9   : > { %v7155_v5 = vpop.f32.mrb[16].mxu0 }
 0x1ba   : > { %v7177_v7 = vpop.f32.mrb[16].mxu1  ;;  %v7156_v9 = vpop.f32.mrb[17].mxu0  ;;  %7478 = vmatpush3.bf16.msra.mxu1 %v8094_v19 }
 0x1bb   : > { %v7157_v11 = vadd.f32 %v7156_v9, %v7155_v5  ;;  %v7178_v12 = vpop.f32.mrb[17].mxu1  ;;  %v7158_v15 = vpop.f32.mrb[18].mxu0  ;;  %7479 = vmatprep.subr.bf16.mxu1 %v8096_v25  ;;  %7458 = vmatpush3.bf16.msra.mxu0 %v8097_v27  ;;  %v8126_v9 = vld [vmem:[%s8475_s14 + $0xca0] sm:$0xff]   ;;  %v8133_v25 = vld [vmem:[%s8475_s14 + $0xc30] sm:$0xff]   ;;  %v8135_v27 = vld [vmem:[%s8475_s14 + $0xc78] sm:$0xff]  }
 0x1bc   : > { %v7179_v14 = vadd.f32 %v7178_v12, %v7177_v7  ;;  %v7180_v18 = vpop.f32.mrb[18].mxu1  ;;  %v7159_v20 = vpop.f32.mrb[19].mxu0  ;;  %7459 = vmatprep.subr.bf16.mxu0 %v8099_v31  ;;  %v8127_v12 = vld [vmem:[%s8475_s14 + $0xc68] sm:$0xff]   ;;  %v412_v31 = vld [vmem:[%s8477_s15 + $0xc0] sm:$0xff] }
 0x1bd   : > { %v5231_v17 = vadd.f32 %v7157_v11, %v8877_v29  ;;  %v7160_v23 = vadd.f32 %v7159_v20, %v7158_v15  ;;  %v7181_v24 = vpop.f32.mrb[19].mxu1  ;;  %v8098_v29 = vld [vmem:[%s8475_s14 + $0xba8] sm:$0xff]  }
 0x1be   : > { %v7182_v26 = vadd.f32 %v7181_v24, %v7180_v18  ;;  %7480 = vmatpush3.bf16.msra.mxu1 %v8098_v29  ;;  %v8128_v15 = vld [vmem:[%s8475_s14 + $0xce8] sm:$0xff]   ;;  %v8132_v24 = vld [vmem:[%s8475_s14 + $0xcf0] sm:$0xff]   ;;  %v8137_v29 = vld [vmem:[%s8475_s14 + $0xc38] sm:$0xff]  }
 0x1bf   : > { %v8919_v21 = vadd.f32 %v7179_v14, %v5231_v17  ;;  %v5234_v28 = vadd.f32 %v7160_v23, %v8884_v38  ;;  %7481 = vmatprep.subr.bf16.mxu1 %v8100_v32  ;;  %7460 = vmatpush3.bf16.msra.mxu0 %v8101_v33  ;;  %v8106_v38 = vld [vmem:[%s8475_s14 + $0xbb8] sm:$0xff]   ;;  %v8129_v18 = vld [vmem:[%s8475_s14 + $0xc28] sm:$0xff]   ;;  %v444_v32 = vld [vmem:[%s8477_s15 + $0x1c0] sm:$0xff] }
 0x1c0   : > { %7461 = vmatprep.subr.bf16.mxu0 %v8103_v35  ;;  %v8130_v20 = vld [vmem:[%s8475_s14 + $0xca8] sm:$0xff]   ;;  %v413_v33 = vld [vmem:[%s8477_s15 + $0xc8] sm:$0xff]  ;;  %v6422_v35 = vcombine.high %v412_v31, %v444_v32 }
 0x1c1   : > { %v8926_v30 = vadd.f32 %v7182_v26, %v5234_v28  ;;  %v8134_v26 = vld [vmem:[%s8475_s14 + $0xcb0] sm:$0xff]   ;;  %v8136_v28 = vld [vmem:[%s8475_s14 + $0xcf8] sm:$0xff]  }
 0x1c2   : > { %7482 = vmatpush3.bf16.msra.mxu1 %v8102_v34  ;;  %v6421_v34 = vcombine.low %v412_v31, %v444_v32  ;;  %v8171_v31 = vld [vmem:[%s8475_s14 + $0xe40] sm:$0xff]  }
 0x1c3   : > { %7483 = vmatprep.subr.bf16.mxu1 %v8104_v36  ;;  %7462 = vmatpush3.bf16.msra.mxu0 %v8105_v37  ;;  %v445_v36 = vld [vmem:[%s8477_s15 + $0x1c8] sm:$0xff]  ;;  %v8172_v32 = vld [vmem:[%s8475_s14 + $0xec0] sm:$0xff]  }
 0x1c4   : > { %7491 = vmatprep.subr.bf16.mxu0 %v8107_v47  ;;  %v6423_v37 = vcombine.low %v413_v33, %v445_v36  ;;  %v8147_v47 = vld [vmem:[%s8475_s14 + $0xd50] sm:$0xff]  }
 0x1c6   : > { %7484 = vmatpush3.bf16.msra.mxu1 %v8106_v38  ;;  %5803 = vmatmul.mubr.bf16.vlgmr.msra.gmra.mrb[44].mxu0 %v6417_v43  ;;  %v6424_v38 = vcombine.high %v413_v33, %v445_v36  ;;  %v8143_v43 = vld [vmem:[%s8475_s14 + $0xd48] sm:$0xff]   ;;  %v8173_v33 = vld [vmem:[%s8475_s14 + $0xe00] sm:$0xff]  }
 0x1c7   : > { %7513 = vmatprep.subr.bf16.mxu1 %v8108_v48  ;;  %7492 = vmatpush3.bf16.msra.mxu0 %v8109_v49  ;;  %v8148_v48 = vld [vmem:[%s8475_s14 + $0xdd0] sm:$0xff]   ;;  %v8176_v36 = vld [vmem:[%s8475_s14 + $0xec8] sm:$0xff]  }
 0x1c8   : > { %7493 = vmatprep.subr.bf16.mxu0 %v8111_v51  ;;  %5884 = vmatprep.mubr.bf16.mxu0 %v6422_v35  ;;  %v8149_v49 = vld [vmem:[%s8475_s14 + $0xd10] sm:$0xff]   ;;  %v8151_v51 = vld [vmem:[%s8475_s14 + $0xd58] sm:$0xff]   ;;  %v8175_v35 = vld [vmem:[%s8475_s14 + $0xe48] sm:$0xff]  }
 0x1c9   : > { %5844 = vmatmul.mubr.bf16.vlgmr.msra.gmra.mrb[44].mxu1 %v6419_v45  ;;  %v8145_v45 = vld [vmem:[%s8475_s14 + $0xd08] sm:$0xff]  }
 0x1ca   : > { %7514 = vmatpush3.bf16.msra.mxu1 %v8110_v50  ;;  %5925 = vmatprep.mubr.bf16.mxu1 %v6424_v38  ;;  %v8150_v50 = vld [vmem:[%s8475_s14 + $0xd90] sm:$0xff]   ;;  %v8178_v38 = vld [vmem:[%s8475_s14 + $0xe88] sm:$0xff]  }
 0x1cb   : > { %7515 = vmatprep.subr.bf16.mxu1 %v8112_v52  ;;  %7494 = vmatpush3.bf16.msra.mxu0 %v8113_v53  ;;  %v8152_v52 = vld [vmem:[%s8475_s14 + $0xdd8] sm:$0xff]  }
 0x1cc   : > { %7495 = vmatprep.subr.bf16.mxu0 %v8115_v55 }
 0x1ce   : > { %7516 = vmatpush3.bf16.msra.mxu1 %v8114_v54  ;;  %v8153_v54 = vld [vmem:[%s8475_s14 + $0xd18] sm:$0xff]  }
 0x1cf   : > { %7517 = vmatprep.subr.bf16.mxu1 %v8116_v56  ;;  %7496 = vmatpush3.bf16.msra.mxu0 %v8117_v57  ;;  %v8154_v56 = vld [vmem:[%s8475_s14 + $0xd98] sm:$0xff]  }
 0x1d0   : > { %7497 = vmatprep.subr.bf16.mxu0 %v8119_v59 }
 0x1d2   : > { %7518 = vmatpush3.bf16.msra.mxu1 %v8118_v58  ;;  %v8155_v58 = vld [vmem:[%s8475_s14 + $0xd60] sm:$0xff]  }
 0x1d3   : > { %7519 = vmatprep.subr.bf16.mxu1 %v8120_v60  ;;  %7498 = vmatpush3.bf16.msra.mxu0 %v8121_v61  ;;  %v8156_v61 = vld [vmem:[%s8475_s14 + $0xde0] sm:$0xff]  }
 0x1d4   : > { %7499 = vmatprep.subr.bf16.mxu0 %v8123_v1 }
 0x1d6   : > { %7520 = vmatpush3.bf16.msra.mxu1 %v8122_v63 }
 0x1d7   : > { %7521 = vmatprep.subr.bf16.mxu1 %v8124_v3  ;;  %7500 = vmatpush3.bf16.msra.mxu0 %v8125_v6  ;;  %v8158_v3 = vld [vmem:[%s8475_s14 + $0xda0] sm:$0xff]   ;;  %v8159_v6 = vld [vmem:[%s8475_s14 + $0xd68] sm:$0xff]  }
 0x1d8   : > { %7501 = vmatprep.subr.bf16.mxu0 %v8127_v12 }
 0x1d9   : > { %v7199_v62 = vpop.f32.mrb[20].mxu0 }
 0x1da   : > { %v7221_v0 = vpop.f32.mrb[20].mxu1  ;;  %v7200_v2 = vpop.f32.mrb[21].mxu0  ;;  %7522 = vmatpush3.bf16.msra.mxu1 %v8126_v9  ;;  %v8160_v9 = vld [vmem:[%s8475_s14 + $0xde8] sm:$0xff]  }
 0x1db   : > { %v7201_v4 = vadd.f32 %v7200_v2, %v7199_v62  ;;  %v7222_v5 = vpop.f32.mrb[21].mxu1  ;;  %v7202_v8 = vpop.f32.mrb[22].mxu0  ;;  %7523 = vmatprep.subr.bf16.mxu1 %v8128_v15  ;;  %7502 = vmatpush3.bf16.msra.mxu0 %v8129_v18  ;;  %v8163_v15 = vld [vmem:[%s8475_s14 + $0xd70] sm:$0xff]  }
 0x1dc   : > { %v7223_v7 = vadd.f32 %v7222_v5, %v7221_v0  ;;  %v7224_v11 = vpop.f32.mrb[22].mxu1  ;;  %v7203_v13 = vpop.f32.mrb[23].mxu0  ;;  %7503 = vmatprep.subr.bf16.mxu0 %v8131_v22  ;;  %v8157_v0 = vld [vmem:[%s8475_s14 + $0xd20] sm:$0xff]   ;;  %v8166_v18 = vld [vmem:[%s8475_s14 + $0xdb0] sm:$0xff]   ;;  %v8170_v22 = vld [vmem:[%s8475_s14 + $0xdb8] sm:$0xff]  }
 0x1dd   : > { %v5313_v10 = vadd.f32 %v7201_v4, %v8919_v21  ;;  %v7204_v16 = vadd.f32 %v7203_v13, %v7202_v8  ;;  %v7225_v17 = vpop.f32.mrb[23].mxu1  ;;  %v8162_v13 = vld [vmem:[%s8475_s14 + $0xda8] sm:$0xff]  }
 0x1de   : > { %v7226_v19 = vadd.f32 %v7225_v17, %v7224_v11  ;;  %7524 = vmatpush3.bf16.msra.mxu1 %v8130_v20  ;;  %v8161_v11 = vld [vmem:[%s8475_s14 + $0xd28] sm:$0xff]   ;;  %v8165_v17 = vld [vmem:[%s8475_s14 + $0xd30] sm:$0xff]   ;;  %v8168_v20 = vld [vmem:[%s8475_s14 + $0xdf8] sm:$0xff]  }
 0x1df   : > { %v8962_v14 = vadd.f32 %v7223_v7, %v5313_v10  ;;  %v5316_v21 = vadd.f32 %v7204_v16, %v8926_v30  ;;  %7525 = vmatprep.subr.bf16.mxu1 %v8132_v24  ;;  %7504 = vmatpush3.bf16.msra.mxu0 %v8133_v25  ;;  %v8138_v30 = vld [vmem:[%s8475_s14 + $0xcb8] sm:$0xff]   ;;  %v8164_v16 = vld [vmem:[%s8475_s14 + $0xdf0] sm:$0xff]   ;;  %v446_v24 = vld [vmem:[%s8477_s15 + $0x1d0] sm:$0xff] }
 0x1e0   : > { %7505 = vmatprep.subr.bf16.mxu0 %v8135_v27  ;;  %v415_v27 = vld [vmem:[%s8477_s15 + $0xd8] sm:$0xff] }
 0x1e1   : > { %v8969_v23 = vadd.f32 %v7226_v19, %v5316_v21  ;;  %v8167_v19 = vld [vmem:[%s8475_s14 + $0xd78] sm:$0xff]  }
 0x1e2   : > { %7526 = vmatpush3.bf16.msra.mxu1 %v8134_v26  ;;  %v8169_v21 = vld [vmem:[%s8475_s14 + $0xd38] sm:$0xff]  }
 0x1e3   : > { %7527 = vmatprep.subr.bf16.mxu1 %v8136_v28  ;;  %7506 = vmatpush3.bf16.msra.mxu0 %v8137_v29  ;;  %v447_v28 = vld [vmem:[%s8477_s15 + $0x1d8] sm:$0xff] }
 0x1e4   : > { %7535 = vmatprep.subr.bf16.mxu0 %v8139_v39  ;;  %v6427_v29 = vcombine.low %v415_v27, %v447_v28  ;;  %v8179_v39 = vld [vmem:[%s8475_s14 + $0xe50] sm:$0xff]  }
 0x1e6   : > { %7528 = vmatpush3.bf16.msra.mxu1 %v8138_v30  ;;  %5885 = vmatmul.mubr.bf16.vlgmr.msra.gmra.mrb[48].mxu0 %v6421_v34  ;;  %v6428_v30 = vcombine.high %v415_v27, %v447_v28  ;;  %v8174_v34 = vld [vmem:[%s8475_s14 + $0xe80] sm:$0xff]   ;;  %v8207_v27 = vld [vmem:[%s8475_s14 + $0xf48] sm:$0xff]  }
 0x1e7   : > { %7557 = vmatprep.subr.bf16.mxu1 %v8140_v40  ;;  %7536 = vmatpush3.bf16.msra.mxu0 %v8141_v41  ;;  %v8180_v40 = vld [vmem:[%s8475_s14 + $0xed0] sm:$0xff]   ;;  %v8208_v28 = vld [vmem:[%s8475_s14 + $0xfc8] sm:$0xff]  }
 0x1e8   : > { %7537 = vmatprep.subr.bf16.mxu0 %v8143_v43  ;;  %v8181_v41 = vld [vmem:[%s8475_s14 + $0xe10] sm:$0xff]   ;;  %v8183_v43 = vld [vmem:[%s8475_s14 + $0xe58] sm:$0xff]  }
 0x1e9   : > { %5926 = vmatmul.mubr.bf16.vlgmr.msra.gmra.mrb[48].mxu1 %v6423_v37  ;;  %v8177_v37 = vld [vmem:[%s8475_s14 + $0xe08] sm:$0xff]  }
 0x1ea   : > { %7558 = vmatpush3.bf16.msra.mxu1 %v8142_v42  ;;  %6007 = vmatprep.mubr.bf16.mxu1 %v6428_v30  ;;  %v8182_v42 = vld [vmem:[%s8475_s14 + $0xe90] sm:$0xff]   ;;  %v8210_v30 = vld [vmem:[%s8475_s14 + $0xf88] sm:$0xff]  }
 0x1eb   : > { %7559 = vmatprep.subr.bf16.mxu1 %v8144_v44  ;;  %7538 = vmatpush3.bf16.msra.mxu0 %v8145_v45  ;;  %v8184_v44 = vld [vmem:[%s8475_s14 + $0xed8] sm:$0xff]  }
 0x1ec   : > { %7539 = vmatprep.subr.bf16.mxu0 %v8147_v47 }
 0x1ee   : > { %7560 = vmatpush3.bf16.msra.mxu1 %v8146_v46  ;;  %v8185_v46 = vld [vmem:[%s8475_s14 + $0xe18] sm:$0xff]  }
 0x1ef   : > { %7561 = vmatprep.subr.bf16.mxu1 %v8148_v48  ;;  %7540 = vmatpush3.bf16.msra.mxu0 %v8149_v49  ;;  %v8186_v48 = vld [vmem:[%s8475_s14 + $0xe98] sm:$0xff]  }
 0x1f0   : > { %7541 = vmatprep.subr.bf16.mxu0 %v8151_v51 }
 0x1f2   : > { %7562 = vmatpush3.bf16.msra.mxu1 %v8150_v50  ;;  %v8187_v50 = vld [vmem:[%s8475_s14 + $0xe60] sm:$0xff]  }
 0x1f3   : > { %7563 = vmatprep.subr.bf16.mxu1 %v8152_v52  ;;  %7542 = vmatpush3.bf16.msra.mxu0 %v8153_v54 }
 0x1f4   : > { %7543 = vmatprep.subr.bf16.mxu0 %v8155_v58 }
 0x1f6   : > { %7564 = vmatpush3.bf16.msra.mxu1 %v8154_v56  ;;  %v8189_v56 = vld [vmem:[%s8475_s14 + $0xe20] sm:$0xff]  }
 0x1f7   : > { %7565 = vmatprep.subr.bf16.mxu1 %v8156_v61  ;;  %7544 = vmatpush3.bf16.msra.mxu0 %v8157_v0 }
 0x1f8   : > { %7545 = vmatprep.subr.bf16.mxu0 %v8159_v6 }
 0x1f9   : > { %v7243_v53 = vpop.f32.mrb[24].mxu0 }
 0x1fa   : > { %v7265_v55 = vpop.f32.mrb[24].mxu1  ;;  %v7244_v57 = vpop.f32.mrb[25].mxu0  ;;  %7566 = vmatpush3.bf16.msra.mxu1 %v8158_v3  ;;  %v8193_v3 = vld [vmem:[%s8475_s14 + $0xe28] sm:$0xff]  }
 0x1fb   : > { %v7245_v59 = vadd.f32 %v7244_v57, %v7243_v53  ;;  %v7266_v60 = vpop.f32.mrb[25].mxu1  ;;  %v7246_v63 = vpop.f32.mrb[26].mxu0  ;;  %7567 = vmatprep.subr.bf16.mxu1 %v8160_v9  ;;  %7546 = vmatpush3.bf16.msra.mxu0 %v8161_v11  ;;  %v8188_v53 = vld [vmem:[%s8475_s14 + $0xee0] sm:$0xff]   ;;  %v8197_v9 = vld [vmem:[%s8475_s14 + $0xe30] sm:$0xff]   ;;  %v8199_v11 = vld [vmem:[%s8475_s14 + $0xe78] sm:$0xff]  }
 0x1fc   : > { %v7267_v62 = vadd.f32 %v7266_v60, %v7265_v55  ;;  %v7268_v2 = vpop.f32.mrb[26].mxu1  ;;  %v7247_v4 = vpop.f32.mrb[27].mxu0  ;;  %7547 = vmatprep.subr.bf16.mxu0 %v8163_v15  ;;  %v416_v15 = vld [vmem:[%s8477_s15 + $0xe0] sm:$0xff] }
 0x1fd   : > { %v5395_v1 = vadd.f32 %v7245_v59, %v8962_v14  ;;  %v7248_v7 = vadd.f32 %v7247_v4, %v7246_v63  ;;  %v7269_v8 = vpop.f32.mrb[27].mxu1  ;;  %v8190_v59 = vld [vmem:[%s8475_s14 + $0xea0] sm:$0xff]  }
 0x1fe   : > { %v7270_v10 = vadd.f32 %v7269_v8, %v7268_v2  ;;  %7568 = vmatpush3.bf16.msra.mxu1 %v8162_v13  ;;  %v8196_v8 = vld [vmem:[%s8475_s14 + $0xef0] sm:$0xff]   ;;  %v8201_v13 = vld [vmem:[%s8475_s14 + $0xe38] sm:$0xff]  }
 0x1ff   : > { %v9003_v5 = vadd.f32 %v7267_v62, %v5395_v1  ;;  %v5398_v12 = vadd.f32 %v7248_v7, %v8969_v23  ;;  %7569 = vmatprep.subr.bf16.mxu1 %v8164_v16  ;;  %7548 = vmatpush3.bf16.msra.mxu0 %v8165_v17  ;;  %v414_v23 = vld [vmem:[%s8477_s15 + $0xd0] sm:$0xff]  ;;  %v8191_v62 = vld [vmem:[%s8475_s14 + $0xe68] sm:$0xff]   ;;  %v8195_v7 = vld [vmem:[%s8475_s14 + $0xe70] sm:$0xff]  }
 0x200   : > { %7549 = vmatprep.subr.bf16.mxu0 %v8167_v19  ;;  %v6425_v25 = vcombine.low %v414_v23, %v446_v24  ;;  %v6426_v26 = vcombine.high %v414_v23, %v446_v24  ;;  %v8192_v1 = vld [vmem:[%s8475_s14 + $0xee8] sm:$0xff]   ;;  %v448_v16 = vld [vmem:[%s8477_s15 + $0x1e0] sm:$0xff]  ;;  %v417_v17 = vld [vmem:[%s8477_s15 + $0xe8] sm:$0xff] }
 0x201   : > { %v9010_v14 = vadd.f32 %v7270_v10, %v5398_v12  ;;  %v8198_v10 = vld [vmem:[%s8475_s14 + $0xeb0] sm:$0xff]   ;;  %v8200_v12 = vld [vmem:[%s8475_s14 + $0xef8] sm:$0xff]   ;;  %v6429_v19 = vcombine.low %v416_v15, %v448_v16  ;;  %v8203_v23 = vld [vmem:[%s8475_s14 + $0xf40] sm:$0xff]  }
 0x202   : > { %7570 = vmatpush3.bf16.msra.mxu1 %v8166_v18  ;;  %5966 = vmatprep.mubr.bf16.mxu0 %v6426_v26  ;;  %v449_v18 = vld [vmem:[%s8477_s15 + $0x1e8] sm:$0xff]  ;;  %v8204_v24 = vld [vmem:[%s8475_s14 + $0xfc0] sm:$0xff]  }
 0x203   : > { %7571 = vmatprep.subr.bf16.mxu1 %v8168_v20  ;;  %7550 = vmatpush3.bf16.msra.mxu0 %v8169_v21  ;;  %v6430_v20 = vcombine.high %v416_v15, %v448_v16  ;;  %v6431_v21 = vcombine.low %v417_v17, %v449_v18  ;;  %v8206_v26 = vld [vmem:[%s8475_s14 + $0xf80] sm:$0xff]  }
 0x204   : > { %7579 = vmatprep.subr.bf16.mxu0 %v8171_v31  ;;  %v8211_v31 = vld [vmem:[%s8475_s14 + $0xf50] sm:$0xff]  }
 0x206   : > { %7572 = vmatpush3.bf16.msra.mxu1 %v8170_v22  ;;  %5967 = vmatmul.mubr.bf16.vlgmr.msra.gmra.mrb[52].mxu0 %v6425_v25  ;;  %v6432_v22 = vcombine.high %v417_v17, %v449_v18  ;;  %v8205_v25 = vld [vmem:[%s8475_s14 + $0xf00] sm:$0xff]  }
 0x207   : > { %7601 = vmatprep.subr.bf16.mxu1 %v8172_v32  ;;  %7580 = vmatpush3.bf16.msra.mxu0 %v8173_v33  ;;  %v8212_v32 = vld [vmem:[%s8475_s14 + $0xfd0] sm:$0xff]  }
 0x208   : > { %7581 = vmatprep.subr.bf16.mxu0 %v8175_v35  ;;  %6048 = vmatprep.mubr.bf16.mxu0 %v6430_v20  ;;  %v8213_v33 = vld [vmem:[%s8475_s14 + $0xf10] sm:$0xff]   ;;  %v8215_v35 = vld [vmem:[%s8475_s14 + $0xf58] sm:$0xff]  }
 0x209   : > { %6008 = vmatmul.mubr.bf16.vlgmr.msra.gmra.mrb[52].mxu1 %v6427_v29  ;;  %v8209_v29 = vld [vmem:[%s8475_s14 + $0xf08] sm:$0xff]  }
 0x20a   : > { %7602 = vmatpush3.bf16.msra.mxu1 %v8174_v34  ;;  %6089 = vmatprep.mubr.bf16.mxu1 %v6432_v22  ;;  %v8214_v34 = vld [vmem:[%s8475_s14 + $0xf90] sm:$0xff]  }
 0x20b   : > { %7603 = vmatprep.subr.bf16.mxu1 %v8176_v36  ;;  %7582 = vmatpush3.bf16.msra.mxu0 %v8177_v37  ;;  %v8216_v36 = vld [vmem:[%s8475_s14 + $0xfd8] sm:$0xff]  }
 0x20c   : > { %7583 = vmatprep.subr.bf16.mxu0 %v8179_v39  ;;  %v8217_v37 = vld [vmem:[%s8475_s14 + $0xf18] sm:$0xff]  }
 0x20d   : > { %v8218_v39 = vld [vmem:[%s8475_s14 + $0xf98] sm:$0xff]  }
 0x20e   : > { %7604 = vmatpush3.bf16.msra.mxu1 %v8178_v38 }
 0x20f   : > { %7605 = vmatprep.subr.bf16.mxu1 %v8180_v40  ;;  %7584 = vmatpush3.bf16.msra.mxu0 %v8181_v41  ;;  %v8219_v41 = vld [vmem:[%s8475_s14 + $0xf60] sm:$0xff]  }
 0x210   : > { %7585 = vmatprep.subr.bf16.mxu0 %v8183_v43  ;;  %v8220_v43 = vld [vmem:[%s8475_s14 + $0xfe0] sm:$0xff]  }
 0x212   : > { %7606 = vmatpush3.bf16.msra.mxu1 %v8182_v42 }
 0x213   : > { %7607 = vmatprep.subr.bf16.mxu1 %v8184_v44  ;;  %7586 = vmatpush3.bf16.msra.mxu0 %v8185_v46  ;;  %v8221_v46 = vld [vmem:[%s8475_s14 + $0xf20] sm:$0xff]  }
 0x214   : > { %7587 = vmatprep.subr.bf16.mxu0 %v8187_v50 }
 0x216   : > { %7608 = vmatpush3.bf16.msra.mxu1 %v8186_v48 }
 0x217   : > { %7609 = vmatprep.subr.bf16.mxu1 %v8188_v53  ;;  %7588 = vmatpush3.bf16.msra.mxu0 %v8189_v56 }
 0x218   : > { %7589 = vmatprep.subr.bf16.mxu0 %v8191_v62  ;;  %v8227_v62 = vld [vmem:[%s8475_s14 + $0xf70] sm:$0xff]  }
 0x219   : > { %v7287_v45 = vpop.f32.mrb[28].mxu0 }
 0x21a   : > { %v7309_v47 = vpop.f32.mrb[28].mxu1  ;;  %v7288_v49 = vpop.f32.mrb[29].mxu0  ;;  %7610 = vmatpush3.bf16.msra.mxu1 %v8190_v59 }
 0x21b   : > { %v7289_v51 = vadd.f32 %v7288_v49, %v7287_v45  ;;  %v7310_v52 = vpop.f32.mrb[29].mxu1  ;;  %v7290_v55 = vpop.f32.mrb[30].mxu0  ;;  %7611 = vmatprep.subr.bf16.mxu1 %v8192_v1  ;;  %7590 = vmatpush3.bf16.msra.mxu0 %v8193_v3  ;;  %v8222_v49 = vld [vmem:[%s8475_s14 + $0xfa0] sm:$0xff]   ;;  %v8229_v1 = vld [vmem:[%s8475_s14 + $0xf30] sm:$0xff]   ;;  %v8231_v3 = vld [vmem:[%s8475_s14 + $0xf78] sm:$0xff]  }
 0x21c   : > { %v7311_v54 = vadd.f32 %v7310_v52, %v7309_v47  ;;  %v7312_v58 = vpop.f32.mrb[30].mxu1  ;;  %v7291_v60 = vpop.f32.mrb[31].mxu0  ;;  %7591 = vmatprep.subr.bf16.mxu0 %v8195_v7  ;;  %v8223_v52 = vld [vmem:[%s8475_s14 + $0xf68] sm:$0xff]   ;;  %v418_v7 = vld [vmem:[%s8477_s15 + $0xf0] sm:$0xff] }
 0x21d   : > { %v5477_v57 = vadd.f32 %v7289_v51, %v9003_v5  ;;  %v7292_v63 = vadd.f32 %v7291_v60, %v7290_v55  ;;  %v7313_v0 = vpop.f32.mrb[31].mxu1  ;;  %v8194_v5 = vld [vmem:[%s8475_s14 + $0xea8] sm:$0xff]  }
 0x21e   : > { %v7314_v2 = vadd.f32 %v7313_v0, %v7312_v58  ;;  %7612 = vmatpush3.bf16.msra.mxu1 %v8194_v5  ;;  %v8224_v55 = vld [vmem:[%s8475_s14 + $0xfe8] sm:$0xff]   ;;  %v8228_v0 = vld [vmem:[%s8475_s14 + $0xff0] sm:$0xff]   ;;  %v8233_v5 = vld [vmem:[%s8475_s14 + $0xf38] sm:$0xff]  }
 0x21f   : > { %v9045_v61 = vadd.f32 %v7311_v54, %v5477_v57  ;;  %v5480_v4 = vadd.f32 %v7292_v63, %v9010_v14  ;;  %7613 = vmatprep.subr.bf16.mxu1 %v8196_v8  ;;  %7592 = vmatpush3.bf16.msra.mxu0 %v8197_v9  ;;  %v8202_v14 = vld [vmem:[%s8475_s14 + $0xeb8] sm:$0xff]   ;;  %v8225_v58 = vld [vmem:[%s8475_s14 + $0xf28] sm:$0xff]   ;;  %v450_v8 = vld [vmem:[%s8477_s15 + $0x1f0] sm:$0xff] }
 0x220   : > { %7593 = vmatprep.subr.bf16.mxu0 %v8199_v11  ;;  %v8226_v60 = vld [vmem:[%s8475_s14 + $0xfa8] sm:$0xff]   ;;  %v6434_v11 = vcombine.high %v418_v7, %v450_v8 }
 0x221   : > { %v9052_v6 = vadd.f32 %v7314_v2, %v5480_v4  ;;  %v8230_v2 = vld [vmem:[%s8475_s14 + $0xfb0] sm:$0xff]   ;;  %v8232_v4 = vld [vmem:[%s8475_s14 + $0xff8] sm:$0xff]   ;;  %v419_v9 = vld [vmem:[%s8477_s15 + $0xf8] sm:$0xff] }
 0x222   : > { %7614 = vmatpush3.bf16.msra.mxu1 %v8198_v10  ;;  %v6433_v10 = vcombine.low %v418_v7, %v450_v8 }
 0x223   : > { %7615 = vmatprep.subr.bf16.mxu1 %v8200_v12  ;;  %7594 = vmatpush3.bf16.msra.mxu0 %v8201_v13  ;;  %v451_v12 = vld [vmem:[%s8477_s15 + $0x1f8] sm:$0xff] }
 0x224   : > { %7623 = vmatprep.subr.bf16.mxu0 %v8203_v23  ;;  %v6435_v13 = vcombine.low %v419_v9, %v451_v12 }
 0x226   : > { %7616 = vmatpush3.bf16.msra.mxu1 %v8202_v14  ;;  %6049 = vmatmul.mubr.bf16.vlgmr.msra.gmra.mrb[56].mxu0 %v6429_v19  ;;  %v6436_v14 = vcombine.high %v419_v9, %v451_v12 }
 0x227   : > { %7645 = vmatprep.subr.bf16.mxu1 %v8204_v24  ;;  %7624 = vmatpush3.bf16.msra.mxu0 %v8205_v25 }
 0x228   : > { %7625 = vmatprep.subr.bf16.mxu0 %v8207_v27  ;;  %6130 = vmatprep.mubr.bf16.mxu0 %v6434_v11 }
 0x229   : > { %6090 = vmatmul.mubr.bf16.vlgmr.msra.gmra.mrb[56].mxu1 %v6431_v21 }
 0x22a   : > { %7646 = vmatpush3.bf16.msra.mxu1 %v8206_v26  ;;  %6171 = vmatprep.mubr.bf16.mxu1 %v6436_v14 }
 0x22b   : > { %7647 = vmatprep.subr.bf16.mxu1 %v8208_v28  ;;  %7626 = vmatpush3.bf16.msra.mxu0 %v8209_v29 }
 0x22c   : > { %7627 = vmatprep.subr.bf16.mxu0 %v8211_v31 }
 0x22e   : > { %7648 = vmatpush3.bf16.msra.mxu1 %v8210_v30 }
 0x22f   : > { %7649 = vmatprep.subr.bf16.mxu1 %v8212_v32  ;;  %7628 = vmatpush3.bf16.msra.mxu0 %v8213_v33 }
 0x230   : > { %7629 = vmatprep.subr.bf16.mxu0 %v8215_v35 }
 0x232   : > { %7650 = vmatpush3.bf16.msra.mxu1 %v8214_v34 }
 0x233   : > { %7651 = vmatprep.subr.bf16.mxu1 %v8216_v36  ;;  %7630 = vmatpush3.bf16.msra.mxu0 %v8217_v37 }
 0x234   : > { %7631 = vmatprep.subr.bf16.mxu0 %v8219_v41 }
 0x236   : > { %7652 = vmatpush3.bf16.msra.mxu1 %v8218_v39 }
 0x237   : > { %7653 = vmatprep.subr.bf16.mxu1 %v8220_v43  ;;  %7632 = vmatpush3.bf16.msra.mxu0 %v8221_v46 }
 0x238   : > { %7633 = vmatprep.subr.bf16.mxu0 %v8223_v52 }
 0x239   : > { %v7331_v38 = vpop.f32.mrb[32].mxu0 }
 0x23a   : > { %v7332_v42 = vpop.f32.mrb[33].mxu0  ;;  %7654 = vmatpush3.bf16.msra.mxu1 %v8222_v49 }
 0x23b   : > { %v7333_v44 = vadd.f32 %v7332_v42, %v7331_v38  ;;  %v7334_v48 = vpop.f32.mrb[34].mxu0  ;;  %7655 = vmatprep.subr.bf16.mxu1 %v8224_v55  ;;  %7634 = vmatpush3.bf16.msra.mxu0 %v8225_v58 }
 0x23c   : > { %v7353_v40 = vpop.f32.mrb[32].mxu1  ;;  %v7335_v53 = vpop.f32.mrb[35].mxu0  ;;  %7635 = vmatprep.subr.bf16.mxu0 %v8227_v62 }
 0x23d   : > { %v7354_v45 = vpop.f32.mrb[33].mxu1  ;;  %v5559_v50 = vadd.f32 %v7333_v44, %v9045_v61  ;;  %v7336_v56 = vadd.f32 %v7335_v53, %v7334_v48 }
 0x23e   : > { %v7355_v47 = vadd.f32 %v7354_v45, %v7353_v40  ;;  %v7356_v51 = vpop.f32.mrb[34].mxu1  ;;  %7656 = vmatpush3.bf16.msra.mxu1 %v8226_v60 }
 0x23f   : > { %v7357_v57 = vpop.f32.mrb[35].mxu1  ;;  %v5562_v61 = vadd.f32 %v7336_v56, %v9052_v6  ;;  %7657 = vmatprep.subr.bf16.mxu1 %v8228_v0  ;;  %7636 = vmatpush3.bf16.msra.mxu0 %v8229_v1  ;;  %v8234_v6 = vld [vmem:[%s8475_s14 + $0xfb8] sm:$0xff]  }
 0x240   : > { %v5600_v54 = vadd.f32 %v7355_v47, %v5559_v50  ;;  %v7358_v59 = vadd.f32 %v7357_v57, %v7356_v51  ;;  %7637 = vmatprep.subr.bf16.mxu0 %v8231_v3 }
 0x242   : > { %v5603_v63 = vadd.f32 %v7358_v59, %v5562_v61  ;;  %7658 = vmatpush3.bf16.msra.mxu1 %v8230_v2 }
 0x243   : > { %7659 = vmatprep.subr.bf16.mxu1 %v8232_v4  ;;  %7638 = vmatpush3.bf16.msra.mxu0 %v8233_v5 }
 0x246   : > { %7660 = vmatpush3.bf16.msra.mxu1 %v8234_v6  ;;  %6131 = vmatmul.mubr.bf16.vlgmr.msra.gmra.mrb[60].mxu0 %v6433_v10 }
 0x249   : > { %6172 = vmatmul.mubr.bf16.vlgmr.msra.gmra.mrb[60].mxu1 %v6435_v13 }
 0x259   : > { %v7375_v15 = vpop.f32.mrb[36].mxu0 }
 0x25a   : > { %v7376_v17 = vpop.f32.mrb[37].mxu0 }
 0x25b   : > { %v7377_v18 = vadd.f32 %v7376_v17, %v7375_v15  ;;  %v7378_v20 = vpop.f32.mrb[38].mxu0 }
 0x25c   : > { %v7397_v16 = vpop.f32.mrb[36].mxu1  ;;  %v7379_v23 = vpop.f32.mrb[39].mxu0 }
 0x25d   : > { %v7398_v19 = vpop.f32.mrb[37].mxu1  ;;  %v5641_v24 = vadd.f32 %v7377_v18, %v5600_v54  ;;  %v7380_v25 = vadd.f32 %v7379_v23, %v7378_v20 }
 0x25e   : > { %v7399_v21 = vadd.f32 %v7398_v19, %v7397_v16  ;;  %v7400_v22 = vpop.f32.mrb[38].mxu1 }
 0x25f   : > { %v7401_v26 = vpop.f32.mrb[39].mxu1  ;;  %v5644_v29 = vadd.f32 %v7380_v25, %v5603_v63 }
 0x260   : > { %v7402_v27 = vadd.f32 %v7401_v26, %v7400_v22  ;;  %v5682_v28 = vadd.f32 %v7399_v21, %v5641_v24 }
 0x262   : > { %v5685_v30 = vadd.f32 %v7402_v27, %v5644_v29 }
 0x279   : > { %v7419_v31 = vpop.f32.mrb[40].mxu0 }
 0x27a   : > { %v7420_v33 = vpop.f32.mrb[41].mxu0 }
 0x27b   : > { %v7421_v34 = vadd.f32 %v7420_v33, %v7419_v31  ;;  %v7422_v36 = vpop.f32.mrb[42].mxu0 }
 0x27c   : > { %v7441_v32 = vpop.f32.mrb[40].mxu1  ;;  %v7423_v39 = vpop.f32.mrb[43].mxu0 }
 0x27d   : > { %v7442_v35 = vpop.f32.mrb[41].mxu1  ;;  %v5723_v40 = vadd.f32 %v7421_v34, %v5682_v28  ;;  %v7424_v41 = vadd.f32 %v7423_v39, %v7422_v36 }
 0x27e   : > { %v7443_v37 = vadd.f32 %v7442_v35, %v7441_v32  ;;  %v7444_v38 = vpop.f32.mrb[42].mxu1 }
 0x27f   : > { %v7445_v42 = vpop.f32.mrb[43].mxu1  ;;  %v5726_v45 = vadd.f32 %v7424_v41, %v5685_v30 }
 0x280   : > { %v7446_v43 = vadd.f32 %v7445_v42, %v7444_v38  ;;  %v5764_v44 = vadd.f32 %v7443_v37, %v5723_v40 }
 0x282   : > { %v5767_v46 = vadd.f32 %v7446_v43, %v5726_v45 }
 0x299   : > { %v7463_v47 = vpop.f32.mrb[44].mxu0 }
 0x29a   : > { %v7464_v49 = vpop.f32.mrb[45].mxu0 }
 0x29b   : > { %v7465_v51 = vadd.f32 %v7464_v49, %v7463_v47  ;;  %v7466_v53 = vpop.f32.mrb[46].mxu0 }
 0x29c   : > { %v7485_v48 = vpop.f32.mrb[44].mxu1  ;;  %v7467_v55 = vpop.f32.mrb[47].mxu0 }
 0x29d   : > { %v7486_v50 = vpop.f32.mrb[45].mxu1  ;;  %v5805_v57 = vadd.f32 %v7465_v51, %v5764_v44  ;;  %v7468_v58 = vadd.f32 %v7467_v55, %v7466_v53 }
 0x29e   : > { %v7487_v52 = vadd.f32 %v7486_v50, %v7485_v48  ;;  %v7488_v54 = vpop.f32.mrb[46].mxu1 }
 0x29f   : > { %v7489_v56 = vpop.f32.mrb[47].mxu1  ;;  %v5808_v61 = vadd.f32 %v7468_v58, %v5767_v46 }
 0x2a0   : > { %v7490_v59 = vadd.f32 %v7489_v56, %v7488_v54  ;;  %v5846_v60 = vadd.f32 %v7487_v52, %v5805_v57 }
 0x2a2   : > { %v5849_v62 = vadd.f32 %v7490_v59, %v5808_v61  ;;  %v386_v59 = vld [vmem:[#allocation2] sm:$0xff] }
 0x2b9   : > { %v7507_v63 = vpop.f32.mrb[48].mxu0 }
 0x2ba   : > { %v7508_v1 = vpop.f32.mrb[49].mxu0 }
 0x2bb   : > { %v7509_v2 = vadd.f32 %v7508_v1, %v7507_v63  ;;  %v7510_v4 = vpop.f32.mrb[50].mxu0  ;;  %v387_v63 = vld [vmem:[#allocation2 + $0x8] sm:$0xff] }
 0x2bc   : > { %v7529_v0 = vpop.f32.mrb[48].mxu1  ;;  %v7511_v7 = vpop.f32.mrb[51].mxu0 }
 0x2bd   : > { %v7530_v3 = vpop.f32.mrb[49].mxu1  ;;  %v5887_v8 = vadd.f32 %v7509_v2, %v5846_v60  ;;  %v7512_v9 = vadd.f32 %v7511_v7, %v7510_v4  ;;  %v8268_v4 = vmov (!%p6949_p10), 0.0   ;;  %v8238_v7 = vld [vmem:[%s9154_s3 + $0x18] sm:$0xff] (!%p6949_p10)  }
 0x2be   : > { %v7531_v5 = vadd.f32 %v7530_v3, %v7529_v0  ;;  %v7532_v6 = vpop.f32.mrb[50].mxu1  ;;  %v8235_v3 = vld [vmem:[%s9154_s3] sm:$0xff] (!%p6949_p10)   ;;  %7676 = vmatprep.subr.bf16.mxu0 (!%p6949_p10), %v8268_v4  ;;  %7692 = vmatprep.mubr.msk.bf16.mxu0 (!%p6949_p10), %vm8269_vm0, %v8268_v4 }
 0x2bf   : > { %v7533_v10 = vpop.f32.mrb[51].mxu1  ;;  %v5890_v13 = vadd.f32 %v7512_v9, %v5849_v62  ;;  %7677 = vmatpush3.bf16.msra.mxu0 (!%p6949_p10), %v8235_v3  ;;  %v8240_v9 = vld [vmem:[%s9154_s3 + $0x28] sm:$0xff] (!%p6949_p10)  }
 0x2c0   : > { %v7534_v11 = vadd.f32 %v7533_v10, %v7532_v6  ;;  %v5928_v12 = vadd.f32 %v7531_v5, %v5887_v8  ;;  %v8236_v5 = vld [vmem:[%s9154_s3 + $0x8] sm:$0xff] (!%p6949_p10)   ;;  %7678 = vmatprep.subr.bf16.mxu0 (!%p6949_p10), %v8268_v4  ;;  %v8237_v6 = vld [vmem:[%s9154_s3 + $0x10] sm:$0xff] (!%p6949_p10)   ;;  %v8239_v8 = vld [vmem:[%s9154_s3 + $0x20] sm:$0xff] (!%p6949_p10)  }
 0x2c2   : > { %v5931_v14 = vadd.f32 %v7534_v11, %v5890_v13 }
 0x2c3   : > { %7679 = vmatpush3.bf16.msra.mxu0 (!%p6949_p10), %v8236_v5 }
 0x2c4   : > { %7680 = vmatprep.subr.bf16.mxu0 (!%p6949_p10), %v8268_v4 }
 0x2c7   : > { %7681 = vmatpush3.bf16.msra.mxu0 (!%p6949_p10), %v8237_v6 }
 0x2c8   : > { %7682 = vmatprep.subr.bf16.mxu0 (!%p6949_p10), %v8268_v4 }
 0x2cb   : > { %7683 = vmatpush3.bf16.msra.mxu0 (!%p6949_p10), %v8238_v7 }
 0x2cc   : > { %7684 = vmatprep.subr.bf16.mxu0 (!%p6949_p10), %v8268_v4 }
 0x2cf   : > { %7685 = vmatpush3.bf16.msra.mxu0 (!%p6949_p10), %v8239_v8 }
 0x2d0   : > { %7686 = vmatprep.subr.bf16.mxu0 (!%p6949_p10), %v8268_v4 }
 0x2d3   : > { %7687 = vmatpush3.bf16.msra.mxu0 (!%p6949_p10), %v8240_v9 }
 0x2d4   : > { %7688 = vmatprep.subr.bf16.mxu0 (!%p6949_p10), %v8268_v4 }
 0x2d9   : > { %v7551_v15 = vpop.f32.mrb[52].mxu0 }
 0x2da   : > { %v7552_v17 = vpop.f32.mrb[53].mxu0 }
 0x2db   : > { %v7553_v18 = vadd.f32 %v7552_v17, %v7551_v15  ;;  %v7554_v20 = vpop.f32.mrb[54].mxu0  ;;  %v8241_v15 = vld [vmem:[%s9154_s3 + $0x30] sm:$0xff] (!%p6949_p10)  }
 0x2dc   : > { %v7573_v16 = vpop.f32.mrb[52].mxu1  ;;  %v7555_v23 = vpop.f32.mrb[55].mxu0  ;;  %7689 = vmatpush3.bf16.msra.mxu0 (!%p6949_p10), %v8241_v15 }
 0x2dd   : > { %v7574_v19 = vpop.f32.mrb[53].mxu1  ;;  %v5969_v24 = vadd.f32 %v7553_v18, %v5928_v12  ;;  %v7556_v25 = vadd.f32 %v7555_v23, %v7554_v20  ;;  %v6950_v12 = vld [vmem:[%s9153_s2] ss:$0 sm:$0xff] (!%p6949_p10)  ;;  %v8242_v18 = vld [vmem:[%s9154_s3 + $0x38] sm:$0xff] (!%p6949_p10)   ;;  %7690 = vmatprep.subr.bf16.mxu0 (!%p6949_p10), %v8268_v4 }
 0x2de   : > { %v7575_v21 = vadd.f32 %v7574_v19, %v7573_v16  ;;  %v7576_v22 = vpop.f32.mrb[54].mxu1  ;;  %v6951_v20 = vld [vmem:[%s9155_s4] ss:$0 sm:$0xff] (!%p6949_p10) }
 0x2df   : > { %v7577_v26 = vpop.f32.mrb[55].mxu1  ;;  %v5972_v29 = vadd.f32 %v7556_v25, %v5931_v14 }
 0x2e0   : > { %v7578_v27 = vadd.f32 %v7577_v26, %v7576_v22  ;;  %v6010_v28 = vadd.f32 %v7575_v21, %v5969_v24  ;;  %7691 = vmatpush3.bf16.msra.mxu0 (!%p6949_p10), %v8242_v18 }
 0x2e2   : > { %v6013_v30 = vadd.f32 %v7578_v27, %v5972_v29 }
 0x2f9   : > { %v7595_v31 = vpop.f32.mrb[56].mxu0 }
 0x2fa   : > { %v7596_v33 = vpop.f32.mrb[57].mxu0 }
 0x2fb   : > { %v7597_v35 = vadd.f32 %v7596_v33, %v7595_v31  ;;  %v7598_v37 = vpop.f32.mrb[58].mxu0 }
 0x2fc   : > { %v7617_v32 = vpop.f32.mrb[56].mxu1  ;;  %v7599_v39 = vpop.f32.mrb[59].mxu0 }
 0x2fd   : > { %v7618_v34 = vpop.f32.mrb[57].mxu1  ;;  %v6051_v41 = vadd.f32 %v7597_v35, %v6010_v28  ;;  %v7600_v42 = vadd.f32 %v7599_v39, %v7598_v37 }
 0x2fe   : > { %v7619_v36 = vadd.f32 %v7618_v34, %v7617_v32  ;;  %v7620_v38 = vpop.f32.mrb[58].mxu1 }
 0x2ff   : > { %v7621_v40 = vpop.f32.mrb[59].mxu1  ;;  %v6054_v45 = vadd.f32 %v7600_v42, %v6013_v30 }
 0x300   : > { %v7622_v43 = vadd.f32 %v7621_v40, %v7620_v38  ;;  %v6092_v44 = vadd.f32 %v7619_v36, %v6051_v41 }
 0x302   : > { %v6095_v46 = vadd.f32 %v7622_v43, %v6054_v45 }
 0x319   : > { %v7639_v47 = vpop.f32.mrb[60].mxu0 }
 0x31a   : > { %v7640_v49 = vpop.f32.mrb[61].mxu0 }
 0x31b   : > { %v7641_v50 = vadd.f32 %v7640_v49, %v7639_v47  ;;  %v7642_v52 = vpop.f32.mrb[62].mxu0 }
 0x31c   : > { %v7661_v48 = vpop.f32.mrb[60].mxu1  ;;  %v7643_v55 = vpop.f32.mrb[63].mxu0 }
 0x31d   : > { %v7662_v51 = vpop.f32.mrb[61].mxu1  ;;  %v6133_v56 = vadd.f32 %v7641_v50, %v6092_v44  ;;  %v7644_v57 = vadd.f32 %v7643_v55, %v7642_v52 }
 0x31e   : > { %v7663_v53 = vadd.f32 %v7662_v51, %v7661_v48  ;;  %v7664_v54 = vpop.f32.mrb[62].mxu1 }
 0x31f   : > { %v7665_v58 = vpop.f32.mrb[63].mxu1  ;;  %v6136_v62 = vadd.f32 %v7644_v57, %v6095_v46 }
 0x320   : > { %v7666_v60 = vadd.f32 %v7665_v58, %v7664_v54  ;;  %v6174_v61 = vadd.f32 %v7663_v53, %v6133_v56  ;;  %6187 = sbr.rel (%p6949_p10) target bundleno = 1037 (0x40d), region = 71 }
 0x322   : > { %v6180_v0 = vadd.f32 %v6174_v61, %v386_v59  ;;  %v6177_v1 = vadd.f32 %v7666_v60, %v6136_v62 }
 0x324   : > { %6182 = vst [vmem:[#allocation2] sm:$0xff] %v6180_v0  ;;  %v6181_v2 = vadd.f32 %v6177_v1, %v387_v63 }
 0x326   : > { %6183 = vst [vmem:[#allocation2 + $0x8] sm:$0xff] %v6181_v2 }
 0x32b   : > { %v6188_v10 = vld [vmem:[#allocation2] sm:$0xff] }
 0x32c   : > { %v6197_v13 = vadd.f32 %v6950_v12, %v6188_v10 }
 0x32d   : > { %v6189_v11 = vld [vmem:[#allocation2 + $0x8] sm:$0xff] }
 0x32e   : > { %v6198_v14 = vadd.f32 %v6950_v12, %v6189_v11  ;;  %v6199_v16 = vmax.f32 %v6197_v13, 0.0 }
 0x330   : > { %v6200_v17 = vmax.f32 %v6198_v14, 0.0 }
 0x332   : > { %v6201_v19 = vpack.c.bf16 %v6200_v17, %v6199_v16 }
 0x334   : > { %7693 = vmatmul.mubr.bf16.vlgmr.msra.gmra.mrb[0].mxu0 %v6201_v19 }
 0x407   : > { %v6307_v21 = vpop.f32.mrb[0].mxu0 }
 0x408   : > { %v6308_v22 = vadd.f32 %v6951_v20, %v6307_v21  ;;  %v7694_v23 = vpop.f32.mrb[1].mxu0 }
 0x409   : > { %v6310_v24 = vpop.f32.mrb[2].mxu0 }
 0x40a   : > { %6314 = vst [vmem:[%s9156_s5] sm:$0xff] %v6308_v22  ;;  %v6311_v25 = vadd.f32 %v6951_v20, %v6310_v24  ;;  %v7695_v26 = vpop.f32.mrb[3].mxu0 }
 0x40c   : > { %6315 = vst [vmem:[%s9156_s5 + $0x8] sm:$0xff] %v6311_v25 }
 0x40d PF: > { %p12_p11 = scmp.ge.s32.totalorder %s8319_s22, 4   ;;  %s9157_s18 = smov %s8261_s19 }
 0x40e   : > { %s9158_s19 = smov %s8328_s25  ;;  %s9159_s20 = smov %s8319_s22 }
 0x40f   :  { %14 = sbr.rel (!%p12_p11) target bundleno = 2 (0x2), region = 105 }

</bundles_post_ra>
